<compile_context>
chip_gen: v7x
topology: tpu7x:2x2x1
jax: 0.10.0
libtpu: 0.0.40
codegen_flags: <defaults>
</compile_context>

<pallas_src>
import jax
import jax.numpy as jnp
from jax.experimental import pallas as pl
from jax.experimental.pallas import tpu as pltpu

SUB_BF16 = 16            # bf16 sublane packing (rows per vreg)
ENC_DIM = 512            # stub encoder output width
# Lane-padded layer widths of the 512->256->128->32->8->1 perceptron.
PDIMS = (512, 256, 128, 128, 8, 8)
OUT_PAD = PDIMS[-1]      # padded output width (true output width is 1)


def _round_up(x, m):
    return ((x + m - 1) // m) * m


def _pad2d(a, rows, cols):
    return jnp.pad(a, ((0, rows - a.shape[0]), (0, cols - a.shape[1])))


# ----------------------------------------------------------------------------
# Fused kernel: [stub encoder 3072->512] -> 512->256->128->32->8->1 MLP
# ----------------------------------------------------------------------------
def gender_classifier_kernel(x_ref, we_ref,
                             w1, b1, w2, b2, w3, b3, w4, b4, w5, b5,
                             o_ref):
    # TODO(synk): pretrained_model.encode_image has no defined architecture in
    # the module; it is stubbed as a single linear projection fused here.
    x = x_ref[...].astype(jnp.bfloat16)          # no-op if pre-cast upstream
    h = jnp.dot(x, we_ref[...],
                preferred_element_type=jnp.float32)              # (TB, 512) f32

    def linear(h_f32, w_ref, b_ref, relu):
        # bf16 MXU matmul, fp32 accumulate; bias/ReLU in the fp32 accumulator.
        y = jnp.dot(h_f32.astype(jnp.bfloat16), w_ref[...],
                    preferred_element_type=jnp.float32) + b_ref[...]
        return jnp.maximum(y, 0.0) if relu else y

    h = linear(h, w1, b1, True)          # 512 -> 256
    h = linear(h, w2, b2, True)          # 256 -> 128
    h = linear(h, w3, b3, True)          # 128 -> 32  (padded to 128 lanes)
    h = linear(h, w4, b4, True)          # 32  -> 8   (cols 0..7 real)
    logits = linear(h, w5, b5, False)    # 8   -> 1   (col 0 real, padded to 8)
    # exp on the EUP; approx reciprocal also routes to the EUP (free slot).
    o_ref[...] = pl.reciprocal(1.0 + jnp.exp(-logits), approx=True)


# ----------------------------------------------------------------------------
# One-time weight packing (outside the per-call path): pad + bf16 cast.
# ----------------------------------------------------------------------------
def pack_params(w_enc, params):
    """w_enc: (K, 512) f32; params: [(W(in,out), b(1,out))]*5 -> packed list."""
    packed = [jnp.asarray(w_enc, jnp.float32).astype(jnp.bfloat16)]
    for i, (w, b) in enumerate(params):
        w = jnp.asarray(w, jnp.float32)
        b = jnp.asarray(b, jnp.float32).reshape(1, -1)
        packed.append(_pad2d(w, PDIMS[i], PDIMS[i + 1]).astype(jnp.bfloat16))
        packed.append(_pad2d(b, 1, PDIMS[i + 1]))          # biases stay f32
    return packed


# ----------------------------------------------------------------------------
# Wrapper: batch tiling only (weights are pre-packed, image pre-cast upstream).
# ----------------------------------------------------------------------------
def gender_classifier_forward(image, packed_params, *, max_tile=1024):
    """image: (B, C, H, W), bf16 preferred (f32 also works, cast in-kernel)."""
    B = image.shape[0]
    x = image.reshape(B, -1)                 # nn.Flatten: free metadata reshape
    K = x.shape[1]

    # Batch tile: large to amortize per-step cost, but capped so the grid has
    # >=2 steps when possible (v7x megacore sharding via "parallel").
    TB = min(max_tile, _round_up(pl.cdiv(B, 2), SUB_BF16))
    grid = (pl.cdiv(B, TB),)                 # ragged last tile masked by Pallas

    def run(weight_mode):
        def resident(shape):                 # weights: loaded once, resident
            return pl.BlockSpec(shape, lambda i: (0, 0),
                                pipeline_mode=weight_mode)

        in_specs = [pl.BlockSpec((TB, K), lambda i: (i, 0))]   # batch-tiled
        in_specs += [resident(a.shape) for a in packed_params]

        return pl.pallas_call(
            gender_classifier_kernel,
            out_shape=jax.ShapeDtypeStruct((B, OUT_PAD), jnp.float32),
            grid=grid,
            in_specs=in_specs,
            out_specs=pl.BlockSpec((TB, OUT_PAD), lambda i: (i, 0)),
            compiler_params=pltpu.CompilerParams(
                dimension_semantics=("parallel",),       # megacore on v7x
                vmem_limit_bytes=48 * 1024 * 1024),      # v5e headroom
        )(x, *packed_params)

    try:
        # Grid-invariant weights: single VMEM buffer (saves ~3.4 MiB).
        out = run(pl.Buffered(1))
    except Exception:  # pragma: no cover - fall back to default buffering
        out = run(None)
    return out[:, :1]


# ----------------------------------------------------------------------------
# Parameter init (PyTorch-default-style uniform) and pure-JAX f32 reference.
# ----------------------------------------------------------------------------
def init_linear(key, fan_in, fan_out):
    kw, kb = jax.random.split(key)
    bound = 1.0 / jnp.sqrt(float(fan_in))
    w = jax.random.uniform(kw, (fan_in, fan_out), jnp.float32, -bound, bound)
    b = jax.random.uniform(kb, (1, fan_out), jnp.float32, -bound, bound)
    return w, b


def reference_forward(image, w_enc, params):
    h = image.reshape(image.shape[0], -1) @ w_enc       # stub encoder + .float()
    for i, (w, b) in enumerate(params):
        h = h @ w + b
        if i < len(params) - 1:
            h = jnp.maximum(h, 0.0)
    return 1.0 / (1.0 + jnp.exp(-h))


if __name__ == "__main__":
    key = jax.random.PRNGKey(0)
    k_img, k_enc, k1, k2, k3, k4, k5 = jax.random.split(key, 7)

    # Small NCHW image consistent with an image-encoder front end.
    B, C, H, W = 2, 3, 32, 32
    image = jax.random.normal(k_img, (B, C, H, W), jnp.float32)

    # Stub encoder projection: (C*H*W, 512)
    w_enc = jax.random.normal(k_enc, (C * H * W, 512), jnp.float32) * 0.02

    dims = [512, 256, 128, 32, 8, 1]
    keys = [k1, k2, k3, k4, k5]
    params = [init_linear(keys[i], dims[i], dims[i + 1]) for i in range(5)]

    # One-time preprocessing, hoisted out of the per-call path (perf review):
    packed = pack_params(w_enc, params)                 # padded bf16 weights
    image_bf16 = image.astype(jnp.bfloat16)             # cast once upstream

    out = jax.block_until_ready(gender_classifier_forward(image_bf16, packed))
    ref = reference_forward(image, w_enc, params)

    assert out.shape == (B, 1)
    assert bool(jnp.all((out >= 0.0) & (out <= 1.0)))
    err = float(jnp.max(jnp.abs(out - ref)))
    assert err < 0.05, err
    print("KERNEL_OK")
</pallas_src>

<mosaic_0001>
module attributes {stable_mosaic.version = 11 : i64} {
  func.func @gender_classifier_kernel(%arg0: i32, %arg1: memref<16x3072xbf16, #tpu.memory_space<vmem>>, %arg2: memref<3072x512xbf16, #tpu.memory_space<vmem>>, %arg3: memref<512x256xbf16, #tpu.memory_space<vmem>>, %arg4: memref<1x256xf32, #tpu.memory_space<vmem>>, %arg5: memref<256x128xbf16, #tpu.memory_space<vmem>>, %arg6: memref<1x128xf32, #tpu.memory_space<vmem>>, %arg7: memref<128x128xbf16, #tpu.memory_space<vmem>>, %arg8: memref<1x128xf32, #tpu.memory_space<vmem>>, %arg9: memref<128x8xbf16, #tpu.memory_space<vmem>>, %arg10: memref<1x8xf32, #tpu.memory_space<vmem>>, %arg11: memref<8x8xbf16, #tpu.memory_space<vmem>>, %arg12: memref<1x8xf32, #tpu.memory_space<vmem>>, %arg13: memref<16x8xf32, #tpu.memory_space<vmem>>) attributes {dimension_semantics = [#tpu.dimension_semantics<parallel>], iteration_bounds = array<i64: 1>, scalar_prefetch = 0 : i64, scratch_operands = 0 : i64, tpu.core_type = #tpu.core_type<tc>, window_params = [{transform_indices = @transform_0, window_bounds = array<i64: 16, 3072>}, {pipeline_mode = #tpu.pipeline_mode<synchronous>, transform_indices = @transform_1, window_bounds = array<i64: 3072, 512>}, {pipeline_mode = #tpu.pipeline_mode<synchronous>, transform_indices = @transform_2, window_bounds = array<i64: 512, 256>}, {pipeline_mode = #tpu.pipeline_mode<synchronous>, transform_indices = @transform_3, window_bounds = array<i64: 1, 256>}, {pipeline_mode = #tpu.pipeline_mode<synchronous>, transform_indices = @transform_4, window_bounds = array<i64: 256, 128>}, {pipeline_mode = #tpu.pipeline_mode<synchronous>, transform_indices = @transform_5, window_bounds = array<i64: 1, 128>}, {pipeline_mode = #tpu.pipeline_mode<synchronous>, transform_indices = @transform_6, window_bounds = array<i64: 128, 128>}, {pipeline_mode = #tpu.pipeline_mode<synchronous>, transform_indices = @transform_7, window_bounds = array<i64: 1, 128>}, {pipeline_mode = #tpu.pipeline_mode<synchronous>, transform_indices = @transform_8, window_bounds = array<i64: 128, 8>}, {pipeline_mode = #tpu.pipeline_mode<synchronous>, transform_indices = @transform_9, window_bounds = array<i64: 1, 8>}, {pipeline_mode = #tpu.pipeline_mode<synchronous>, transform_indices = @transform_10, window_bounds = array<i64: 8, 8>}, {pipeline_mode = #tpu.pipeline_mode<synchronous>, transform_indices = @transform_11, window_bounds = array<i64: 1, 8>}, {transform_indices = @transform_12, window_bounds = array<i64: 16, 8>}]} {
    %c0 = arith.constant 0 : index
    %c0_0 = arith.constant 0 : index
    %0 = vector.load %arg1[%c0, %c0_0] : memref<16x3072xbf16, #tpu.memory_space<vmem>>, vector<16x3072xbf16>
    %c0_1 = arith.constant 0 : index
    %c0_2 = arith.constant 0 : index
    %1 = vector.load %arg2[%c0_1, %c0_2] : memref<3072x512xbf16, #tpu.memory_space<vmem>>, vector<3072x512xbf16>
    %cst = arith.constant dense<0.000000e+00> : vector<16x512xf32>
    %2 = tpu.matmul %0, %1, %cst {dimension_numbers = #tpu.dot_dimension_numbers<[1], [0], [0], [1], [0, 0, 1, 1], [], []>} : vector<16x3072xbf16>, vector<3072x512xbf16>, vector<16x512xf32> -> vector<16x512xf32>
    %3 = arith.truncf %2 : vector<16x512xf32> to vector<16x512xbf16>
    %c0_3 = arith.constant 0 : index
    %c0_4 = arith.constant 0 : index
    %4 = vector.load %arg3[%c0_3, %c0_4] : memref<512x256xbf16, #tpu.memory_space<vmem>>, vector<512x256xbf16>
    %cst_5 = arith.constant dense<0.000000e+00> : vector<16x256xf32>
    %5 = tpu.matmul %3, %4, %cst_5 {dimension_numbers = #tpu.dot_dimension_numbers<[1], [0], [0], [1], [0, 0, 1, 1], [], []>} : vector<16x512xbf16>, vector<512x256xbf16>, vector<16x256xf32> -> vector<16x256xf32>
    %c0_6 = arith.constant 0 : index
    %c0_7 = arith.constant 0 : index
    %6 = vector.load %arg4[%c0_6, %c0_7] : memref<1x256xf32, #tpu.memory_space<vmem>>, vector<1x256xf32>
    %7 = vector.broadcast %6 : vector<1x256xf32> to vector<16x256xf32>
    %8 = arith.addf %5, %7 : vector<16x256xf32>
    %cst_8 = arith.constant 0.000000e+00 : f32
    %9 = vector.broadcast %cst_8 : f32 to vector<16x256xf32>
    %10 = arith.maximumf %8, %9 : vector<16x256xf32>
    %11 = arith.truncf %10 : vector<16x256xf32> to vector<16x256xbf16>
    %c0_9 = arith.constant 0 : index
    %c0_10 = arith.constant 0 : index
    %12 = vector.load %arg5[%c0_9, %c0_10] : memref<256x128xbf16, #tpu.memory_space<vmem>>, vector<256x128xbf16>
    %cst_11 = arith.constant dense<0.000000e+00> : vector<16x128xf32>
    %13 = tpu.matmul %11, %12, %cst_11 {dimension_numbers = #tpu.dot_dimension_numbers<[1], [0], [0], [1], [0, 0, 1, 1], [], []>} : vector<16x256xbf16>, vector<256x128xbf16>, vector<16x128xf32> -> vector<16x128xf32>
    %c0_12 = arith.constant 0 : index
    %c0_13 = arith.constant 0 : index
    %14 = vector.load %arg6[%c0_12, %c0_13] : memref<1x128xf32, #tpu.memory_space<vmem>>, vector<1x128xf32>
    %15 = vector.broadcast %14 : vector<1x128xf32> to vector<16x128xf32>
    %16 = arith.addf %13, %15 : vector<16x128xf32>
    %cst_14 = arith.constant 0.000000e+00 : f32
    %17 = vector.broadcast %cst_14 : f32 to vector<16x128xf32>
    %18 = arith.maximumf %16, %17 : vector<16x128xf32>
    %19 = arith.truncf %18 : vector<16x128xf32> to vector<16x128xbf16>
    %c0_15 = arith.constant 0 : index
    %c0_16 = arith.constant 0 : index
    %20 = vector.load %arg7[%c0_15, %c0_16] : memref<128x128xbf16, #tpu.memory_space<vmem>>, vector<128x128xbf16>
    %cst_17 = arith.constant dense<0.000000e+00> : vector<16x128xf32>
    %21 = tpu.matmul %19, %20, %cst_17 {dimension_numbers = #tpu.dot_dimension_numbers<[1], [0], [0], [1], [0, 0, 1, 1], [], []>} : vector<16x128xbf16>, vector<128x128xbf16>, vector<16x128xf32> -> vector<16x128xf32>
    %c0_18 = arith.constant 0 : index
    %c0_19 = arith.constant 0 : index
    %22 = vector.load %arg8[%c0_18, %c0_19] : memref<1x128xf32, #tpu.memory_space<vmem>>, vector<1x128xf32>
    %23 = vector.broadcast %22 : vector<1x128xf32> to vector<16x128xf32>
    %24 = arith.addf %21, %23 : vector<16x128xf32>
    %cst_20 = arith.constant 0.000000e+00 : f32
    %25 = vector.broadcast %cst_20 : f32 to vector<16x128xf32>
    %26 = arith.maximumf %24, %25 : vector<16x128xf32>
    %27 = arith.truncf %26 : vector<16x128xf32> to vector<16x128xbf16>
    %c0_21 = arith.constant 0 : index
    %c0_22 = arith.constant 0 : index
    %28 = vector.load %arg9[%c0_21, %c0_22] : memref<128x8xbf16, #tpu.memory_space<vmem>>, vector<128x8xbf16>
    %cst_23 = arith.constant dense<0.000000e+00> : vector<16x8xf32>
    %29 = tpu.matmul %27, %28, %cst_23 {dimension_numbers = #tpu.dot_dimension_numbers<[1], [0], [0], [1], [0, 0, 1, 1], [], []>} : vector<16x128xbf16>, vector<128x8xbf16>, vector<16x8xf32> -> vector<16x8xf32>
    %c0_24 = arith.constant 0 : index
    %c0_25 = arith.constant 0 : index
    %30 = vector.load %arg10[%c0_24, %c0_25] : memref<1x8xf32, #tpu.memory_space<vmem>>, vector<1x8xf32>
    %31 = vector.broadcast %30 : vector<1x8xf32> to vector<16x8xf32>
    %32 = arith.addf %29, %31 : vector<16x8xf32>
    %cst_26 = arith.constant 0.000000e+00 : f32
    %33 = vector.broadcast %cst_26 : f32 to vector<16x8xf32>
    %34 = arith.maximumf %32, %33 : vector<16x8xf32>
    %35 = arith.truncf %34 : vector<16x8xf32> to vector<16x8xbf16>
    %c0_27 = arith.constant 0 : index
    %c0_28 = arith.constant 0 : index
    %36 = vector.load %arg11[%c0_27, %c0_28] : memref<8x8xbf16, #tpu.memory_space<vmem>>, vector<8x8xbf16>
    %cst_29 = arith.constant dense<0.000000e+00> : vector<16x8xf32>
    %37 = tpu.matmul %35, %36, %cst_29 {dimension_numbers = #tpu.dot_dimension_numbers<[1], [0], [0], [1], [0, 0, 1, 1], [], []>} : vector<16x8xbf16>, vector<8x8xbf16>, vector<16x8xf32> -> vector<16x8xf32>
    %c0_30 = arith.constant 0 : index
    %c0_31 = arith.constant 0 : index
    %38 = vector.load %arg12[%c0_30, %c0_31] : memref<1x8xf32, #tpu.memory_space<vmem>>, vector<1x8xf32>
    %39 = vector.broadcast %38 : vector<1x8xf32> to vector<16x8xf32>
    %40 = arith.addf %37, %39 : vector<16x8xf32>
    %cst_32 = arith.constant 0.000000e+00 : f32
    %41 = vector.broadcast %cst_32 : f32 to vector<16x8xf32>
    %42 = arith.subf %41, %40 : vector<16x8xf32>
    %43 = math.exp %42 : vector<16x8xf32>
    %cst_33 = arith.constant 1.000000e+00 : f32
    %44 = vector.broadcast %cst_33 : f32 to vector<16x8xf32>
    %45 = arith.addf %44, %43 : vector<16x8xf32>
    %46 = tpu.reciprocal %45 {approx = true} : vector<16x8xf32> -> vector<16x8xf32>
    %c0_34 = arith.constant 0 : index
    %c0_35 = arith.constant 0 : index
    %47 = vector.load %arg13[%c0_34, %c0_35] : memref<16x8xf32, #tpu.memory_space<vmem>>, vector<16x8xf32>
    tpu.vector_store %arg13[%c0_34, %c0_35], %46 {strides = array<i32>} : memref<16x8xf32, #tpu.memory_space<vmem>>, vector<16x8xf32>,
    return
  }
  func.func @transform_0(%arg0: i32) -> (i32, i32) {
    %c0_i32 = arith.constant 0 : i32
    %c0_i32_0 = arith.constant 0 : i32
    return %arg0, %c0_i32 : i32, i32
  }
  func.func @transform_1(%arg0: i32) -> (i32, i32) {
    %c0_i32 = arith.constant 0 : i32
    %c0_i32_0 = arith.constant 0 : i32
    %c0_i32_1 = arith.constant 0 : i32
    return %c0_i32, %c0_i32_0 : i32, i32
  }
  func.func @transform_2(%arg0: i32) -> (i32, i32) {
    %c0_i32 = arith.constant 0 : i32
    %c0_i32_0 = arith.constant 0 : i32
    %c0_i32_1 = arith.constant 0 : i32
    return %c0_i32, %c0_i32_0 : i32, i32
  }
  func.func @transform_3(%arg0: i32) -> (i32, i32) {
    %c0_i32 = arith.constant 0 : i32
    %c0_i32_0 = arith.constant 0 : i32
    %c0_i32_1 = arith.constant 0 : i32
    return %c0_i32, %c0_i32_0 : i32, i32
  }
  func.func @transform_4(%arg0: i32) -> (i32, i32) {
    %c0_i32 = arith.constant 0 : i32
    %c0_i32_0 = arith.constant 0 : i32
    %c0_i32_1 = arith.constant 0 : i32
    return %c0_i32, %c0_i32_0 : i32, i32
  }
  func.func @transform_5(%arg0: i32) -> (i32, i32) {
    %c0_i32 = arith.constant 0 : i32
    %c0_i32_0 = arith.constant 0 : i32
    %c0_i32_1 = arith.constant 0 : i32
    return %c0_i32, %c0_i32_0 : i32, i32
  }
  func.func @transform_6(%arg0: i32) -> (i32, i32) {
    %c0_i32 = arith.constant 0 : i32
    %c0_i32_0 = arith.constant 0 : i32
    %c0_i32_1 = arith.constant 0 : i32
    return %c0_i32, %c0_i32_0 : i32, i32
  }
  func.func @transform_7(%arg0: i32) -> (i32, i32) {
    %c0_i32 = arith.constant 0 : i32
    %c0_i32_0 = arith.constant 0 : i32
    %c0_i32_1 = arith.constant 0 : i32
    return %c0_i32, %c0_i32_0 : i32, i32
  }
  func.func @transform_8(%arg0: i32) -> (i32, i32) {
    %c0_i32 = arith.constant 0 : i32
    %c0_i32_0 = arith.constant 0 : i32
    %c0_i32_1 = arith.constant 0 : i32
    return %c0_i32, %c0_i32_0 : i32, i32
  }
  func.func @transform_9(%arg0: i32) -> (i32, i32) {
    %c0_i32 = arith.constant 0 : i32
    %c0_i32_0 = arith.constant 0 : i32
    %c0_i32_1 = arith.constant 0 : i32
    return %c0_i32, %c0_i32_0 : i32, i32
  }
  func.func @transform_10(%arg0: i32) -> (i32, i32) {
    %c0_i32 = arith.constant 0 : i32
    %c0_i32_0 = arith.constant 0 : i32
    %c0_i32_1 = arith.constant 0 : i32
    return %c0_i32, %c0_i32_0 : i32, i32
  }
  func.func @transform_11(%arg0: i32) -> (i32, i32) {
    %c0_i32 = arith.constant 0 : i32
    %c0_i32_0 = arith.constant 0 : i32
    %c0_i32_1 = arith.constant 0 : i32
    return %c0_i32, %c0_i32_0 : i32, i32
  }
  func.func @transform_12(%arg0: i32) -> (i32, i32) {
    %c0_i32 = arith.constant 0 : i32
    %c0_i32_0 = arith.constant 0 : i32
    return %arg0, %c0_i32 : i32, i32
  }
}

module attributes {stable_mosaic.version = 11 : i64} {
  func.func @gender_classifier_kernel(%arg0: i32, %arg1: memref<16x3072xbf16, #tpu.memory_space<vmem>>, %arg2: memref<3072x512xbf16, #tpu.memory_space<vmem>>, %arg3: memref<512x256xbf16, #tpu.memory_space<vmem>>, %arg4: memref<1x256xf32, #tpu.memory_space<vmem>>, %arg5: memref<256x128xbf16, #tpu.memory_space<vmem>>, %arg6: memref<1x128xf32, #tpu.memory_space<vmem>>, %arg7: memref<128x128xbf16, #tpu.memory_space<vmem>>, %arg8: memref<1x128xf32, #tpu.memory_space<vmem>>, %arg9: memref<128x8xbf16, #tpu.memory_space<vmem>>, %arg10: memref<1x8xf32, #tpu.memory_space<vmem>>, %arg11: memref<8x8xbf16, #tpu.memory_space<vmem>>, %arg12: memref<1x8xf32, #tpu.memory_space<vmem>>, %arg13: memref<16x8xf32, #tpu.memory_space<vmem>>) attributes {dimension_semantics = [#tpu.dimension_semantics<parallel>], iteration_bounds = array<i64: 1>, scalar_prefetch = 0 : i64, scratch_operands = 0 : i64, tpu.core_type = #tpu.core_type<tc>, window_params = [{transform_indices = @transform_0, window_bounds = array<i64: 16, 3072>}, {pipeline_mode = #tpu.pipeline_mode<synchronous>, transform_indices = @transform_1, window_bounds = array<i64: 3072, 512>}, {pipeline_mode = #tpu.pipeline_mode<synchronous>, transform_indices = @transform_2, window_bounds = array<i64: 512, 256>}, {pipeline_mode = #tpu.pipeline_mode<synchronous>, transform_indices = @transform_3, window_bounds = array<i64: 1, 256>}, {pipeline_mode = #tpu.pipeline_mode<synchronous>, transform_indices = @transform_4, window_bounds = array<i64: 256, 128>}, {pipeline_mode = #tpu.pipeline_mode<synchronous>, transform_indices = @transform_5, window_bounds = array<i64: 1, 128>}, {pipeline_mode = #tpu.pipeline_mode<synchronous>, transform_indices = @transform_6, window_bounds = array<i64: 128, 128>}, {pipeline_mode = #tpu.pipeline_mode<synchronous>, transform_indices = @transform_7, window_bounds = array<i64: 1, 128>}, {pipeline_mode = #tpu.pipeline_mode<synchronous>, transform_indices = @transform_8, window_bounds = array<i64: 128, 8>}, {pipeline_mode = #tpu.pipeline_mode<synchronous>, transform_indices = @transform_9, window_bounds = array<i64: 1, 8>}, {pipeline_mode = #tpu.pipeline_mode<synchronous>, transform_indices = @transform_10, window_bounds = array<i64: 8, 8>}, {pipeline_mode = #tpu.pipeline_mode<synchronous>, transform_indices = @transform_11, window_bounds = array<i64: 1, 8>}, {transform_indices = @transform_12, window_bounds = array<i64: 16, 8>}]} {
    %c0 = arith.constant 0 : index
    %c0_0 = arith.constant 0 : index
    %0 = vector.load %arg1[%c0, %c0_0] : memref<16x3072xbf16, #tpu.memory_space<vmem>>, vector<16x3072xbf16>
    %c0_1 = arith.constant 0 : index
    %c0_2 = arith.constant 0 : index
    %1 = vector.load %arg2[%c0_1, %c0_2] : memref<3072x512xbf16, #tpu.memory_space<vmem>>, vector<3072x512xbf16>
    %cst = arith.constant dense<0.000000e+00> : vector<16x512xf32>
    %2 = tpu.matmul %0, %1, %cst {dimension_numbers = #tpu.dot_dimension_numbers<[1], [0], [0], [1], [0, 0, 1, 1], [], []>} : vector<16x3072xbf16>, vector<3072x512xbf16>, vector<16x512xf32> -> vector<16x512xf32>
    %3 = arith.truncf %2 : vector<16x512xf32> to vector<16x512xbf16>
    %c0_3 = arith.constant 0 : index
    %c0_4 = arith.constant 0 : index
    %4 = vector.load %arg3[%c0_3, %c0_4] : memref<512x256xbf16, #tpu.memory_space<vmem>>, vector<512x256xbf16>
    %cst_5 = arith.constant dense<0.000000e+00> : vector<16x256xf32>
    %5 = tpu.matmul %3, %4, %cst_5 {dimension_numbers = #tpu.dot_dimension_numbers<[1], [0], [0], [1], [0, 0, 1, 1], [], []>} : vector<16x512xbf16>, vector<512x256xbf16>, vector<16x256xf32> -> vector<16x256xf32>
    %c0_6 = arith.constant 0 : index
    %c0_7 = arith.constant 0 : index
    %6 = vector.load %arg4[%c0_6, %c0_7] : memref<1x256xf32, #tpu.memory_space<vmem>>, vector<1x256xf32>
    %7 = vector.broadcast %6 : vector<1x256xf32> to vector<16x256xf32>
    %8 = arith.addf %5, %7 : vector<16x256xf32>
    %cst_8 = arith.constant 0.000000e+00 : f32
    %9 = vector.broadcast %cst_8 : f32 to vector<16x256xf32>
    %10 = arith.maximumf %8, %9 : vector<16x256xf32>
    %11 = arith.truncf %10 : vector<16x256xf32> to vector<16x256xbf16>
    %c0_9 = arith.constant 0 : index
    %c0_10 = arith.constant 0 : index
    %12 = vector.load %arg5[%c0_9, %c0_10] : memref<256x128xbf16, #tpu.memory_space<vmem>>, vector<256x128xbf16>
    %cst_11 = arith.constant dense<0.000000e+00> : vector<16x128xf32>
    %13 = tpu.matmul %11, %12, %cst_11 {dimension_numbers = #tpu.dot_dimension_numbers<[1], [0], [0], [1], [0, 0, 1, 1], [], []>} : vector<16x256xbf16>, vector<256x128xbf16>, vector<16x128xf32> -> vector<16x128xf32>
    %c0_12 = arith.constant 0 : index
    %c0_13 = arith.constant 0 : index
    %14 = vector.load %arg6[%c0_12, %c0_13] : memref<1x128xf32, #tpu.memory_space<vmem>>, vector<1x128xf32>
    %15 = vector.broadcast %14 : vector<1x128xf32> to vector<16x128xf32>
    %16 = arith.addf %13, %15 : vector<16x128xf32>
    %cst_14 = arith.constant 0.000000e+00 : f32
    %17 = vector.broadcast %cst_14 : f32 to vector<16x128xf32>
    %18 = arith.maximumf %16, %17 : vector<16x128xf32>
    %19 = arith.truncf %18 : vector<16x128xf32> to vector<16x128xbf16>
    %c0_15 = arith.constant 0 : index
    %c0_16 = arith.constant 0 : index
    %20 = vector.load %arg7[%c0_15, %c0_16] : memref<128x128xbf16, #tpu.memory_space<vmem>>, vector<128x128xbf16>
    %cst_17 = arith.constant dense<0.000000e+00> : vector<16x128xf32>
    %21 = tpu.matmul %19, %20, %cst_17 {dimension_numbers = #tpu.dot_dimension_numbers<[1], [0], [0], [1], [0, 0, 1, 1], [], []>} : vector<16x128xbf16>, vector<128x128xbf16>, vector<16x128xf32> -> vector<16x128xf32>
    %c0_18 = arith.constant 0 : index
    %c0_19 = arith.constant 0 : index
    %22 = vector.load %arg8[%c0_18, %c0_19] : memref<1x128xf32, #tpu.memory_space<vmem>>, vector<1x128xf32>
    %23 = vector.broadcast %22 : vector<1x128xf32> to vector<16x128xf32>
    %24 = arith.addf %21, %23 : vector<16x128xf32>
    %cst_20 = arith.constant 0.000000e+00 : f32
    %25 = vector.broadcast %cst_20 : f32 to vector<16x128xf32>
    %26 = arith.maximumf %24, %25 : vector<16x128xf32>
    %27 = arith.truncf %26 : vector<16x128xf32> to vector<16x128xbf16>
    %c0_21 = arith.constant 0 : index
    %c0_22 = arith.constant 0 : index
    %28 = vector.load %arg9[%c0_21, %c0_22] : memref<128x8xbf16, #tpu.memory_space<vmem>>, vector<128x8xbf16>
    %cst_23 = arith.constant dense<0.000000e+00> : vector<16x8xf32>
    %29 = tpu.matmul %27, %28, %cst_23 {dimension_numbers = #tpu.dot_dimension_numbers<[1], [0], [0], [1], [0, 0, 1, 1], [], []>} : vector<16x128xbf16>, vector<128x8xbf16>, vector<16x8xf32> -> vector<16x8xf32>
    %c0_24 = arith.constant 0 : index
    %c0_25 = arith.constant 0 : index
    %30 = vector.load %arg10[%c0_24, %c0_25] : memref<1x8xf32, #tpu.memory_space<vmem>>, vector<1x8xf32>
    %31 = vector.broadcast %30 : vector<1x8xf32> to vector<16x8xf32>
    %32 = arith.addf %29, %31 : vector<16x8xf32>
    %cst_26 = arith.constant 0.000000e+00 : f32
    %33 = vector.broadcast %cst_26 : f32 to vector<16x8xf32>
    %34 = arith.maximumf %32, %33 : vector<16x8xf32>
    %35 = arith.truncf %34 : vector<16x8xf32> to vector<16x8xbf16>
    %c0_27 = arith.constant 0 : index
    %c0_28 = arith.constant 0 : index
    %36 = vector.load %arg11[%c0_27, %c0_28] : memref<8x8xbf16, #tpu.memory_space<vmem>>, vector<8x8xbf16>
    %cst_29 = arith.constant dense<0.000000e+00> : vector<16x8xf32>
    %37 = tpu.matmul %35, %36, %cst_29 {dimension_numbers = #tpu.dot_dimension_numbers<[1], [0], [0], [1], [0, 0, 1, 1], [], []>} : vector<16x8xbf16>, vector<8x8xbf16>, vector<16x8xf32> -> vector<16x8xf32>
    %c0_30 = arith.constant 0 : index
    %c0_31 = arith.constant 0 : index
    %38 = vector.load %arg12[%c0_30, %c0_31] : memref<1x8xf32, #tpu.memory_space<vmem>>, vector<1x8xf32>
    %39 = vector.broadcast %38 : vector<1x8xf32> to vector<16x8xf32>
    %40 = arith.addf %37, %39 : vector<16x8xf32>
    %cst_32 = arith.constant 0.000000e+00 : f32
    %41 = vector.broadcast %cst_32 : f32 to vector<16x8xf32>
    %42 = arith.subf %41, %40 : vector<16x8xf32>
    %43 = math.exp %42 : vector<16x8xf32>
    %cst_33 = arith.constant 1.000000e+00 : f32
    %44 = vector.broadcast %cst_33 : f32 to vector<16x8xf32>
    %45 = arith.addf %44, %43 : vector<16x8xf32>
    %46 = tpu.reciprocal %45 {approx = true} : vector<16x8xf32> -> vector<16x8xf32>
    %c0_34 = arith.constant 0 : index
    %c0_35 = arith.constant 0 : index
    %47 = vector.load %arg13[%c0_34, %c0_35] : memref<16x8xf32, #tpu.memory_space<vmem>>, vector<16x8xf32>
    tpu.vector_store %arg13[%c0_34, %c0_35], %46 {strides = array<i32>} : memref<16x8xf32, #tpu.memory_space<vmem>>, vector<16x8xf32>,
    return
  }
  func.func @transform_0(%arg0: i32) -> (i32, i32) {
    %c0_i32 = arith.constant 0 : i32
    %c0_i32_0 = arith.constant 0 : i32
    return %arg0, %c0_i32 : i32, i32
  }
  func.func @transform_1(%arg0: i32) -> (i32, i32) {
    %c0_i32 = arith.constant 0 : i32
    %c0_i32_0 = arith.constant 0 : i32
    %c0_i32_1 = arith.constant 0 : i32
    return %c0_i32, %c0_i32_0 : i32, i32
  }
  func.func @transform_2(%arg0: i32) -> (i32, i32) {
    %c0_i32 = arith.constant 0 : i32
    %c0_i32_0 = arith.constant 0 : i32
    %c0_i32_1 = arith.constant 0 : i32
    return %c0_i32, %c0_i32_0 : i32, i32
  }
  func.func @transform_3(%arg0: i32) -> (i32, i32) {
    %c0_i32 = arith.constant 0 : i32
    %c0_i32_0 = arith.constant 0 : i32
    %c0_i32_1 = arith.constant 0 : i32
    return %c0_i32, %c0_i32_0 : i32, i32
  }
  func.func @transform_4(%arg0: i32) -> (i32, i32) {
    %c0_i32 = arith.constant 0 : i32
    %c0_i32_0 = arith.constant 0 : i32
    %c0_i32_1 = arith.constant 0 : i32
    return %c0_i32, %c0_i32_0 : i32, i32
  }
  func.func @transform_5(%arg0: i32) -> (i32, i32) {
    %c0_i32 = arith.constant 0 : i32
    %c0_i32_0 = arith.constant 0 : i32
    %c0_i32_1 = arith.constant 0 : i32
    return %c0_i32, %c0_i32_0 : i32, i32
  }
  func.func @transform_6(%arg0: i32) -> (i32, i32) {
    %c0_i32 = arith.constant 0 : i32
    %c0_i32_0 = arith.constant 0 : i32
    %c0_i32_1 = arith.constant 0 : i32
    return %c0_i32, %c0_i32_0 : i32, i32
  }
  func.func @transform_7(%arg0: i32) -> (i32, i32) {
    %c0_i32 = arith.constant 0 : i32
    %c0_i32_0 = arith.constant 0 : i32
    %c0_i32_1 = arith.constant 0 : i32
    return %c0_i32, %c0_i32_0 : i32, i32
  }
  func.func @transform_8(%arg0: i32) -> (i32, i32) {
    %c0_i32 = arith.constant 0 : i32
    %c0_i32_0 = arith.constant 0 : i32
    %c0_i32_1 = arith.constant 0 : i32
    return %c0_i32, %c0_i32_0 : i32, i32
  }
  func.func @transform_9(%arg0: i32) -> (i32, i32) {
    %c0_i32 = arith.constant 0 : i32
    %c0_i32_0 = arith.constant 0 : i32
    %c0_i32_1 = arith.constant 0 : i32
    return %c0_i32, %c0_i32_0 : i32, i32
  }
  func.func @transform_10(%arg0: i32) -> (i32, i32) {
    %c0_i32 = arith.constant 0 : i32
    %c0_i32_0 = arith.constant 0 : i32
    %c0_i32_1 = arith.constant 0 : i32
    return %c0_i32, %c0_i32_0 : i32, i32
  }
  func.func @transform_11(%arg0: i32) -> (i32, i32) {
    %c0_i32 = arith.constant 0 : i32
    %c0_i32_0 = arith.constant 0 : i32
    %c0_i32_1 = arith.constant 0 : i32
    return %c0_i32, %c0_i32_0 : i32, i32
  }
  func.func @transform_12(%arg0: i32) -> (i32, i32) {
    %c0_i32 = arith.constant 0 : i32
    %c0_i32_0 = arith.constant 0 : i32
    return %arg0, %c0_i32 : i32, i32
  }
}

</mosaic_0001>

<bundles_post_ra>
// kernel: tpu_custom_call.1
= control target key start
LH: loop header
LB: loop body
LE: loop exit
PB: predicated region body
PF: predicated region fallthrough
CT: control target
= control target key end

     0   :  { %17 = vsyncpa [#allocation3], 0  ;;  %s10404_s0 = inlined_call_operand.hbm [shape: bf16[2,3072], index: 0, kind: input, shape index: {}]   ;;  %s10405_s1 = inlined_call_operand.hbm [shape: bf16[3072,512], index: 1, kind: input, shape index: {}]   ;;  %s10406_s2 = inlined_call_operand.hbm [shape: bf16[512,256], index: 2, kind: input, shape index: {}]   ;;  %s10407_s3 = inlined_call_operand.hbm [shape: f32[1,256], index: 3, kind: input, shape index: {}]   ;;  %s10408_s4 = inlined_call_operand.hbm [shape: bf16[256,128], index: 4, kind: input, shape index: {}]   ;;  %s10409_s5 = inlined_call_operand.hbm [shape: f32[1,128], index: 5, kind: input, shape index: {}]   ;;  %s10410_s6 = inlined_call_operand.hbm [shape: bf16[128,128], index: 6, kind: input, shape index: {}]   ;;  %s10411_s7 = inlined_call_operand.hbm [shape: f32[1,128], index: 7, kind: input, shape index: {}]   ;;  %s10412_s8 = inlined_call_operand.vmem [shape: bf16[128,8], index: 8, kind: input, shape index: {}]   ;;  %s10413_s9 = inlined_call_operand.hbm [shape: f32[1,8], index: 9, kind: input, shape index: {}]   ;;  %s10414_s10 = inlined_call_operand.hbm [shape: bf16[8,8], index: 10, kind: input, shape index: {}]   ;;  %s10415_s11 = inlined_call_operand.hbm [shape: f32[1,8], index: 11, kind: input, shape index: {}]   ;;  %s10416_s12 = inlined_call_operand.hbm [shape: f32[2,8], index: 12, kind: output, shape index: {}]  }
   0x1   :  { %18 = vsyncpa [#allocation6], 0 }
   0x2   :  { %19 = vsyncpa [#allocation9], 0 }
   0x3   :  { %20 = vsyncpa [#allocation12], 0 }
   0x4   :  { %21 = vsyncpa [#allocation15], 0 }
   0x5   :  { %22 = vsyncpa [#allocation18], 0 }
   0x6   :  { %23 = vsyncpa [#allocation4], 0 }
   0x7   :  { %28 = vsyncadd [#allocation3], 2688  ;;  %s9972_s21 = smov [#allocation5]   ;;  %s9694_s25 = scalar_lea.hbm %s10405_s1, 98304 }
   0x8   :  { %s41_s22 = sshll.u32 %s9972_s21, 4  ;;  %p9695_p0 = scmp.ne.s32.totalorder %s10405_s1, %s9694_s25  ;;  %s42_s22 = int_to_ptr.vmem [resolvable:$true] %s41_s22 }
   0x9   :  { %p9698_p1 = scmp.lt.u32.totalorder %s9694_s25, %s10405_s1 }
   0xb   :  { %p9700_p2 = pnand %p9698_p1, %p9695_p0 }
   0xd   :  { %9703 = shalt.err (!%p9700_p2)
}
   0xe   :  { %s9704_s30 = scalar_lea.vmem %s42_s22, 98304  ;;  %p9709_p4 = scmp.lt.s32.totalorder %s42_s22, %s42_s22 }
   0xf   :  { %p9705_p3 = scmp.ne.s32.totalorder %s42_s22, %s9704_s30  ;;  %p9710_p5 = scmp.lt.s32.totalorder %s9704_s30, %s9704_s30 }
  0x11   :  { %p9711_p6 = por %p9710_p5, %p9709_p4 }
  0x13   :  { %p9712_p7 = pnand %p9711_p6, %p9705_p3 }
  0x15   :  { %9715 = shalt.err (!%p9712_p7)
}
  0x16   :  { %s9973_s13 = smov 256   ;;  %s9974_s14 = smov 16  }
  0x17   :  { %47 = dma.hbm_to_vmem [thread:$0]  %s10405_s1, 98304, %s42_s22, [#allocation6], %s9973_s13, %s9973_s13, %s9974_s14  }
  0x18   :  { %s9975_s17 = smov [#allocation8]   ;;  %s9976_s19 = smov [#allocation11]  }
  0x19   :  { %s66_s18 = sshll.u32 %s9975_s17, 4  ;;  %s88_s20 = sshll.u32 %s9976_s19, 4  ;;  %s67_s18 = int_to_ptr.vmem [resolvable:$true] %s66_s18  ;;  %s89_s20 = int_to_ptr.vmem [resolvable:$true] %s88_s20 }
  0x1a   :  { %s9716_s24 = scalar_lea.hbm %s10407_s3, 32 }
  0x1b   :  { %p9717_p8 = scmp.ne.s32.totalorder %s10407_s3, %s9716_s24  ;;  %p9720_p9 = scmp.lt.u32.totalorder %s9716_s24, %s10407_s3 }
  0x1d   :  { %p9722_p10 = pnand %p9720_p9, %p9717_p8 }
  0x1f   :  { %9725 = shalt.err (!%p9722_p10)
}
  0x20   :  { %s9726_s1 = scalar_lea.vmem %s67_s18, 32  ;;  %p9731_p12 = scmp.lt.s32.totalorder %s67_s18, %s67_s18 }
  0x21   :  { %p9727_p11 = scmp.ne.s32.totalorder %s67_s18, %s9726_s1  ;;  %p9732_p13 = scmp.lt.s32.totalorder %s9726_s1, %s9726_s1 }
  0x23   :  { %p9733_p0 = por %p9732_p13, %p9731_p12 }
  0x25   :  { %p9734_p1 = pnand %p9733_p0, %p9727_p11 }
  0x27   :  { %9737 = shalt.err (!%p9734_p1)
}
  0x28   :  { %69 = dma.hbm_to_vmem [thread:$0]  %s10407_s3, 32, %s67_s18, [#allocation9]  }
  0x29   :  { %s9738_s14 = scalar_lea.hbm %s10409_s5, 16 }
  0x2a   :  { %p9739_p2 = scmp.ne.s32.totalorder %s10409_s5, %s9738_s14  ;;  %p9742_p3 = scmp.lt.u32.totalorder %s9738_s14, %s10409_s5 }
  0x2c   :  { %p9744_p4 = pnand %p9742_p3, %p9739_p2 }
  0x2e   :  { %9747 = shalt.err (!%p9744_p4)
}
  0x2f   :  { %s9748_s21 = scalar_lea.vmem %s89_s20, 16  ;;  %s9752_s23 = scalar_lea.vmem %s89_s20, 32 }
  0x30   :  { %p9749_p5 = scmp.ne.s32.totalorder %s89_s20, %s9748_s21  ;;  %p9753_p6 = scmp.lt.s32.totalorder %s89_s20, %s89_s20 }
  0x31   :  { %p9754_p7 = scmp.lt.s32.totalorder %s9752_s23, %s9748_s21 }
  0x33   :  { %p9755_p8 = por %p9754_p7, %p9753_p6 }
  0x35   :  { %p9756_p9 = pnand %p9755_p8, %p9749_p5 }
  0x37   :  { %9759 = shalt.err (!%p9756_p9)
}
  0x38   :  { %91 = dma.hbm_to_vmem [thread:$0]  %s10409_s5, 16, %s89_s20, [#allocation12]  }
  0x39   :  { %s9977_s24 = smov [#allocation14]   ;;  %s9978_s26 = smov [#allocation17]  }
  0x3a   :  { %s110_s25 = sshll.u32 %s9977_s24, 4  ;;  %s132_s27 = sshll.u32 %s9978_s26, 4  ;;  %s111_s25 = int_to_ptr.vmem [resolvable:$true] %s110_s25  ;;  %s133_s27 = int_to_ptr.vmem [resolvable:$true] %s132_s27 }
  0x3b   :  { %s9760_s22 = scalar_lea.hbm %s10411_s7, 16 }
  0x3c   :  { %p9761_p10 = scmp.ne.s32.totalorder %s10411_s7, %s9760_s22  ;;  %p9764_p11 = scmp.lt.u32.totalorder %s9760_s22, %s10411_s7 }
  0x3e   :  { %p9766_p12 = pnand %p9764_p11, %p9761_p10 }
  0x40   :  { %9769 = shalt.err (!%p9766_p12)
}
  0x41   :  { %s9770_s5 = scalar_lea.vmem %s111_s25, 16  ;;  %s9774_s20 = scalar_lea.vmem %s111_s25, 32 }
  0x42   :  { %p9771_p13 = scmp.ne.s32.totalorder %s111_s25, %s9770_s5  ;;  %p9775_p0 = scmp.lt.s32.totalorder %s111_s25, %s111_s25 }
  0x43   :  { %p9776_p1 = scmp.lt.s32.totalorder %s9774_s20, %s9770_s5 }
  0x45   :  { %p9777_p2 = por %p9776_p1, %p9775_p0 }
  0x47   :  { %p9778_p3 = pnand %p9777_p2, %p9771_p13 }
  0x49   :  { %9781 = shalt.err (!%p9778_p3)
}
  0x4a   :  { %113 = dma.hbm_to_vmem [thread:$0]  %s10411_s7, 16, %s111_s25, [#allocation15]  }
  0x4b   :  { %s9782_s21 = scalar_lea.hbm %s10414_s10, 64 }
  0x4c   :  { %p9783_p4 = scmp.ne.s32.totalorder %s10414_s10, %s9782_s21  ;;  %p9786_p5 = scmp.lt.u32.totalorder %s9782_s21, %s10414_s10 }
  0x4e   :  { %p9788_p6 = pnand %p9786_p5, %p9783_p4 }
  0x50   :  { %9791 = shalt.err (!%p9788_p6)
}
  0x51   :  { %s9792_s26 = scalar_lea.vmem %s133_s27, 64  ;;  %p9797_p8 = scmp.lt.s32.totalorder %s133_s27, %s133_s27 }
  0x52   :  { %p9793_p7 = scmp.ne.s32.totalorder %s133_s27, %s9792_s26  ;;  %p9798_p9 = scmp.lt.s32.totalorder %s9792_s26, %s9792_s26 }
  0x54   :  { %p9799_p10 = por %p9798_p9, %p9797_p8 }
  0x56   :  { %p9800_p11 = pnand %p9799_p10, %p9793_p7 }
  0x58   :  { %9803 = shalt.err (!%p9800_p11)
}
  0x59   :  { %135 = dma.hbm_to_vmem [thread:$0]  %s10414_s10, 64, %s133_s27, [#allocation18]  }
  0x5a   :  { %s9979_s28 = smov [#allocation2]   ;;  %s9804_s30 = scalar_lea.hbm %s10404_s0, 384 }
  0x5b   :  { %s29_s1 = sshll.u32 %s9979_s28, 4  ;;  %p9805_p12 = scmp.ne.s32.totalorder %s10404_s0, %s9804_s30  ;;  %s30_s1 = int_to_ptr.vmem [resolvable:$true] %s29_s1 }
  0x5c   :  { %p9808_p13 = scmp.lt.u32.totalorder %s9804_s30, %s10404_s0 }
  0x5e   :  { %p9810_p0 = pnand %p9808_p13, %p9805_p12 }
  0x60   :  { %9813 = shalt.err (!%p9810_p0)
}
  0x61   :  { %s9814_s15 = scalar_lea.vmem %s30_s1, 384  ;;  %s9818_s10 = scalar_lea.vmem %s30_s1, 3072 }
  0x62   :  { %p9815_p1 = scmp.ne.s32.totalorder %s30_s1, %s9814_s15  ;;  %p9819_p2 = scmp.lt.s32.totalorder %s30_s1, %s30_s1 }
  0x63   :  { %p9820_p3 = scmp.lt.s32.totalorder %s9818_s10, %s9814_s15 }
  0x65   :  { %p9821_p4 = por %p9820_p3, %p9819_p2 }
  0x67   :  { %p9822_p5 = pnand %p9821_p4, %p9815_p1 }
  0x69   :  { %9825 = shalt.err (!%p9822_p5)
}
  0x6a   :  { %s9980_s27 = smov 384   ;;  %s9981_s16 = smov 24  }
  0x6b   :  { %35 = dma.hbm_to_vmem [thread:$0]  %s10404_s0, 384, %s30_s1, [#allocation3], %s9980_s27, %s9980_s27, %s9981_s16  }
  0x6c   :  { %s9982_s21 = smov [#allocation7]   ;;  %s9826_s24 = scalar_lea.hbm %s10406_s2, 8192 }
  0x6d   :  { %s53_s23 = sshll.u32 %s9982_s21, 4  ;;  %p9827_p6 = scmp.ne.s32.totalorder %s10406_s2, %s9826_s24  ;;  %s54_s23 = int_to_ptr.vmem [resolvable:$true] %s53_s23 }
  0x6e   :  { %p9830_p7 = scmp.lt.u32.totalorder %s9826_s24, %s10406_s2 }
  0x70   :  { %p9832_p8 = pnand %p9830_p7, %p9827_p6 }
  0x72   :  { %9835 = shalt.err (!%p9832_p8)
}
  0x73   :  { %s9836_s22 = scalar_lea.vmem %s54_s23, 8192  ;;  %p9841_p10 = scmp.lt.s32.totalorder %s54_s23, %s54_s23 }
  0x74   :  { %p9837_p9 = scmp.ne.s32.totalorder %s54_s23, %s9836_s22  ;;  %p9842_p11 = scmp.lt.s32.totalorder %s9836_s22, %s9836_s22 }
  0x76   :  { %p9843_p12 = por %p9842_p11, %p9841_p10 }
  0x78   :  { %p9844_p13 = pnand %p9843_p12, %p9837_p9 }
  0x7a   :  { %9847 = shalt.err (!%p9844_p13)
}
  0x7b   :  { %s9983_s0 = smov 128   ;;  %s9984_s1 = smov 8  }
  0x7c   :  { %59 = dma.hbm_to_vmem [thread:$0]  %s10406_s2, 8192, %s54_s23, [#allocation6], %s9983_s0, %s9983_s0, %s9984_s1  }
  0x7d   :  { %s9985_s13 = smov [#allocation10]   ;;  %s9848_s15 = scalar_lea.hbm %s10408_s4, 2048 }
  0x7e   :  { %s75_s14 = sshll.u32 %s9985_s13, 4  ;;  %p9849_p0 = scmp.ne.s32.totalorder %s10408_s4, %s9848_s15  ;;  %s76_s14 = int_to_ptr.vmem [resolvable:$true] %s75_s14 }
  0x7f   :  { %p9852_p1 = scmp.lt.u32.totalorder %s9848_s15, %s10408_s4 }
  0x81   :  { %p9854_p2 = pnand %p9852_p1, %p9849_p0 }
  0x83   :  { %9857 = shalt.err (!%p9854_p2)
}
  0x84   :  { %s9858_s19 = scalar_lea.vmem %s76_s14, 2048  ;;  %p9863_p4 = scmp.lt.s32.totalorder %s76_s14, %s76_s14 }
  0x85   :  { %p9859_p3 = scmp.ne.s32.totalorder %s76_s14, %s9858_s19  ;;  %p9864_p5 = scmp.lt.s32.totalorder %s9858_s19, %s9858_s19 }
  0x87   :  { %p9865_p6 = por %p9864_p5, %p9863_p4 }
  0x89   :  { %p9866_p7 = pnand %p9865_p6, %p9859_p3 }
  0x8b   :  { %9869 = shalt.err (!%p9866_p7)
}
  0x8c   :  { %s9986_s2 = smov 64   ;;  %s9987_s21 = smov 4  }
  0x8d   :  { %81 = dma.hbm_to_vmem [thread:$0]  %s10408_s4, 2048, %s76_s14, [#allocation9], %s9986_s2, %s9986_s2, %s9987_s21  }
  0x8e   :  { %s9988_s18 = smov [#allocation13]   ;;  %s9989_s26 = smov [#allocation16]  }
  0x8f   :  { %s97_s24 = sshll.u32 %s9988_s18, 4  ;;  %s122_s7 = sshll.u32 %s9989_s26, 4  ;;  %s98_s24 = int_to_ptr.vmem [resolvable:$true] %s97_s24  ;;  %s123_s7 = int_to_ptr.vmem [resolvable:$true] %s122_s7 }
  0x90   :  { %s9870_s22 = scalar_lea.hbm %s10410_s6, 1024 }
  0x91   :  { %p9871_p8 = scmp.ne.s32.totalorder %s10410_s6, %s9870_s22  ;;  %p9874_p9 = scmp.lt.u32.totalorder %s9870_s22, %s10410_s6 }
  0x93   :  { %p9876_p10 = pnand %p9874_p9, %p9871_p8 }
  0x95   :  { %9879 = shalt.err (!%p9876_p10)
}
  0x96   :  { %s9880_s4 = scalar_lea.vmem %s98_s24, 1024  ;;  %p9885_p12 = scmp.lt.s32.totalorder %s98_s24, %s98_s24 }
  0x97   :  { %p9881_p11 = scmp.ne.s32.totalorder %s98_s24, %s9880_s4  ;;  %p9886_p13 = scmp.lt.s32.totalorder %s9880_s4, %s9880_s4 }
  0x99   :  { %p9887_p0 = por %p9886_p13, %p9885_p12 }
  0x9b   :  { %p9888_p1 = pnand %p9887_p0, %p9881_p11 }
  0x9d   :  { %9891 = shalt.err (!%p9888_p1)
}
  0x9e   :  { %103 = dma.hbm_to_vmem [thread:$0]  %s10410_s6, 1024, %s98_s24, [#allocation12], %s9986_s2, %s9986_s2, %s9987_s21  }
  0x9f   :  { %s9892_s15 = scalar_lea.hbm %s10413_s9, 16 }
  0xa0   :  { %p9893_p2 = scmp.ne.s32.totalorder %s10413_s9, %s9892_s15  ;;  %p9896_p3 = scmp.lt.u32.totalorder %s9892_s15, %s10413_s9 }
  0xa2   :  { %p9898_p4 = pnand %p9896_p3, %p9893_p2 }
  0xa4   :  { %9901 = shalt.err (!%p9898_p4)
}
  0xa5   :  { %s9902_s19 = scalar_lea.vmem %s123_s7, 16  ;;  %s9906_s23 = scalar_lea.vmem %s123_s7, 32 }
  0xa6   :  { %p9903_p5 = scmp.ne.s32.totalorder %s123_s7, %s9902_s19  ;;  %p9907_p6 = scmp.lt.s32.totalorder %s123_s7, %s123_s7 }
  0xa7   :  { %p9908_p7 = scmp.lt.s32.totalorder %s9906_s23, %s9902_s19 }
  0xa9   :  { %p9909_p8 = por %p9908_p7, %p9907_p6 }
  0xab   :  { %p9910_p9 = pnand %p9909_p8, %p9903_p5 }
  0xad   :  { %9913 = shalt.err (!%p9910_p9)
}
  0xae   :  { %125 = dma.hbm_to_vmem [thread:$0]  %s10413_s9, 16, %s123_s7, [#allocation15]  }
  0xaf   :  { %s9990_s21 = smov [#allocation19]   ;;  %s9914_s26 = scalar_lea.hbm %s10415_s11, 16 }
  0xb0   :  { %s142_s3 = sshll.u32 %s9990_s21, 4  ;;  %p9915_p10 = scmp.ne.s32.totalorder %s10415_s11, %s9914_s26  ;;  %s143_s3 = int_to_ptr.vmem [resolvable:$true] %s142_s3 }
  0xb1   :  { %p9918_p11 = scmp.lt.u32.totalorder %s9914_s26, %s10415_s11 }
  0xb3   :  { %p9920_p12 = pnand %p9918_p11, %p9915_p10 }
  0xb5   :  { %9923 = shalt.err (!%p9920_p12)
}
  0xb6   :  { %s9924_s1 = scalar_lea.vmem %s143_s3, 16  ;;  %s9928_s9 = scalar_lea.vmem %s143_s3, 32 }
  0xb7   :  { %p9925_p13 = scmp.ne.s32.totalorder %s143_s3, %s9924_s1  ;;  %p9929_p0 = scmp.lt.s32.totalorder %s143_s3, %s143_s3 }
  0xb8   :  { %p9930_p1 = scmp.lt.s32.totalorder %s9928_s9, %s9924_s1 }
  0xba   :  { %p9931_p2 = por %p9930_p1, %p9929_p0 }
  0xbc   :  { %p9932_p3 = pnand %p9931_p2, %p9925_p13 }
  0xbe   :  { %9935 = shalt.err (!%p9932_p3)
}
  0xbf   :  { %145 = dma.hbm_to_vmem [thread:$0]  %s10415_s11, 16, %s143_s3, [#allocation18]  }
  0xc0   :  { %9958 = dma.done.wait [#allocation3], 3072  }
  0xc1   :  { %9959 = vsyncadd [#allocation3], 4294964224 }
  0xc2   :  { %9960 = dma.done.wait [#allocation6], 106496  }
  0xc3   :  { %9961 = vsyncadd [#allocation6], 4294860800 }
  0xc4   :  { %9962 = dma.done.wait [#allocation9], 2080  }
  0xc5   :  { %9963 = vsyncadd [#allocation9], 4294965216 }
  0xc6   :  { %9964 = dma.done.wait [#allocation12], 1040  }
  0xc7   :  { %9965 = vsyncadd [#allocation12], 4294966256 }
  0xc8   :  { %9966 = dma.done.wait [#allocation15], 32  }
  0xc9   :  { %9967 = vsyncadd [#allocation15], 4294967264 }
  0xca   :  { %9968 = dma.done.wait [#allocation18], 80  }
  0xcb   :  { %9969 = vsyncadd [#allocation18], 4294967216  ;;  %v8370_v0 = vld [vmem:[#allocation5 + $0x4] ss:$16 sps:$4 sm:$0xff]   ;;  %v8372_v1 = vld [vmem:[#allocation5 + $0xc] ss:$16 sps:$4 sm:$0xff]   ;;  %v1007_v41 = vlaneseq }
  0xcc   :  { %5268 = vmatprep.subr.bf16.mxu0 %v8370_v0  ;;  %v8374_v2 = vld [vmem:[#allocation5] ss:$16 sps:$4 sm:$0xff]   ;;  %v8375_v3 = vld [vmem:[#allocation5 + $0x8] ss:$16 sps:$4 sm:$0xff]   ;;  %5784 = vmatprep.subr.bf16.mxu1 %v8372_v1  ;;  %v8376_v4 = vld [vmem:[#allocation5 + $0x24] ss:$16 sps:$4 sm:$0xff]  }
  0xcd   :  { %5269 = vmatpush1.bf16.msra.mxu0 %v8374_v2  ;;  %5785 = vmatpush1.bf16.msra.mxu1 %v8375_v3  ;;  %v8378_v5 = vld [vmem:[#allocation5 + $0x2c] ss:$16 sps:$4 sm:$0xff]   ;;  %v8380_v6 = vld [vmem:[#allocation5 + $0x20] ss:$16 sps:$4 sm:$0xff]   ;;  %v8381_v7 = vld [vmem:[#allocation5 + $0x28] ss:$16 sps:$4 sm:$0xff]  }
  0xce   :  { %5270 = vmatprep.subr.bf16.mxu0 %v8376_v4  ;;  %5786 = vmatprep.subr.bf16.mxu1 %v8378_v5  ;;  %v8382_v8 = vld [vmem:[#allocation5 + $0x44] ss:$16 sps:$4 sm:$0xff]   ;;  %v8384_v9 = vld [vmem:[#allocation5 + $0x4c] ss:$16 sps:$4 sm:$0xff]   ;;  %v8386_v10 = vld [vmem:[#allocation5 + $0x40] ss:$16 sps:$4 sm:$0xff]  }
  0xcf   :  { %v8387_v11 = vld [vmem:[#allocation5 + $0x48] ss:$16 sps:$4 sm:$0xff]   ;;  %v8388_v12 = vld [vmem:[#allocation5 + $0x64] ss:$16 sps:$4 sm:$0xff]   ;;  %v8390_v13 = vld [vmem:[#allocation5 + $0x6c] ss:$16 sps:$4 sm:$0xff]  }
  0xd0   :  { %v8392_v14 = vld [vmem:[#allocation5 + $0x60] ss:$16 sps:$4 sm:$0xff]   ;;  %v8393_v15 = vld [vmem:[#allocation5 + $0x68] ss:$16 sps:$4 sm:$0xff]   ;;  %v8394_v16 = vld [vmem:[#allocation5 + $0x84] ss:$16 sps:$4 sm:$0xff]  }
  0xd1   :  { %5271 = vmatpush1.bf16.msra.mxu0 %v8380_v6  ;;  %5787 = vmatpush1.bf16.msra.mxu1 %v8381_v7  ;;  %v8396_v17 = vld [vmem:[#allocation5 + $0x8c] ss:$16 sps:$4 sm:$0xff]   ;;  %v8398_v18 = vld [vmem:[#allocation5 + $0x80] ss:$16 sps:$4 sm:$0xff]   ;;  %v8399_v19 = vld [vmem:[#allocation5 + $0x88] ss:$16 sps:$4 sm:$0xff]  }
  0xd2   :  { %5272 = vmatprep.subr.bf16.mxu0 %v8382_v8  ;;  %5788 = vmatprep.subr.bf16.mxu1 %v8384_v9  ;;  %v8400_v20 = vld [vmem:[#allocation5 + $0xa4] ss:$16 sps:$4 sm:$0xff]   ;;  %v8402_v21 = vld [vmem:[#allocation5 + $0xac] ss:$16 sps:$4 sm:$0xff]   ;;  %v8404_v22 = vld [vmem:[#allocation5 + $0xa0] ss:$16 sps:$4 sm:$0xff]  }
  0xd3   :  { %v8405_v23 = vld [vmem:[#allocation5 + $0xa8] ss:$16 sps:$4 sm:$0xff]   ;;  %v8406_v24 = vld [vmem:[#allocation5 + $0xc4] ss:$16 sps:$4 sm:$0xff]   ;;  %v8408_v25 = vld [vmem:[#allocation5 + $0xcc] ss:$16 sps:$4 sm:$0xff]  }
  0xd4   :  { %v8410_v26 = vld [vmem:[#allocation5 + $0xc0] ss:$16 sps:$4 sm:$0xff]   ;;  %v8411_v27 = vld [vmem:[#allocation5 + $0xc8] ss:$16 sps:$4 sm:$0xff]   ;;  %v8412_v28 = vld [vmem:[#allocation5 + $0xe4] ss:$16 sps:$4 sm:$0xff]  }
  0xd5   :  { %5273 = vmatpush1.bf16.msra.mxu0 %v8386_v10  ;;  %5789 = vmatpush1.bf16.msra.mxu1 %v8387_v11  ;;  %v8414_v29 = vld [vmem:[#allocation5 + $0xec] ss:$16 sps:$4 sm:$0xff]   ;;  %v8416_v30 = vld [vmem:[#allocation5 + $0xe0] ss:$16 sps:$4 sm:$0xff]   ;;  %v8417_v31 = vld [vmem:[#allocation5 + $0xe8] ss:$16 sps:$4 sm:$0xff]  }
  0xd6   :  { %5274 = vmatprep.subr.bf16.mxu0 %v8388_v12  ;;  %5790 = vmatprep.subr.bf16.mxu1 %v8390_v13  ;;  %v8418_v32 = vld [vmem:[#allocation5 + $0x104] ss:$16 sps:$4 sm:$0xff]   ;;  %v8420_v33 = vld [vmem:[#allocation5 + $0x10c] ss:$16 sps:$4 sm:$0xff]   ;;  %v8422_v34 = vld [vmem:[#allocation5 + $0x100] ss:$16 sps:$4 sm:$0xff]  }
  0xd7   :  { %v8423_v35 = vld [vmem:[#allocation5 + $0x108] ss:$16 sps:$4 sm:$0xff]   ;;  %v8424_v36 = vld [vmem:[#allocation5 + $0x124] ss:$16 sps:$4 sm:$0xff]   ;;  %v8426_v37 = vld [vmem:[#allocation5 + $0x12c] ss:$16 sps:$4 sm:$0xff]  }
  0xd8   :  { %v8428_v38 = vld [vmem:[#allocation5 + $0x120] ss:$16 sps:$4 sm:$0xff]   ;;  %v9991_v39 = vmov 1966171168   ;;  %v8429_v42 = vld [vmem:[#allocation5 + $0x128] ss:$16 sps:$4 sm:$0xff]  }
  0xd9   :  { %5275 = vmatpush1.bf16.msra.mxu0 %v8392_v14  ;;  %5791 = vmatpush1.bf16.msra.mxu1 %v8393_v15  ;;  %v1005_v40 = vunpack.c.l.s4 %v9991_v39  ;;  %v8430_v43 = vld [vmem:[#allocation5 + $0x144] ss:$16 sps:$4 sm:$0xff]   ;;  %v8432_v44 = vld [vmem:[#allocation5 + $0x14c] ss:$16 sps:$4 sm:$0xff]   ;;  %v8434_v45 = vld [vmem:[#allocation5 + $0x140] ss:$16 sps:$4 sm:$0xff]  }
  0xda   :  { %5276 = vmatprep.subr.bf16.mxu0 %v8394_v16  ;;  %5792 = vmatprep.subr.bf16.mxu1 %v8396_v17  ;;  %v8435_v46 = vld [vmem:[#allocation5 + $0x148] ss:$16 sps:$4 sm:$0xff]   ;;  %v10194_v48 = vshrl.u32 %v1007_v41, 7  ;;  %v8436_v49 = vld [vmem:[#allocation5 + $0x164] ss:$16 sps:$4 sm:$0xff]   ;;  %vm9993_vm0 = vmmov 0  }
  0xdb   :  { %v1006_v47 = vunpack.c.0.s8 %v1005_v40  ;;  %v8438_v50 = vld [vmem:[#allocation5 + $0x16c] ss:$16 sps:$4 sm:$0xff]   ;;  %v8440_v51 = vld [vmem:[#allocation5 + $0x160] ss:$16 sps:$4 sm:$0xff]   ;;  %v8441_v52 = vld [vmem:[#allocation5 + $0x168] ss:$16 sps:$4 sm:$0xff]  }
  0xdc   :  { %v8442_v53 = vld [vmem:[#allocation5 + $0x184] ss:$16 sps:$4 sm:$0xff]   ;;  %v8444_v55 = vld [vmem:[#allocation5 + $0x18c] ss:$16 sps:$4 sm:$0xff]   ;;  %v8466_v56 = vld [vmem:[#allocation2] ss:$24 sps:$4 sm:$0xff]  }
  0xdd   :  { %5277 = vmatpush1.bf16.msra.mxu0 %v8398_v18  ;;  %5793 = vmatpush1.bf16.msra.mxu1 %v8399_v19  ;;  %v10197_v54 = vsub.s32 %v1006_v47, %v10194_v48  ;;  %v8469_v57 = vld [vmem:[#allocation2 + $0x30] ss:$24 sps:$4 sm:$0xff]   ;;  %v8472_v58 = vld [vmem:[#allocation2 + $0x60] ss:$24 sps:$4 sm:$0xff]   ;;  %v8448_v63 = vld [vmem:[#allocation5 + $0x1a4] ss:$16 sps:$4 sm:$0xff]  }
  0xde   :  { %5278 = vmatprep.subr.bf16.mxu0 %v8400_v20  ;;  %5794 = vmatprep.subr.bf16.mxu1 %v8402_v21  ;;  %v8446_v59 = vld [vmem:[#allocation5 + $0x180] ss:$16 sps:$4 sm:$0xff]   ;;  %v8447_v60 = vld [vmem:[#allocation5 + $0x188] ss:$16 sps:$4 sm:$0xff]   ;;  %v8450_v2 = vld [vmem:[#allocation5 + $0x1ac] ss:$16 sps:$4 sm:$0xff]  }
  0xdf   :  { %v8475_v61 = vld [vmem:[#allocation2 + $0x90] ss:$24 sps:$4 sm:$0xff]   ;;  %v1010_v62 = vrot.slane %v8466_v56, %v10197_v54  ;;  %v1024_v0 = vrot.slane %v8469_v57, %v10197_v54  ;;  %v1038_v1 = vrot.slane %v8472_v58, %v10197_v54  ;;  %v8454_v10 = vld [vmem:[#allocation5 + $0x1c4] ss:$16 sps:$4 sm:$0xff]   ;;  %v8456_v12 = vld [vmem:[#allocation5 + $0x1cc] ss:$16 sps:$4 sm:$0xff]  }
  0xe0   :  { %v1052_v3 = vrot.slane %v8475_v61, %v10197_v54  ;;  %v8452_v6 = vld [vmem:[#allocation5 + $0x1a0] ss:$16 sps:$4 sm:$0xff]   ;;  %v8453_v7 = vld [vmem:[#allocation5 + $0x1a8] ss:$16 sps:$4 sm:$0xff]   ;;  %v8460_v20 = vld [vmem:[#allocation5 + $0x1e4] ss:$16 sps:$4 sm:$0xff]  }
  0xe1   :  { %5279 = vmatpush1.bf16.msra.mxu0 %v8404_v22  ;;  %5795 = vmatpush1.bf16.msra.mxu1 %v8405_v23  ;;  %v1061_v4 = vcombine.high %v1010_v62, %v1024_v0  ;;  %v1060_v5 = vcombine.low %v1010_v62, %v1024_v0  ;;  %v8458_v16 = vld [vmem:[#allocation5 + $0x1c0] ss:$16 sps:$4 sm:$0xff]   ;;  %v8459_v17 = vld [vmem:[#allocation5 + $0x1c8] ss:$16 sps:$4 sm:$0xff]   ;;  %v8462_v21 = vld [vmem:[#allocation5 + $0x1ec] ss:$16 sps:$4 sm:$0xff]  }
  0xe2   :  { %5280 = vmatprep.subr.bf16.mxu0 %v8406_v24  ;;  %5796 = vmatprep.subr.bf16.mxu1 %v8408_v25  ;;  %v1065_v8 = vcombine.high %v1038_v1, %v1052_v3  ;;  %v1064_v9 = vcombine.low %v1038_v1, %v1052_v3  ;;  %v8464_v22 = vld [vmem:[#allocation5 + $0x1e0] ss:$16 sps:$4 sm:$0xff]   ;;  %v8465_v23 = vld [vmem:[#allocation5 + $0x1e8] ss:$16 sps:$4 sm:$0xff]   ;;  %v8480_v24 = vld [vmem:[#allocation5 + $0x204] ss:$16 sps:$4 sm:$0xff]  }
  0xe3   :  { %v1088_v11 = vrot.slane %v1061_v4, %v10197_v54  ;;  %v1074_v14 = vrot.slane %v1060_v5, %v10197_v54  ;;  %v8483_v25 = vld [vmem:[#allocation5 + $0x20c] ss:$16 sps:$4 sm:$0xff]   ;;  %v8496_v40 = vld [vmem:[#allocation5 + $0x260] ss:$16 sps:$4 sm:$0xff]   ;;  %v8499_v41 = vld [vmem:[#allocation5 + $0x268] ss:$16 sps:$4 sm:$0xff]  }
  0xe4   :  { %v1116_v13 = vrot.slane %v1065_v8, %v10197_v54  ;;  %v1102_v15 = vrot.slane %v1064_v9, %v10197_v54  ;;  %v8501_v39 = vld [vmem:[#allocation5 + $0x26c] ss:$16 sps:$4 sm:$0xff]   ;;  %v8522_v56 = vld [vmem:[#allocation5 + $0x2e4] ss:$16 sps:$4 sm:$0xff]   ;;  %v8520_v58 = vld [vmem:[#allocation5 + $0x2e0] ss:$16 sps:$4 sm:$0xff]  }
  0xe5   :  { %5281 = vmatpush1.bf16.msra.mxu0 %v8410_v26  ;;  %5797 = vmatpush1.bf16.msra.mxu1 %v8411_v27  ;;  %v8478_v26 = vld [vmem:[#allocation5 + $0x200] ss:$16 sps:$4 sm:$0xff]   ;;  %v8481_v27 = vld [vmem:[#allocation5 + $0x208] ss:$16 sps:$4 sm:$0xff]   ;;  %v8513_v47 = vld [vmem:[#allocation5 + $0x2ac] ss:$16 sps:$4 sm:$0xff]  }
  0xe6   :  { %5282 = vmatprep.subr.bf16.mxu0 %v8412_v28  ;;  %5798 = vmatprep.subr.bf16.mxu1 %v8414_v29  ;;  %v1128_v18 = vcombine.low %v1088_v11, %v1116_v13  ;;  %v10207_v19 = vcombine.high %v1074_v14, %v1102_v15  ;;  %v1124_v28 = vcombine.low %v1074_v14, %v1102_v15  ;;  %v8486_v29 = vld [vmem:[#allocation5 + $0x224] ss:$16 sps:$4 sm:$0xff]   ;;  %v8525_v57 = vld [vmem:[#allocation5 + $0x2ec] ss:$16 sps:$4 sm:$0xff]   ;;  %v8526_v62 = vld [vmem:[#allocation5 + $0x300] ss:$16 sps:$4 sm:$0xff]  }
  0xe7   :  { %v8531_v61 = vld [vmem:[#allocation5 + $0x30c] ss:$16 sps:$4 sm:$0xff]   ;;  %v8534_v0 = vld [vmem:[#allocation5 + $0x324] ss:$16 sps:$4 sm:$0xff]   ;;  %v8535_v3 = vld [vmem:[#allocation5 + $0x328] ss:$16 sps:$4 sm:$0xff]  }
  0xe8   :  { %5300 = vmatprep.mubr.bf16.mxu0 %v1128_v18  ;;  %5816 = vmatprep.mubr.bf16.mxu1 %v1128_v18  ;;  %v8537_v1 = vld [vmem:[#allocation5 + $0x32c] ss:$16 sps:$4 sm:$0xff]   ;;  %v8540_v4 = vld [vmem:[#allocation5 + $0x344] ss:$16 sps:$4 sm:$0xff]   ;;  %v8550_v14 = vld [vmem:[#allocation5 + $0x380] ss:$16 sps:$4 sm:$0xff]  }
  0xe9   :  { %5283 = vmatpush1.bf16.msra.mxu0 %v8416_v30  ;;  %5799 = vmatpush1.bf16.msra.mxu1 %v8417_v31  ;;  %v8489_v30 = vld [vmem:[#allocation5 + $0x22c] ss:$16 sps:$4 sm:$0xff]   ;;  %v1129_v31 = vcombine.high %v1088_v11, %v1116_v13  ;;  %v8546_v8 = vld [vmem:[#allocation5 + $0x364] ss:$16 sps:$4 sm:$0xff]   ;;  %v8547_v11 = vld [vmem:[#allocation5 + $0x368] ss:$16 sps:$4 sm:$0xff]  }
  0xea   :  { %5284 = vmatprep.subr.bf16.mxu0 %v8418_v32  ;;  %5800 = vmatprep.subr.bf16.mxu1 %v8420_v33  ;;  %v8484_v32 = vld [vmem:[#allocation5 + $0x220] ss:$16 sps:$4 sm:$0xff]   ;;  %v8487_v33 = vld [vmem:[#allocation5 + $0x228] ss:$16 sps:$4 sm:$0xff]   ;;  %v8543_v5 = vld [vmem:[#allocation5 + $0x34c] ss:$16 sps:$4 sm:$0xff]  }
  0xeb   :  { %v8549_v9 = vld [vmem:[#allocation5 + $0x36c] ss:$16 sps:$4 sm:$0xff]   ;;  %v8553_v15 = vld [vmem:[#allocation5 + $0x388] ss:$16 sps:$4 sm:$0xff]   ;;  %v8558_v18 = vld [vmem:[#allocation5 + $0x3a4] ss:$16 sps:$4 sm:$0xff]  }
  0xec   :  { %v8555_v13 = vld [vmem:[#allocation5 + $0x38c] ss:$16 sps:$4 sm:$0xff]   ;;  %vm7213_vm1 = vcmask 1043456   ;;  %vm7209_vm2 = vcmask 64512  }
  0xed   :  { %5285 = vmatpush1.bf16.msra.mxu0 %v8422_v34  ;;  %5801 = vmatpush1.bf16.msra.mxu1 %v8423_v35  ;;  %v8492_v34 = vld [vmem:[#allocation5 + $0x244] ss:$16 sps:$4 sm:$0xff]   ;;  %v8495_v35 = vld [vmem:[#allocation5 + $0x24c] ss:$16 sps:$4 sm:$0xff]  }
  0xee   :  { %5286 = vmatprep.subr.bf16.mxu0 %v8424_v36  ;;  %5802 = vmatprep.subr.bf16.mxu1 %v8426_v37  ;;  %v8490_v36 = vld [vmem:[#allocation5 + $0x240] ss:$16 sps:$4 sm:$0xff]   ;;  %v8493_v37 = vld [vmem:[#allocation5 + $0x248] ss:$16 sps:$4 sm:$0xff]  }
  0xf1   :  { %5287 = vmatpush1.bf16.msra.mxu0 %v8428_v38  ;;  %5803 = vmatpush1.bf16.msra.mxu1 %v8429_v42  ;;  %v8498_v38 = vld [vmem:[#allocation5 + $0x264] ss:$16 sps:$4 sm:$0xff]  }
  0xf2   :  { %5288 = vmatprep.subr.bf16.mxu0 %v8430_v43  ;;  %5804 = vmatprep.subr.bf16.mxu1 %v8432_v44  ;;  %v8504_v42 = vld [vmem:[#allocation5 + $0x284] ss:$16 sps:$4 sm:$0xff]   ;;  %v8507_v43 = vld [vmem:[#allocation5 + $0x28c] ss:$16 sps:$4 sm:$0xff]   ;;  %v8502_v44 = vld [vmem:[#allocation5 + $0x280] ss:$16 sps:$4 sm:$0xff]  }
  0xf5   :  { %5289 = vmatpush1.bf16.msra.mxu0 %v8434_v45  ;;  %5805 = vmatpush1.bf16.msra.mxu1 %v8435_v46  ;;  %v8505_v45 = vld [vmem:[#allocation5 + $0x288] ss:$16 sps:$4 sm:$0xff]   ;;  %v8510_v46 = vld [vmem:[#allocation5 + $0x2a4] ss:$16 sps:$4 sm:$0xff]  }
  0xf6   :  { %5290 = vmatprep.subr.bf16.mxu0 %v8436_v49  ;;  %5806 = vmatprep.subr.bf16.mxu1 %v8438_v50  ;;  %v8508_v49 = vld [vmem:[#allocation5 + $0x2a0] ss:$16 sps:$4 sm:$0xff]   ;;  %v8511_v50 = vld [vmem:[#allocation5 + $0x2a8] ss:$16 sps:$4 sm:$0xff]  }
  0xf9   :  { %5291 = vmatpush1.bf16.msra.mxu0 %v8440_v51  ;;  %5807 = vmatpush1.bf16.msra.mxu1 %v8441_v52  ;;  %v8516_v51 = vld [vmem:[#allocation5 + $0x2c4] ss:$16 sps:$4 sm:$0xff]   ;;  %v8519_v52 = vld [vmem:[#allocation5 + $0x2cc] ss:$16 sps:$4 sm:$0xff]  }
  0xfa   :  { %5292 = vmatprep.subr.bf16.mxu0 %v8442_v53  ;;  %5808 = vmatprep.subr.bf16.mxu1 %v8444_v55  ;;  %v8514_v53 = vld [vmem:[#allocation5 + $0x2c0] ss:$16 sps:$4 sm:$0xff]   ;;  %v8517_v55 = vld [vmem:[#allocation5 + $0x2c8] ss:$16 sps:$4 sm:$0xff]  }
  0xfd   :  { %5293 = vmatpush1.bf16.msra.mxu0 %v8446_v59  ;;  %5809 = vmatpush1.bf16.msra.mxu1 %v8447_v60  ;;  %v8523_v59 = vld [vmem:[#allocation5 + $0x2e8] ss:$16 sps:$4 sm:$0xff]   ;;  %v8528_v60 = vld [vmem:[#allocation5 + $0x304] ss:$16 sps:$4 sm:$0xff]  }
  0xfe   :  { %5294 = vmatprep.subr.bf16.mxu0 %v8448_v63  ;;  %5810 = vmatprep.subr.bf16.mxu1 %v8450_v2  ;;  %v8529_v63 = vld [vmem:[#allocation5 + $0x308] ss:$16 sps:$4 sm:$0xff]   ;;  %v8532_v2 = vld [vmem:[#allocation5 + $0x320] ss:$16 sps:$4 sm:$0xff]  }
 0x101   :  { %5295 = vmatpush1.bf16.msra.mxu0 %v8452_v6  ;;  %5811 = vmatpush1.bf16.msra.mxu1 %v8453_v7  ;;  %v8538_v6 = vld [vmem:[#allocation5 + $0x340] ss:$16 sps:$4 sm:$0xff]   ;;  %v8541_v7 = vld [vmem:[#allocation5 + $0x348] ss:$16 sps:$4 sm:$0xff]  }
 0x102   :  { %5296 = vmatprep.subr.bf16.mxu0 %v8454_v10  ;;  %5812 = vmatprep.subr.bf16.mxu1 %v8456_v12  ;;  %v8544_v10 = vld [vmem:[#allocation5 + $0x360] ss:$16 sps:$4 sm:$0xff]   ;;  %v8552_v12 = vld [vmem:[#allocation5 + $0x384] ss:$16 sps:$4 sm:$0xff]  }
 0x105   :  { %5297 = vmatpush1.bf16.msra.mxu0 %v8458_v16  ;;  %5813 = vmatpush1.bf16.msra.mxu1 %v8459_v17  ;;  %v8468_v16 = vld [vmem:[#allocation2 + $0x4] ss:$24 sps:$4 sm:$0xff]   ;;  %v8471_v17 = vld [vmem:[#allocation2 + $0x34] ss:$24 sps:$4 sm:$0xff]  }
 0x106   :  { %5298 = vmatprep.subr.bf16.mxu0 %v8460_v20  ;;  %5814 = vmatprep.subr.bf16.mxu1 %v8462_v21  ;;  %v8561_v20 = vld [vmem:[#allocation5 + $0x3ac] ss:$16 sps:$4 sm:$0xff]  }
 0x107   :  { %v8474_v21 = vld [vmem:[#allocation2 + $0x64] ss:$24 sps:$4 sm:$0xff]  }
 0x109   :  { %5299 = vmatpush1.bf16.msra.mxu0 %v8464_v22  ;;  %5815 = vmatpush1.bf16.msra.mxu1 %v8465_v23  ;;  %v8477_v22 = vld [vmem:[#allocation2 + $0x94] ss:$24 sps:$4 sm:$0xff]   ;;  %v8556_v23 = vld [vmem:[#allocation5 + $0x3a0] ss:$16 sps:$4 sm:$0xff]  }
 0x10a   :  { %5311 = vmatprep.subr.bf16.mxu0 %v8480_v24  ;;  %5827 = vmatprep.subr.bf16.mxu1 %v8483_v25  ;;  %v8559_v24 = vld [vmem:[#allocation5 + $0x3a8] ss:$16 sps:$4 sm:$0xff]   ;;  %v8564_v25 = vld [vmem:[#allocation5 + $0x3c4] ss:$16 sps:$4 sm:$0xff]  }
 0x10c   :  { %5301 = vmatmul.mubr.bf16.vlgmr.msra.gmra.mrb[0].mxu0 %v1124_v28  ;;  %5817 = vmatmul.mubr.bf16.vlgmr.msra.gmra.mrb[0].mxu1 %v1124_v28  ;;  %v1031_v28 = vrot.slane %v8471_v17, %v10197_v54  ;;  %v8624_v17 = vld [vmem:[#allocation5 + $0x504] ss:$16 sps:$4 sm:$0xff]  }
 0x10d   :  { %5312 = vmatpush1.bf16.msra.mxu0 %v8478_v26  ;;  %5828 = vmatpush1.bf16.msra.mxu1 %v8481_v27  ;;  %v8567_v26 = vld [vmem:[#allocation5 + $0x3cc] ss:$16 sps:$4 sm:$0xff]   ;;  %v1017_v27 = vrot.slane %v8468_v16, %v10197_v54  ;;  %v8619_v16 = vld [vmem:[#allocation5 + $0x4e8] ss:$16 sps:$4 sm:$0xff]  }
 0x10e   :  { %5313 = vmatprep.subr.bf16.mxu0 %v8486_v29  ;;  %5829 = vmatprep.subr.bf16.mxu1 %v8489_v30  ;;  %v1045_v29 = vrot.slane %v8474_v21, %v10197_v54  ;;  %v1059_v30 = vrot.slane %v8477_v22, %v10197_v54  ;;  %v8625_v21 = vld [vmem:[#allocation5 + $0x508] ss:$16 sps:$4 sm:$0xff]   ;;  %v8630_v22 = vld [vmem:[#allocation5 + $0x524] ss:$16 sps:$4 sm:$0xff]  }
 0x10f   :  { %5343 = vmatprep.mubr.bf16.mxu0 %v1129_v31  ;;  %5859 = vmatprep.mubr.bf16.mxu1 %v1129_v31  ;;  %v8562_v31 = vld [vmem:[#allocation5 + $0x3c0] ss:$16 sps:$4 sm:$0xff]  }
 0x111   :  { %5314 = vmatpush1.bf16.msra.mxu0 %v8484_v32  ;;  %5830 = vmatpush1.bf16.msra.mxu1 %v8487_v33  ;;  %v8565_v32 = vld [vmem:[#allocation5 + $0x3c8] ss:$16 sps:$4 sm:$0xff]   ;;  %v8570_v33 = vld [vmem:[#allocation5 + $0x3e4] ss:$16 sps:$4 sm:$0xff]  }
 0x112   :  { %5315 = vmatprep.subr.bf16.mxu0 %v8492_v34  ;;  %5831 = vmatprep.subr.bf16.mxu1 %v8495_v35  ;;  %v8573_v34 = vld [vmem:[#allocation5 + $0x3ec] ss:$16 sps:$4 sm:$0xff]   ;;  %v1063_v35 = vcombine.high %v1017_v27, %v1031_v28 }
 0x115   :  { %5316 = vmatpush1.bf16.msra.mxu0 %v8490_v36  ;;  %5832 = vmatpush1.bf16.msra.mxu1 %v8493_v37  ;;  %v1067_v36 = vcombine.high %v1045_v29, %v1059_v30  ;;  %v8568_v37 = vld [vmem:[#allocation5 + $0x3e0] ss:$16 sps:$4 sm:$0xff]  }
 0x116   :  { %5317 = vmatprep.subr.bf16.mxu0 %v8498_v38  ;;  %5833 = vmatprep.subr.bf16.mxu1 %v8501_v39  ;;  %v8571_v38 = vld [vmem:[#allocation5 + $0x3e8] ss:$16 sps:$4 sm:$0xff]   ;;  %v1062_v39 = vcombine.low %v1017_v27, %v1031_v28  ;;  %v8639_v27 = vld [vmem:[#allocation5 + $0x54c] ss:$16 sps:$4 sm:$0xff]   ;;  %v8634_v28 = vld [vmem:[#allocation5 + $0x540] ss:$16 sps:$4 sm:$0xff]  }
 0x119   :  { %5318 = vmatpush1.bf16.msra.mxu0 %v8496_v40  ;;  %5834 = vmatpush1.bf16.msra.mxu1 %v8499_v41  ;;  %v1066_v40 = vcombine.low %v1045_v29, %v1059_v30  ;;  %v8576_v41 = vld [vmem:[#allocation5 + $0x404] ss:$16 sps:$4 sm:$0xff]   ;;  %v8637_v29 = vld [vmem:[#allocation5 + $0x548] ss:$16 sps:$4 sm:$0xff]  }
 0x11a   :  { %5319 = vmatprep.subr.bf16.mxu0 %v8504_v42  ;;  %5835 = vmatprep.subr.bf16.mxu1 %v8507_v43  ;;  %v8579_v42 = vld [vmem:[#allocation5 + $0x40c] ss:$16 sps:$4 sm:$0xff]   ;;  %v1095_v43 = vrot.slane %v1063_v35, %v10197_v54  ;;  %v8642_v30 = vld [vmem:[#allocation5 + $0x564] ss:$16 sps:$4 sm:$0xff]  }
 0x11b   :  { %v8651_v35 = vld [vmem:[#allocation5 + $0x58c] ss:$16 sps:$4 sm:$0xff]  }
 0x11d   :  { %5320 = vmatpush1.bf16.msra.mxu0 %v8502_v44  ;;  %5836 = vmatpush1.bf16.msra.mxu1 %v8505_v45  ;;  %v1123_v44 = vrot.slane %v1067_v36, %v10197_v54  ;;  %v8574_v45 = vld [vmem:[#allocation5 + $0x400] ss:$16 sps:$4 sm:$0xff]  }
 0x11e   :  { %5321 = vmatprep.subr.bf16.mxu0 %v8510_v46  ;;  %5837 = vmatprep.subr.bf16.mxu1 %v8513_v47  ;;  %v8577_v46 = vld [vmem:[#allocation5 + $0x408] ss:$16 sps:$4 sm:$0xff]   ;;  %v10216_v47 = vrot.slane %v1062_v39, %v10197_v54  ;;  %v8646_v36 = vld [vmem:[#allocation5 + $0x580] ss:$16 sps:$4 sm:$0xff]   ;;  %v8657_v39 = vld [vmem:[#allocation5 + $0x5ac] ss:$16 sps:$4 sm:$0xff]  }
 0x121   :  { %5322 = vmatpush1.bf16.msra.mxu0 %v8508_v49  ;;  %5838 = vmatpush1.bf16.msra.mxu1 %v8511_v50  ;;  %v10219_v49 = vrot.slane %v1066_v40, %v10197_v54  ;;  %v8582_v50 = vld [vmem:[#allocation5 + $0x424] ss:$16 sps:$4 sm:$0xff]   ;;  %v8652_v40 = vld [vmem:[#allocation5 + $0x5a0] ss:$16 sps:$4 sm:$0xff]  }
 0x122   :  { %5323 = vmatprep.subr.bf16.mxu0 %v8516_v51  ;;  %5839 = vmatprep.subr.bf16.mxu1 %v8519_v52  ;;  %v10221_v51 = vcombine.high %v1095_v43, %v1123_v44  ;;  %v8585_v52 = vld [vmem:[#allocation5 + $0x42c] ss:$16 sps:$4 sm:$0xff]  }
 0x125   :  { %5324 = vmatpush1.bf16.msra.mxu0 %v8514_v53  ;;  %5840 = vmatpush1.bf16.msra.mxu1 %v8517_v55  ;;  %v10225_v53 = vcombine.high %v10216_v47, %v10219_v49  ;;  %v1130_v55 = vcombine.low %v1095_v43, %v1123_v44  ;;  %v8663_v43 = vld [vmem:[#allocation5 + $0x5cc] ss:$16 sps:$4 sm:$0xff]   ;;  %v8658_v44 = vld [vmem:[#allocation5 + $0x5c0] ss:$16 sps:$4 sm:$0xff]  }
 0x126   :  { %5325 = vmatprep.subr.bf16.mxu0 %v8522_v56  ;;  %5841 = vmatprep.subr.bf16.mxu1 %v8525_v57  ;;  %v8580_v56 = vld [vmem:[#allocation5 + $0x420] ss:$16 sps:$4 sm:$0xff]   ;;  %v8583_v57 = vld [vmem:[#allocation5 + $0x428] ss:$16 sps:$4 sm:$0xff]  }
 0x129   :  { %5326 = vmatpush1.bf16.msra.mxu0 %v8520_v58  ;;  %5842 = vmatpush1.bf16.msra.mxu1 %v8523_v59  ;;  %v8588_v58 = vld [vmem:[#allocation5 + $0x444] ss:$16 sps:$4 sm:$0xff]   ;;  %v8591_v59 = vld [vmem:[#allocation5 + $0x44c] ss:$16 sps:$4 sm:$0xff]  }
 0x12a   :  { %5327 = vmatprep.subr.bf16.mxu0 %v8528_v60  ;;  %5843 = vmatprep.subr.bf16.mxu1 %v8531_v61  ;;  %v8586_v60 = vld [vmem:[#allocation5 + $0x440] ss:$16 sps:$4 sm:$0xff]   ;;  %v8589_v61 = vld [vmem:[#allocation5 + $0x448] ss:$16 sps:$4 sm:$0xff]  }
 0x12d   :  { %5328 = vmatpush1.bf16.msra.mxu0 %v8526_v62  ;;  %5844 = vmatpush1.bf16.msra.mxu1 %v8529_v63  ;;  %v8594_v62 = vld [vmem:[#allocation5 + $0x464] ss:$16 sps:$4 sm:$0xff]   ;;  %v8597_v63 = vld [vmem:[#allocation5 + $0x46c] ss:$16 sps:$4 sm:$0xff]  }
 0x12e   :  { %5329 = vmatprep.subr.bf16.mxu0 %v8534_v0  ;;  %5845 = vmatprep.subr.bf16.mxu1 %v8537_v1  ;;  %v8592_v0 = vld [vmem:[#allocation5 + $0x460] ss:$16 sps:$4 sm:$0xff]   ;;  %v8600_v1 = vld [vmem:[#allocation5 + $0x484] ss:$16 sps:$4 sm:$0xff]  }
 0x131   :  { %5330 = vmatpush1.bf16.msra.mxu0 %v8532_v2  ;;  %5846 = vmatpush1.bf16.msra.mxu1 %v8535_v3  ;;  %v8603_v2 = vld [vmem:[#allocation5 + $0x48c] ss:$16 sps:$4 sm:$0xff]   ;;  %v8598_v3 = vld [vmem:[#allocation5 + $0x480] ss:$16 sps:$4 sm:$0xff]  }
 0x132   :  { %5331 = vmatprep.subr.bf16.mxu0 %v8540_v4  ;;  %5847 = vmatprep.subr.bf16.mxu1 %v8543_v5  ;;  %v8601_v4 = vld [vmem:[#allocation5 + $0x488] ss:$16 sps:$4 sm:$0xff]   ;;  %v8606_v5 = vld [vmem:[#allocation5 + $0x4a4] ss:$16 sps:$4 sm:$0xff]  }
 0x135   :  { %5332 = vmatpush1.bf16.msra.mxu0 %v8538_v6  ;;  %5848 = vmatpush1.bf16.msra.mxu1 %v8541_v7  ;;  %v8609_v6 = vld [vmem:[#allocation5 + $0x4ac] ss:$16 sps:$4 sm:$0xff]   ;;  %v8604_v7 = vld [vmem:[#allocation5 + $0x4a0] ss:$16 sps:$4 sm:$0xff]  }
 0x136   :  { %5333 = vmatprep.subr.bf16.mxu0 %v8546_v8  ;;  %5849 = vmatprep.subr.bf16.mxu1 %v8549_v9  ;;  %v8607_v8 = vld [vmem:[#allocation5 + $0x4a8] ss:$16 sps:$4 sm:$0xff]   ;;  %v8612_v9 = vld [vmem:[#allocation5 + $0x4c4] ss:$16 sps:$4 sm:$0xff]  }
 0x139   :  { %5334 = vmatpush1.bf16.msra.mxu0 %v8544_v10  ;;  %5850 = vmatpush1.bf16.msra.mxu1 %v8547_v11  ;;  %v8615_v10 = vld [vmem:[#allocation5 + $0x4cc] ss:$16 sps:$4 sm:$0xff]   ;;  %v8610_v11 = vld [vmem:[#allocation5 + $0x4c0] ss:$16 sps:$4 sm:$0xff]  }
 0x13a   :  { %5335 = vmatprep.subr.bf16.mxu0 %v8552_v12  ;;  %5851 = vmatprep.subr.bf16.mxu1 %v8555_v13  ;;  %v8613_v12 = vld [vmem:[#allocation5 + $0x4c8] ss:$16 sps:$4 sm:$0xff]   ;;  %v8618_v13 = vld [vmem:[#allocation5 + $0x4e4] ss:$16 sps:$4 sm:$0xff]  }
 0x13d   :  { %5336 = vmatpush1.bf16.msra.mxu0 %v8550_v14  ;;  %5852 = vmatpush1.bf16.msra.mxu1 %v8553_v15  ;;  %v8621_v14 = vld [vmem:[#allocation5 + $0x4ec] ss:$16 sps:$4 sm:$0xff]   ;;  %v8616_v15 = vld [vmem:[#allocation5 + $0x4e0] ss:$16 sps:$4 sm:$0xff]  }
 0x13e   :  { %5337 = vmatprep.subr.bf16.mxu0 %v8558_v18  ;;  %5853 = vmatprep.subr.bf16.mxu1 %v8561_v20  ;;  %v8627_v18 = vld [vmem:[#allocation5 + $0x50c] ss:$16 sps:$4 sm:$0xff]   ;;  %v8622_v20 = vld [vmem:[#allocation5 + $0x500] ss:$16 sps:$4 sm:$0xff]  }
 0x141   :  { %5338 = vmatpush1.bf16.msra.mxu0 %v8556_v23  ;;  %5854 = vmatpush1.bf16.msra.mxu1 %v8559_v24  ;;  %v8633_v23 = vld [vmem:[#allocation5 + $0x52c] ss:$16 sps:$4 sm:$0xff]   ;;  %v8628_v24 = vld [vmem:[#allocation5 + $0x520] ss:$16 sps:$4 sm:$0xff]  }
 0x142   :  { %5339 = vmatprep.subr.bf16.mxu0 %v8564_v25  ;;  %5855 = vmatprep.subr.bf16.mxu1 %v8567_v26  ;;  %v8631_v25 = vld [vmem:[#allocation5 + $0x528] ss:$16 sps:$4 sm:$0xff]   ;;  %v8636_v26 = vld [vmem:[#allocation5 + $0x544] ss:$16 sps:$4 sm:$0xff]  }
 0x145   :  { %5340 = vmatpush1.bf16.msra.mxu0 %v8562_v31  ;;  %5856 = vmatpush1.bf16.msra.mxu1 %v8565_v32  ;;  %v8645_v31 = vld [vmem:[#allocation5 + $0x56c] ss:$16 sps:$4 sm:$0xff]   ;;  %v8640_v32 = vld [vmem:[#allocation5 + $0x560] ss:$16 sps:$4 sm:$0xff]  }
 0x146   :  { %5341 = vmatprep.subr.bf16.mxu0 %v8570_v33  ;;  %5857 = vmatprep.subr.bf16.mxu1 %v8573_v34  ;;  %v8643_v33 = vld [vmem:[#allocation5 + $0x568] ss:$16 sps:$4 sm:$0xff]   ;;  %v8648_v34 = vld [vmem:[#allocation5 + $0x584] ss:$16 sps:$4 sm:$0xff]  }
 0x149   :  { %5342 = vmatpush1.bf16.msra.mxu0 %v8568_v37  ;;  %5858 = vmatpush1.bf16.msra.mxu1 %v8571_v38  ;;  %v8649_v37 = vld [vmem:[#allocation5 + $0x588] ss:$16 sps:$4 sm:$0xff]   ;;  %v8654_v38 = vld [vmem:[#allocation5 + $0x5a4] ss:$16 sps:$4 sm:$0xff]  }
 0x14a   :  { %5354 = vmatprep.subr.bf16.mxu0 %v8576_v41  ;;  %5870 = vmatprep.subr.bf16.mxu1 %v8579_v42  ;;  %v8655_v41 = vld [vmem:[#allocation5 + $0x5a8] ss:$16 sps:$4 sm:$0xff]   ;;  %v8660_v42 = vld [vmem:[#allocation5 + $0x5c4] ss:$16 sps:$4 sm:$0xff]  }
 0x14c   :  { %5344 = vmatmul.mubr.bf16.vlgmr.msra.gmra.mrb[0].mxu0 %v10207_v19  ;;  %5860 = vmatmul.mubr.bf16.vlgmr.msra.gmra.mrb[0].mxu1 %v10207_v19  ;;  %v8595_v19 = vld [vmem:[#allocation5 + $0x468] ss:$16 sps:$4 sm:$0xff]  }
 0x14d   :  { %5355 = vmatpush1.bf16.msra.mxu0 %v8574_v45  ;;  %5871 = vmatpush1.bf16.msra.mxu1 %v8577_v46  ;;  %v8661_v45 = vld [vmem:[#allocation5 + $0x5c8] ss:$16 sps:$4 sm:$0xff]   ;;  %v8666_v46 = vld [vmem:[#allocation5 + $0x5e4] ss:$16 sps:$4 sm:$0xff]  }
 0x14e   :  { %5356 = vmatprep.subr.bf16.mxu0 %v8582_v50  ;;  %5872 = vmatprep.subr.bf16.mxu1 %v8585_v52  ;;  %v8669_v50 = vld [vmem:[#allocation5 + $0x5ec] ss:$16 sps:$4 sm:$0xff]   ;;  %v8664_v52 = vld [vmem:[#allocation5 + $0x5e0] ss:$16 sps:$4 sm:$0xff]  }
 0x14f   :  { %5386 = vmatprep.mubr.bf16.mxu0 %v1130_v55  ;;  %5902 = vmatprep.mubr.bf16.mxu1 %v1130_v55  ;;  %v8667_v55 = vld [vmem:[#allocation5 + $0x5e8] ss:$16 sps:$4 sm:$0xff]  }
 0x151   :  { %5357 = vmatpush1.bf16.msra.mxu0 %v8580_v56  ;;  %5873 = vmatpush1.bf16.msra.mxu1 %v8583_v57  ;;  %v8672_v56 = vld [vmem:[#allocation5 + $0x604] ss:$16 sps:$4 sm:$0xff]   ;;  %v8675_v57 = vld [vmem:[#allocation5 + $0x60c] ss:$16 sps:$4 sm:$0xff]  }
 0x152   :  { %5358 = vmatprep.subr.bf16.mxu0 %v8588_v58  ;;  %5874 = vmatprep.subr.bf16.mxu1 %v8591_v59  ;;  %v8670_v58 = vld [vmem:[#allocation5 + $0x600] ss:$16 sps:$4 sm:$0xff]   ;;  %v8673_v59 = vld [vmem:[#allocation5 + $0x608] ss:$16 sps:$4 sm:$0xff]  }
 0x155   :  { %5359 = vmatpush1.bf16.msra.mxu0 %v8586_v60  ;;  %5875 = vmatpush1.bf16.msra.mxu1 %v8589_v61  ;;  %v1126_v60 = vcombine.low %v10216_v47, %v10219_v49  ;;  %v8678_v61 = vld [vmem:[#allocation5 + $0x624] ss:$16 sps:$4 sm:$0xff]   ;;  %v8682_v47 = vld [vmem:[#allocation5 + $0x640] ss:$16 sps:$4 sm:$0xff]   ;;  %v8685_v49 = vld [vmem:[#allocation5 + $0x648] ss:$16 sps:$4 sm:$0xff]  }
 0x156   :  { %5360 = vmatprep.subr.bf16.mxu0 %v8594_v62  ;;  %5876 = vmatprep.subr.bf16.mxu1 %v8597_v63  ;;  %v8681_v62 = vld [vmem:[#allocation5 + $0x62c] ss:$16 sps:$4 sm:$0xff]   ;;  %v8676_v63 = vld [vmem:[#allocation5 + $0x620] ss:$16 sps:$4 sm:$0xff]  }
 0x159   :  { %5361 = vmatpush1.bf16.msra.mxu0 %v8592_v0  ;;  %5877 = vmatpush1.bf16.msra.mxu1 %v8595_v19  ;;  %v8679_v0 = vld [vmem:[#allocation5 + $0x628] ss:$16 sps:$4 sm:$0xff]   ;;  %v8684_v19 = vld [vmem:[#allocation5 + $0x644] ss:$16 sps:$4 sm:$0xff]  }
 0x15a   :  { %5362 = vmatprep.subr.bf16.mxu0 %v8600_v1  ;;  %5878 = vmatprep.subr.bf16.mxu1 %v8603_v2  ;;  %v8687_v1 = vld [vmem:[#allocation5 + $0x64c] ss:$16 sps:$4 sm:$0xff]   ;;  %v8690_v2 = vld [vmem:[#allocation5 + $0x664] ss:$16 sps:$4 sm:$0xff]  }
 0x15d   :  { %5363 = vmatpush1.bf16.msra.mxu0 %v8598_v3  ;;  %5879 = vmatpush1.bf16.msra.mxu1 %v8601_v4  ;;  %v8693_v3 = vld [vmem:[#allocation5 + $0x66c] ss:$16 sps:$4 sm:$0xff]   ;;  %v8688_v4 = vld [vmem:[#allocation5 + $0x660] ss:$16 sps:$4 sm:$0xff]  }
 0x15e   :  { %5364 = vmatprep.subr.bf16.mxu0 %v8606_v5  ;;  %5880 = vmatprep.subr.bf16.mxu1 %v8609_v6  ;;  %v8691_v5 = vld [vmem:[#allocation5 + $0x668] ss:$16 sps:$4 sm:$0xff]   ;;  %v8696_v6 = vld [vmem:[#allocation5 + $0x684] ss:$16 sps:$4 sm:$0xff]  }
 0x161   :  { %5365 = vmatpush1.bf16.msra.mxu0 %v8604_v7  ;;  %5881 = vmatpush1.bf16.msra.mxu1 %v8607_v8  ;;  %v8699_v7 = vld [vmem:[#allocation5 + $0x68c] ss:$16 sps:$4 sm:$0xff]   ;;  %v8694_v8 = vld [vmem:[#allocation5 + $0x680] ss:$16 sps:$4 sm:$0xff]  }
 0x162   :  { %5366 = vmatprep.subr.bf16.mxu0 %v8612_v9  ;;  %5882 = vmatprep.subr.bf16.mxu1 %v8615_v10  ;;  %v8697_v9 = vld [vmem:[#allocation5 + $0x688] ss:$16 sps:$4 sm:$0xff]   ;;  %v8705_v10 = vld [vmem:[#allocation5 + $0x6ac] ss:$16 sps:$4 sm:$0xff]  }
 0x165   :  { %5367 = vmatpush1.bf16.msra.mxu0 %v8610_v11  ;;  %5883 = vmatpush1.bf16.msra.mxu1 %v8613_v12  ;;  %v8700_v11 = vld [vmem:[#allocation5 + $0x6a0] ss:$16 sps:$4 sm:$0xff]   ;;  %v8703_v12 = vld [vmem:[#allocation5 + $0x6a8] ss:$16 sps:$4 sm:$0xff]  }
 0x166   :  { %5368 = vmatprep.subr.bf16.mxu0 %v8618_v13  ;;  %5884 = vmatprep.subr.bf16.mxu1 %v8621_v14  ;;  %v8708_v13 = vld [vmem:[#allocation5 + $0x6c4] ss:$16 sps:$4 sm:$0xff]   ;;  %v8711_v14 = vld [vmem:[#allocation5 + $0x6cc] ss:$16 sps:$4 sm:$0xff]  }
 0x169   :  { %5369 = vmatpush1.bf16.msra.mxu0 %v8616_v15  ;;  %5885 = vmatpush1.bf16.msra.mxu1 %v8619_v16  ;;  %v8706_v15 = vld [vmem:[#allocation5 + $0x6c0] ss:$16 sps:$4 sm:$0xff]   ;;  %v8709_v16 = vld [vmem:[#allocation5 + $0x6c8] ss:$16 sps:$4 sm:$0xff]  }
 0x16a   :  { %5370 = vmatprep.subr.bf16.mxu0 %v8624_v17  ;;  %5886 = vmatprep.subr.bf16.mxu1 %v8627_v18  ;;  %v8714_v17 = vld [vmem:[#allocation5 + $0x6e4] ss:$16 sps:$4 sm:$0xff]   ;;  %v8717_v18 = vld [vmem:[#allocation5 + $0x6ec] ss:$16 sps:$4 sm:$0xff]  }
 0x16d   :  { %5371 = vmatpush1.bf16.msra.mxu0 %v8622_v20  ;;  %5887 = vmatpush1.bf16.msra.mxu1 %v8625_v21  ;;  %v8712_v20 = vld [vmem:[#allocation5 + $0x6e0] ss:$16 sps:$4 sm:$0xff]   ;;  %v8715_v21 = vld [vmem:[#allocation5 + $0x6e8] ss:$16 sps:$4 sm:$0xff]  }
 0x16e   :  { %5372 = vmatprep.subr.bf16.mxu0 %v8630_v22  ;;  %5888 = vmatprep.subr.bf16.mxu1 %v8633_v23  ;;  %v8720_v22 = vld [vmem:[#allocation5 + $0x704] ss:$16 sps:$4 sm:$0xff]   ;;  %v8723_v23 = vld [vmem:[#allocation5 + $0x70c] ss:$16 sps:$4 sm:$0xff]  }
 0x171   :  { %5373 = vmatpush1.bf16.msra.mxu0 %v8628_v24  ;;  %5889 = vmatpush1.bf16.msra.mxu1 %v8631_v25  ;;  %v8718_v24 = vld [vmem:[#allocation5 + $0x700] ss:$16 sps:$4 sm:$0xff]   ;;  %v8721_v25 = vld [vmem:[#allocation5 + $0x708] ss:$16 sps:$4 sm:$0xff]  }
 0x172   :  { %5374 = vmatprep.subr.bf16.mxu0 %v8636_v26  ;;  %5890 = vmatprep.subr.bf16.mxu1 %v8639_v27  ;;  %v8726_v26 = vld [vmem:[#allocation5 + $0x724] ss:$16 sps:$4 sm:$0xff]   ;;  %v8729_v27 = vld [vmem:[#allocation5 + $0x72c] ss:$16 sps:$4 sm:$0xff]  }
 0x175   :  { %5375 = vmatpush1.bf16.msra.mxu0 %v8634_v28  ;;  %5891 = vmatpush1.bf16.msra.mxu1 %v8637_v29  ;;  %v8724_v28 = vld [vmem:[#allocation5 + $0x720] ss:$16 sps:$4 sm:$0xff]   ;;  %v8727_v29 = vld [vmem:[#allocation5 + $0x728] ss:$16 sps:$4 sm:$0xff]  }
 0x176   :  { %5376 = vmatprep.subr.bf16.mxu0 %v8642_v30  ;;  %5892 = vmatprep.subr.bf16.mxu1 %v8645_v31  ;;  %v8732_v30 = vld [vmem:[#allocation5 + $0x744] ss:$16 sps:$4 sm:$0xff]   ;;  %v8735_v31 = vld [vmem:[#allocation5 + $0x74c] ss:$16 sps:$4 sm:$0xff]  }
 0x179   :  { %5377 = vmatpush1.bf16.msra.mxu0 %v8640_v32  ;;  %5893 = vmatpush1.bf16.msra.mxu1 %v8643_v33  ;;  %v8730_v32 = vld [vmem:[#allocation5 + $0x740] ss:$16 sps:$4 sm:$0xff]   ;;  %v8733_v33 = vld [vmem:[#allocation5 + $0x748] ss:$16 sps:$4 sm:$0xff]  }
 0x17a   :  { %5378 = vmatprep.subr.bf16.mxu0 %v8648_v34  ;;  %5894 = vmatprep.subr.bf16.mxu1 %v8651_v35  ;;  %v8738_v34 = vld [vmem:[#allocation5 + $0x764] ss:$16 sps:$4 sm:$0xff]   ;;  %v8741_v35 = vld [vmem:[#allocation5 + $0x76c] ss:$16 sps:$4 sm:$0xff]  }
 0x17d   :  { %5379 = vmatpush1.bf16.msra.mxu0 %v8646_v36  ;;  %5895 = vmatpush1.bf16.msra.mxu1 %v8649_v37  ;;  %v8736_v36 = vld [vmem:[#allocation5 + $0x760] ss:$16 sps:$4 sm:$0xff]   ;;  %v8739_v37 = vld [vmem:[#allocation5 + $0x768] ss:$16 sps:$4 sm:$0xff]  }
 0x17e   :  { %5380 = vmatprep.subr.bf16.mxu0 %v8654_v38  ;;  %5896 = vmatprep.subr.bf16.mxu1 %v8657_v39  ;;  %v8744_v38 = vld [vmem:[#allocation5 + $0x784] ss:$16 sps:$4 sm:$0xff]   ;;  %v8747_v39 = vld [vmem:[#allocation5 + $0x78c] ss:$16 sps:$4 sm:$0xff]  }
 0x181   :  { %5381 = vmatpush1.bf16.msra.mxu0 %v8652_v40  ;;  %5897 = vmatpush1.bf16.msra.mxu1 %v8655_v41  ;;  %v8742_v40 = vld [vmem:[#allocation5 + $0x780] ss:$16 sps:$4 sm:$0xff]   ;;  %v8745_v41 = vld [vmem:[#allocation5 + $0x788] ss:$16 sps:$4 sm:$0xff]  }
 0x182   :  { %5382 = vmatprep.subr.bf16.mxu0 %v8660_v42  ;;  %5898 = vmatprep.subr.bf16.mxu1 %v8663_v43  ;;  %v8750_v42 = vld [vmem:[#allocation5 + $0x7a4] ss:$16 sps:$4 sm:$0xff]   ;;  %v8753_v43 = vld [vmem:[#allocation5 + $0x7ac] ss:$16 sps:$4 sm:$0xff]  }
 0x185   :  { %5383 = vmatpush1.bf16.msra.mxu0 %v8658_v44  ;;  %5899 = vmatpush1.bf16.msra.mxu1 %v8661_v45  ;;  %v8862_v44 = vld [vmem:[#allocation2 + $0x8] ss:$24 sps:$4 sm:$0xff]   ;;  %v8864_v45 = vld [vmem:[#allocation2 + $0x38] ss:$24 sps:$4 sm:$0xff]  }
 0x186   :  { %5384 = vmatprep.subr.bf16.mxu0 %v8666_v46  ;;  %5900 = vmatprep.subr.bf16.mxu1 %v8669_v50  ;;  %v8866_v46 = vld [vmem:[#allocation2 + $0x68] ss:$24 sps:$4 sm:$0xff]   ;;  %v8868_v50 = vld [vmem:[#allocation2 + $0x98] ss:$24 sps:$4 sm:$0xff]  }
 0x189   :  { %5385 = vmatpush1.bf16.msra.mxu0 %v8664_v52  ;;  %5901 = vmatpush1.bf16.msra.mxu1 %v8667_v55  ;;  %v8748_v52 = vld [vmem:[#allocation5 + $0x7a0] ss:$16 sps:$4 sm:$0xff]   ;;  %v8751_v55 = vld [vmem:[#allocation5 + $0x7a8] ss:$16 sps:$4 sm:$0xff]  }
 0x18a   :  { %5397 = vmatprep.subr.bf16.mxu0 %v8672_v56  ;;  %5913 = vmatprep.subr.bf16.mxu1 %v8675_v57  ;;  %v8756_v56 = vld [vmem:[#allocation5 + $0x7c4] ss:$16 sps:$4 sm:$0xff]   ;;  %v8759_v57 = vld [vmem:[#allocation5 + $0x7cc] ss:$16 sps:$4 sm:$0xff]  }
 0x18c   :  { %5387 = vmatmul.mubr.bf16.vlgmr.msra.gmra.mrb[0].mxu0 %v1126_v60  ;;  %5903 = vmatmul.mubr.bf16.vlgmr.msra.gmra.mrb[0].mxu1 %v1126_v60  ;;  %v1174_v60 = vrot.slane %v8866_v46, %v10197_v54  ;;  %v8817_v46 = vld [vmem:[#allocation5 + $0x908] ss:$16 sps:$4 sm:$0xff]  }
 0x18d   :  { %5398 = vmatpush1.bf16.msra.mxu0 %v8670_v58  ;;  %5914 = vmatpush1.bf16.msra.mxu1 %v8673_v59  ;;  %v1146_v58 = vrot.slane %v8862_v44, %v10197_v54  ;;  %v1160_v59 = vrot.slane %v8864_v45, %v10197_v54  ;;  %v8819_v44 = vld [vmem:[#allocation5 + $0x90c] ss:$16 sps:$4 sm:$0xff]   ;;  %v8814_v45 = vld [vmem:[#allocation5 + $0x900] ss:$16 sps:$4 sm:$0xff]  }
 0x18e   :  { %5399 = vmatprep.subr.bf16.mxu0 %v8678_v61  ;;  %5915 = vmatprep.subr.bf16.mxu1 %v8681_v62  ;;  %v1188_v61 = vrot.slane %v8868_v50, %v10197_v54  ;;  %v8754_v62 = vld [vmem:[#allocation5 + $0x7c0] ss:$16 sps:$4 sm:$0xff]   ;;  %v8822_v50 = vld [vmem:[#allocation5 + $0x924] ss:$16 sps:$4 sm:$0xff]  }
 0x18f   :  { %5429 = vmatprep.mubr.bf16.mxu0 %v10221_v51  ;;  %5945 = vmatprep.mubr.bf16.mxu1 %v10221_v51  ;;  %v8702_v51 = vld [vmem:[#allocation5 + $0x6a4] ss:$16 sps:$4 sm:$0xff]  }
 0x191   :  { %5400 = vmatpush1.bf16.msra.mxu0 %v8676_v63  ;;  %5916 = vmatpush1.bf16.msra.mxu1 %v8679_v0  ;;  %v8757_v63 = vld [vmem:[#allocation5 + $0x7c8] ss:$16 sps:$4 sm:$0xff]   ;;  %v8762_v0 = vld [vmem:[#allocation5 + $0x7e4] ss:$16 sps:$4 sm:$0xff]  }
 0x192   :  { %5401 = vmatprep.subr.bf16.mxu0 %v8684_v19  ;;  %5917 = vmatprep.subr.bf16.mxu1 %v8687_v1  ;;  %v8765_v19 = vld [vmem:[#allocation5 + $0x7ec] ss:$16 sps:$4 sm:$0xff]   ;;  %v1197_v1 = vcombine.high %v1146_v58, %v1160_v59 }
 0x195   :  { %5402 = vmatpush1.bf16.msra.mxu0 %v8682_v47  ;;  %5918 = vmatpush1.bf16.msra.mxu1 %v8685_v49  ;;  %v1201_v47 = vcombine.high %v1174_v60, %v1188_v61  ;;  %v8760_v49 = vld [vmem:[#allocation5 + $0x7e0] ss:$16 sps:$4 sm:$0xff]  }
 0x196   :  { %5403 = vmatprep.subr.bf16.mxu0 %v8690_v2  ;;  %5919 = vmatprep.subr.bf16.mxu1 %v8693_v3  ;;  %v8763_v2 = vld [vmem:[#allocation5 + $0x7e8] ss:$16 sps:$4 sm:$0xff]   ;;  %v1196_v3 = vcombine.low %v1146_v58, %v1160_v59  ;;  %v8831_v58 = vld [vmem:[#allocation5 + $0x94c] ss:$16 sps:$4 sm:$0xff]   ;;  %v8826_v59 = vld [vmem:[#allocation5 + $0x940] ss:$16 sps:$4 sm:$0xff]  }
 0x199   :  { %5404 = vmatpush1.bf16.msra.mxu0 %v8688_v4  ;;  %5920 = vmatpush1.bf16.msra.mxu1 %v8691_v5  ;;  %v1200_v4 = vcombine.low %v1174_v60, %v1188_v61  ;;  %v8768_v5 = vld [vmem:[#allocation5 + $0x804] ss:$16 sps:$4 sm:$0xff]   ;;  %v8829_v60 = vld [vmem:[#allocation5 + $0x948] ss:$16 sps:$4 sm:$0xff]  }
 0x19a   :  { %5405 = vmatprep.subr.bf16.mxu0 %v8696_v6  ;;  %5921 = vmatprep.subr.bf16.mxu1 %v8699_v7  ;;  %v8771_v6 = vld [vmem:[#allocation5 + $0x80c] ss:$16 sps:$4 sm:$0xff]   ;;  %v1224_v7 = vrot.slane %v1197_v1, %v10197_v54  ;;  %v8834_v61 = vld [vmem:[#allocation5 + $0x964] ss:$16 sps:$4 sm:$0xff]  }
 0x19b   :  { %v8843_v1 = vld [vmem:[#allocation5 + $0x98c] ss:$16 sps:$4 sm:$0xff]  }
 0x19d   :  { %5406 = vmatpush1.bf16.msra.mxu0 %v8694_v8  ;;  %5922 = vmatpush1.bf16.msra.mxu1 %v8697_v9  ;;  %v1252_v8 = vrot.slane %v1201_v47, %v10197_v54  ;;  %v8766_v9 = vld [vmem:[#allocation5 + $0x800] ss:$16 sps:$4 sm:$0xff]  }
 0x19e   :  { %5407 = vmatprep.subr.bf16.mxu0 %v8702_v51  ;;  %5923 = vmatprep.subr.bf16.mxu1 %v8705_v10  ;;  %v8769_v51 = vld [vmem:[#allocation5 + $0x808] ss:$16 sps:$4 sm:$0xff]   ;;  %v10240_v10 = vrot.slane %v1196_v3, %v10197_v54  ;;  %v8838_v47 = vld [vmem:[#allocation5 + $0x980] ss:$16 sps:$4 sm:$0xff]   ;;  %v8849_v3 = vld [vmem:[#allocation5 + $0x9ac] ss:$16 sps:$4 sm:$0xff]  }
 0x1a1   :  { %5408 = vmatpush1.bf16.msra.mxu0 %v8700_v11  ;;  %5924 = vmatpush1.bf16.msra.mxu1 %v8703_v12  ;;  %v10243_v11 = vrot.slane %v1200_v4, %v10197_v54  ;;  %v8774_v12 = vld [vmem:[#allocation5 + $0x824] ss:$16 sps:$4 sm:$0xff]   ;;  %v8844_v4 = vld [vmem:[#allocation5 + $0x9a0] ss:$16 sps:$4 sm:$0xff]  }
 0x1a2   :  { %5409 = vmatprep.subr.bf16.mxu0 %v8708_v13  ;;  %5925 = vmatprep.subr.bf16.mxu1 %v8711_v14  ;;  %v10245_v13 = vcombine.high %v1224_v7, %v1252_v8  ;;  %v8777_v14 = vld [vmem:[#allocation5 + $0x82c] ss:$16 sps:$4 sm:$0xff]  }
 0x1a5   :  { %5410 = vmatpush1.bf16.msra.mxu0 %v8706_v15  ;;  %5926 = vmatpush1.bf16.msra.mxu1 %v8709_v16  ;;  %v10249_v15 = vcombine.high %v10240_v10, %v10243_v11  ;;  %v1264_v16 = vcombine.low %v1224_v7, %v1252_v8  ;;  %v8855_v7 = vld [vmem:[#allocation5 + $0x9cc] ss:$16 sps:$4 sm:$0xff]   ;;  %v8850_v8 = vld [vmem:[#allocation5 + $0x9c0] ss:$16 sps:$4 sm:$0xff]  }
 0x1a6   :  { %5411 = vmatprep.subr.bf16.mxu0 %v8714_v17  ;;  %5927 = vmatprep.subr.bf16.mxu1 %v8717_v18  ;;  %v8772_v17 = vld [vmem:[#allocation5 + $0x820] ss:$16 sps:$4 sm:$0xff]   ;;  %v8775_v18 = vld [vmem:[#allocation5 + $0x828] ss:$16 sps:$4 sm:$0xff]  }
 0x1a9   :  { %5412 = vmatpush1.bf16.msra.mxu0 %v8712_v20  ;;  %5928 = vmatpush1.bf16.msra.mxu1 %v8715_v21  ;;  %v8780_v20 = vld [vmem:[#allocation5 + $0x844] ss:$16 sps:$4 sm:$0xff]   ;;  %v8783_v21 = vld [vmem:[#allocation5 + $0x84c] ss:$16 sps:$4 sm:$0xff]  }
 0x1aa   :  { %5413 = vmatprep.subr.bf16.mxu0 %v8720_v22  ;;  %5929 = vmatprep.subr.bf16.mxu1 %v8723_v23  ;;  %v8778_v22 = vld [vmem:[#allocation5 + $0x840] ss:$16 sps:$4 sm:$0xff]   ;;  %v8781_v23 = vld [vmem:[#allocation5 + $0x848] ss:$16 sps:$4 sm:$0xff]  }
 0x1ad   :  { %5414 = vmatpush1.bf16.msra.mxu0 %v8718_v24  ;;  %5930 = vmatpush1.bf16.msra.mxu1 %v8721_v25  ;;  %v8786_v24 = vld [vmem:[#allocation5 + $0x864] ss:$16 sps:$4 sm:$0xff]   ;;  %v8789_v25 = vld [vmem:[#allocation5 + $0x86c] ss:$16 sps:$4 sm:$0xff]  }
 0x1ae   :  { %5415 = vmatprep.subr.bf16.mxu0 %v8726_v26  ;;  %5931 = vmatprep.subr.bf16.mxu1 %v8729_v27  ;;  %v8784_v26 = vld [vmem:[#allocation5 + $0x860] ss:$16 sps:$4 sm:$0xff]   ;;  %v8792_v27 = vld [vmem:[#allocation5 + $0x884] ss:$16 sps:$4 sm:$0xff]  }
 0x1b1   :  { %5416 = vmatpush1.bf16.msra.mxu0 %v8724_v28  ;;  %5932 = vmatpush1.bf16.msra.mxu1 %v8727_v29  ;;  %v8795_v28 = vld [vmem:[#allocation5 + $0x88c] ss:$16 sps:$4 sm:$0xff]   ;;  %v8790_v29 = vld [vmem:[#allocation5 + $0x880] ss:$16 sps:$4 sm:$0xff]  }
 0x1b2   :  { %5417 = vmatprep.subr.bf16.mxu0 %v8732_v30  ;;  %5933 = vmatprep.subr.bf16.mxu1 %v8735_v31  ;;  %v8793_v30 = vld [vmem:[#allocation5 + $0x888] ss:$16 sps:$4 sm:$0xff]   ;;  %v8798_v31 = vld [vmem:[#allocation5 + $0x8a4] ss:$16 sps:$4 sm:$0xff]  }
 0x1b5   :  { %5418 = vmatpush1.bf16.msra.mxu0 %v8730_v32  ;;  %5934 = vmatpush1.bf16.msra.mxu1 %v8733_v33  ;;  %v8801_v32 = vld [vmem:[#allocation5 + $0x8ac] ss:$16 sps:$4 sm:$0xff]   ;;  %v8796_v33 = vld [vmem:[#allocation5 + $0x8a0] ss:$16 sps:$4 sm:$0xff]  }
 0x1b6   :  { %5419 = vmatprep.subr.bf16.mxu0 %v8738_v34  ;;  %5935 = vmatprep.subr.bf16.mxu1 %v8741_v35  ;;  %v8799_v34 = vld [vmem:[#allocation5 + $0x8a8] ss:$16 sps:$4 sm:$0xff]   ;;  %v8804_v35 = vld [vmem:[#allocation5 + $0x8c4] ss:$16 sps:$4 sm:$0xff]  }
 0x1b9   :  { %5420 = vmatpush1.bf16.msra.mxu0 %v8736_v36  ;;  %5936 = vmatpush1.bf16.msra.mxu1 %v8739_v37  ;;  %v8807_v36 = vld [vmem:[#allocation5 + $0x8cc] ss:$16 sps:$4 sm:$0xff]   ;;  %v8802_v37 = vld [vmem:[#allocation5 + $0x8c0] ss:$16 sps:$4 sm:$0xff]  }
 0x1ba   :  { %5421 = vmatprep.subr.bf16.mxu0 %v8744_v38  ;;  %5937 = vmatprep.subr.bf16.mxu1 %v8747_v39  ;;  %v8805_v38 = vld [vmem:[#allocation5 + $0x8c8] ss:$16 sps:$4 sm:$0xff]   ;;  %v8810_v39 = vld [vmem:[#allocation5 + $0x8e4] ss:$16 sps:$4 sm:$0xff]  }
 0x1bd   :  { %5422 = vmatpush1.bf16.msra.mxu0 %v8742_v40  ;;  %5938 = vmatpush1.bf16.msra.mxu1 %v8745_v41  ;;  %v8813_v40 = vld [vmem:[#allocation5 + $0x8ec] ss:$16 sps:$4 sm:$0xff]   ;;  %v8808_v41 = vld [vmem:[#allocation5 + $0x8e0] ss:$16 sps:$4 sm:$0xff]  }
 0x1be   :  { %5423 = vmatprep.subr.bf16.mxu0 %v8750_v42  ;;  %5939 = vmatprep.subr.bf16.mxu1 %v8753_v43  ;;  %v8811_v42 = vld [vmem:[#allocation5 + $0x8e8] ss:$16 sps:$4 sm:$0xff]   ;;  %v8816_v43 = vld [vmem:[#allocation5 + $0x904] ss:$16 sps:$4 sm:$0xff]  }
 0x1c1   :  { %5424 = vmatpush1.bf16.msra.mxu0 %v8748_v52  ;;  %5940 = vmatpush1.bf16.msra.mxu1 %v8751_v55  ;;  %v8825_v52 = vld [vmem:[#allocation5 + $0x92c] ss:$16 sps:$4 sm:$0xff]   ;;  %v8820_v55 = vld [vmem:[#allocation5 + $0x920] ss:$16 sps:$4 sm:$0xff]  }
 0x1c2   :  { %5425 = vmatprep.subr.bf16.mxu0 %v8756_v56  ;;  %5941 = vmatprep.subr.bf16.mxu1 %v8759_v57  ;;  %v8823_v56 = vld [vmem:[#allocation5 + $0x928] ss:$16 sps:$4 sm:$0xff]   ;;  %v8828_v57 = vld [vmem:[#allocation5 + $0x944] ss:$16 sps:$4 sm:$0xff]  }
 0x1c5   :  { %5426 = vmatpush1.bf16.msra.mxu0 %v8754_v62  ;;  %5942 = vmatpush1.bf16.msra.mxu1 %v8757_v63  ;;  %v8837_v62 = vld [vmem:[#allocation5 + $0x96c] ss:$16 sps:$4 sm:$0xff]   ;;  %v8832_v63 = vld [vmem:[#allocation5 + $0x960] ss:$16 sps:$4 sm:$0xff]  }
 0x1c6   :  { %5427 = vmatprep.subr.bf16.mxu0 %v8762_v0  ;;  %5943 = vmatprep.subr.bf16.mxu1 %v8765_v19  ;;  %v8835_v0 = vld [vmem:[#allocation5 + $0x968] ss:$16 sps:$4 sm:$0xff]   ;;  %v8840_v19 = vld [vmem:[#allocation5 + $0x984] ss:$16 sps:$4 sm:$0xff]  }
 0x1c9   :  { %5428 = vmatpush1.bf16.msra.mxu0 %v8760_v49  ;;  %5944 = vmatpush1.bf16.msra.mxu1 %v8763_v2  ;;  %v8841_v49 = vld [vmem:[#allocation5 + $0x988] ss:$16 sps:$4 sm:$0xff]   ;;  %v8846_v2 = vld [vmem:[#allocation5 + $0x9a4] ss:$16 sps:$4 sm:$0xff]  }
 0x1ca   :  { %5440 = vmatprep.subr.bf16.mxu0 %v8768_v5  ;;  %5956 = vmatprep.subr.bf16.mxu1 %v8771_v6  ;;  %v8847_v5 = vld [vmem:[#allocation5 + $0x9a8] ss:$16 sps:$4 sm:$0xff]   ;;  %v8852_v6 = vld [vmem:[#allocation5 + $0x9c4] ss:$16 sps:$4 sm:$0xff]  }
 0x1cc   :  { %5430 = vmatmul.mubr.bf16.vlgmr.msra.gmra.mrb[0].mxu0 %v10225_v53  ;;  %5946 = vmatmul.mubr.bf16.vlgmr.msra.gmra.mrb[0].mxu1 %v10225_v53  ;;  %v8787_v53 = vld [vmem:[#allocation5 + $0x868] ss:$16 sps:$4 sm:$0xff]  }
 0x1cd   :  { %5441 = vmatpush1.bf16.msra.mxu0 %v8766_v9  ;;  %5957 = vmatpush1.bf16.msra.mxu1 %v8769_v51  ;;  %v8853_v9 = vld [vmem:[#allocation5 + $0x9c8] ss:$16 sps:$4 sm:$0xff]   ;;  %v8858_v51 = vld [vmem:[#allocation5 + $0x9e4] ss:$16 sps:$4 sm:$0xff]  }
 0x1ce   :  { %5442 = vmatprep.subr.bf16.mxu0 %v8774_v12  ;;  %5958 = vmatprep.subr.bf16.mxu1 %v8777_v14  ;;  %v8861_v12 = vld [vmem:[#allocation5 + $0x9ec] ss:$16 sps:$4 sm:$0xff]   ;;  %v8856_v14 = vld [vmem:[#allocation5 + $0x9e0] ss:$16 sps:$4 sm:$0xff]  }
 0x1cf   :  { %5472 = vmatprep.mubr.bf16.mxu0 %v1264_v16  ;;  %5988 = vmatprep.mubr.bf16.mxu1 %v1264_v16  ;;  %v8859_v16 = vld [vmem:[#allocation5 + $0x9e8] ss:$16 sps:$4 sm:$0xff]  }
 0x1d1   :  { %5443 = vmatpush1.bf16.msra.mxu0 %v8772_v17  ;;  %5959 = vmatpush1.bf16.msra.mxu1 %v8775_v18  ;;  %v8872_v17 = vld [vmem:[#allocation5 + $0xa04] ss:$16 sps:$4 sm:$0xff]   ;;  %v8875_v18 = vld [vmem:[#allocation5 + $0xa0c] ss:$16 sps:$4 sm:$0xff]  }
 0x1d2   :  { %5444 = vmatprep.subr.bf16.mxu0 %v8780_v20  ;;  %5960 = vmatprep.subr.bf16.mxu1 %v8783_v21  ;;  %v1260_v20 = vcombine.low %v10240_v10, %v10243_v11  ;;  %v8870_v21 = vld [vmem:[#allocation5 + $0xa00] ss:$16 sps:$4 sm:$0xff]   ;;  %v8885_v11 = vld [vmem:[#allocation5 + $0xa48] ss:$16 sps:$4 sm:$0xff]  }
 0x1d3   :  { %v8882_v10 = vld [vmem:[#allocation5 + $0xa40] ss:$16 sps:$4 sm:$0xff]  }
 0x1d5   :  { %5445 = vmatpush1.bf16.msra.mxu0 %v8778_v22  ;;  %5961 = vmatpush1.bf16.msra.mxu1 %v8781_v23  ;;  %v8873_v22 = vld [vmem:[#allocation5 + $0xa08] ss:$16 sps:$4 sm:$0xff]   ;;  %v8878_v23 = vld [vmem:[#allocation5 + $0xa24] ss:$16 sps:$4 sm:$0xff]  }
 0x1d6   :  { %5446 = vmatprep.subr.bf16.mxu0 %v8786_v24  ;;  %5962 = vmatprep.subr.bf16.mxu1 %v8789_v25  ;;  %v8881_v24 = vld [vmem:[#allocation5 + $0xa2c] ss:$16 sps:$4 sm:$0xff]   ;;  %v8876_v25 = vld [vmem:[#allocation5 + $0xa20] ss:$16 sps:$4 sm:$0xff]  }
 0x1d9   :  { %5447 = vmatpush1.bf16.msra.mxu0 %v8784_v26  ;;  %5963 = vmatpush1.bf16.msra.mxu1 %v8787_v53  ;;  %v8879_v26 = vld [vmem:[#allocation5 + $0xa28] ss:$16 sps:$4 sm:$0xff]   ;;  %v8884_v53 = vld [vmem:[#allocation5 + $0xa44] ss:$16 sps:$4 sm:$0xff]  }
 0x1da   :  { %5448 = vmatprep.subr.bf16.mxu0 %v8792_v27  ;;  %5964 = vmatprep.subr.bf16.mxu1 %v8795_v28  ;;  %v8887_v27 = vld [vmem:[#allocation5 + $0xa4c] ss:$16 sps:$4 sm:$0xff]   ;;  %v8890_v28 = vld [vmem:[#allocation5 + $0xa64] ss:$16 sps:$4 sm:$0xff]  }
 0x1dd   :  { %5449 = vmatpush1.bf16.msra.mxu0 %v8790_v29  ;;  %5965 = vmatpush1.bf16.msra.mxu1 %v8793_v30  ;;  %v8893_v29 = vld [vmem:[#allocation5 + $0xa6c] ss:$16 sps:$4 sm:$0xff]   ;;  %v8888_v30 = vld [vmem:[#allocation5 + $0xa60] ss:$16 sps:$4 sm:$0xff]  }
 0x1de   :  { %5450 = vmatprep.subr.bf16.mxu0 %v8798_v31  ;;  %5966 = vmatprep.subr.bf16.mxu1 %v8801_v32  ;;  %v8891_v31 = vld [vmem:[#allocation5 + $0xa68] ss:$16 sps:$4 sm:$0xff]   ;;  %v8896_v32 = vld [vmem:[#allocation5 + $0xa84] ss:$16 sps:$4 sm:$0xff]  }
 0x1e1   :  { %5451 = vmatpush1.bf16.msra.mxu0 %v8796_v33  ;;  %5967 = vmatpush1.bf16.msra.mxu1 %v8799_v34  ;;  %v8899_v33 = vld [vmem:[#allocation5 + $0xa8c] ss:$16 sps:$4 sm:$0xff]   ;;  %v8894_v34 = vld [vmem:[#allocation5 + $0xa80] ss:$16 sps:$4 sm:$0xff]  }
 0x1e2   :  { %5452 = vmatprep.subr.bf16.mxu0 %v8804_v35  ;;  %5968 = vmatprep.subr.bf16.mxu1 %v8807_v36  ;;  %v8902_v35 = vld [vmem:[#allocation5 + $0xaa4] ss:$16 sps:$4 sm:$0xff]   ;;  %v8905_v36 = vld [vmem:[#allocation5 + $0xaac] ss:$16 sps:$4 sm:$0xff]  }
 0x1e5   :  { %5453 = vmatpush1.bf16.msra.mxu0 %v8802_v37  ;;  %5969 = vmatpush1.bf16.msra.mxu1 %v8805_v38  ;;  %v8900_v37 = vld [vmem:[#allocation5 + $0xaa0] ss:$16 sps:$4 sm:$0xff]   ;;  %v8903_v38 = vld [vmem:[#allocation5 + $0xaa8] ss:$16 sps:$4 sm:$0xff]  }
 0x1e6   :  { %5454 = vmatprep.subr.bf16.mxu0 %v8810_v39  ;;  %5970 = vmatprep.subr.bf16.mxu1 %v8813_v40  ;;  %v8908_v39 = vld [vmem:[#allocation5 + $0xac4] ss:$16 sps:$4 sm:$0xff]   ;;  %v8911_v40 = vld [vmem:[#allocation5 + $0xacc] ss:$16 sps:$4 sm:$0xff]  }
 0x1e9   :  { %5455 = vmatpush1.bf16.msra.mxu0 %v8808_v41  ;;  %5971 = vmatpush1.bf16.msra.mxu1 %v8811_v42  ;;  %v8906_v41 = vld [vmem:[#allocation5 + $0xac0] ss:$16 sps:$4 sm:$0xff]   ;;  %v8909_v42 = vld [vmem:[#allocation5 + $0xac8] ss:$16 sps:$4 sm:$0xff]  }
 0x1ea   :  { %5456 = vmatprep.subr.bf16.mxu0 %v8816_v43  ;;  %5972 = vmatprep.subr.bf16.mxu1 %v8819_v44  ;;  %v8914_v43 = vld [vmem:[#allocation5 + $0xae4] ss:$16 sps:$4 sm:$0xff]   ;;  %v8917_v44 = vld [vmem:[#allocation5 + $0xaec] ss:$16 sps:$4 sm:$0xff]  }
 0x1ed   :  { %5457 = vmatpush1.bf16.msra.mxu0 %v8814_v45  ;;  %5973 = vmatpush1.bf16.msra.mxu1 %v8817_v46  ;;  %v8912_v45 = vld [vmem:[#allocation5 + $0xae0] ss:$16 sps:$4 sm:$0xff]   ;;  %v8915_v46 = vld [vmem:[#allocation5 + $0xae8] ss:$16 sps:$4 sm:$0xff]  }
 0x1ee   :  { %5458 = vmatprep.subr.bf16.mxu0 %v8822_v50  ;;  %5974 = vmatprep.subr.bf16.mxu1 %v8825_v52  ;;  %v8920_v50 = vld [vmem:[#allocation5 + $0xb04] ss:$16 sps:$4 sm:$0xff]   ;;  %v8923_v52 = vld [vmem:[#allocation5 + $0xb0c] ss:$16 sps:$4 sm:$0xff]  }
 0x1f1   :  { %5459 = vmatpush1.bf16.msra.mxu0 %v8820_v55  ;;  %5975 = vmatpush1.bf16.msra.mxu1 %v8823_v56  ;;  %v8918_v55 = vld [vmem:[#allocation5 + $0xb00] ss:$16 sps:$4 sm:$0xff]   ;;  %v8921_v56 = vld [vmem:[#allocation5 + $0xb08] ss:$16 sps:$4 sm:$0xff]  }
 0x1f2   :  { %5460 = vmatprep.subr.bf16.mxu0 %v8828_v57  ;;  %5976 = vmatprep.subr.bf16.mxu1 %v8831_v58  ;;  %v8926_v57 = vld [vmem:[#allocation5 + $0xb24] ss:$16 sps:$4 sm:$0xff]   ;;  %v8929_v58 = vld [vmem:[#allocation5 + $0xb2c] ss:$16 sps:$4 sm:$0xff]  }
 0x1f5   :  { %5461 = vmatpush1.bf16.msra.mxu0 %v8826_v59  ;;  %5977 = vmatpush1.bf16.msra.mxu1 %v8829_v60  ;;  %v8924_v59 = vld [vmem:[#allocation5 + $0xb20] ss:$16 sps:$4 sm:$0xff]   ;;  %v8927_v60 = vld [vmem:[#allocation5 + $0xb28] ss:$16 sps:$4 sm:$0xff]  }
 0x1f6   :  { %5462 = vmatprep.subr.bf16.mxu0 %v8834_v61  ;;  %5978 = vmatprep.subr.bf16.mxu1 %v8837_v62  ;;  %v8932_v61 = vld [vmem:[#allocation5 + $0xb44] ss:$16 sps:$4 sm:$0xff]   ;;  %v8935_v62 = vld [vmem:[#allocation5 + $0xb4c] ss:$16 sps:$4 sm:$0xff]  }
 0x1f9   :  { %5463 = vmatpush1.bf16.msra.mxu0 %v8832_v63  ;;  %5979 = vmatpush1.bf16.msra.mxu1 %v8835_v0  ;;  %v8930_v63 = vld [vmem:[#allocation5 + $0xb40] ss:$16 sps:$4 sm:$0xff]   ;;  %v8933_v0 = vld [vmem:[#allocation5 + $0xb48] ss:$16 sps:$4 sm:$0xff]  }
 0x1fa   :  { %5464 = vmatprep.subr.bf16.mxu0 %v8840_v19  ;;  %5980 = vmatprep.subr.bf16.mxu1 %v8843_v1  ;;  %v8938_v19 = vld [vmem:[#allocation5 + $0xb64] ss:$16 sps:$4 sm:$0xff]   ;;  %v8941_v1 = vld [vmem:[#allocation5 + $0xb6c] ss:$16 sps:$4 sm:$0xff]  }
 0x1fd   :  { %5465 = vmatpush1.bf16.msra.mxu0 %v8838_v47  ;;  %5981 = vmatpush1.bf16.msra.mxu1 %v8841_v49  ;;  %v8936_v47 = vld [vmem:[#allocation5 + $0xb60] ss:$16 sps:$4 sm:$0xff]   ;;  %v8939_v49 = vld [vmem:[#allocation5 + $0xb68] ss:$16 sps:$4 sm:$0xff]  }
 0x1fe   :  { %5466 = vmatprep.subr.bf16.mxu0 %v8846_v2  ;;  %5982 = vmatprep.subr.bf16.mxu1 %v8849_v3  ;;  %v8944_v2 = vld [vmem:[#allocation5 + $0xb84] ss:$16 sps:$4 sm:$0xff]   ;;  %v8947_v3 = vld [vmem:[#allocation5 + $0xb8c] ss:$16 sps:$4 sm:$0xff]  }
 0x201   :  { %5467 = vmatpush1.bf16.msra.mxu0 %v8844_v4  ;;  %5983 = vmatpush1.bf16.msra.mxu1 %v8847_v5  ;;  %v8942_v4 = vld [vmem:[#allocation5 + $0xb80] ss:$16 sps:$4 sm:$0xff]   ;;  %v8945_v5 = vld [vmem:[#allocation5 + $0xb88] ss:$16 sps:$4 sm:$0xff]  }
 0x202   :  { %5468 = vmatprep.subr.bf16.mxu0 %v8852_v6  ;;  %5984 = vmatprep.subr.bf16.mxu1 %v8855_v7  ;;  %v8950_v6 = vld [vmem:[#allocation5 + $0xba4] ss:$16 sps:$4 sm:$0xff]   ;;  %v8953_v7 = vld [vmem:[#allocation5 + $0xbac] ss:$16 sps:$4 sm:$0xff]  }
 0x205   :  { %5469 = vmatpush1.bf16.msra.mxu0 %v8850_v8  ;;  %5985 = vmatpush1.bf16.msra.mxu1 %v8853_v9  ;;  %v9062_v8 = vld [vmem:[#allocation2 + $0xc] ss:$24 sps:$4 sm:$0xff]   ;;  %v9063_v9 = vld [vmem:[#allocation2 + $0x3c] ss:$24 sps:$4 sm:$0xff]  }
 0x206   :  { %5470 = vmatprep.subr.bf16.mxu0 %v8858_v51  ;;  %5986 = vmatprep.subr.bf16.mxu1 %v8861_v12  ;;  %v9064_v51 = vld [vmem:[#allocation2 + $0x6c] ss:$24 sps:$4 sm:$0xff]   ;;  %v9065_v12 = vld [vmem:[#allocation2 + $0x9c] ss:$24 sps:$4 sm:$0xff]  }
 0x209   :  { %5471 = vmatpush1.bf16.msra.mxu0 %v8856_v14  ;;  %5987 = vmatpush1.bf16.msra.mxu1 %v8859_v16  ;;  %v8948_v14 = vld [vmem:[#allocation5 + $0xba0] ss:$16 sps:$4 sm:$0xff]   ;;  %v8951_v16 = vld [vmem:[#allocation5 + $0xba8] ss:$16 sps:$4 sm:$0xff]  }
 0x20a   :  { %5483 = vmatprep.subr.bf16.mxu0 %v8872_v17  ;;  %5999 = vmatprep.subr.bf16.mxu1 %v8875_v18  ;;  %v8956_v17 = vld [vmem:[#allocation5 + $0xbc4] ss:$16 sps:$4 sm:$0xff]   ;;  %v8959_v18 = vld [vmem:[#allocation5 + $0xbcc] ss:$16 sps:$4 sm:$0xff]  }
 0x20c   :  { %5473 = vmatmul.mubr.bf16.vlgmr.msra.gmra.mrb[0].mxu0 %v1260_v20  ;;  %5989 = vmatmul.mubr.bf16.vlgmr.msra.gmra.mrb[0].mxu1 %v1260_v20  ;;  %v1153_v20 = vrot.slane %v9062_v8, %v10197_v54  ;;  %v9019_v8 = vld [vmem:[#allocation5 + $0xd0c] ss:$16 sps:$4 sm:$0xff]  }
 0x20d   :  { %5484 = vmatpush1.bf16.msra.mxu0 %v8870_v21  ;;  %6000 = vmatpush1.bf16.msra.mxu1 %v8873_v22  ;;  %v1167_v21 = vrot.slane %v9063_v9, %v10197_v54  ;;  %v1181_v22 = vrot.slane %v9064_v51, %v10197_v54  ;;  %v9014_v9 = vld [vmem:[#allocation5 + $0xd00] ss:$16 sps:$4 sm:$0xff]   ;;  %v9017_v51 = vld [vmem:[#allocation5 + $0xd08] ss:$16 sps:$4 sm:$0xff]  }
 0x20e   :  { %5485 = vmatprep.subr.bf16.mxu0 %v8878_v23  ;;  %6001 = vmatprep.subr.bf16.mxu1 %v8881_v24  ;;  %v1195_v23 = vrot.slane %v9065_v12, %v10197_v54  ;;  %v8954_v24 = vld [vmem:[#allocation5 + $0xbc0] ss:$16 sps:$4 sm:$0xff]   ;;  %v9022_v12 = vld [vmem:[#allocation5 + $0xd24] ss:$16 sps:$4 sm:$0xff]  }
 0x20f   :  { %5515 = vmatprep.mubr.bf16.mxu0 %v10245_v13  ;;  %6031 = vmatprep.mubr.bf16.mxu1 %v10245_v13  ;;  %v8897_v13 = vld [vmem:[#allocation5 + $0xa88] ss:$16 sps:$4 sm:$0xff]  }
 0x211   :  { %5486 = vmatpush1.bf16.msra.mxu0 %v8876_v25  ;;  %6002 = vmatpush1.bf16.msra.mxu1 %v8879_v26  ;;  %v8957_v25 = vld [vmem:[#allocation5 + $0xbc8] ss:$16 sps:$4 sm:$0xff]   ;;  %v8962_v26 = vld [vmem:[#allocation5 + $0xbe4] ss:$16 sps:$4 sm:$0xff]  }
 0x212   :  { %5487 = vmatprep.subr.bf16.mxu0 %v8884_v53  ;;  %6003 = vmatprep.subr.bf16.mxu1 %v8887_v27  ;;  %v8965_v53 = vld [vmem:[#allocation5 + $0xbec] ss:$16 sps:$4 sm:$0xff]   ;;  %v1199_v27 = vcombine.high %v1153_v20, %v1167_v21 }
 0x215   :  { %5488 = vmatpush1.bf16.msra.mxu0 %v8882_v10  ;;  %6004 = vmatpush1.bf16.msra.mxu1 %v8885_v11  ;;  %v1203_v10 = vcombine.high %v1181_v22, %v1195_v23  ;;  %v1198_v11 = vcombine.low %v1153_v20, %v1167_v21  ;;  %v9031_v20 = vld [vmem:[#allocation5 + $0xd4c] ss:$16 sps:$4 sm:$0xff]   ;;  %v9026_v21 = vld [vmem:[#allocation5 + $0xd40] ss:$16 sps:$4 sm:$0xff]  }
 0x216   :  { %5489 = vmatprep.subr.bf16.mxu0 %v8890_v28  ;;  %6005 = vmatprep.subr.bf16.mxu1 %v8893_v29  ;;  %v1202_v28 = vcombine.low %v1181_v22, %v1195_v23  ;;  %v8960_v29 = vld [vmem:[#allocation5 + $0xbe0] ss:$16 sps:$4 sm:$0xff]   ;;  %v9029_v22 = vld [vmem:[#allocation5 + $0xd48] ss:$16 sps:$4 sm:$0xff]   ;;  %v9034_v23 = vld [vmem:[#allocation5 + $0xd64] ss:$16 sps:$4 sm:$0xff]  }
 0x219   :  { %5490 = vmatpush1.bf16.msra.mxu0 %v8888_v30  ;;  %6006 = vmatpush1.bf16.msra.mxu1 %v8891_v31  ;;  %v8963_v30 = vld [vmem:[#allocation5 + $0xbe8] ss:$16 sps:$4 sm:$0xff]   ;;  %v8968_v31 = vld [vmem:[#allocation5 + $0xc04] ss:$16 sps:$4 sm:$0xff]  }
 0x21a   :  { %5491 = vmatprep.subr.bf16.mxu0 %v8896_v32  ;;  %6007 = vmatprep.subr.bf16.mxu1 %v8899_v33  ;;  %v8971_v32 = vld [vmem:[#allocation5 + $0xc0c] ss:$16 sps:$4 sm:$0xff]   ;;  %v1231_v33 = vrot.slane %v1199_v27, %v10197_v54 }
 0x21b   :  { %v9043_v27 = vld [vmem:[#allocation5 + $0xd8c] ss:$16 sps:$4 sm:$0xff]  }
 0x21d   :  { %5492 = vmatpush1.bf16.msra.mxu0 %v8894_v34  ;;  %6008 = vmatpush1.bf16.msra.mxu1 %v8897_v13  ;;  %v1259_v34 = vrot.slane %v1203_v10, %v10197_v54  ;;  %v10264_v13 = vrot.slane %v1198_v11, %v10197_v54  ;;  %v9038_v10 = vld [vmem:[#allocation5 + $0xd80] ss:$16 sps:$4 sm:$0xff]   ;;  %v9041_v11 = vld [vmem:[#allocation5 + $0xd88] ss:$16 sps:$4 sm:$0xff]  }
 0x21e   :  { %5493 = vmatprep.subr.bf16.mxu0 %v8902_v35  ;;  %6009 = vmatprep.subr.bf16.mxu1 %v8905_v36  ;;  %v10267_v35 = vrot.slane %v1202_v28, %v10197_v54  ;;  %v8966_v36 = vld [vmem:[#allocation5 + $0xc00] ss:$16 sps:$4 sm:$0xff]   ;;  %v9046_v28 = vld [vmem:[#allocation5 + $0xda4] ss:$16 sps:$4 sm:$0xff]  }
 0x221   :  { %5494 = vmatpush1.bf16.msra.mxu0 %v8900_v37  ;;  %6010 = vmatpush1.bf16.msra.mxu1 %v8903_v38  ;;  %v8969_v37 = vld [vmem:[#allocation5 + $0xc08] ss:$16 sps:$4 sm:$0xff]   ;;  %v10269_v38 = vcombine.high %v1231_v33, %v1259_v34 }
 0x222   :  { %5495 = vmatprep.subr.bf16.mxu0 %v8908_v39  ;;  %6011 = vmatprep.subr.bf16.mxu1 %v8911_v40  ;;  %v8974_v39 = vld [vmem:[#allocation5 + $0xc24] ss:$16 sps:$4 sm:$0xff]   ;;  %v8977_v40 = vld [vmem:[#allocation5 + $0xc2c] ss:$16 sps:$4 sm:$0xff]  }
 0x225   :  { %5496 = vmatpush1.bf16.msra.mxu0 %v8906_v41  ;;  %6012 = vmatpush1.bf16.msra.mxu1 %v8909_v42  ;;  %v10273_v41 = vcombine.high %v10264_v13, %v10267_v35  ;;  %v1266_v42 = vcombine.low %v1231_v33, %v1259_v34  ;;  %v9055_v33 = vld [vmem:[#allocation5 + $0xdcc] ss:$16 sps:$4 sm:$0xff]   ;;  %v9050_v34 = vld [vmem:[#allocation5 + $0xdc0] ss:$16 sps:$4 sm:$0xff]  }
 0x226   :  { %5497 = vmatprep.subr.bf16.mxu0 %v8914_v43  ;;  %6013 = vmatprep.subr.bf16.mxu1 %v8917_v44  ;;  %v8972_v43 = vld [vmem:[#allocation5 + $0xc20] ss:$16 sps:$4 sm:$0xff]   ;;  %v8975_v44 = vld [vmem:[#allocation5 + $0xc28] ss:$16 sps:$4 sm:$0xff]  }
 0x229   :  { %5498 = vmatpush1.bf16.msra.mxu0 %v8912_v45  ;;  %6014 = vmatpush1.bf16.msra.mxu1 %v8915_v46  ;;  %v8980_v45 = vld [vmem:[#allocation5 + $0xc44] ss:$16 sps:$4 sm:$0xff]   ;;  %v8983_v46 = vld [vmem:[#allocation5 + $0xc4c] ss:$16 sps:$4 sm:$0xff]  }
 0x22a   :  { %5499 = vmatprep.subr.bf16.mxu0 %v8920_v50  ;;  %6015 = vmatprep.subr.bf16.mxu1 %v8923_v52  ;;  %v8978_v50 = vld [vmem:[#allocation5 + $0xc40] ss:$16 sps:$4 sm:$0xff]   ;;  %v8981_v52 = vld [vmem:[#allocation5 + $0xc48] ss:$16 sps:$4 sm:$0xff]  }
 0x22d   :  { %5500 = vmatpush1.bf16.msra.mxu0 %v8918_v55  ;;  %6016 = vmatpush1.bf16.msra.mxu1 %v8921_v56  ;;  %v8986_v55 = vld [vmem:[#allocation5 + $0xc64] ss:$16 sps:$4 sm:$0xff]   ;;  %v8989_v56 = vld [vmem:[#allocation5 + $0xc6c] ss:$16 sps:$4 sm:$0xff]  }
 0x22e   :  { %5501 = vmatprep.subr.bf16.mxu0 %v8926_v57  ;;  %6017 = vmatprep.subr.bf16.mxu1 %v8929_v58  ;;  %v8987_v57 = vld [vmem:[#allocation5 + $0xc68] ss:$16 sps:$4 sm:$0xff]   ;;  %v8992_v58 = vld [vmem:[#allocation5 + $0xc84] ss:$16 sps:$4 sm:$0xff]  }
 0x231   :  { %5502 = vmatpush1.bf16.msra.mxu0 %v8924_v59  ;;  %6018 = vmatpush1.bf16.msra.mxu1 %v8927_v60  ;;  %v8995_v59 = vld [vmem:[#allocation5 + $0xc8c] ss:$16 sps:$4 sm:$0xff]   ;;  %v8990_v60 = vld [vmem:[#allocation5 + $0xc80] ss:$16 sps:$4 sm:$0xff]  }
 0x232   :  { %5503 = vmatprep.subr.bf16.mxu0 %v8932_v61  ;;  %6019 = vmatprep.subr.bf16.mxu1 %v8935_v62  ;;  %v8993_v61 = vld [vmem:[#allocation5 + $0xc88] ss:$16 sps:$4 sm:$0xff]   ;;  %v8998_v62 = vld [vmem:[#allocation5 + $0xca4] ss:$16 sps:$4 sm:$0xff]  }
 0x235   :  { %5504 = vmatpush1.bf16.msra.mxu0 %v8930_v63  ;;  %6020 = vmatpush1.bf16.msra.mxu1 %v8933_v0  ;;  %v9001_v63 = vld [vmem:[#allocation5 + $0xcac] ss:$16 sps:$4 sm:$0xff]   ;;  %v8996_v0 = vld [vmem:[#allocation5 + $0xca0] ss:$16 sps:$4 sm:$0xff]  }
 0x236   :  { %5505 = vmatprep.subr.bf16.mxu0 %v8938_v19  ;;  %6021 = vmatprep.subr.bf16.mxu1 %v8941_v1  ;;  %v8999_v19 = vld [vmem:[#allocation5 + $0xca8] ss:$16 sps:$4 sm:$0xff]   ;;  %v9004_v1 = vld [vmem:[#allocation5 + $0xcc4] ss:$16 sps:$4 sm:$0xff]  }
 0x239   :  { %5506 = vmatpush1.bf16.msra.mxu0 %v8936_v47  ;;  %6022 = vmatpush1.bf16.msra.mxu1 %v8939_v49  ;;  %v9007_v47 = vld [vmem:[#allocation5 + $0xccc] ss:$16 sps:$4 sm:$0xff]   ;;  %v9002_v49 = vld [vmem:[#allocation5 + $0xcc0] ss:$16 sps:$4 sm:$0xff]  }
 0x23a   :  { %5507 = vmatprep.subr.bf16.mxu0 %v8944_v2  ;;  %6023 = vmatprep.subr.bf16.mxu1 %v8947_v3  ;;  %v9005_v2 = vld [vmem:[#allocation5 + $0xcc8] ss:$16 sps:$4 sm:$0xff]   ;;  %v9010_v3 = vld [vmem:[#allocation5 + $0xce4] ss:$16 sps:$4 sm:$0xff]  }
 0x23d   :  { %5508 = vmatpush1.bf16.msra.mxu0 %v8942_v4  ;;  %6024 = vmatpush1.bf16.msra.mxu1 %v8945_v5  ;;  %v9013_v4 = vld [vmem:[#allocation5 + $0xcec] ss:$16 sps:$4 sm:$0xff]   ;;  %v9008_v5 = vld [vmem:[#allocation5 + $0xce0] ss:$16 sps:$4 sm:$0xff]  }
 0x23e   :  { %5509 = vmatprep.subr.bf16.mxu0 %v8950_v6  ;;  %6025 = vmatprep.subr.bf16.mxu1 %v8953_v7  ;;  %v9011_v6 = vld [vmem:[#allocation5 + $0xce8] ss:$16 sps:$4 sm:$0xff]   ;;  %v9016_v7 = vld [vmem:[#allocation5 + $0xd04] ss:$16 sps:$4 sm:$0xff]  }
 0x241   :  { %5510 = vmatpush1.bf16.msra.mxu0 %v8948_v14  ;;  %6026 = vmatpush1.bf16.msra.mxu1 %v8951_v16  ;;  %v9025_v14 = vld [vmem:[#allocation5 + $0xd2c] ss:$16 sps:$4 sm:$0xff]   ;;  %v9020_v16 = vld [vmem:[#allocation5 + $0xd20] ss:$16 sps:$4 sm:$0xff]  }
 0x242   :  { %5511 = vmatprep.subr.bf16.mxu0 %v8956_v17  ;;  %6027 = vmatprep.subr.bf16.mxu1 %v8959_v18  ;;  %v9023_v17 = vld [vmem:[#allocation5 + $0xd28] ss:$16 sps:$4 sm:$0xff]   ;;  %v9028_v18 = vld [vmem:[#allocation5 + $0xd44] ss:$16 sps:$4 sm:$0xff]  }
 0x245   :  { %5512 = vmatpush1.bf16.msra.mxu0 %v8954_v24  ;;  %6028 = vmatpush1.bf16.msra.mxu1 %v8957_v25  ;;  %v9037_v24 = vld [vmem:[#allocation5 + $0xd6c] ss:$16 sps:$4 sm:$0xff]   ;;  %v9032_v25 = vld [vmem:[#allocation5 + $0xd60] ss:$16 sps:$4 sm:$0xff]  }
 0x246   :  { %5513 = vmatprep.subr.bf16.mxu0 %v8962_v26  ;;  %6029 = vmatprep.subr.bf16.mxu1 %v8965_v53  ;;  %v9035_v26 = vld [vmem:[#allocation5 + $0xd68] ss:$16 sps:$4 sm:$0xff]   ;;  %v9040_v53 = vld [vmem:[#allocation5 + $0xd84] ss:$16 sps:$4 sm:$0xff]  }
 0x249   :  { %5514 = vmatpush1.bf16.msra.mxu0 %v8960_v29  ;;  %6030 = vmatpush1.bf16.msra.mxu1 %v8963_v30  ;;  %v9049_v29 = vld [vmem:[#allocation5 + $0xdac] ss:$16 sps:$4 sm:$0xff]   ;;  %v9044_v30 = vld [vmem:[#allocation5 + $0xda0] ss:$16 sps:$4 sm:$0xff]  }
 0x24a   :  { %5526 = vmatprep.subr.bf16.mxu0 %v8968_v31  ;;  %6042 = vmatprep.subr.bf16.mxu1 %v8971_v32  ;;  %v9047_v31 = vld [vmem:[#allocation5 + $0xda8] ss:$16 sps:$4 sm:$0xff]   ;;  %v9052_v32 = vld [vmem:[#allocation5 + $0xdc4] ss:$16 sps:$4 sm:$0xff]  }
 0x24c   :  { %5516 = vmatmul.mubr.bf16.vlgmr.msra.gmra.mrb[0].mxu0 %v10249_v15  ;;  %6032 = vmatmul.mubr.bf16.vlgmr.msra.gmra.mrb[0].mxu1 %v10249_v15  ;;  %v8984_v15 = vld [vmem:[#allocation5 + $0xc60] ss:$16 sps:$4 sm:$0xff]  }
 0x24d   :  { %5527 = vmatpush1.bf16.msra.mxu0 %v8966_v36  ;;  %6043 = vmatpush1.bf16.msra.mxu1 %v8969_v37  ;;  %v9053_v36 = vld [vmem:[#allocation5 + $0xdc8] ss:$16 sps:$4 sm:$0xff]   ;;  %v9058_v37 = vld [vmem:[#allocation5 + $0xde4] ss:$16 sps:$4 sm:$0xff]  }
 0x24e   :  { %5528 = vmatprep.subr.bf16.mxu0 %v8974_v39  ;;  %6044 = vmatprep.subr.bf16.mxu1 %v8977_v40  ;;  %v9061_v39 = vld [vmem:[#allocation5 + $0xdec] ss:$16 sps:$4 sm:$0xff]   ;;  %v9056_v40 = vld [vmem:[#allocation5 + $0xde0] ss:$16 sps:$4 sm:$0xff]  }
 0x24f   :  { %5558 = vmatprep.mubr.bf16.mxu0 %v1266_v42  ;;  %6074 = vmatprep.mubr.bf16.mxu1 %v1266_v42  ;;  %v9059_v42 = vld [vmem:[#allocation5 + $0xde8] ss:$16 sps:$4 sm:$0xff]  }
 0x251   :  { %5529 = vmatpush1.bf16.msra.mxu0 %v8972_v43  ;;  %6045 = vmatpush1.bf16.msra.mxu1 %v8975_v44  ;;  %v9068_v43 = vld [vmem:[#allocation5 + $0xe04] ss:$16 sps:$4 sm:$0xff]   ;;  %v9071_v44 = vld [vmem:[#allocation5 + $0xe0c] ss:$16 sps:$4 sm:$0xff]  }
 0x252   :  { %5530 = vmatprep.subr.bf16.mxu0 %v8980_v45  ;;  %6046 = vmatprep.subr.bf16.mxu1 %v8983_v46  ;;  %v1262_v45 = vcombine.low %v10264_v13, %v10267_v35  ;;  %v9066_v46 = vld [vmem:[#allocation5 + $0xe00] ss:$16 sps:$4 sm:$0xff]   ;;  %v9081_v35 = vld [vmem:[#allocation5 + $0xe48] ss:$16 sps:$4 sm:$0xff]  }
 0x253   :  { %v9078_v13 = vld [vmem:[#allocation5 + $0xe40] ss:$16 sps:$4 sm:$0xff]  }
 0x255   :  { %5531 = vmatpush1.bf16.msra.mxu0 %v8978_v50  ;;  %6047 = vmatpush1.bf16.msra.mxu1 %v8981_v52  ;;  %v9069_v50 = vld [vmem:[#allocation5 + $0xe08] ss:$16 sps:$4 sm:$0xff]   ;;  %v9074_v52 = vld [vmem:[#allocation5 + $0xe24] ss:$16 sps:$4 sm:$0xff]  }
 0x256   :  { %5532 = vmatprep.subr.bf16.mxu0 %v8986_v55  ;;  %6048 = vmatprep.subr.bf16.mxu1 %v8989_v56  ;;  %v9077_v55 = vld [vmem:[#allocation5 + $0xe2c] ss:$16 sps:$4 sm:$0xff]   ;;  %v9072_v56 = vld [vmem:[#allocation5 + $0xe20] ss:$16 sps:$4 sm:$0xff]  }
 0x259   :  { %5533 = vmatpush1.bf16.msra.mxu0 %v8984_v15  ;;  %6049 = vmatpush1.bf16.msra.mxu1 %v8987_v57  ;;  %v9075_v15 = vld [vmem:[#allocation5 + $0xe28] ss:$16 sps:$4 sm:$0xff]   ;;  %v9080_v57 = vld [vmem:[#allocation5 + $0xe44] ss:$16 sps:$4 sm:$0xff]  }
 0x25a   :  { %5534 = vmatprep.subr.bf16.mxu0 %v8992_v58  ;;  %6050 = vmatprep.subr.bf16.mxu1 %v8995_v59  ;;  %v9083_v58 = vld [vmem:[#allocation5 + $0xe4c] ss:$16 sps:$4 sm:$0xff]   ;;  %v9086_v59 = vld [vmem:[#allocation5 + $0xe64] ss:$16 sps:$4 sm:$0xff]  }
 0x25d   :  { %5535 = vmatpush1.bf16.msra.mxu0 %v8990_v60  ;;  %6051 = vmatpush1.bf16.msra.mxu1 %v8993_v61  ;;  %v9089_v60 = vld [vmem:[#allocation5 + $0xe6c] ss:$16 sps:$4 sm:$0xff]   ;;  %v9084_v61 = vld [vmem:[#allocation5 + $0xe60] ss:$16 sps:$4 sm:$0xff]  }
 0x25e   :  { %5536 = vmatprep.subr.bf16.mxu0 %v8998_v62  ;;  %6052 = vmatprep.subr.bf16.mxu1 %v9001_v63  ;;  %v9087_v62 = vld [vmem:[#allocation5 + $0xe68] ss:$16 sps:$4 sm:$0xff]   ;;  %v9092_v63 = vld [vmem:[#allocation5 + $0xe84] ss:$16 sps:$4 sm:$0xff]  }
 0x261   :  { %5537 = vmatpush1.bf16.msra.mxu0 %v8996_v0  ;;  %6053 = vmatpush1.bf16.msra.mxu1 %v8999_v19  ;;  %v9095_v0 = vld [vmem:[#allocation5 + $0xe8c] ss:$16 sps:$4 sm:$0xff]   ;;  %v9090_v19 = vld [vmem:[#allocation5 + $0xe80] ss:$16 sps:$4 sm:$0xff]  }
 0x262   :  { %5538 = vmatprep.subr.bf16.mxu0 %v9004_v1  ;;  %6054 = vmatprep.subr.bf16.mxu1 %v9007_v47  ;;  %v9098_v1 = vld [vmem:[#allocation5 + $0xea4] ss:$16 sps:$4 sm:$0xff]   ;;  %v9101_v47 = vld [vmem:[#allocation5 + $0xeac] ss:$16 sps:$4 sm:$0xff]  }
 0x265   :  { %5539 = vmatpush1.bf16.msra.mxu0 %v9002_v49  ;;  %6055 = vmatpush1.bf16.msra.mxu1 %v9005_v2  ;;  %v9096_v49 = vld [vmem:[#allocation5 + $0xea0] ss:$16 sps:$4 sm:$0xff]   ;;  %v9099_v2 = vld [vmem:[#allocation5 + $0xea8] ss:$16 sps:$4 sm:$0xff]  }
 0x266   :  { %5540 = vmatprep.subr.bf16.mxu0 %v9010_v3  ;;  %6056 = vmatprep.subr.bf16.mxu1 %v9013_v4  ;;  %v9104_v3 = vld [vmem:[#allocation5 + $0xec4] ss:$16 sps:$4 sm:$0xff]   ;;  %v9107_v4 = vld [vmem:[#allocation5 + $0xecc] ss:$16 sps:$4 sm:$0xff]  }
 0x269   :  { %5541 = vmatpush1.bf16.msra.mxu0 %v9008_v5  ;;  %6057 = vmatpush1.bf16.msra.mxu1 %v9011_v6  ;;  %v9102_v5 = vld [vmem:[#allocation5 + $0xec0] ss:$16 sps:$4 sm:$0xff]   ;;  %v9105_v6 = vld [vmem:[#allocation5 + $0xec8] ss:$16 sps:$4 sm:$0xff]  }
 0x26a   :  { %5542 = vmatprep.subr.bf16.mxu0 %v9016_v7  ;;  %6058 = vmatprep.subr.bf16.mxu1 %v9019_v8  ;;  %v9110_v7 = vld [vmem:[#allocation5 + $0xee4] ss:$16 sps:$4 sm:$0xff]   ;;  %v9113_v8 = vld [vmem:[#allocation5 + $0xeec] ss:$16 sps:$4 sm:$0xff]  }
 0x26d   :  { %5543 = vmatpush1.bf16.msra.mxu0 %v9014_v9  ;;  %6059 = vmatpush1.bf16.msra.mxu1 %v9017_v51  ;;  %v9108_v9 = vld [vmem:[#allocation5 + $0xee0] ss:$16 sps:$4 sm:$0xff]   ;;  %v9111_v51 = vld [vmem:[#allocation5 + $0xee8] ss:$16 sps:$4 sm:$0xff]  }
 0x26e   :  { %5544 = vmatprep.subr.bf16.mxu0 %v9022_v12  ;;  %6060 = vmatprep.subr.bf16.mxu1 %v9025_v14  ;;  %v9116_v12 = vld [vmem:[#allocation5 + $0xf04] ss:$16 sps:$4 sm:$0xff]   ;;  %v9119_v14 = vld [vmem:[#allocation5 + $0xf0c] ss:$16 sps:$4 sm:$0xff]  }
 0x271   :  { %5545 = vmatpush1.bf16.msra.mxu0 %v9020_v16  ;;  %6061 = vmatpush1.bf16.msra.mxu1 %v9023_v17  ;;  %v9114_v16 = vld [vmem:[#allocation5 + $0xf00] ss:$16 sps:$4 sm:$0xff]   ;;  %v9117_v17 = vld [vmem:[#allocation5 + $0xf08] ss:$16 sps:$4 sm:$0xff]  }
 0x272   :  { %5546 = vmatprep.subr.bf16.mxu0 %v9028_v18  ;;  %6062 = vmatprep.subr.bf16.mxu1 %v9031_v20  ;;  %v9122_v18 = vld [vmem:[#allocation5 + $0xf24] ss:$16 sps:$4 sm:$0xff]   ;;  %v9125_v20 = vld [vmem:[#allocation5 + $0xf2c] ss:$16 sps:$4 sm:$0xff]  }
 0x275   :  { %5547 = vmatpush1.bf16.msra.mxu0 %v9026_v21  ;;  %6063 = vmatpush1.bf16.msra.mxu1 %v9029_v22  ;;  %v9120_v21 = vld [vmem:[#allocation5 + $0xf20] ss:$16 sps:$4 sm:$0xff]   ;;  %v9123_v22 = vld [vmem:[#allocation5 + $0xf28] ss:$16 sps:$4 sm:$0xff]  }
 0x276   :  { %5548 = vmatprep.subr.bf16.mxu0 %v9034_v23  ;;  %6064 = vmatprep.subr.bf16.mxu1 %v9037_v24  ;;  %v9128_v23 = vld [vmem:[#allocation5 + $0xf44] ss:$16 sps:$4 sm:$0xff]   ;;  %v9131_v24 = vld [vmem:[#allocation5 + $0xf4c] ss:$16 sps:$4 sm:$0xff]  }
 0x279   :  { %5549 = vmatpush1.bf16.msra.mxu0 %v9032_v25  ;;  %6065 = vmatpush1.bf16.msra.mxu1 %v9035_v26  ;;  %v9126_v25 = vld [vmem:[#allocation5 + $0xf40] ss:$16 sps:$4 sm:$0xff]   ;;  %v9129_v26 = vld [vmem:[#allocation5 + $0xf48] ss:$16 sps:$4 sm:$0xff]  }
 0x27a   :  { %5550 = vmatprep.subr.bf16.mxu0 %v9040_v53  ;;  %6066 = vmatprep.subr.bf16.mxu1 %v9043_v27  ;;  %v9134_v53 = vld [vmem:[#allocation5 + $0xf64] ss:$16 sps:$4 sm:$0xff]   ;;  %v9137_v27 = vld [vmem:[#allocation5 + $0xf6c] ss:$16 sps:$4 sm:$0xff]  }
 0x27d   :  { %5551 = vmatpush1.bf16.msra.mxu0 %v9038_v10  ;;  %6067 = vmatpush1.bf16.msra.mxu1 %v9041_v11  ;;  %v9132_v10 = vld [vmem:[#allocation5 + $0xf60] ss:$16 sps:$4 sm:$0xff]   ;;  %v9135_v11 = vld [vmem:[#allocation5 + $0xf68] ss:$16 sps:$4 sm:$0xff]  }
 0x27e   :  { %5552 = vmatprep.subr.bf16.mxu0 %v9046_v28  ;;  %6068 = vmatprep.subr.bf16.mxu1 %v9049_v29  ;;  %v9140_v28 = vld [vmem:[#allocation5 + $0xf84] ss:$16 sps:$4 sm:$0xff]   ;;  %v9143_v29 = vld [vmem:[#allocation5 + $0xf8c] ss:$16 sps:$4 sm:$0xff]  }
 0x281   :  { %5553 = vmatpush1.bf16.msra.mxu0 %v9044_v30  ;;  %6069 = vmatpush1.bf16.msra.mxu1 %v9047_v31  ;;  %v9138_v30 = vld [vmem:[#allocation5 + $0xf80] ss:$16 sps:$4 sm:$0xff]   ;;  %v9141_v31 = vld [vmem:[#allocation5 + $0xf88] ss:$16 sps:$4 sm:$0xff]  }
 0x282   :  { %5554 = vmatprep.subr.bf16.mxu0 %v9052_v32  ;;  %6070 = vmatprep.subr.bf16.mxu1 %v9055_v33  ;;  %v9146_v32 = vld [vmem:[#allocation5 + $0xfa4] ss:$16 sps:$4 sm:$0xff]   ;;  %v9149_v33 = vld [vmem:[#allocation5 + $0xfac] ss:$16 sps:$4 sm:$0xff]  }
 0x285   :  { %5555 = vmatpush1.bf16.msra.mxu0 %v9050_v34  ;;  %6071 = vmatpush1.bf16.msra.mxu1 %v9053_v36  ;;  %v9258_v34 = vld [vmem:[#allocation2 + $0x10] ss:$24 sps:$4 sm:$0xff]   ;;  %v9260_v36 = vld [vmem:[#allocation2 + $0x40] ss:$24 sps:$4 sm:$0xff]  }
 0x286   :  { %5556 = vmatprep.subr.bf16.mxu0 %v9058_v37  ;;  %6072 = vmatprep.subr.bf16.mxu1 %v9061_v39  ;;  %v9262_v37 = vld [vmem:[#allocation2 + $0x70] ss:$24 sps:$4 sm:$0xff]   ;;  %v9264_v39 = vld [vmem:[#allocation2 + $0xa0] ss:$24 sps:$4 sm:$0xff]  }
 0x289   :  { %5557 = vmatpush1.bf16.msra.mxu0 %v9056_v40  ;;  %6073 = vmatpush1.bf16.msra.mxu1 %v9059_v42  ;;  %v9144_v40 = vld [vmem:[#allocation5 + $0xfa0] ss:$16 sps:$4 sm:$0xff]   ;;  %v9147_v42 = vld [vmem:[#allocation5 + $0xfa8] ss:$16 sps:$4 sm:$0xff]  }
 0x28a   :  { %5569 = vmatprep.subr.bf16.mxu0 %v9068_v43  ;;  %6085 = vmatprep.subr.bf16.mxu1 %v9071_v44  ;;  %v9152_v43 = vld [vmem:[#allocation5 + $0xfc4] ss:$16 sps:$4 sm:$0xff]   ;;  %v9155_v44 = vld [vmem:[#allocation5 + $0xfcc] ss:$16 sps:$4 sm:$0xff]  }
 0x28c   :  { %5559 = vmatmul.mubr.bf16.vlgmr.msra.gmra.mrb[0].mxu0 %v1262_v45  ;;  %6075 = vmatmul.mubr.bf16.vlgmr.msra.gmra.mrb[0].mxu1 %v1262_v45  ;;  %v1282_v45 = vrot.slane %v9258_v34, %v10197_v54  ;;  %v9215_v34 = vld [vmem:[#allocation5 + $0x110c] ss:$16 sps:$4 sm:$0xff]  }
 0x28d   :  { %5570 = vmatpush1.bf16.msra.mxu0 %v9066_v46  ;;  %6086 = vmatpush1.bf16.msra.mxu1 %v9069_v50  ;;  %v1296_v46 = vrot.slane %v9260_v36, %v10197_v54  ;;  %v1310_v50 = vrot.slane %v9262_v37, %v10197_v54  ;;  %v9210_v36 = vld [vmem:[#allocation5 + $0x1100] ss:$16 sps:$4 sm:$0xff]   ;;  %v9213_v37 = vld [vmem:[#allocation5 + $0x1108] ss:$16 sps:$4 sm:$0xff]  }
 0x28e   :  { %5571 = vmatprep.subr.bf16.mxu0 %v9074_v52  ;;  %6087 = vmatprep.subr.bf16.mxu1 %v9077_v55  ;;  %v1324_v52 = vrot.slane %v9264_v39, %v10197_v54  ;;  %v9150_v55 = vld [vmem:[#allocation5 + $0xfc0] ss:$16 sps:$4 sm:$0xff]   ;;  %v9218_v39 = vld [vmem:[#allocation5 + $0x1124] ss:$16 sps:$4 sm:$0xff]  }
 0x28f   :  { %5601 = vmatprep.mubr.bf16.mxu0 %v10269_v38  ;;  %6117 = vmatprep.mubr.bf16.mxu1 %v10269_v38  ;;  %v9093_v38 = vld [vmem:[#allocation5 + $0xe88] ss:$16 sps:$4 sm:$0xff]  }
 0x291   :  { %5572 = vmatpush1.bf16.msra.mxu0 %v9072_v56  ;;  %6088 = vmatpush1.bf16.msra.mxu1 %v9075_v15  ;;  %v9153_v56 = vld [vmem:[#allocation5 + $0xfc8] ss:$16 sps:$4 sm:$0xff]   ;;  %v9158_v15 = vld [vmem:[#allocation5 + $0xfe4] ss:$16 sps:$4 sm:$0xff]  }
 0x292   :  { %5573 = vmatprep.subr.bf16.mxu0 %v9080_v57  ;;  %6089 = vmatprep.subr.bf16.mxu1 %v9083_v58  ;;  %v9161_v57 = vld [vmem:[#allocation5 + $0xfec] ss:$16 sps:$4 sm:$0xff]   ;;  %v1333_v58 = vcombine.high %v1282_v45, %v1296_v46 }
 0x295   :  { %5574 = vmatpush1.bf16.msra.mxu0 %v9078_v13  ;;  %6090 = vmatpush1.bf16.msra.mxu1 %v9081_v35  ;;  %v1337_v13 = vcombine.high %v1310_v50, %v1324_v52  ;;  %v1332_v35 = vcombine.low %v1282_v45, %v1296_v46  ;;  %v9227_v45 = vld [vmem:[#allocation5 + $0x114c] ss:$16 sps:$4 sm:$0xff]   ;;  %v9222_v46 = vld [vmem:[#allocation5 + $0x1140] ss:$16 sps:$4 sm:$0xff]  }
 0x296   :  { %5575 = vmatprep.subr.bf16.mxu0 %v9086_v59  ;;  %6091 = vmatprep.subr.bf16.mxu1 %v9089_v60  ;;  %v1336_v59 = vcombine.low %v1310_v50, %v1324_v52  ;;  %v9156_v60 = vld [vmem:[#allocation5 + $0xfe0] ss:$16 sps:$4 sm:$0xff]   ;;  %v9225_v50 = vld [vmem:[#allocation5 + $0x1148] ss:$16 sps:$4 sm:$0xff]   ;;  %v9230_v52 = vld [vmem:[#allocation5 + $0x1164] ss:$16 sps:$4 sm:$0xff]  }
 0x299   :  { %5576 = vmatpush1.bf16.msra.mxu0 %v9084_v61  ;;  %6092 = vmatpush1.bf16.msra.mxu1 %v9087_v62  ;;  %v9159_v61 = vld [vmem:[#allocation5 + $0xfe8] ss:$16 sps:$4 sm:$0xff]   ;;  %v9164_v62 = vld [vmem:[#allocation5 + $0x1004] ss:$16 sps:$4 sm:$0xff]  }
 0x29a   :  { %5577 = vmatprep.subr.bf16.mxu0 %v9092_v63  ;;  %6093 = vmatprep.subr.bf16.mxu1 %v9095_v0  ;;  %v9167_v63 = vld [vmem:[#allocation5 + $0x100c] ss:$16 sps:$4 sm:$0xff]   ;;  %v1360_v0 = vrot.slane %v1333_v58, %v10197_v54 }
 0x29b   :  { %v9239_v58 = vld [vmem:[#allocation5 + $0x118c] ss:$16 sps:$4 sm:$0xff]  }
 0x29d   :  { %5578 = vmatpush1.bf16.msra.mxu0 %v9090_v19  ;;  %6094 = vmatpush1.bf16.msra.mxu1 %v9093_v38  ;;  %v1388_v19 = vrot.slane %v1337_v13, %v10197_v54  ;;  %v10288_v38 = vrot.slane %v1332_v35, %v10197_v54  ;;  %v9234_v13 = vld [vmem:[#allocation5 + $0x1180] ss:$16 sps:$4 sm:$0xff]   ;;  %v9237_v35 = vld [vmem:[#allocation5 + $0x1188] ss:$16 sps:$4 sm:$0xff]  }
 0x29e   :  { %5579 = vmatprep.subr.bf16.mxu0 %v9098_v1  ;;  %6095 = vmatprep.subr.bf16.mxu1 %v9101_v47  ;;  %v10291_v1 = vrot.slane %v1336_v59, %v10197_v54  ;;  %v9162_v47 = vld [vmem:[#allocation5 + $0x1000] ss:$16 sps:$4 sm:$0xff]   ;;  %v9242_v59 = vld [vmem:[#allocation5 + $0x11a4] ss:$16 sps:$4 sm:$0xff]  }
 0x2a1   :  { %5580 = vmatpush1.bf16.msra.mxu0 %v9096_v49  ;;  %6096 = vmatpush1.bf16.msra.mxu1 %v9099_v2  ;;  %v9165_v49 = vld [vmem:[#allocation5 + $0x1008] ss:$16 sps:$4 sm:$0xff]   ;;  %v10293_v2 = vcombine.high %v1360_v0, %v1388_v19 }
 0x2a2   :  { %5581 = vmatprep.subr.bf16.mxu0 %v9104_v3  ;;  %6097 = vmatprep.subr.bf16.mxu1 %v9107_v4  ;;  %v9170_v3 = vld [vmem:[#allocation5 + $0x1024] ss:$16 sps:$4 sm:$0xff]   ;;  %v9173_v4 = vld [vmem:[#allocation5 + $0x102c] ss:$16 sps:$4 sm:$0xff]  }
 0x2a5   :  { %5582 = vmatpush1.bf16.msra.mxu0 %v9102_v5  ;;  %6098 = vmatpush1.bf16.msra.mxu1 %v9105_v6  ;;  %v10297_v5 = vcombine.high %v10288_v38, %v10291_v1  ;;  %v1400_v6 = vcombine.low %v1360_v0, %v1388_v19  ;;  %v9251_v0 = vld [vmem:[#allocation5 + $0x11cc] ss:$16 sps:$4 sm:$0xff]   ;;  %v9246_v19 = vld [vmem:[#allocation5 + $0x11c0] ss:$16 sps:$4 sm:$0xff]  }
 0x2a6   :  { %5583 = vmatprep.subr.bf16.mxu0 %v9110_v7  ;;  %6099 = vmatprep.subr.bf16.mxu1 %v9113_v8  ;;  %v9168_v7 = vld [vmem:[#allocation5 + $0x1020] ss:$16 sps:$4 sm:$0xff]   ;;  %v9171_v8 = vld [vmem:[#allocation5 + $0x1028] ss:$16 sps:$4 sm:$0xff]  }
 0x2a9   :  { %5584 = vmatpush1.bf16.msra.mxu0 %v9108_v9  ;;  %6100 = vmatpush1.bf16.msra.mxu1 %v9111_v51  ;;  %v9176_v9 = vld [vmem:[#allocation5 + $0x1044] ss:$16 sps:$4 sm:$0xff]   ;;  %v9179_v51 = vld [vmem:[#allocation5 + $0x104c] ss:$16 sps:$4 sm:$0xff]  }
 0x2aa   :  { %5585 = vmatprep.subr.bf16.mxu0 %v9116_v12  ;;  %6101 = vmatprep.subr.bf16.mxu1 %v9119_v14  ;;  %v9174_v12 = vld [vmem:[#allocation5 + $0x1040] ss:$16 sps:$4 sm:$0xff]   ;;  %v9177_v14 = vld [vmem:[#allocation5 + $0x1048] ss:$16 sps:$4 sm:$0xff]  }
 0x2ad   :  { %5586 = vmatpush1.bf16.msra.mxu0 %v9114_v16  ;;  %6102 = vmatpush1.bf16.msra.mxu1 %v9117_v17  ;;  %v9182_v16 = vld [vmem:[#allocation5 + $0x1064] ss:$16 sps:$4 sm:$0xff]   ;;  %v9185_v17 = vld [vmem:[#allocation5 + $0x106c] ss:$16 sps:$4 sm:$0xff]  }
 0x2ae   :  { %5587 = vmatprep.subr.bf16.mxu0 %v9122_v18  ;;  %6103 = vmatprep.subr.bf16.mxu1 %v9125_v20  ;;  %v9183_v18 = vld [vmem:[#allocation5 + $0x1068] ss:$16 sps:$4 sm:$0xff]   ;;  %v9188_v20 = vld [vmem:[#allocation5 + $0x1084] ss:$16 sps:$4 sm:$0xff]  }
 0x2b1   :  { %5588 = vmatpush1.bf16.msra.mxu0 %v9120_v21  ;;  %6104 = vmatpush1.bf16.msra.mxu1 %v9123_v22  ;;  %v9191_v21 = vld [vmem:[#allocation5 + $0x108c] ss:$16 sps:$4 sm:$0xff]   ;;  %v9186_v22 = vld [vmem:[#allocation5 + $0x1080] ss:$16 sps:$4 sm:$0xff]  }
 0x2b2   :  { %5589 = vmatprep.subr.bf16.mxu0 %v9128_v23  ;;  %6105 = vmatprep.subr.bf16.mxu1 %v9131_v24  ;;  %v9189_v23 = vld [vmem:[#allocation5 + $0x1088] ss:$16 sps:$4 sm:$0xff]   ;;  %v9194_v24 = vld [vmem:[#allocation5 + $0x10a4] ss:$16 sps:$4 sm:$0xff]  }
 0x2b5   :  { %5590 = vmatpush1.bf16.msra.mxu0 %v9126_v25  ;;  %6106 = vmatpush1.bf16.msra.mxu1 %v9129_v26  ;;  %v9197_v25 = vld [vmem:[#allocation5 + $0x10ac] ss:$16 sps:$4 sm:$0xff]   ;;  %v9192_v26 = vld [vmem:[#allocation5 + $0x10a0] ss:$16 sps:$4 sm:$0xff]  }
 0x2b6   :  { %5591 = vmatprep.subr.bf16.mxu0 %v9134_v53  ;;  %6107 = vmatprep.subr.bf16.mxu1 %v9137_v27  ;;  %v9195_v53 = vld [vmem:[#allocation5 + $0x10a8] ss:$16 sps:$4 sm:$0xff]   ;;  %v9200_v27 = vld [vmem:[#allocation5 + $0x10c4] ss:$16 sps:$4 sm:$0xff]  }
 0x2b9   :  { %5592 = vmatpush1.bf16.msra.mxu0 %v9132_v10  ;;  %6108 = vmatpush1.bf16.msra.mxu1 %v9135_v11  ;;  %v9203_v10 = vld [vmem:[#allocation5 + $0x10cc] ss:$16 sps:$4 sm:$0xff]   ;;  %v9198_v11 = vld [vmem:[#allocation5 + $0x10c0] ss:$16 sps:$4 sm:$0xff]  }
 0x2ba   :  { %5593 = vmatprep.subr.bf16.mxu0 %v9140_v28  ;;  %6109 = vmatprep.subr.bf16.mxu1 %v9143_v29  ;;  %v9201_v28 = vld [vmem:[#allocation5 + $0x10c8] ss:$16 sps:$4 sm:$0xff]   ;;  %v9206_v29 = vld [vmem:[#allocation5 + $0x10e4] ss:$16 sps:$4 sm:$0xff]  }
 0x2bd   :  { %5594 = vmatpush1.bf16.msra.mxu0 %v9138_v30  ;;  %6110 = vmatpush1.bf16.msra.mxu1 %v9141_v31  ;;  %v9209_v30 = vld [vmem:[#allocation5 + $0x10ec] ss:$16 sps:$4 sm:$0xff]   ;;  %v9204_v31 = vld [vmem:[#allocation5 + $0x10e0] ss:$16 sps:$4 sm:$0xff]  }
 0x2be   :  { %5595 = vmatprep.subr.bf16.mxu0 %v9146_v32  ;;  %6111 = vmatprep.subr.bf16.mxu1 %v9149_v33  ;;  %v9207_v32 = vld [vmem:[#allocation5 + $0x10e8] ss:$16 sps:$4 sm:$0xff]   ;;  %v9212_v33 = vld [vmem:[#allocation5 + $0x1104] ss:$16 sps:$4 sm:$0xff]  }
 0x2c1   :  { %5596 = vmatpush1.bf16.msra.mxu0 %v9144_v40  ;;  %6112 = vmatpush1.bf16.msra.mxu1 %v9147_v42  ;;  %v9221_v40 = vld [vmem:[#allocation5 + $0x112c] ss:$16 sps:$4 sm:$0xff]   ;;  %v9216_v42 = vld [vmem:[#allocation5 + $0x1120] ss:$16 sps:$4 sm:$0xff]  }
 0x2c2   :  { %5597 = vmatprep.subr.bf16.mxu0 %v9152_v43  ;;  %6113 = vmatprep.subr.bf16.mxu1 %v9155_v44  ;;  %v9219_v43 = vld [vmem:[#allocation5 + $0x1128] ss:$16 sps:$4 sm:$0xff]   ;;  %v9224_v44 = vld [vmem:[#allocation5 + $0x1144] ss:$16 sps:$4 sm:$0xff]  }
 0x2c5   :  { %5598 = vmatpush1.bf16.msra.mxu0 %v9150_v55  ;;  %6114 = vmatpush1.bf16.msra.mxu1 %v9153_v56  ;;  %v9233_v55 = vld [vmem:[#allocation5 + $0x116c] ss:$16 sps:$4 sm:$0xff]   ;;  %v9228_v56 = vld [vmem:[#allocation5 + $0x1160] ss:$16 sps:$4 sm:$0xff]  }
 0x2c6   :  { %5599 = vmatprep.subr.bf16.mxu0 %v9158_v15  ;;  %6115 = vmatprep.subr.bf16.mxu1 %v9161_v57  ;;  %v9231_v15 = vld [vmem:[#allocation5 + $0x1168] ss:$16 sps:$4 sm:$0xff]   ;;  %v9236_v57 = vld [vmem:[#allocation5 + $0x1184] ss:$16 sps:$4 sm:$0xff]  }
 0x2c9   :  { %5600 = vmatpush1.bf16.msra.mxu0 %v9156_v60  ;;  %6116 = vmatpush1.bf16.msra.mxu1 %v9159_v61  ;;  %v9245_v60 = vld [vmem:[#allocation5 + $0x11ac] ss:$16 sps:$4 sm:$0xff]   ;;  %v9240_v61 = vld [vmem:[#allocation5 + $0x11a0] ss:$16 sps:$4 sm:$0xff]  }
 0x2ca   :  { %5612 = vmatprep.subr.bf16.mxu0 %v9164_v62  ;;  %6128 = vmatprep.subr.bf16.mxu1 %v9167_v63  ;;  %v9243_v62 = vld [vmem:[#allocation5 + $0x11a8] ss:$16 sps:$4 sm:$0xff]   ;;  %v9248_v63 = vld [vmem:[#allocation5 + $0x11c4] ss:$16 sps:$4 sm:$0xff]  }
 0x2cc   :  { %5602 = vmatmul.mubr.bf16.vlgmr.msra.gmra.mrb[0].mxu0 %v10273_v41  ;;  %6118 = vmatmul.mubr.bf16.vlgmr.msra.gmra.mrb[0].mxu1 %v10273_v41  ;;  %v9180_v41 = vld [vmem:[#allocation5 + $0x1060] ss:$16 sps:$4 sm:$0xff]  }
 0x2cd   :  { %5613 = vmatpush1.bf16.msra.mxu0 %v9162_v47  ;;  %6129 = vmatpush1.bf16.msra.mxu1 %v9165_v49  ;;  %v9249_v47 = vld [vmem:[#allocation5 + $0x11c8] ss:$16 sps:$4 sm:$0xff]   ;;  %v9254_v49 = vld [vmem:[#allocation5 + $0x11e4] ss:$16 sps:$4 sm:$0xff]  }
 0x2ce   :  { %5614 = vmatprep.subr.bf16.mxu0 %v9170_v3  ;;  %6130 = vmatprep.subr.bf16.mxu1 %v9173_v4  ;;  %v9257_v3 = vld [vmem:[#allocation5 + $0x11ec] ss:$16 sps:$4 sm:$0xff]   ;;  %v9252_v4 = vld [vmem:[#allocation5 + $0x11e0] ss:$16 sps:$4 sm:$0xff]  }
 0x2cf   :  { %5644 = vmatprep.mubr.bf16.mxu0 %v1400_v6  ;;  %6160 = vmatprep.mubr.bf16.mxu1 %v1400_v6  ;;  %v9255_v6 = vld [vmem:[#allocation5 + $0x11e8] ss:$16 sps:$4 sm:$0xff]  }
 0x2d1   :  { %5615 = vmatpush1.bf16.msra.mxu0 %v9168_v7  ;;  %6131 = vmatpush1.bf16.msra.mxu1 %v9171_v8  ;;  %v9268_v7 = vld [vmem:[#allocation5 + $0x1204] ss:$16 sps:$4 sm:$0xff]   ;;  %v9271_v8 = vld [vmem:[#allocation5 + $0x120c] ss:$16 sps:$4 sm:$0xff]  }
 0x2d2   :  { %5616 = vmatprep.subr.bf16.mxu0 %v9176_v9  ;;  %6132 = vmatprep.subr.bf16.mxu1 %v9179_v51  ;;  %v1396_v9 = vcombine.low %v10288_v38, %v10291_v1  ;;  %v9266_v51 = vld [vmem:[#allocation5 + $0x1200] ss:$16 sps:$4 sm:$0xff]   ;;  %v9281_v1 = vld [vmem:[#allocation5 + $0x1248] ss:$16 sps:$4 sm:$0xff]  }
 0x2d3   :  { %v9278_v38 = vld [vmem:[#allocation5 + $0x1240] ss:$16 sps:$4 sm:$0xff]  }
 0x2d5   :  { %5617 = vmatpush1.bf16.msra.mxu0 %v9174_v12  ;;  %6133 = vmatpush1.bf16.msra.mxu1 %v9177_v14  ;;  %v9269_v12 = vld [vmem:[#allocation5 + $0x1208] ss:$16 sps:$4 sm:$0xff]   ;;  %v9274_v14 = vld [vmem:[#allocation5 + $0x1224] ss:$16 sps:$4 sm:$0xff]  }
 0x2d6   :  { %5618 = vmatprep.subr.bf16.mxu0 %v9182_v16  ;;  %6134 = vmatprep.subr.bf16.mxu1 %v9185_v17  ;;  %v9277_v16 = vld [vmem:[#allocation5 + $0x122c] ss:$16 sps:$4 sm:$0xff]   ;;  %v9272_v17 = vld [vmem:[#allocation5 + $0x1220] ss:$16 sps:$4 sm:$0xff]  }
 0x2d9   :  { %5619 = vmatpush1.bf16.msra.mxu0 %v9180_v41  ;;  %6135 = vmatpush1.bf16.msra.mxu1 %v9183_v18  ;;  %v9275_v41 = vld [vmem:[#allocation5 + $0x1228] ss:$16 sps:$4 sm:$0xff]   ;;  %v9280_v18 = vld [vmem:[#allocation5 + $0x1244] ss:$16 sps:$4 sm:$0xff]  }
 0x2da   :  { %5620 = vmatprep.subr.bf16.mxu0 %v9188_v20  ;;  %6136 = vmatprep.subr.bf16.mxu1 %v9191_v21  ;;  %v9283_v20 = vld [vmem:[#allocation5 + $0x124c] ss:$16 sps:$4 sm:$0xff]   ;;  %v9286_v21 = vld [vmem:[#allocation5 + $0x1264] ss:$16 sps:$4 sm:$0xff]  }
 0x2dd   :  { %5621 = vmatpush1.bf16.msra.mxu0 %v9186_v22  ;;  %6137 = vmatpush1.bf16.msra.mxu1 %v9189_v23  ;;  %v9289_v22 = vld [vmem:[#allocation5 + $0x126c] ss:$16 sps:$4 sm:$0xff]   ;;  %v9284_v23 = vld [vmem:[#allocation5 + $0x1260] ss:$16 sps:$4 sm:$0xff]  }
 0x2de   :  { %5622 = vmatprep.subr.bf16.mxu0 %v9194_v24  ;;  %6138 = vmatprep.subr.bf16.mxu1 %v9197_v25  ;;  %v9287_v24 = vld [vmem:[#allocation5 + $0x1268] ss:$16 sps:$4 sm:$0xff]   ;;  %v9292_v25 = vld [vmem:[#allocation5 + $0x1284] ss:$16 sps:$4 sm:$0xff]  }
 0x2e1   :  { %5623 = vmatpush1.bf16.msra.mxu0 %v9192_v26  ;;  %6139 = vmatpush1.bf16.msra.mxu1 %v9195_v53  ;;  %v9295_v26 = vld [vmem:[#allocation5 + $0x128c] ss:$16 sps:$4 sm:$0xff]   ;;  %v9290_v53 = vld [vmem:[#allocation5 + $0x1280] ss:$16 sps:$4 sm:$0xff]  }
 0x2e2   :  { %5624 = vmatprep.subr.bf16.mxu0 %v9200_v27  ;;  %6140 = vmatprep.subr.bf16.mxu1 %v9203_v10  ;;  %v9298_v27 = vld [vmem:[#allocation5 + $0x12a4] ss:$16 sps:$4 sm:$0xff]   ;;  %v9301_v10 = vld [vmem:[#allocation5 + $0x12ac] ss:$16 sps:$4 sm:$0xff]  }
 0x2e5   :  { %5625 = vmatpush1.bf16.msra.mxu0 %v9198_v11  ;;  %6141 = vmatpush1.bf16.msra.mxu1 %v9201_v28  ;;  %v9296_v11 = vld [vmem:[#allocation5 + $0x12a0] ss:$16 sps:$4 sm:$0xff]   ;;  %v9299_v28 = vld [vmem:[#allocation5 + $0x12a8] ss:$16 sps:$4 sm:$0xff]  }
 0x2e6   :  { %5626 = vmatprep.subr.bf16.mxu0 %v9206_v29  ;;  %6142 = vmatprep.subr.bf16.mxu1 %v9209_v30  ;;  %v9304_v29 = vld [vmem:[#allocation5 + $0x12c4] ss:$16 sps:$4 sm:$0xff]   ;;  %v9307_v30 = vld [vmem:[#allocation5 + $0x12cc] ss:$16 sps:$4 sm:$0xff]  }
 0x2e9   :  { %5627 = vmatpush1.bf16.msra.mxu0 %v9204_v31  ;;  %6143 = vmatpush1.bf16.msra.mxu1 %v9207_v32  ;;  %v9302_v31 = vld [vmem:[#allocation5 + $0x12c0] ss:$16 sps:$4 sm:$0xff]   ;;  %v9305_v32 = vld [vmem:[#allocation5 + $0x12c8] ss:$16 sps:$4 sm:$0xff]  }
 0x2ea   :  { %5628 = vmatprep.subr.bf16.mxu0 %v9212_v33  ;;  %6144 = vmatprep.subr.bf16.mxu1 %v9215_v34  ;;  %v9310_v33 = vld [vmem:[#allocation5 + $0x12e4] ss:$16 sps:$4 sm:$0xff]   ;;  %v9313_v34 = vld [vmem:[#allocation5 + $0x12ec] ss:$16 sps:$4 sm:$0xff]  }
 0x2ed   :  { %5629 = vmatpush1.bf16.msra.mxu0 %v9210_v36  ;;  %6145 = vmatpush1.bf16.msra.mxu1 %v9213_v37  ;;  %v9308_v36 = vld [vmem:[#allocation5 + $0x12e0] ss:$16 sps:$4 sm:$0xff]   ;;  %v9311_v37 = vld [vmem:[#allocation5 + $0x12e8] ss:$16 sps:$4 sm:$0xff]  }
 0x2ee   :  { %5630 = vmatprep.subr.bf16.mxu0 %v9218_v39  ;;  %6146 = vmatprep.subr.bf16.mxu1 %v9221_v40  ;;  %v9316_v39 = vld [vmem:[#allocation5 + $0x1304] ss:$16 sps:$4 sm:$0xff]   ;;  %v9319_v40 = vld [vmem:[#allocation5 + $0x130c] ss:$16 sps:$4 sm:$0xff]  }
 0x2f1   :  { %5631 = vmatpush1.bf16.msra.mxu0 %v9216_v42  ;;  %6147 = vmatpush1.bf16.msra.mxu1 %v9219_v43  ;;  %v9314_v42 = vld [vmem:[#allocation5 + $0x1300] ss:$16 sps:$4 sm:$0xff]   ;;  %v9317_v43 = vld [vmem:[#allocation5 + $0x1308] ss:$16 sps:$4 sm:$0xff]  }
 0x2f2   :  { %5632 = vmatprep.subr.bf16.mxu0 %v9224_v44  ;;  %6148 = vmatprep.subr.bf16.mxu1 %v9227_v45  ;;  %v9322_v44 = vld [vmem:[#allocation5 + $0x1324] ss:$16 sps:$4 sm:$0xff]   ;;  %v9325_v45 = vld [vmem:[#allocation5 + $0x132c] ss:$16 sps:$4 sm:$0xff]  }
 0x2f5   :  { %5633 = vmatpush1.bf16.msra.mxu0 %v9222_v46  ;;  %6149 = vmatpush1.bf16.msra.mxu1 %v9225_v50  ;;  %v9320_v46 = vld [vmem:[#allocation5 + $0x1320] ss:$16 sps:$4 sm:$0xff]   ;;  %v9323_v50 = vld [vmem:[#allocation5 + $0x1328] ss:$16 sps:$4 sm:$0xff]  }
 0x2f6   :  { %5634 = vmatprep.subr.bf16.mxu0 %v9230_v52  ;;  %6150 = vmatprep.subr.bf16.mxu1 %v9233_v55  ;;  %v9328_v52 = vld [vmem:[#allocation5 + $0x1344] ss:$16 sps:$4 sm:$0xff]   ;;  %v9331_v55 = vld [vmem:[#allocation5 + $0x134c] ss:$16 sps:$4 sm:$0xff]  }
 0x2f9   :  { %5635 = vmatpush1.bf16.msra.mxu0 %v9228_v56  ;;  %6151 = vmatpush1.bf16.msra.mxu1 %v9231_v15  ;;  %v9326_v56 = vld [vmem:[#allocation5 + $0x1340] ss:$16 sps:$4 sm:$0xff]   ;;  %v9329_v15 = vld [vmem:[#allocation5 + $0x1348] ss:$16 sps:$4 sm:$0xff]  }
 0x2fa   :  { %5636 = vmatprep.subr.bf16.mxu0 %v9236_v57  ;;  %6152 = vmatprep.subr.bf16.mxu1 %v9239_v58  ;;  %v9334_v57 = vld [vmem:[#allocation5 + $0x1364] ss:$16 sps:$4 sm:$0xff]   ;;  %v9337_v58 = vld [vmem:[#allocation5 + $0x136c] ss:$16 sps:$4 sm:$0xff]  }
 0x2fd   :  { %5637 = vmatpush1.bf16.msra.mxu0 %v9234_v13  ;;  %6153 = vmatpush1.bf16.msra.mxu1 %v9237_v35  ;;  %v9332_v13 = vld [vmem:[#allocation5 + $0x1360] ss:$16 sps:$4 sm:$0xff]   ;;  %v9335_v35 = vld [vmem:[#allocation5 + $0x1368] ss:$16 sps:$4 sm:$0xff]  }
 0x2fe   :  { %5638 = vmatprep.subr.bf16.mxu0 %v9242_v59  ;;  %6154 = vmatprep.subr.bf16.mxu1 %v9245_v60  ;;  %v9340_v59 = vld [vmem:[#allocation5 + $0x1384] ss:$16 sps:$4 sm:$0xff]   ;;  %v9343_v60 = vld [vmem:[#allocation5 + $0x138c] ss:$16 sps:$4 sm:$0xff]  }
 0x301   :  { %5639 = vmatpush1.bf16.msra.mxu0 %v9240_v61  ;;  %6155 = vmatpush1.bf16.msra.mxu1 %v9243_v62  ;;  %v9338_v61 = vld [vmem:[#allocation5 + $0x1380] ss:$16 sps:$4 sm:$0xff]   ;;  %v9341_v62 = vld [vmem:[#allocation5 + $0x1388] ss:$16 sps:$4 sm:$0xff]  }
 0x302   :  { %5640 = vmatprep.subr.bf16.mxu0 %v9248_v63  ;;  %6156 = vmatprep.subr.bf16.mxu1 %v9251_v0  ;;  %v9346_v63 = vld [vmem:[#allocation5 + $0x13a4] ss:$16 sps:$4 sm:$0xff]   ;;  %v9349_v0 = vld [vmem:[#allocation5 + $0x13ac] ss:$16 sps:$4 sm:$0xff]  }
 0x305   :  { %5641 = vmatpush1.bf16.msra.mxu0 %v9246_v19  ;;  %6157 = vmatpush1.bf16.msra.mxu1 %v9249_v47  ;;  %v9458_v19 = vld [vmem:[#allocation2 + $0x14] ss:$24 sps:$4 sm:$0xff]   ;;  %v9459_v47 = vld [vmem:[#allocation2 + $0x44] ss:$24 sps:$4 sm:$0xff]  }
 0x306   :  { %5642 = vmatprep.subr.bf16.mxu0 %v9254_v49  ;;  %6158 = vmatprep.subr.bf16.mxu1 %v9257_v3  ;;  %v9460_v49 = vld [vmem:[#allocation2 + $0x74] ss:$24 sps:$4 sm:$0xff]   ;;  %v9461_v3 = vld [vmem:[#allocation2 + $0xa4] ss:$24 sps:$4 sm:$0xff]  }
 0x309   :  { %5643 = vmatpush1.bf16.msra.mxu0 %v9252_v4  ;;  %6159 = vmatpush1.bf16.msra.mxu1 %v9255_v6  ;;  %v9344_v4 = vld [vmem:[#allocation5 + $0x13a0] ss:$16 sps:$4 sm:$0xff]   ;;  %v9347_v6 = vld [vmem:[#allocation5 + $0x13a8] ss:$16 sps:$4 sm:$0xff]  }
 0x30a   :  { %5655 = vmatprep.subr.bf16.mxu0 %v9268_v7  ;;  %6171 = vmatprep.subr.bf16.mxu1 %v9271_v8  ;;  %v9352_v7 = vld [vmem:[#allocation5 + $0x13c4] ss:$16 sps:$4 sm:$0xff]   ;;  %v9355_v8 = vld [vmem:[#allocation5 + $0x13cc] ss:$16 sps:$4 sm:$0xff]  }
 0x30c   :  { %5645 = vmatmul.mubr.bf16.vlgmr.msra.gmra.mrb[0].mxu0 %v1396_v9  ;;  %6161 = vmatmul.mubr.bf16.vlgmr.msra.gmra.mrb[0].mxu1 %v1396_v9  ;;  %v1289_v9 = vrot.slane %v9458_v19, %v10197_v54  ;;  %v9410_v19 = vld [vmem:[#allocation5 + $0x1500] ss:$16 sps:$4 sm:$0xff]  }
 0x30d   :  { %5656 = vmatpush1.bf16.msra.mxu0 %v9266_v51  ;;  %6172 = vmatpush1.bf16.msra.mxu1 %v9269_v12  ;;  %v1303_v51 = vrot.slane %v9459_v47, %v10197_v54  ;;  %v1317_v12 = vrot.slane %v9460_v49, %v10197_v54  ;;  %v9413_v47 = vld [vmem:[#allocation5 + $0x1508] ss:$16 sps:$4 sm:$0xff]   ;;  %v9418_v49 = vld [vmem:[#allocation5 + $0x1524] ss:$16 sps:$4 sm:$0xff]  }
 0x30e   :  { %5657 = vmatprep.subr.bf16.mxu0 %v9274_v14  ;;  %6173 = vmatprep.subr.bf16.mxu1 %v9277_v16  ;;  %v1331_v14 = vrot.slane %v9461_v3, %v10197_v54  ;;  %v9350_v16 = vld [vmem:[#allocation5 + $0x13c0] ss:$16 sps:$4 sm:$0xff]   ;;  %v9421_v3 = vld [vmem:[#allocation5 + $0x152c] ss:$16 sps:$4 sm:$0xff]  }
 0x30f   :  { %5687 = vmatprep.mubr.bf16.mxu0 %v10293_v2  ;;  %6203 = vmatprep.mubr.bf16.mxu1 %v10293_v2  ;;  %v9293_v2 = vld [vmem:[#allocation5 + $0x1288] ss:$16 sps:$4 sm:$0xff]  }
 0x311   :  { %5658 = vmatpush1.bf16.msra.mxu0 %v9272_v17  ;;  %6174 = vmatpush1.bf16.msra.mxu1 %v9275_v41  ;;  %v9353_v17 = vld [vmem:[#allocation5 + $0x13c8] ss:$16 sps:$4 sm:$0xff]   ;;  %v9358_v41 = vld [vmem:[#allocation5 + $0x13e4] ss:$16 sps:$4 sm:$0xff]  }
 0x312   :  { %5659 = vmatprep.subr.bf16.mxu0 %v9280_v18  ;;  %6175 = vmatprep.subr.bf16.mxu1 %v9283_v20  ;;  %v9361_v18 = vld [vmem:[#allocation5 + $0x13ec] ss:$16 sps:$4 sm:$0xff]   ;;  %v1335_v20 = vcombine.high %v1289_v9, %v1303_v51 }
 0x315   :  { %5660 = vmatpush1.bf16.msra.mxu0 %v9278_v38  ;;  %6176 = vmatpush1.bf16.msra.mxu1 %v9281_v1  ;;  %v1339_v38 = vcombine.high %v1317_v12, %v1331_v14  ;;  %v1334_v1 = vcombine.low %v1289_v9, %v1303_v51  ;;  %v9422_v9 = vld [vmem:[#allocation5 + $0x1540] ss:$16 sps:$4 sm:$0xff]   ;;  %v9425_v51 = vld [vmem:[#allocation5 + $0x1548] ss:$16 sps:$4 sm:$0xff]  }
 0x316   :  { %5661 = vmatprep.subr.bf16.mxu0 %v9286_v21  ;;  %6177 = vmatprep.subr.bf16.mxu1 %v9289_v22  ;;  %v1338_v21 = vcombine.low %v1317_v12, %v1331_v14  ;;  %v9356_v22 = vld [vmem:[#allocation5 + $0x13e0] ss:$16 sps:$4 sm:$0xff]   ;;  %v9430_v12 = vld [vmem:[#allocation5 + $0x1564] ss:$16 sps:$4 sm:$0xff]   ;;  %v9433_v14 = vld [vmem:[#allocation5 + $0x156c] ss:$16 sps:$4 sm:$0xff]  }
 0x319   :  { %5662 = vmatpush1.bf16.msra.mxu0 %v9284_v23  ;;  %6178 = vmatpush1.bf16.msra.mxu1 %v9287_v24  ;;  %v9359_v23 = vld [vmem:[#allocation5 + $0x13e8] ss:$16 sps:$4 sm:$0xff]   ;;  %v9364_v24 = vld [vmem:[#allocation5 + $0x1404] ss:$16 sps:$4 sm:$0xff]  }
 0x31a   :  { %5663 = vmatprep.subr.bf16.mxu0 %v9292_v25  ;;  %6179 = vmatprep.subr.bf16.mxu1 %v9295_v26  ;;  %v9367_v25 = vld [vmem:[#allocation5 + $0x140c] ss:$16 sps:$4 sm:$0xff]   ;;  %v1367_v26 = vrot.slane %v1335_v20, %v10197_v54  ;;  %v9434_v20 = vld [vmem:[#allocation5 + $0x1580] ss:$16 sps:$4 sm:$0xff]  }
 0x31d   :  { %5664 = vmatpush1.bf16.msra.mxu0 %v9290_v53  ;;  %6180 = vmatpush1.bf16.msra.mxu1 %v9293_v2  ;;  %v1395_v53 = vrot.slane %v1339_v38, %v10197_v54  ;;  %v10312_v2 = vrot.slane %v1334_v1, %v10197_v54  ;;  %v9437_v38 = vld [vmem:[#allocation5 + $0x1588] ss:$16 sps:$4 sm:$0xff]   ;;  %v9442_v1 = vld [vmem:[#allocation5 + $0x15a4] ss:$16 sps:$4 sm:$0xff]  }
 0x31e   :  { %5665 = vmatprep.subr.bf16.mxu0 %v9298_v27  ;;  %6181 = vmatprep.subr.bf16.mxu1 %v9301_v10  ;;  %v10315_v27 = vrot.slane %v1338_v21, %v10197_v54  ;;  %v9362_v10 = vld [vmem:[#allocation5 + $0x1400] ss:$16 sps:$4 sm:$0xff]   ;;  %v9445_v21 = vld [vmem:[#allocation5 + $0x15ac] ss:$16 sps:$4 sm:$0xff]  }
 0x31f   :  { %v9368_v54 = vld [vmem:[#allocation5 + $0x1420] ss:$16 sps:$4 sm:$0xff]  }
 0x321   :  { %5666 = vmatpush1.bf16.msra.mxu0 %v9296_v11  ;;  %6182 = vmatpush1.bf16.msra.mxu1 %v9299_v28  ;;  %v9365_v11 = vld [vmem:[#allocation5 + $0x1408] ss:$16 sps:$4 sm:$0xff]   ;;  %v10317_v28 = vcombine.high %v1367_v26, %v1395_v53 }
 0x322   :  { %5667 = vmatprep.subr.bf16.mxu0 %v9304_v29  ;;  %6183 = vmatprep.subr.bf16.mxu1 %v9307_v30  ;;  %v10321_v29 = vcombine.high %v10312_v2, %v10315_v27  ;;  %v9370_v30 = vld [vmem:[#allocation5 + $0x1424] ss:$16 sps:$4 sm:$0xff]  }
 0x325   :  { %5668 = vmatpush1.bf16.msra.mxu0 %v9302_v31  ;;  %6184 = vmatpush1.bf16.msra.mxu1 %v9305_v32  ;;  %v9373_v31 = vld [vmem:[#allocation5 + $0x142c] ss:$16 sps:$4 sm:$0xff]   ;;  %v1402_v32 = vcombine.low %v1367_v26, %v1395_v53  ;;  %v9446_v26 = vld [vmem:[#allocation5 + $0x15c0] ss:$16 sps:$4 sm:$0xff]   ;;  %v9449_v53 = vld [vmem:[#allocation5 + $0x15c8] ss:$16 sps:$4 sm:$0xff]  }
 0x326   :  { %5669 = vmatprep.subr.bf16.mxu0 %v9310_v33  ;;  %6185 = vmatprep.subr.bf16.mxu1 %v9313_v34  ;;  %v9371_v33 = vld [vmem:[#allocation5 + $0x1428] ss:$16 sps:$4 sm:$0xff]   ;;  %v9376_v34 = vld [vmem:[#allocation5 + $0x1444] ss:$16 sps:$4 sm:$0xff]  }
 0x329   :  { %5670 = vmatpush1.bf16.msra.mxu0 %v9308_v36  ;;  %6186 = vmatpush1.bf16.msra.mxu1 %v9311_v37  ;;  %v9379_v36 = vld [vmem:[#allocation5 + $0x144c] ss:$16 sps:$4 sm:$0xff]   ;;  %v9374_v37 = vld [vmem:[#allocation5 + $0x1440] ss:$16 sps:$4 sm:$0xff]  }
 0x32a   :  { %5671 = vmatprep.subr.bf16.mxu0 %v9316_v39  ;;  %6187 = vmatprep.subr.bf16.mxu1 %v9319_v40  ;;  %v9377_v39 = vld [vmem:[#allocation5 + $0x1448] ss:$16 sps:$4 sm:$0xff]   ;;  %v9382_v40 = vld [vmem:[#allocation5 + $0x1464] ss:$16 sps:$4 sm:$0xff]  }
 0x32d   :  { %5672 = vmatpush1.bf16.msra.mxu0 %v9314_v42  ;;  %6188 = vmatpush1.bf16.msra.mxu1 %v9317_v43  ;;  %v9385_v42 = vld [vmem:[#allocation5 + $0x146c] ss:$16 sps:$4 sm:$0xff]   ;;  %v9383_v43 = vld [vmem:[#allocation5 + $0x1468] ss:$16 sps:$4 sm:$0xff]  }
 0x32e   :  { %5673 = vmatprep.subr.bf16.mxu0 %v9322_v44  ;;  %6189 = vmatprep.subr.bf16.mxu1 %v9325_v45  ;;  %v9388_v44 = vld [vmem:[#allocation5 + $0x1484] ss:$16 sps:$4 sm:$0xff]   ;;  %v9391_v45 = vld [vmem:[#allocation5 + $0x148c] ss:$16 sps:$4 sm:$0xff]  }
 0x331   :  { %5674 = vmatpush1.bf16.msra.mxu0 %v9320_v46  ;;  %6190 = vmatpush1.bf16.msra.mxu1 %v9323_v50  ;;  %v9386_v46 = vld [vmem:[#allocation5 + $0x1480] ss:$16 sps:$4 sm:$0xff]   ;;  %v9389_v50 = vld [vmem:[#allocation5 + $0x1488] ss:$16 sps:$4 sm:$0xff]  }
 0x332   :  { %5675 = vmatprep.subr.bf16.mxu0 %v9328_v52  ;;  %6191 = vmatprep.subr.bf16.mxu1 %v9331_v55  ;;  %v9394_v52 = vld [vmem:[#allocation5 + $0x14a4] ss:$16 sps:$4 sm:$0xff]   ;;  %v9397_v55 = vld [vmem:[#allocation5 + $0x14ac] ss:$16 sps:$4 sm:$0xff]  }
 0x335   :  { %5676 = vmatpush1.bf16.msra.mxu0 %v9326_v56  ;;  %6192 = vmatpush1.bf16.msra.mxu1 %v9329_v15  ;;  %v9392_v56 = vld [vmem:[#allocation5 + $0x14a0] ss:$16 sps:$4 sm:$0xff]   ;;  %v9395_v15 = vld [vmem:[#allocation5 + $0x14a8] ss:$16 sps:$4 sm:$0xff]  }
 0x336   :  { %5677 = vmatprep.subr.bf16.mxu0 %v9334_v57  ;;  %6193 = vmatprep.subr.bf16.mxu1 %v9337_v58  ;;  %v9400_v57 = vld [vmem:[#allocation5 + $0x14c4] ss:$16 sps:$4 sm:$0xff]   ;;  %v9403_v58 = vld [vmem:[#allocation5 + $0x14cc] ss:$16 sps:$4 sm:$0xff]  }
 0x339   :  { %5678 = vmatpush1.bf16.msra.mxu0 %v9332_v13  ;;  %6194 = vmatpush1.bf16.msra.mxu1 %v9335_v35  ;;  %v9398_v13 = vld [vmem:[#allocation5 + $0x14c0] ss:$16 sps:$4 sm:$0xff]   ;;  %v9401_v35 = vld [vmem:[#allocation5 + $0x14c8] ss:$16 sps:$4 sm:$0xff]  }
 0x33a   :  { %5679 = vmatprep.subr.bf16.mxu0 %v9340_v59  ;;  %6195 = vmatprep.subr.bf16.mxu1 %v9343_v60  ;;  %v9406_v59 = vld [vmem:[#allocation5 + $0x14e4] ss:$16 sps:$4 sm:$0xff]   ;;  %v9409_v60 = vld [vmem:[#allocation5 + $0x14ec] ss:$16 sps:$4 sm:$0xff]  }
 0x33d   :  { %5680 = vmatpush1.bf16.msra.mxu0 %v9338_v61  ;;  %6196 = vmatpush1.bf16.msra.mxu1 %v9341_v62  ;;  %v9404_v61 = vld [vmem:[#allocation5 + $0x14e0] ss:$16 sps:$4 sm:$0xff]   ;;  %v9407_v62 = vld [vmem:[#allocation5 + $0x14e8] ss:$16 sps:$4 sm:$0xff]  }
 0x33e   :  { %5681 = vmatprep.subr.bf16.mxu0 %v9346_v63  ;;  %6197 = vmatprep.subr.bf16.mxu1 %v9349_v0  ;;  %v9412_v63 = vld [vmem:[#allocation5 + $0x1504] ss:$16 sps:$4 sm:$0xff]   ;;  %v9415_v0 = vld [vmem:[#allocation5 + $0x150c] ss:$16 sps:$4 sm:$0xff]  }
 0x341   :  { %5682 = vmatpush1.bf16.msra.mxu0 %v9344_v4  ;;  %6198 = vmatpush1.bf16.msra.mxu1 %v9347_v6  ;;  %v9416_v4 = vld [vmem:[#allocation5 + $0x1520] ss:$16 sps:$4 sm:$0xff]   ;;  %v9419_v6 = vld [vmem:[#allocation5 + $0x1528] ss:$16 sps:$4 sm:$0xff]  }
 0x342   :  { %5683 = vmatprep.subr.bf16.mxu0 %v9352_v7  ;;  %6199 = vmatprep.subr.bf16.mxu1 %v9355_v8  ;;  %v9424_v7 = vld [vmem:[#allocation5 + $0x1544] ss:$16 sps:$4 sm:$0xff]   ;;  %v9427_v8 = vld [vmem:[#allocation5 + $0x154c] ss:$16 sps:$4 sm:$0xff]  }
 0x345   :  { %5684 = vmatpush1.bf16.msra.mxu0 %v9350_v16  ;;  %6200 = vmatpush1.bf16.msra.mxu1 %v9353_v17  ;;  %v9428_v16 = vld [vmem:[#allocation5 + $0x1560] ss:$16 sps:$4 sm:$0xff]   ;;  %v9431_v17 = vld [vmem:[#allocation5 + $0x1568] ss:$16 sps:$4 sm:$0xff]  }
 0x346   :  { %5685 = vmatprep.subr.bf16.mxu0 %v9358_v41  ;;  %6201 = vmatprep.subr.bf16.mxu1 %v9361_v18  ;;  %v9436_v41 = vld [vmem:[#allocation5 + $0x1584] ss:$16 sps:$4 sm:$0xff]   ;;  %v9439_v18 = vld [vmem:[#allocation5 + $0x158c] ss:$16 sps:$4 sm:$0xff]  }
 0x349   :  { %5686 = vmatpush1.bf16.msra.mxu0 %v9356_v22  ;;  %6202 = vmatpush1.bf16.msra.mxu1 %v9359_v23  ;;  %v9440_v22 = vld [vmem:[#allocation5 + $0x15a0] ss:$16 sps:$4 sm:$0xff]   ;;  %v9443_v23 = vld [vmem:[#allocation5 + $0x15a8] ss:$16 sps:$4 sm:$0xff]  }
 0x34a   :  { %5698 = vmatprep.subr.bf16.mxu0 %v9364_v24  ;;  %6214 = vmatprep.subr.bf16.mxu1 %v9367_v25  ;;  %v9448_v24 = vld [vmem:[#allocation5 + $0x15c4] ss:$16 sps:$4 sm:$0xff]   ;;  %v9451_v25 = vld [vmem:[#allocation5 + $0x15cc] ss:$16 sps:$4 sm:$0xff]  }
 0x34c   :  { %5688 = vmatmul.mubr.bf16.vlgmr.msra.gmra.mrb[0].mxu0 %v10297_v5  ;;  %6204 = vmatmul.mubr.bf16.vlgmr.msra.gmra.mrb[0].mxu1 %v10297_v5  ;;  %v9380_v5 = vld [vmem:[#allocation5 + $0x1460] ss:$16 sps:$4 sm:$0xff]  }
 0x34d   :  { %5699 = vmatpush1.bf16.msra.mxu0 %v9362_v10  ;;  %6215 = vmatpush1.bf16.msra.mxu1 %v9365_v11  ;;  %v9454_v10 = vld [vmem:[#allocation5 + $0x15e4] ss:$16 sps:$4 sm:$0xff]   ;;  %v9457_v11 = vld [vmem:[#allocation5 + $0x15ec] ss:$16 sps:$4 sm:$0xff]  }
 0x34e   :  { %5700 = vmatprep.subr.bf16.mxu0 %v9370_v30  ;;  %6216 = vmatprep.subr.bf16.mxu1 %v9373_v31  ;;  %v9452_v30 = vld [vmem:[#allocation5 + $0x15e0] ss:$16 sps:$4 sm:$0xff]   ;;  %v9455_v31 = vld [vmem:[#allocation5 + $0x15e8] ss:$16 sps:$4 sm:$0xff]  }
 0x34f   :  { %5730 = vmatprep.mubr.bf16.mxu0 %v1402_v32  ;;  %6246 = vmatprep.mubr.bf16.mxu1 %v1402_v32  ;;  %v9464_v32 = vld [vmem:[#allocation5 + $0x1604] ss:$16 sps:$4 sm:$0xff]  }
 0x351   :  { %5701 = vmatpush1.bf16.msra.mxu0 %v9368_v54  ;;  %6217 = vmatpush1.bf16.msra.mxu1 %v9371_v33  ;;  %v9467_v54 = vld [vmem:[#allocation5 + $0x160c] ss:$16 sps:$4 sm:$0xff]   ;;  %v1398_v33 = vcombine.low %v10312_v2, %v10315_v27  ;;  %v9474_v2 = vld [vmem:[#allocation5 + $0x1640] ss:$16 sps:$4 sm:$0xff]   ;;  %v9477_v27 = vld [vmem:[#allocation5 + $0x1648] ss:$16 sps:$4 sm:$0xff]  }
 0x352   :  { %5702 = vmatprep.subr.bf16.mxu0 %v9376_v34  ;;  %6218 = vmatprep.subr.bf16.mxu1 %v9379_v36  ;;  %v9462_v34 = vld [vmem:[#allocation5 + $0x1600] ss:$16 sps:$4 sm:$0xff]   ;;  %v9465_v36 = vld [vmem:[#allocation5 + $0x1608] ss:$16 sps:$4 sm:$0xff]  }
 0x355   :  { %5703 = vmatpush1.bf16.msra.mxu0 %v9374_v37  ;;  %6219 = vmatpush1.bf16.msra.mxu1 %v9377_v39  ;;  %v9470_v37 = vld [vmem:[#allocation5 + $0x1624] ss:$16 sps:$4 sm:$0xff]   ;;  %v9473_v39 = vld [vmem:[#allocation5 + $0x162c] ss:$16 sps:$4 sm:$0xff]  }
 0x356   :  { %5704 = vmatprep.subr.bf16.mxu0 %v9382_v40  ;;  %6220 = vmatprep.subr.bf16.mxu1 %v9385_v42  ;;  %v9468_v40 = vld [vmem:[#allocation5 + $0x1620] ss:$16 sps:$4 sm:$0xff]   ;;  %v9471_v42 = vld [vmem:[#allocation5 + $0x1628] ss:$16 sps:$4 sm:$0xff]  }
 0x359   :  { %5705 = vmatpush1.bf16.msra.mxu0 %v9380_v5  ;;  %6221 = vmatpush1.bf16.msra.mxu1 %v9383_v43  ;;  %v9476_v5 = vld [vmem:[#allocation5 + $0x1644] ss:$16 sps:$4 sm:$0xff]   ;;  %v9479_v43 = vld [vmem:[#allocation5 + $0x164c] ss:$16 sps:$4 sm:$0xff]  }
 0x35a   :  { %5706 = vmatprep.subr.bf16.mxu0 %v9388_v44  ;;  %6222 = vmatprep.subr.bf16.mxu1 %v9391_v45  ;;  %v9482_v44 = vld [vmem:[#allocation5 + $0x1664] ss:$16 sps:$4 sm:$0xff]   ;;  %v9485_v45 = vld [vmem:[#allocation5 + $0x166c] ss:$16 sps:$4 sm:$0xff]  }
 0x35d   :  { %5707 = vmatpush1.bf16.msra.mxu0 %v9386_v46  ;;  %6223 = vmatpush1.bf16.msra.mxu1 %v9389_v50  ;;  %v9480_v46 = vld [vmem:[#allocation5 + $0x1660] ss:$16 sps:$4 sm:$0xff]   ;;  %v9483_v50 = vld [vmem:[#allocation5 + $0x1668] ss:$16 sps:$4 sm:$0xff]  }
 0x35e   :  { %5708 = vmatprep.subr.bf16.mxu0 %v9394_v52  ;;  %6224 = vmatprep.subr.bf16.mxu1 %v9397_v55  ;;  %v9488_v52 = vld [vmem:[#allocation5 + $0x1684] ss:$16 sps:$4 sm:$0xff]   ;;  %v9491_v55 = vld [vmem:[#allocation5 + $0x168c] ss:$16 sps:$4 sm:$0xff]  }
 0x361   :  { %5709 = vmatpush1.bf16.msra.mxu0 %v9392_v56  ;;  %6225 = vmatpush1.bf16.msra.mxu1 %v9395_v15  ;;  %v9486_v56 = vld [vmem:[#allocation5 + $0x1680] ss:$16 sps:$4 sm:$0xff]   ;;  %v9494_v15 = vld [vmem:[#allocation5 + $0x16a4] ss:$16 sps:$4 sm:$0xff]  }
 0x362   :  { %5710 = vmatprep.subr.bf16.mxu0 %v9400_v57  ;;  %6226 = vmatprep.subr.bf16.mxu1 %v9403_v58  ;;  %v9497_v57 = vld [vmem:[#allocation5 + $0x16ac] ss:$16 sps:$4 sm:$0xff]   ;;  %v9492_v58 = vld [vmem:[#allocation5 + $0x16a0] ss:$16 sps:$4 sm:$0xff]  }
 0x365   :  { %5711 = vmatpush1.bf16.msra.mxu0 %v9398_v13  ;;  %6227 = vmatpush1.bf16.msra.mxu1 %v9401_v35  ;;  %v9495_v13 = vld [vmem:[#allocation5 + $0x16a8] ss:$16 sps:$4 sm:$0xff]   ;;  %v9500_v35 = vld [vmem:[#allocation5 + $0x16c4] ss:$16 sps:$4 sm:$0xff]  }
 0x366   :  { %5712 = vmatprep.subr.bf16.mxu0 %v9406_v59  ;;  %6228 = vmatprep.subr.bf16.mxu1 %v9409_v60  ;;  %v9503_v59 = vld [vmem:[#allocation5 + $0x16cc] ss:$16 sps:$4 sm:$0xff]   ;;  %v9498_v60 = vld [vmem:[#allocation5 + $0x16c0] ss:$16 sps:$4 sm:$0xff]  }
 0x369   :  { %5713 = vmatpush1.bf16.msra.mxu0 %v9404_v61  ;;  %6229 = vmatpush1.bf16.msra.mxu1 %v9407_v62  ;;  %v9501_v61 = vld [vmem:[#allocation5 + $0x16c8] ss:$16 sps:$4 sm:$0xff]   ;;  %v9506_v62 = vld [vmem:[#allocation5 + $0x16e4] ss:$16 sps:$4 sm:$0xff]  }
 0x36a   :  { %5714 = vmatprep.subr.bf16.mxu0 %v9412_v63  ;;  %6230 = vmatprep.subr.bf16.mxu1 %v9415_v0  ;;  %v9509_v63 = vld [vmem:[#allocation5 + $0x16ec] ss:$16 sps:$4 sm:$0xff]   ;;  %v9504_v0 = vld [vmem:[#allocation5 + $0x16e0] ss:$16 sps:$4 sm:$0xff]  }
 0x36d   :  { %5715 = vmatpush1.bf16.msra.mxu0 %v9410_v19  ;;  %6231 = vmatpush1.bf16.msra.mxu1 %v9413_v47  ;;  %v9507_v19 = vld [vmem:[#allocation5 + $0x16e8] ss:$16 sps:$4 sm:$0xff]   ;;  %v9512_v47 = vld [vmem:[#allocation5 + $0x1704] ss:$16 sps:$4 sm:$0xff]  }
 0x36e   :  { %5716 = vmatprep.subr.bf16.mxu0 %v9418_v49  ;;  %6232 = vmatprep.subr.bf16.mxu1 %v9421_v3  ;;  %v9515_v49 = vld [vmem:[#allocation5 + $0x170c] ss:$16 sps:$4 sm:$0xff]   ;;  %v9510_v3 = vld [vmem:[#allocation5 + $0x1700] ss:$16 sps:$4 sm:$0xff]  }
 0x371   :  { %5717 = vmatpush1.bf16.msra.mxu0 %v9416_v4  ;;  %6233 = vmatpush1.bf16.msra.mxu1 %v9419_v6  ;;  %v9513_v4 = vld [vmem:[#allocation5 + $0x1708] ss:$16 sps:$4 sm:$0xff]   ;;  %v9518_v6 = vld [vmem:[#allocation5 + $0x1724] ss:$16 sps:$4 sm:$0xff]  }
 0x372   :  { %5718 = vmatprep.subr.bf16.mxu0 %v9424_v7  ;;  %6234 = vmatprep.subr.bf16.mxu1 %v9427_v8  ;;  %v9521_v7 = vld [vmem:[#allocation5 + $0x172c] ss:$16 sps:$4 sm:$0xff]   ;;  %v9516_v8 = vld [vmem:[#allocation5 + $0x1720] ss:$16 sps:$4 sm:$0xff]  }
 0x375   :  { %5719 = vmatpush1.bf16.msra.mxu0 %v9422_v9  ;;  %6235 = vmatpush1.bf16.msra.mxu1 %v9425_v51  ;;  %v9519_v9 = vld [vmem:[#allocation5 + $0x1728] ss:$16 sps:$4 sm:$0xff]   ;;  %v9524_v51 = vld [vmem:[#allocation5 + $0x1744] ss:$16 sps:$4 sm:$0xff]  }
 0x376   :  { %5720 = vmatprep.subr.bf16.mxu0 %v9430_v12  ;;  %6236 = vmatprep.subr.bf16.mxu1 %v9433_v14  ;;  %v9527_v12 = vld [vmem:[#allocation5 + $0x174c] ss:$16 sps:$4 sm:$0xff]   ;;  %v9522_v14 = vld [vmem:[#allocation5 + $0x1740] ss:$16 sps:$4 sm:$0xff]  }
 0x379   :  { %5721 = vmatpush1.bf16.msra.mxu0 %v9428_v16  ;;  %6237 = vmatpush1.bf16.msra.mxu1 %v9431_v17  ;;  %v9525_v16 = vld [vmem:[#allocation5 + $0x1748] ss:$16 sps:$4 sm:$0xff]   ;;  %v9530_v17 = vld [vmem:[#allocation5 + $0x1764] ss:$16 sps:$4 sm:$0xff]  }
 0x37a   :  { %5722 = vmatprep.subr.bf16.mxu0 %v9436_v41  ;;  %6238 = vmatprep.subr.bf16.mxu1 %v9439_v18  ;;  %v9533_v41 = vld [vmem:[#allocation5 + $0x176c] ss:$16 sps:$4 sm:$0xff]   ;;  %v9528_v18 = vld [vmem:[#allocation5 + $0x1760] ss:$16 sps:$4 sm:$0xff]  }
 0x37d   :  { %5723 = vmatpush1.bf16.msra.mxu0 %v9434_v20  ;;  %6239 = vmatpush1.bf16.msra.mxu1 %v9437_v38  ;;  %v9531_v20 = vld [vmem:[#allocation5 + $0x1768] ss:$16 sps:$4 sm:$0xff]   ;;  %v9536_v38 = vld [vmem:[#allocation5 + $0x1784] ss:$16 sps:$4 sm:$0xff]  }
 0x37e   :  { %5724 = vmatprep.subr.bf16.mxu0 %v9442_v1  ;;  %6240 = vmatprep.subr.bf16.mxu1 %v9445_v21  ;;  %v9539_v1 = vld [vmem:[#allocation5 + $0x178c] ss:$16 sps:$4 sm:$0xff]   ;;  %v9534_v21 = vld [vmem:[#allocation5 + $0x1780] ss:$16 sps:$4 sm:$0xff]  }
 0x381   :  { %5725 = vmatpush1.bf16.msra.mxu0 %v9440_v22  ;;  %6241 = vmatpush1.bf16.msra.mxu1 %v9443_v23  ;;  %v9537_v22 = vld [vmem:[#allocation5 + $0x1788] ss:$16 sps:$4 sm:$0xff]   ;;  %v9542_v23 = vld [vmem:[#allocation5 + $0x17a4] ss:$16 sps:$4 sm:$0xff]  }
 0x382   :  { %5726 = vmatprep.subr.bf16.mxu0 %v9448_v24  ;;  %6242 = vmatprep.subr.bf16.mxu1 %v9451_v25  ;;  %v9545_v24 = vld [vmem:[#allocation5 + $0x17ac] ss:$16 sps:$4 sm:$0xff]   ;;  %v9540_v25 = vld [vmem:[#allocation5 + $0x17a0] ss:$16 sps:$4 sm:$0xff]  }
 0x385   :  { %5727 = vmatpush1.bf16.msra.mxu0 %v9446_v26  ;;  %6243 = vmatpush1.bf16.msra.mxu1 %v9449_v53  ;;  %v9543_v26 = vld [vmem:[#allocation5 + $0x17a8] ss:$16 sps:$4 sm:$0xff]   ;;  %v9548_v53 = vld [vmem:[#allocation5 + $0x17c4] ss:$16 sps:$4 sm:$0xff]  }
 0x386   :  { %5728 = vmatprep.subr.bf16.mxu0 %v9454_v10  ;;  %6244 = vmatprep.subr.bf16.mxu1 %v9457_v11  ;;  %v9551_v10 = vld [vmem:[#allocation5 + $0x17cc] ss:$16 sps:$4 sm:$0xff]   ;;  %v9546_v11 = vld [vmem:[#allocation5 + $0x17c0] ss:$16 sps:$4 sm:$0xff]  }
 0x389   :  { %5729 = vmatpush1.bf16.msra.mxu0 %v9452_v30  ;;  %6245 = vmatpush1.bf16.msra.mxu1 %v9455_v31  ;;  %v9549_v30 = vld [vmem:[#allocation5 + $0x17c8] ss:$16 sps:$4 sm:$0xff]   ;;  %v9554_v31 = vld [vmem:[#allocation5 + $0x17e4] ss:$16 sps:$4 sm:$0xff]  }
 0x38a   :  { %5741 = vmatprep.subr.bf16.mxu0 %v9464_v32  ;;  %6257 = vmatprep.subr.bf16.mxu1 %v9467_v54  ;;  %v9557_v32 = vld [vmem:[#allocation5 + $0x17ec] ss:$16 sps:$4 sm:$0xff]   ;;  %v9552_v54 = vld [vmem:[#allocation5 + $0x17e0] ss:$16 sps:$4 sm:$0xff]  }
 0x38c   :  { %5731 = vmatmul.mubr.bf16.vlgmr.msra.gmra.mrb[0].mxu0 %v1398_v33  ;;  %6247 = vmatmul.mubr.bf16.vlgmr.msra.gmra.mrb[0].mxu1 %v1398_v33  ;;  %v9555_v33 = vld [vmem:[#allocation5 + $0x17e8] ss:$16 sps:$4 sm:$0xff]  }
 0x38d   :  { %5742 = vmatpush1.bf16.msra.mxu0 %v9462_v34  ;;  %6258 = vmatpush1.bf16.msra.mxu1 %v9465_v36  ;;  %v9560_v34 = vld [vmem:[#allocation7 + $0x4] ss:$8 sps:$4 sm:$0xff]   ;;  %v9558_v36 = vld [vmem:[#allocation7] ss:$8 sps:$4 sm:$0xff]  }
 0x38e   :  { %5743 = vmatprep.subr.bf16.mxu0 %v9470_v37  ;;  %6259 = vmatprep.subr.bf16.mxu1 %v9473_v39  ;;  %v9563_v37 = vld [vmem:[#allocation7 + $0x14] ss:$8 sps:$4 sm:$0xff]   ;;  %v9561_v39 = vld [vmem:[#allocation7 + $0x10] ss:$8 sps:$4 sm:$0xff]  }
 0x38f   :  { %5773 = vmatprep.mubr.bf16.mxu0 %v10317_v28  ;;  %6289 = vmatprep.mubr.bf16.mxu1 %v10317_v28  ;;  %v9489_v28 = vld [vmem:[#allocation5 + $0x1688] ss:$16 sps:$4 sm:$0xff]  }
 0x391   :  { %5744 = vmatpush1.bf16.msra.mxu0 %v9468_v40  ;;  %6260 = vmatpush1.bf16.msra.mxu1 %v9471_v42  ;;  %v9566_v40 = vld [vmem:[#allocation7 + $0x24] ss:$8 sps:$4 sm:$0xff]   ;;  %v9564_v42 = vld [vmem:[#allocation7 + $0x20] ss:$8 sps:$4 sm:$0xff]  }
 0x392   :  { %5745 = vmatprep.subr.bf16.mxu0 %v9476_v5  ;;  %6261 = vmatprep.subr.bf16.mxu1 %v9479_v43  ;;  %v9569_v5 = vld [vmem:[#allocation7 + $0x34] ss:$8 sps:$4 sm:$0xff]   ;;  %v9567_v43 = vld [vmem:[#allocation7 + $0x30] ss:$8 sps:$4 sm:$0xff]  }
 0x395   :  { %5746 = vmatpush1.bf16.msra.mxu0 %v9474_v2  ;;  %6262 = vmatpush1.bf16.msra.mxu1 %v9477_v27  ;;  %v9572_v2 = vld [vmem:[#allocation7 + $0x44] ss:$8 sps:$4 sm:$0xff]   ;;  %v9570_v27 = vld [vmem:[#allocation7 + $0x40] ss:$8 sps:$4 sm:$0xff]  }
 0x396   :  { %5747 = vmatprep.subr.bf16.mxu0 %v9482_v44  ;;  %6263 = vmatprep.subr.bf16.mxu1 %v9485_v45  ;;  %v9575_v44 = vld [vmem:[#allocation7 + $0x54] ss:$8 sps:$4 sm:$0xff]   ;;  %v9573_v45 = vld [vmem:[#allocation7 + $0x50] ss:$8 sps:$4 sm:$0xff]  }
 0x399   :  { %5748 = vmatpush1.bf16.msra.mxu0 %v9480_v46  ;;  %6264 = vmatpush1.bf16.msra.mxu1 %v9483_v50  ;;  %v9576_v46 = vld [vmem:[#allocation7 + $0x60] ss:$8 sps:$4 sm:$0xff]   ;;  %v9581_v50 = vld [vmem:[#allocation7 + $0x74] ss:$8 sps:$4 sm:$0xff]  }
 0x39a   :  { %5749 = vmatprep.subr.bf16.mxu0 %v9488_v52  ;;  %6265 = vmatprep.subr.bf16.mxu1 %v9491_v55  ;;  %v9579_v52 = vld [vmem:[#allocation7 + $0x70] ss:$8 sps:$4 sm:$0xff]   ;;  %v9584_v55 = vld [vmem:[#allocation7 + $0x84] ss:$8 sps:$4 sm:$0xff]  }
 0x39d   :  { %5750 = vmatpush1.bf16.msra.mxu0 %v9486_v56  ;;  %6266 = vmatpush1.bf16.msra.mxu1 %v9489_v28  ;;  %v9582_v56 = vld [vmem:[#allocation7 + $0x80] ss:$8 sps:$4 sm:$0xff]   ;;  %v9587_v28 = vld [vmem:[#allocation7 + $0x94] ss:$8 sps:$4 sm:$0xff]  }
 0x39e   :  { %5751 = vmatprep.subr.bf16.mxu0 %v9494_v15  ;;  %6267 = vmatprep.subr.bf16.mxu1 %v9497_v57  ;;  %v9585_v15 = vld [vmem:[#allocation7 + $0x90] ss:$8 sps:$4 sm:$0xff]   ;;  %v9590_v57 = vld [vmem:[#allocation7 + $0xa4] ss:$8 sps:$4 sm:$0xff]  }
 0x3a1   :  { %5752 = vmatpush1.bf16.msra.mxu0 %v9492_v58  ;;  %6268 = vmatpush1.bf16.msra.mxu1 %v9495_v13  ;;  %v9588_v58 = vld [vmem:[#allocation7 + $0xa0] ss:$8 sps:$4 sm:$0xff]   ;;  %v9593_v13 = vld [vmem:[#allocation7 + $0xb4] ss:$8 sps:$4 sm:$0xff]  }
 0x3a2   :  { %5753 = vmatprep.subr.bf16.mxu0 %v9500_v35  ;;  %6269 = vmatprep.subr.bf16.mxu1 %v9503_v59  ;;  %v9591_v35 = vld [vmem:[#allocation7 + $0xb0] ss:$8 sps:$4 sm:$0xff]   ;;  %v9596_v59 = vld [vmem:[#allocation7 + $0xc4] ss:$8 sps:$4 sm:$0xff]  }
 0x3a5   :  { %5754 = vmatpush1.bf16.msra.mxu0 %v9498_v60  ;;  %6270 = vmatpush1.bf16.msra.mxu1 %v9501_v61  ;;  %v9594_v60 = vld [vmem:[#allocation7 + $0xc0] ss:$8 sps:$4 sm:$0xff]   ;;  %v9599_v61 = vld [vmem:[#allocation7 + $0xd4] ss:$8 sps:$4 sm:$0xff]  }
 0x3a6   :  { %5755 = vmatprep.subr.bf16.mxu0 %v9506_v62  ;;  %6271 = vmatprep.subr.bf16.mxu1 %v9509_v63  ;;  %v9597_v62 = vld [vmem:[#allocation7 + $0xd0] ss:$8 sps:$4 sm:$0xff]   ;;  %v9602_v63 = vld [vmem:[#allocation7 + $0xe4] ss:$8 sps:$4 sm:$0xff]  }
 0x3a9   :  { %5756 = vmatpush1.bf16.msra.mxu0 %v9504_v0  ;;  %6272 = vmatpush1.bf16.msra.mxu1 %v9507_v19  ;;  %v9600_v0 = vld [vmem:[#allocation7 + $0xe0] ss:$8 sps:$4 sm:$0xff]   ;;  %v9605_v19 = vld [vmem:[#allocation7 + $0xf4] ss:$8 sps:$4 sm:$0xff]  }
 0x3aa   :  { %5757 = vmatprep.subr.bf16.mxu0 %v9512_v47  ;;  %6273 = vmatprep.subr.bf16.mxu1 %v9515_v49  ;;  %v9603_v47 = vld [vmem:[#allocation7 + $0xf0] ss:$8 sps:$4 sm:$0xff]   ;;  %v9608_v49 = vld [vmem:[#allocation7 + $0x104] ss:$8 sps:$4 sm:$0xff]  }
 0x3ad   :  { %5758 = vmatpush1.bf16.msra.mxu0 %v9510_v3  ;;  %6274 = vmatpush1.bf16.msra.mxu1 %v9513_v4  ;;  %v9654_v3 = vld [vmem:[#allocation10 + $0x40] sm:$0xff]  }
 0x3ae   :  { %5759 = vmatprep.subr.bf16.mxu0 %v9518_v6  ;;  %6275 = vmatprep.subr.bf16.mxu1 %v9521_v7  ;;  %v9655_v4 = vld [vmem:[#allocation10] sm:$0xff]   ;;  %v9656_v6 = vld [vmem:[#allocation10 + $0x48] sm:$0xff]  }
 0x3af   :  { %v9657_v7 = vld [vmem:[#allocation10 + $0x8] sm:$0xff]  }
 0x3b1   :  { %5760 = vmatpush1.bf16.msra.mxu0 %v9516_v8  ;;  %6276 = vmatpush1.bf16.msra.mxu1 %v9519_v9  ;;  %v9658_v8 = vld [vmem:[#allocation10 + $0x50] sm:$0xff]  }
 0x3b2   :  { %5761 = vmatprep.subr.bf16.mxu0 %v9524_v51  ;;  %6277 = vmatprep.subr.bf16.mxu1 %v9527_v12  ;;  %v9659_v9 = vld [vmem:[#allocation10 + $0x10] sm:$0xff]   ;;  %v9660_v51 = vld [vmem:[#allocation10 + $0x58] sm:$0xff]  }
 0x3b3   :  { %v9661_v12 = vld [vmem:[#allocation10 + $0x18] sm:$0xff]  }
 0x3b5   :  { %5762 = vmatpush1.bf16.msra.mxu0 %v9522_v14  ;;  %6278 = vmatpush1.bf16.msra.mxu1 %v9525_v16  ;;  %v9662_v14 = vld [vmem:[#allocation10 + $0x60] sm:$0xff]  }
 0x3b6   :  { %5763 = vmatprep.subr.bf16.mxu0 %v9530_v17  ;;  %6279 = vmatprep.subr.bf16.mxu1 %v9533_v41  ;;  %v9663_v16 = vld [vmem:[#allocation10 + $0x20] sm:$0xff]   ;;  %v9664_v17 = vld [vmem:[#allocation10 + $0x68] sm:$0xff]  }
 0x3b9   :  { %5764 = vmatpush1.bf16.msra.mxu0 %v9528_v18  ;;  %6280 = vmatpush1.bf16.msra.mxu1 %v9531_v20 }
 0x3ba   :  { %5765 = vmatprep.subr.bf16.mxu0 %v9536_v38  ;;  %6281 = vmatprep.subr.bf16.mxu1 %v9539_v1 }
 0x3bd   :  { %5766 = vmatpush1.bf16.msra.mxu0 %v9534_v21  ;;  %6282 = vmatpush1.bf16.msra.mxu1 %v9537_v22 }
 0x3be   :  { %5767 = vmatprep.subr.bf16.mxu0 %v9542_v23  ;;  %6283 = vmatprep.subr.bf16.mxu1 %v9545_v24 }
 0x3c1   :  { %5768 = vmatpush1.bf16.msra.mxu0 %v9540_v25  ;;  %6284 = vmatpush1.bf16.msra.mxu1 %v9543_v26 }
 0x3c2   :  { %5769 = vmatprep.subr.bf16.mxu0 %v9548_v53  ;;  %6285 = vmatprep.subr.bf16.mxu1 %v9551_v10  ;;  %v9606_v10 = vld [vmem:[#allocation7 + $0x100] ss:$8 sps:$4 sm:$0xff]  }
 0x3c5   :  { %5770 = vmatpush1.bf16.msra.mxu0 %v9546_v11  ;;  %6286 = vmatpush1.bf16.msra.mxu1 %v9549_v30  ;;  %v9611_v11 = vld [vmem:[#allocation7 + $0x114] ss:$8 sps:$4 sm:$0xff]   ;;  %v9609_v30 = vld [vmem:[#allocation7 + $0x110] ss:$8 sps:$4 sm:$0xff]  }
 0x3c6   :  { %5771 = vmatprep.subr.bf16.mxu0 %v9554_v31  ;;  %6287 = vmatprep.subr.bf16.mxu1 %v9557_v32  ;;  %v9614_v31 = vld [vmem:[#allocation7 + $0x124] ss:$8 sps:$4 sm:$0xff]   ;;  %v9612_v32 = vld [vmem:[#allocation7 + $0x120] ss:$8 sps:$4 sm:$0xff]  }
 0x3c9   :  { %5772 = vmatpush1.bf16.msra.mxu0 %v9552_v54  ;;  %6288 = vmatpush1.bf16.msra.mxu1 %v9555_v33  ;;  %v9617_v54 = vld [vmem:[#allocation7 + $0x134] ss:$8 sps:$4 sm:$0xff]   ;;  %v9615_v33 = vld [vmem:[#allocation7 + $0x130] ss:$8 sps:$4 sm:$0xff]  }
 0x3ca   :  { %6700 = vmatprep.subr.bf16.mxu0 %v9560_v34  ;;  %8161 = vmatprep.subr.bf16.mxu1 %v9654_v3  ;;  %v9620_v34 = vld [vmem:[#allocation7 + $0x144] ss:$8 sps:$4 sm:$0xff]  }
 0x3cc   :  { %5774 = vmatmul.mubr.bf16.vlgmr.msra.gmra.mrb[0].mxu0 %v10321_v29  ;;  %6290 = vmatmul.mubr.bf16.vlgmr.msra.gmra.mrb[0].mxu1 %v10321_v29  ;;  %v9578_v29 = vld [vmem:[#allocation7 + $0x64] ss:$8 sps:$4 sm:$0xff]  }
 0x3cd   :  { %6701 = vmatpush1.bf16.msra.mxu0 %v9558_v36  ;;  %8162 = vmatpush3.bf16.msra.mxu1 %v9655_v4  ;;  %v9618_v36 = vld [vmem:[#allocation7 + $0x140] ss:$8 sps:$4 sm:$0xff]  }
 0x3ce   :  { %6702 = vmatprep.subr.bf16.mxu0 %v9563_v37  ;;  %8163 = vmatprep.subr.bf16.mxu1 %v9656_v6  ;;  %v9623_v37 = vld [vmem:[#allocation7 + $0x154] ss:$8 sps:$4 sm:$0xff]  }
 0x3d1   :  { %6703 = vmatpush1.bf16.msra.mxu0 %v9561_v39  ;;  %8164 = vmatpush3.bf16.msra.mxu1 %v9657_v7  ;;  %v9621_v39 = vld [vmem:[#allocation7 + $0x150] ss:$8 sps:$4 sm:$0xff]  }
 0x3d2   :  { %6704 = vmatprep.subr.bf16.mxu0 %v9566_v40  ;;  %8165 = vmatprep.subr.bf16.mxu1 %v9658_v8  ;;  %v9626_v40 = vld [vmem:[#allocation7 + $0x164] ss:$8 sps:$4 sm:$0xff]  }
 0x3d5   :  { %6705 = vmatpush1.bf16.msra.mxu0 %v9564_v42  ;;  %8166 = vmatpush3.bf16.msra.mxu1 %v9659_v9  ;;  %v9624_v42 = vld [vmem:[#allocation7 + $0x160] ss:$8 sps:$4 sm:$0xff]  }
 0x3d6   :  { %6706 = vmatprep.subr.bf16.mxu0 %v9569_v5  ;;  %8167 = vmatprep.subr.bf16.mxu1 %v9660_v51  ;;  %v9629_v5 = vld [vmem:[#allocation7 + $0x174] ss:$8 sps:$4 sm:$0xff]  }
 0x3d9   :  { %6707 = vmatpush1.bf16.msra.mxu0 %v9567_v43  ;;  %8168 = vmatpush3.bf16.msra.mxu1 %v9661_v12  ;;  %v9627_v43 = vld [vmem:[#allocation7 + $0x170] ss:$8 sps:$4 sm:$0xff]  }
 0x3da   :  { %6708 = vmatprep.subr.bf16.mxu0 %v9572_v2  ;;  %8169 = vmatprep.subr.bf16.mxu1 %v9662_v14  ;;  %v9632_v2 = vld [vmem:[#allocation7 + $0x184] ss:$8 sps:$4 sm:$0xff]  }
 0x3dd   :  { %6709 = vmatpush1.bf16.msra.mxu0 %v9570_v27  ;;  %8170 = vmatpush3.bf16.msra.mxu1 %v9663_v16  ;;  %v9630_v27 = vld [vmem:[#allocation7 + $0x180] ss:$8 sps:$4 sm:$0xff]  }
 0x3de   :  { %6710 = vmatprep.subr.bf16.mxu0 %v9575_v44  ;;  %8171 = vmatprep.subr.bf16.mxu1 %v9664_v17  ;;  %v9635_v44 = vld [vmem:[#allocation7 + $0x194] ss:$8 sps:$4 sm:$0xff]  }
 0x3e1   :  { %6711 = vmatpush1.bf16.msra.mxu0 %v9573_v45  ;;  %v9633_v45 = vld [vmem:[#allocation7 + $0x190] ss:$8 sps:$4 sm:$0xff]  }
 0x3e2   :  { %6712 = vmatprep.subr.bf16.mxu0 %v9578_v29  ;;  %v9638_v29 = vld [vmem:[#allocation7 + $0x1a4] ss:$8 sps:$4 sm:$0xff]  }
 0x3e5   :  { %6713 = vmatpush1.bf16.msra.mxu0 %v9576_v46  ;;  %v9636_v46 = vld [vmem:[#allocation7 + $0x1a0] ss:$8 sps:$4 sm:$0xff]  }
 0x3e6   :  { %6714 = vmatprep.subr.bf16.mxu0 %v9581_v50  ;;  %v9641_v50 = vld [vmem:[#allocation7 + $0x1b4] ss:$8 sps:$4 sm:$0xff]  }
 0x3e9   :  { %6715 = vmatpush1.bf16.msra.mxu0 %v9579_v52  ;;  %v9639_v52 = vld [vmem:[#allocation7 + $0x1b0] ss:$8 sps:$4 sm:$0xff]  }
 0x3ea   :  { %6716 = vmatprep.subr.bf16.mxu0 %v9584_v55  ;;  %v9644_v55 = vld [vmem:[#allocation7 + $0x1c4] ss:$8 sps:$4 sm:$0xff]  }
 0x3ed   :  { %6717 = vmatpush1.bf16.msra.mxu0 %v9582_v56  ;;  %v9642_v56 = vld [vmem:[#allocation7 + $0x1c0] ss:$8 sps:$4 sm:$0xff]  }
 0x3ee   :  { %6718 = vmatprep.subr.bf16.mxu0 %v9587_v28  ;;  %v9647_v28 = vld [vmem:[#allocation7 + $0x1d4] ss:$8 sps:$4 sm:$0xff]  }
 0x3f1   :  { %6719 = vmatpush1.bf16.msra.mxu0 %v9585_v15  ;;  %v9645_v15 = vld [vmem:[#allocation7 + $0x1d0] ss:$8 sps:$4 sm:$0xff]  }
 0x3f2   :  { %6720 = vmatprep.subr.bf16.mxu0 %v9590_v57  ;;  %v9650_v57 = vld [vmem:[#allocation7 + $0x1e4] ss:$8 sps:$4 sm:$0xff]  }
 0x3f5   :  { %6721 = vmatpush1.bf16.msra.mxu0 %v9588_v58  ;;  %v9648_v58 = vld [vmem:[#allocation7 + $0x1e0] ss:$8 sps:$4 sm:$0xff]  }
 0x3f6   :  { %6722 = vmatprep.subr.bf16.mxu0 %v9593_v13  ;;  %v9653_v13 = vld [vmem:[#allocation7 + $0x1f4] ss:$8 sps:$4 sm:$0xff]  }
 0x3f9   :  { %6723 = vmatpush1.bf16.msra.mxu0 %v9591_v35  ;;  %v9651_v35 = vld [vmem:[#allocation7 + $0x1f0] ss:$8 sps:$4 sm:$0xff]  }
 0x3fa   :  { %6724 = vmatprep.subr.bf16.mxu0 %v9596_v59  ;;  %v9665_v59 = vld [vmem:[#allocation10 + $0x28] sm:$0xff]  }
 0x3fb   :  { %8172 = vmatpush3.bf16.msra.mxu1 %v9665_v59 }
 0x3fd   :  { %6725 = vmatpush1.bf16.msra.mxu0 %v9594_v60  ;;  %v9666_v60 = vld [vmem:[#allocation10 + $0x70] sm:$0xff]  }
 0x3fe   :  { %6726 = vmatprep.subr.bf16.mxu0 %v9599_v61  ;;  %v9667_v61 = vld [vmem:[#allocation10 + $0x30] sm:$0xff]   ;;  %8173 = vmatprep.subr.bf16.mxu1 %v9666_v60  ;;  %v8150_v60 = vld [vmem:[#allocation16] ss:$0 sm:$0xff] }
 0x3ff   :  { %8174 = vmatpush3.bf16.msra.mxu1 %v9667_v61 }
 0x401   :  { %6727 = vmatpush1.bf16.msra.mxu0 %v9597_v62  ;;  %v9668_v62 = vld [vmem:[#allocation10 + $0x78] sm:$0xff]  }
 0x402   :  { %6728 = vmatprep.subr.bf16.mxu0 %v9602_v63  ;;  %v9669_v63 = vld [vmem:[#allocation10 + $0x38] sm:$0xff]   ;;  %8175 = vmatprep.subr.bf16.mxu1 %v9668_v62 }
 0x403   :  { %8176 = vmatpush3.bf16.msra.mxu1 %v9669_v63 }
 0x405   :  { %6729 = vmatpush1.bf16.msra.mxu0 %v9600_v0  ;;  %v9992_v0 = vmov 0.0  }
 0x406   :  { %6730 = vmatprep.subr.bf16.mxu0 %v9605_v19  ;;  %8203 = vmatprep.subr.bf16.mxu1 %v9992_v0  ;;  %v6372_v19 = vsub.s32 0, %v10194_v48 }
 0x409   :  { %6731 = vmatpush1.bf16.msra.mxu0 %v9603_v47  ;;  %v6368_v47 = vld [vmem:[#allocation8] sm:$0x3] }
 0x40a   :  { %6743 = vmatprep.subr.bf16.mxu0 %v9608_v49  ;;  %v6376_v49 = vsub.s32 1, %v10194_v48  ;;  %v6373_v3 = vrot.slane %v6368_v47, %v6372_v19  ;;  %v9671_v48 = vld [vmem:[#allocation13 + $0x8] sm:$0xff]  }
 0x40c   :  { %v6377_v4 = vrot.slane %v6368_v47, %v6376_v49 }
 0x49f   :  { %v5775_v41 = vpop.f32.mrb[0].mxu0  ;;  %v10331_v18 = vpop.f32.mrb[0].mxu1 }
 0x4a0   :  { %v5777_v20 = vpop.f32.mrb[1].mxu0  ;;  %v6293_v38 = vpop.f32.mrb[1].mxu1 }
 0x4a1   :  { %v5779_v1 = vpop.f32.mrb[2].mxu0  ;;  %v10333_v21 = vpop.f32.mrb[2].mxu1 }
 0x4a2   :  { %v6300_v22 = vpack.c.bf16 %v5779_v1, %v5775_v41  ;;  %v6302_v23 = vpack.c.bf16 %v10333_v21, %v10331_v18  ;;  %v5781_v24 = vpop.f32.mrb[3].mxu0  ;;  %v6297_v25 = vpop.f32.mrb[3].mxu1  ;;  %v9670_v21 = vld [vmem:[#allocation13] sm:$0xff]  }
 0x4a3   :  { %v6301_v26 = vpack.c.bf16 %v5781_v24, %v5777_v20  ;;  %v6303_v53 = vpack.c.bf16 %v6297_v25, %v6293_v38  ;;  %v9674_v24 = vld [vmem:[#allocation13 + $0x20] sm:$0xff]   ;;  %v9675_v25 = vld [vmem:[#allocation13 + $0x28] sm:$0xff]  }
 0x4a5   :  { %6732 = vmatprep.mubr.bf16.mxu0 %v6301_v26  ;;  %v9676_v26 = vld [vmem:[#allocation13 + $0x30] sm:$0xff]  }
 0x4a6   :  { %6733 = vmatmul.mubr.bf16.vlgmr.msra.gmra.mrb[4].mxu0 %v6300_v22  ;;  %v9672_v22 = vld [vmem:[#allocation13 + $0x10] sm:$0xff]  }
 0x4a7   :  { %6744 = vmatpush1.bf16.msra.mxu0 %v9606_v10  ;;  %6775 = vmatprep.mubr.bf16.mxu0 %v6303_v53  ;;  %v9677_v53 = vld [vmem:[#allocation13 + $0x38] sm:$0xff]  }
 0x4a8   :  { %6745 = vmatprep.subr.bf16.mxu0 %v9611_v11  ;;  %v8124_v11 = vld [vmem:[#allocation11] ss:$0 sm:$0xff] }
 0x4ab   :  { %6746 = vmatpush1.bf16.msra.mxu0 %v9609_v30 }
 0x4ac   :  { %6747 = vmatprep.subr.bf16.mxu0 %v9614_v31 }
 0x4af   :  { %6748 = vmatpush1.bf16.msra.mxu0 %v9612_v32 }
 0x4b0   :  { %6749 = vmatprep.subr.bf16.mxu0 %v9617_v54 }
 0x4b3   :  { %6750 = vmatpush1.bf16.msra.mxu0 %v9615_v33 }
 0x4b4   :  { %6751 = vmatprep.subr.bf16.mxu0 %v9620_v34 }
 0x4b7   :  { %6752 = vmatpush1.bf16.msra.mxu0 %v9618_v36 }
 0x4b8   :  { %6753 = vmatprep.subr.bf16.mxu0 %v9623_v37 }
 0x4bb   :  { %6754 = vmatpush1.bf16.msra.mxu0 %v9621_v39 }
 0x4bc   :  { %6755 = vmatprep.subr.bf16.mxu0 %v9626_v40  ;;  %v9678_v40 = vld [vmem:[%s10412_s8] sm:$0xff]  }
 0x4bf   :  { %6756 = vmatpush1.bf16.msra.mxu0 %v9624_v42 }
 0x4c0   :  { %6757 = vmatprep.subr.bf16.mxu0 %v9629_v5  ;;  %v9679_v5 = vld [vmem:[%s10412_s8 + $0x8] sm:$0xff]  }
 0x4c3   :  { %6758 = vmatpush1.bf16.msra.mxu0 %v9627_v43  ;;  %v9680_v43 = vld [vmem:[%s10412_s8 + $0x10] sm:$0xff]  }
 0x4c4   :  { %6759 = vmatprep.subr.bf16.mxu0 %v9632_v2  ;;  %v9681_v2 = vld [vmem:[%s10412_s8 + $0x18] sm:$0xff]  }
 0x4c7   :  { %6760 = vmatpush1.bf16.msra.mxu0 %v9630_v27  ;;  %v9682_v27 = vld [vmem:[%s10412_s8 + $0x20] sm:$0xff]  }
 0x4c8   :  { %6761 = vmatprep.subr.bf16.mxu0 %v9635_v44  ;;  %v9683_v44 = vld [vmem:[%s10412_s8 + $0x28] sm:$0xff]  }
 0x4cb   :  { %6762 = vmatpush1.bf16.msra.mxu0 %v9633_v45  ;;  %v9684_v45 = vld [vmem:[%s10412_s8 + $0x30] sm:$0xff]  }
 0x4cc   :  { %6763 = vmatprep.subr.bf16.mxu0 %v9638_v29  ;;  %v9685_v29 = vld [vmem:[%s10412_s8 + $0x38] sm:$0xff]  }
 0x4cf   :  { %6764 = vmatpush1.bf16.msra.mxu0 %v9636_v46  ;;  %v8141_v46 = vld [vmem:[#allocation14] ss:$0 sm:$0xff] }
 0x4d0   :  { %6765 = vmatprep.subr.bf16.mxu0 %v9641_v50 }
 0x4d3   :  { %6766 = vmatpush1.bf16.msra.mxu0 %v9639_v52 }
 0x4d4   :  { %6767 = vmatprep.subr.bf16.mxu0 %v9644_v55 }
 0x4d7   :  { %6768 = vmatpush1.bf16.msra.mxu0 %v9642_v56 }
 0x4d8   :  { %6769 = vmatprep.subr.bf16.mxu0 %v9647_v28 }
 0x4db   :  { %6770 = vmatpush1.bf16.msra.mxu0 %v9645_v15 }
 0x4dc   :  { %6771 = vmatprep.subr.bf16.mxu0 %v9650_v57 }
 0x4df   :  { %6772 = vmatpush1.bf16.msra.mxu0 %v9648_v58 }
 0x4e0   :  { %6773 = vmatprep.subr.bf16.mxu0 %v9653_v13 }
 0x4e3   :  { %6774 = vmatpush1.bf16.msra.mxu0 %v9651_v35  ;;  %v7201_v35 = vld [vmem:[#allocation17] sm:$0xf] }
 0x4e4   :  { %v7215_v59 = vsel %vm7213_vm1, %v7201_v35, 0 }
 0x4e6   :  { %6776 = vmatmul.mubr.bf16.vlgmr.msra.gmra.mrb[4].mxu0 %v6302_v23  ;;  %v9673_v23 = vld [vmem:[#allocation13 + $0x18] sm:$0xff]  }
 0x5b9   :  { %v6777_v6 = vpop.f32.mrb[4].mxu0 }
 0x5ba   :  { %v8249_v7 = vadd.f32 %v6777_v6, %v6373_v3  ;;  %v6779_v8 = vpop.f32.mrb[5].mxu0 }
 0x5bb   :  { %v8250_v9 = vadd.f32 %v6779_v8, %v6377_v4  ;;  %v6781_v51 = vpop.f32.mrb[6].mxu0 }
 0x5bc   :  { %v8251_v12 = vadd.f32 %v6781_v51, %v6373_v3  ;;  %v6783_v14 = vpop.f32.mrb[7].mxu0  ;;  %v6786_v17 = vmax.f32 %v8249_v7, 0.0  ;;  %v8159_v7 = vld [vmem:[#allocation19] ss:$0 sm:$0xff] }
 0x5bd   :  { %v8252_v16 = vadd.f32 %v6783_v14, %v6377_v4  ;;  %v6787_v18 = vmax.f32 %v8250_v9, 0.0 }
 0x5be   :  { %v6788_v41 = vmax.f32 %v8251_v12, 0.0 }
 0x5bf   :  { %v6789_v20 = vmax.f32 %v8252_v16, 0.0 }
 0x5c0   :  { %v6790_v38 = vpack.c.bf16 %v6788_v41, %v6786_v17 }
 0x5c1   :  { %v6791_v1 = vpack.c.bf16 %v6789_v20, %v6787_v18 }
 0x5c3   :  { %6959 = vmatprep.mubr.bf16.mxu1 %v6791_v1 }
 0x5c4   :  { %6960 = vmatmul.mubr.bf16.vlgmr.msra.gmra.mrb[4].mxu1 %v6790_v38 }
 0x5c5   :  { %8204 = vmatpush3.bf16.msra.mxu1 %v9670_v21  ;;  %8219 = vmatprep.mubr.msk.bf16.mxu1 %vm9993_vm0, %v9992_v0 }
 0x5c6   :  { %8205 = vmatprep.subr.bf16.mxu1 %v9992_v0 }
 0x5c9   :  { %8206 = vmatpush3.bf16.msra.mxu1 %v9671_v48 }
 0x5ca   :  { %8207 = vmatprep.subr.bf16.mxu1 %v9992_v0 }
 0x5cd   :  { %8208 = vmatpush3.bf16.msra.mxu1 %v9672_v22 }
 0x5ce   :  { %8209 = vmatprep.subr.bf16.mxu1 %v9992_v0 }
 0x5d1   :  { %8210 = vmatpush3.bf16.msra.mxu1 %v9673_v23 }
 0x5d2   :  { %8211 = vmatprep.subr.bf16.mxu1 %v9992_v0 }
 0x5d5   :  { %8212 = vmatpush3.bf16.msra.mxu1 %v9674_v24 }
 0x5d6   :  { %8213 = vmatprep.subr.bf16.mxu1 %v9992_v0 }
 0x5d9   :  { %8214 = vmatpush3.bf16.msra.mxu1 %v9675_v25 }
 0x5da   :  { %8215 = vmatprep.subr.bf16.mxu1 %v9992_v0 }
 0x5dd   :  { %8216 = vmatpush3.bf16.msra.mxu1 %v9676_v26 }
 0x5de   :  { %8217 = vmatprep.subr.bf16.mxu1 %v9992_v0 }
 0x5e1   :  { %8218 = vmatpush3.bf16.msra.mxu1 %v9677_v53 }
 0x5e2   :  { %8223 = vmatprep.subr.bf16.mxu1 %v9992_v0 }
 0x697   :  { %v8177_v10 = vpop.f32.mrb[4].mxu1 }
 0x698   :  { %v8178_v30 = vpop.f32.mrb[5].mxu1 }
 0x699   :  { %v8179_v31 = vadd.f32 %v8178_v30, %v8177_v10  ;;  %v8180_v32 = vpop.f32.mrb[6].mxu1 }
 0x69a   :  { %v8181_v54 = vpop.f32.mrb[7].mxu1 }
 0x69b   :  { %v6962_v33 = vadd.f32 %v8179_v31, %v8124_v11  ;;  %v8182_v34 = vadd.f32 %v8181_v54, %v8180_v32 }
 0x69d   :  { %v6965_v36 = vadd.f32 %v8182_v34, %v8124_v11  ;;  %v6968_v37 = vmax.f32 %v6962_v33, 0.0 }
 0x69f   :  { %v6969_v39 = vmax.f32 %v6965_v36, 0.0 }
 0x6a1   :  { %v6970_v42 = vpack.c.bf16 %v6969_v39, %v6968_v37 }
 0x6a3   :  { %8220 = vmatmul.mubr.bf16.vlgmr.msra.gmra.mrb[8].mxu1 %v6970_v42 }
 0x6a4   :  { %8224 = vmatpush3.bf16.msra.mxu1 %v9678_v40  ;;  %8239 = vmatprep.mubr.msk.bf16.mxu1 %vm9993_vm0, %v9992_v0 }
 0x6a5   :  { %8225 = vmatprep.subr.bf16.mxu1 %v9992_v0 }
 0x6a8   :  { %8226 = vmatpush3.bf16.msra.mxu1 %v9679_v5 }
 0x6a9   :  { %8227 = vmatprep.subr.bf16.mxu1 %v9992_v0 }
 0x6ac   :  { %8228 = vmatpush3.bf16.msra.mxu1 %v9680_v43 }
 0x6ad   :  { %8229 = vmatprep.subr.bf16.mxu1 %v9992_v0 }
 0x6b0   :  { %8230 = vmatpush3.bf16.msra.mxu1 %v9681_v2 }
 0x6b1   :  { %8231 = vmatprep.subr.bf16.mxu1 %v9992_v0 }
 0x6b4   :  { %8232 = vmatpush3.bf16.msra.mxu1 %v9682_v27 }
 0x6b5   :  { %8233 = vmatprep.subr.bf16.mxu1 %v9992_v0 }
 0x6b8   :  { %8234 = vmatpush3.bf16.msra.mxu1 %v9683_v44 }
 0x6b9   :  { %8235 = vmatprep.subr.bf16.mxu1 %v9992_v0 }
 0x6bc   :  { %8236 = vmatpush3.bf16.msra.mxu1 %v9684_v45 }
 0x6bd   :  { %8237 = vmatprep.subr.bf16.mxu1 %v9992_v0 }
 0x6c0   :  { %8238 = vmatpush3.bf16.msra.mxu1 %v9685_v29 }
 0x6c1   :  { %8243 = vmatprep.subr.bf16.mxu1 %v9992_v0 }
 0x776   :  { %v7076_v50 = vpop.f32.mrb[8].mxu1 }
 0x777   :  { %v7077_v52 = vadd.f32 %v8141_v46, %v7076_v50  ;;  %v8221_v55 = vpop.f32.mrb[9].mxu1 }
 0x778   :  { %v7079_v56 = vpop.f32.mrb[10].mxu1 }
 0x779   :  { %v7080_v28 = vadd.f32 %v8141_v46, %v7079_v56  ;;  %v8222_v15 = vpop.f32.mrb[11].mxu1  ;;  %v7083_v57 = vmax.f32 %v7077_v52, 0.0 }
 0x77b   :  { %v7084_v58 = vmax.f32 %v7080_v28, 0.0 }
 0x77d   :  { %v7085_v13 = vpack.c.bf16 %v7084_v58, %v7083_v57 }
 0x77f   :  { %8240 = vmatmul.mubr.bf16.vlgmr.msra.gmra.mrb[12].mxu1 %v7085_v13 }
 0x780   :  { %8245 = vmatprep.mubr.msk.bf16.mxu1 %vm9993_vm0, %v9992_v0  ;;  %8244 = vmatpush3.bf16.msra.mxu1 %v7215_v59 }
 0x852   :  { %v7191_v61 = vpop.f32.mrb[12].mxu1 }
 0x853   :  { %v7192_v62 = vadd.f32 %v8150_v60, %v7191_v61  ;;  %v8241_v63 = vpop.f32.mrb[13].mxu1 }
 0x854   :  { %v7194_v19 = vpop.f32.mrb[14].mxu1 }
 0x855   :  { %v7195_v47 = vadd.f32 %v8150_v60, %v7194_v19  ;;  %v8242_v49 = vpop.f32.mrb[15].mxu1  ;;  %v7198_v3 = vmax.f32 %v7192_v62, 0.0 }
 0x857   :  { %v7199_v4 = vmax.f32 %v7195_v47, 0.0 }
 0x859   :  { %v7200_v6 = vpack.c.bf16 %v7199_v4, %v7198_v3 }
 0x85b   :  { %8246 = vmatmul.mubr.msk.bf16.vlgmr.msra.gmra.mrb[16].mxu1 %vm7209_vm2, %v7200_v6 }
 0x92e   :  { %v7251_v8 = vpop.f32.mrb[16].mxu1 }
 0x92f   :  { %v7252_v0 = vadd.f32 %v8159_v7, %v7251_v8  ;;  %v8247_v9 = vpop.f32.mrb[17].mxu1 }
 0x930   :  { %v7254_v51 = vpop.f32.mrb[18].mxu1 }
 0x931   :  { %v7258_v12 = vsub.f32 0.0, %v7252_v0  ;;  %v7255_v14 = vadd.f32 %v8159_v7, %v7254_v51  ;;  %v8248_v16 = vpop.f32.mrb[19].mxu1 }
 0x933   :  { %v7260_v17 = vmul.f32 1.442695, %v7258_v12  ;;  %v7259_v41 = vsub.f32 0.0, %v7255_v14 }
 0x935   :  { %9686 = vpow2.f32 %v7260_v17  ;;  %v7262_v18 = vmul.f32 1.442695, %v7259_v41 }
 0x937   :  { %9688 = vpow2.f32 %v7262_v18 }
 0x93f   :  { %v9687_v20 = vpop.eup %9686 }
 0x940   :  { %v7264_v38 = vadd.f32 1.0, %v9687_v20 }
 0x941   :  { %v9689_v1 = vpop.eup %9688 }
 0x942   :  { %9690 = vrcp.f32 %v7264_v38  ;;  %v7265_v21 = vadd.f32 1.0, %v9689_v1 }
 0x944   :  { %9692 = vrcp.f32 %v7265_v21 }
 0x94c   :  { %v9691_v48 = vpop.eup %9690 }
 0x94d   :  { %7268 = vst.msk [vmem:[#allocation20] sm:$0xff] %vm7209_vm2, %v9691_v48 }
 0x94e   :  { %v9693_v22 = vpop.eup %9692 }
 0x94f   :  { %7269 = vst.msk [vmem:[#allocation20 + $0x8] sm:$0xff] %vm7209_vm2, %v9693_v22 }
 0x950   :  { %7274 = vsyncadd [#allocation4], 224  ;;  %s9994_s8 = smov [#allocation20]  }
 0x951   :  { %s7275_s21 = sshll.u32 %s9994_s8, 4  ;;  %s7276_s21 = int_to_ptr.vmem [resolvable:$true] %s7275_s21 }
 0x952   :  { %s9936_s3 = scalar_lea.vmem %s7276_s21, 32  ;;  %s9940_s18 = scalar_lea.vmem %s7276_s21, 256 }
 0x953   :  { %p9937_p4 = scmp.ne.s32.totalorder %s7276_s21, %s9936_s3  ;;  %p9941_p5 = scmp.lt.s32.totalorder %s7276_s21, %s7276_s21 }
 0x954   :  { %p9942_p6 = scmp.lt.s32.totalorder %s9940_s18, %s9936_s3 }
 0x956   :  { %p9943_p7 = por %p9942_p6, %p9941_p5 }
 0x958   :  { %p9944_p8 = pnand %p9943_p7, %p9937_p4 }
 0x95a   :  { %9947 = shalt.err (!%p9944_p8)
}
 0x95b   :  { %s9948_s25 = scalar_lea.hbm %s10416_s12, 32 }
 0x95c   :  { %p9949_p9 = scmp.ne.s32.totalorder %s10416_s12, %s9948_s25  ;;  %p9952_p10 = scmp.lt.u32.totalorder %s9948_s25, %s10416_s12 }
 0x95e   :  { %p9954_p11 = pnand %p9952_p10, %p9949_p9 }
 0x960   :  { %9957 = shalt.err (!%p9954_p11)
}
 0x961   :  { %s9995_s9 = smov 32   ;;  %s9996_s7 = smov 2  }
 0x962   :  { %7281 = dma.vmem_to_hbm [thread:$0]  %s7276_s21, 32, %s10416_s12, [#allocation4], %s9995_s9, %s9995_s9, %s9996_s7  }
 0x963   :  { %9970 = dma.done.wait [#allocation4], 256  }
 0x964   :  { %9971 = vsyncadd [#allocation4], 4294967040 }
 0x965   :  { %7285 = vsyncpa [#allocation3], 1 }
 0x966   :  { %7286 = vsyncpa [#allocation6], 1 }
 0x967   :  { %7287 = vsyncpa [#allocation9], 1 }
 0x968   :  { %7288 = vsyncpa [#allocation12], 1 }
 0x969   :  { %7289 = vsyncpa [#allocation15], 1 }
 0x96a   :  { %7290 = vsyncpa [#allocation18], 1 }
 0x96b   :  { %7291 = vsyncpa [#allocation4], 1 }

// kernel: tpu_custom_call.1
= control target key start
LH: loop header
LB: loop body
LE: loop exit
PB: predicated region body
PF: predicated region fallthrough
CT: control target
= control target key end

     0   :  { %17 = vsyncpa [#allocation3], 0  ;;  %s10404_s0 = inlined_call_operand.hbm [shape: bf16[2,3072], index: 0, kind: input, shape index: {}]   ;;  %s10405_s1 = inlined_call_operand.hbm [shape: bf16[3072,512], index: 1, kind: input, shape index: {}]   ;;  %s10406_s2 = inlined_call_operand.hbm [shape: bf16[512,256], index: 2, kind: input, shape index: {}]   ;;  %s10407_s3 = inlined_call_operand.hbm [shape: f32[1,256], index: 3, kind: input, shape index: {}]   ;;  %s10408_s4 = inlined_call_operand.hbm [shape: bf16[256,128], index: 4, kind: input, shape index: {}]   ;;  %s10409_s5 = inlined_call_operand.hbm [shape: f32[1,128], index: 5, kind: input, shape index: {}]   ;;  %s10410_s6 = inlined_call_operand.hbm [shape: bf16[128,128], index: 6, kind: input, shape index: {}]   ;;  %s10411_s7 = inlined_call_operand.hbm [shape: f32[1,128], index: 7, kind: input, shape index: {}]   ;;  %s10412_s8 = inlined_call_operand.vmem [shape: bf16[128,8], index: 8, kind: input, shape index: {}]   ;;  %s10413_s9 = inlined_call_operand.hbm [shape: f32[1,8], index: 9, kind: input, shape index: {}]   ;;  %s10414_s10 = inlined_call_operand.hbm [shape: bf16[8,8], index: 10, kind: input, shape index: {}]   ;;  %s10415_s11 = inlined_call_operand.hbm [shape: f32[1,8], index: 11, kind: input, shape index: {}]   ;;  %s10416_s12 = inlined_call_operand.hbm [shape: f32[2,8], index: 12, kind: output, shape index: {}]  }
   0x1   :  { %18 = vsyncpa [#allocation6], 0 }
   0x2   :  { %19 = vsyncpa [#allocation9], 0 }
   0x3   :  { %20 = vsyncpa [#allocation12], 0 }
   0x4   :  { %21 = vsyncpa [#allocation15], 0 }
   0x5   :  { %22 = vsyncpa [#allocation18], 0 }
   0x6   :  { %23 = vsyncpa [#allocation4], 0 }
   0x7   :  { %28 = vsyncadd [#allocation3], 2688  ;;  %s9972_s21 = smov [#allocation5]   ;;  %s9694_s25 = scalar_lea.hbm %s10405_s1, 98304 }
   0x8   :  { %s41_s22 = sshll.u32 %s9972_s21, 4  ;;  %p9695_p0 = scmp.ne.s32.totalorder %s10405_s1, %s9694_s25  ;;  %s42_s22 = int_to_ptr.vmem [resolvable:$true] %s41_s22 }
   0x9   :  { %p9698_p1 = scmp.lt.u32.totalorder %s9694_s25, %s10405_s1 }
   0xb   :  { %p9700_p2 = pnand %p9698_p1, %p9695_p0 }
   0xd   :  { %9703 = shalt.err (!%p9700_p2)
}
   0xe   :  { %s9704_s30 = scalar_lea.vmem %s42_s22, 98304  ;;  %p9709_p4 = scmp.lt.s32.totalorder %s42_s22, %s42_s22 }
   0xf   :  { %p9705_p3 = scmp.ne.s32.totalorder %s42_s22, %s9704_s30  ;;  %p9710_p5 = scmp.lt.s32.totalorder %s9704_s30, %s9704_s30 }
  0x11   :  { %p9711_p6 = por %p9710_p5, %p9709_p4 }
  0x13   :  { %p9712_p7 = pnand %p9711_p6, %p9705_p3 }
  0x15   :  { %9715 = shalt.err (!%p9712_p7)
}
  0x16   :  { %s9973_s13 = smov 256   ;;  %s9974_s14 = smov 16  }
  0x17   :  { %47 = dma.hbm_to_vmem [thread:$0]  %s10405_s1, 98304, %s42_s22, [#allocation6], %s9973_s13, %s9973_s13, %s9974_s14  }
  0x18   :  { %s9975_s17 = smov [#allocation8]   ;;  %s9976_s19 = smov [#allocation11]  }
  0x19   :  { %s66_s18 = sshll.u32 %s9975_s17, 4  ;;  %s88_s20 = sshll.u32 %s9976_s19, 4  ;;  %s67_s18 = int_to_ptr.vmem [resolvable:$true] %s66_s18  ;;  %s89_s20 = int_to_ptr.vmem [resolvable:$true] %s88_s20 }
  0x1a   :  { %s9716_s24 = scalar_lea.hbm %s10407_s3, 32 }
  0x1b   :  { %p9717_p8 = scmp.ne.s32.totalorder %s10407_s3, %s9716_s24  ;;  %p9720_p9 = scmp.lt.u32.totalorder %s9716_s24, %s10407_s3 }
  0x1d   :  { %p9722_p10 = pnand %p9720_p9, %p9717_p8 }
  0x1f   :  { %9725 = shalt.err (!%p9722_p10)
}
  0x20   :  { %s9726_s1 = scalar_lea.vmem %s67_s18, 32  ;;  %p9731_p12 = scmp.lt.s32.totalorder %s67_s18, %s67_s18 }
  0x21   :  { %p9727_p11 = scmp.ne.s32.totalorder %s67_s18, %s9726_s1  ;;  %p9732_p13 = scmp.lt.s32.totalorder %s9726_s1, %s9726_s1 }
  0x23   :  { %p9733_p0 = por %p9732_p13, %p9731_p12 }
  0x25   :  { %p9734_p1 = pnand %p9733_p0, %p9727_p11 }
  0x27   :  { %9737 = shalt.err (!%p9734_p1)
}
  0x28   :  { %69 = dma.hbm_to_vmem [thread:$0]  %s10407_s3, 32, %s67_s18, [#allocation9]  }
  0x29   :  { %s9738_s14 = scalar_lea.hbm %s10409_s5, 16 }
  0x2a   :  { %p9739_p2 = scmp.ne.s32.totalorder %s10409_s5, %s9738_s14  ;;  %p9742_p3 = scmp.lt.u32.totalorder %s9738_s14, %s10409_s5 }
  0x2c   :  { %p9744_p4 = pnand %p9742_p3, %p9739_p2 }
  0x2e   :  { %9747 = shalt.err (!%p9744_p4)
}
  0x2f   :  { %s9748_s21 = scalar_lea.vmem %s89_s20, 16  ;;  %s9752_s23 = scalar_lea.vmem %s89_s20, 32 }
  0x30   :  { %p9749_p5 = scmp.ne.s32.totalorder %s89_s20, %s9748_s21  ;;  %p9753_p6 = scmp.lt.s32.totalorder %s89_s20, %s89_s20 }
  0x31   :  { %p9754_p7 = scmp.lt.s32.totalorder %s9752_s23, %s9748_s21 }
  0x33   :  { %p9755_p8 = por %p9754_p7, %p9753_p6 }
  0x35   :  { %p9756_p9 = pnand %p9755_p8, %p9749_p5 }
  0x37   :  { %9759 = shalt.err (!%p9756_p9)
}
  0x38   :  { %91 = dma.hbm_to_vmem [thread:$0]  %s10409_s5, 16, %s89_s20, [#allocation12]  }
  0x39   :  { %s9977_s24 = smov [#allocation14]   ;;  %s9978_s26 = smov [#allocation17]  }
  0x3a   :  { %s110_s25 = sshll.u32 %s9977_s24, 4  ;;  %s132_s27 = sshll.u32 %s9978_s26, 4  ;;  %s111_s25 = int_to_ptr.vmem [resolvable:$true] %s110_s25  ;;  %s133_s27 = int_to_ptr.vmem [resolvable:$true] %s132_s27 }
  0x3b   :  { %s9760_s22 = scalar_lea.hbm %s10411_s7, 16 }
  0x3c   :  { %p9761_p10 = scmp.ne.s32.totalorder %s10411_s7, %s9760_s22  ;;  %p9764_p11 = scmp.lt.u32.totalorder %s9760_s22, %s10411_s7 }
  0x3e   :  { %p9766_p12 = pnand %p9764_p11, %p9761_p10 }
  0x40   :  { %9769 = shalt.err (!%p9766_p12)
}
  0x41   :  { %s9770_s5 = scalar_lea.vmem %s111_s25, 16  ;;  %s9774_s20 = scalar_lea.vmem %s111_s25, 32 }
  0x42   :  { %p9771_p13 = scmp.ne.s32.totalorder %s111_s25, %s9770_s5  ;;  %p9775_p0 = scmp.lt.s32.totalorder %s111_s25, %s111_s25 }
  0x43   :  { %p9776_p1 = scmp.lt.s32.totalorder %s9774_s20, %s9770_s5 }
  0x45   :  { %p9777_p2 = por %p9776_p1, %p9775_p0 }
  0x47   :  { %p9778_p3 = pnand %p9777_p2, %p9771_p13 }
  0x49   :  { %9781 = shalt.err (!%p9778_p3)
}
  0x4a   :  { %113 = dma.hbm_to_vmem [thread:$0]  %s10411_s7, 16, %s111_s25, [#allocation15]  }
  0x4b   :  { %s9782_s21 = scalar_lea.hbm %s10414_s10, 64 }
  0x4c   :  { %p9783_p4 = scmp.ne.s32.totalorder %s10414_s10, %s9782_s21  ;;  %p9786_p5 = scmp.lt.u32.totalorder %s9782_s21, %s10414_s10 }
  0x4e   :  { %p9788_p6 = pnand %p9786_p5, %p9783_p4 }
  0x50   :  { %9791 = shalt.err (!%p9788_p6)
}
  0x51   :  { %s9792_s26 = scalar_lea.vmem %s133_s27, 64  ;;  %p9797_p8 = scmp.lt.s32.totalorder %s133_s27, %s133_s27 }
  0x52   :  { %p9793_p7 = scmp.ne.s32.totalorder %s133_s27, %s9792_s26  ;;  %p9798_p9 = scmp.lt.s32.totalorder %s9792_s26, %s9792_s26 }
  0x54   :  { %p9799_p10 = por %p9798_p9, %p9797_p8 }
  0x56   :  { %p9800_p11 = pnand %p9799_p10, %p9793_p7 }
  0x58   :  { %9803 = shalt.err (!%p9800_p11)
}
  0x59   :  { %135 = dma.hbm_to_vmem [thread:$0]  %s10414_s10, 64, %s133_s27, [#allocation18]  }
  0x5a   :  { %s9979_s28 = smov [#allocation2]   ;;  %s9804_s30 = scalar_lea.hbm %s10404_s0, 384 }
  0x5b   :  { %s29_s1 = sshll.u32 %s9979_s28, 4  ;;  %p9805_p12 = scmp.ne.s32.totalorder %s10404_s0, %s9804_s30  ;;  %s30_s1 = int_to_ptr.vmem [resolvable:$true] %s29_s1 }
  0x5c   :  { %p9808_p13 = scmp.lt.u32.totalorder %s9804_s30, %s10404_s0 }
  0x5e   :  { %p9810_p0 = pnand %p9808_p13, %p9805_p12 }
  0x60   :  { %9813 = shalt.err (!%p9810_p0)
}
  0x61   :  { %s9814_s15 = scalar_lea.vmem %s30_s1, 384  ;;  %s9818_s10 = scalar_lea.vmem %s30_s1, 3072 }
  0x62   :  { %p9815_p1 = scmp.ne.s32.totalorder %s30_s1, %s9814_s15  ;;  %p9819_p2 = scmp.lt.s32.totalorder %s30_s1, %s30_s1 }
  0x63   :  { %p9820_p3 = scmp.lt.s32.totalorder %s9818_s10, %s9814_s15 }
  0x65   :  { %p9821_p4 = por %p9820_p3, %p9819_p2 }
  0x67   :  { %p9822_p5 = pnand %p9821_p4, %p9815_p1 }
  0x69   :  { %9825 = shalt.err (!%p9822_p5)
}
  0x6a   :  { %s9980_s27 = smov 384   ;;  %s9981_s16 = smov 24  }
  0x6b   :  { %35 = dma.hbm_to_vmem [thread:$0]  %s10404_s0, 384, %s30_s1, [#allocation3], %s9980_s27, %s9980_s27, %s9981_s16  }
  0x6c   :  { %s9982_s21 = smov [#allocation7]   ;;  %s9826_s24 = scalar_lea.hbm %s10406_s2, 8192 }
  0x6d   :  { %s53_s23 = sshll.u32 %s9982_s21, 4  ;;  %p9827_p6 = scmp.ne.s32.totalorder %s10406_s2, %s9826_s24  ;;  %s54_s23 = int_to_ptr.vmem [resolvable:$true] %s53_s23 }
  0x6e   :  { %p9830_p7 = scmp.lt.u32.totalorder %s9826_s24, %s10406_s2 }
  0x70   :  { %p9832_p8 = pnand %p9830_p7, %p9827_p6 }
  0x72   :  { %9835 = shalt.err (!%p9832_p8)
}
  0x73   :  { %s9836_s22 = scalar_lea.vmem %s54_s23, 8192  ;;  %p9841_p10 = scmp.lt.s32.totalorder %s54_s23, %s54_s23 }
  0x74   :  { %p9837_p9 = scmp.ne.s32.totalorder %s54_s23, %s9836_s22  ;;  %p9842_p11 = scmp.lt.s32.totalorder %s9836_s22, %s9836_s22 }
  0x76   :  { %p9843_p12 = por %p9842_p11, %p9841_p10 }
  0x78   :  { %p9844_p13 = pnand %p9843_p12, %p9837_p9 }
  0x7a   :  { %9847 = shalt.err (!%p9844_p13)
}
  0x7b   :  { %s9983_s0 = smov 128   ;;  %s9984_s1 = smov 8  }
  0x7c   :  { %59 = dma.hbm_to_vmem [thread:$0]  %s10406_s2, 8192, %s54_s23, [#allocation6], %s9983_s0, %s9983_s0, %s9984_s1  }
  0x7d   :  { %s9985_s13 = smov [#allocation10]   ;;  %s9848_s15 = scalar_lea.hbm %s10408_s4, 2048 }
  0x7e   :  { %s75_s14 = sshll.u32 %s9985_s13, 4  ;;  %p9849_p0 = scmp.ne.s32.totalorder %s10408_s4, %s9848_s15  ;;  %s76_s14 = int_to_ptr.vmem [resolvable:$true] %s75_s14 }
  0x7f   :  { %p9852_p1 = scmp.lt.u32.totalorder %s9848_s15, %s10408_s4 }
  0x81   :  { %p9854_p2 = pnand %p9852_p1, %p9849_p0 }
  0x83   :  { %9857 = shalt.err (!%p9854_p2)
}
  0x84   :  { %s9858_s19 = scalar_lea.vmem %s76_s14, 2048  ;;  %p9863_p4 = scmp.lt.s32.totalorder %s76_s14, %s76_s14 }
  0x85   :  { %p9859_p3 = scmp.ne.s32.totalorder %s76_s14, %s9858_s19  ;;  %p9864_p5 = scmp.lt.s32.totalorder %s9858_s19, %s9858_s19 }
  0x87   :  { %p9865_p6 = por %p9864_p5, %p9863_p4 }
  0x89   :  { %p9866_p7 = pnand %p9865_p6, %p9859_p3 }
  0x8b   :  { %9869 = shalt.err (!%p9866_p7)
}
  0x8c   :  { %s9986_s2 = smov 64   ;;  %s9987_s21 = smov 4  }
  0x8d   :  { %81 = dma.hbm_to_vmem [thread:$0]  %s10408_s4, 2048, %s76_s14, [#allocation9], %s9986_s2, %s9986_s2, %s9987_s21  }
  0x8e   :  { %s9988_s18 = smov [#allocation13]   ;;  %s9989_s26 = smov [#allocation16]  }
  0x8f   :  { %s97_s24 = sshll.u32 %s9988_s18, 4  ;;  %s122_s7 = sshll.u32 %s9989_s26, 4  ;;  %s98_s24 = int_to_ptr.vmem [resolvable:$true] %s97_s24  ;;  %s123_s7 = int_to_ptr.vmem [resolvable:$true] %s122_s7 }
  0x90   :  { %s9870_s22 = scalar_lea.hbm %s10410_s6, 1024 }
  0x91   :  { %p9871_p8 = scmp.ne.s32.totalorder %s10410_s6, %s9870_s22  ;;  %p9874_p9 = scmp.lt.u32.totalorder %s9870_s22, %s10410_s6 }
  0x93   :  { %p9876_p10 = pnand %p9874_p9, %p9871_p8 }
  0x95   :  { %9879 = shalt.err (!%p9876_p10)
}
  0x96   :  { %s9880_s4 = scalar_lea.vmem %s98_s24, 1024  ;;  %p9885_p12 = scmp.lt.s32.totalorder %s98_s24, %s98_s24 }
  0x97   :  { %p9881_p11 = scmp.ne.s32.totalorder %s98_s24, %s9880_s4  ;;  %p9886_p13 = scmp.lt.s32.totalorder %s9880_s4, %s9880_s4 }
  0x99   :  { %p9887_p0 = por %p9886_p13, %p9885_p12 }
  0x9b   :  { %p9888_p1 = pnand %p9887_p0, %p9881_p11 }
  0x9d   :  { %9891 = shalt.err (!%p9888_p1)
}
  0x9e   :  { %103 = dma.hbm_to_vmem [thread:$0]  %s10410_s6, 1024, %s98_s24, [#allocation12], %s9986_s2, %s9986_s2, %s9987_s21  }
  0x9f   :  { %s9892_s15 = scalar_lea.hbm %s10413_s9, 16 }
  0xa0   :  { %p9893_p2 = scmp.ne.s32.totalorder %s10413_s9, %s9892_s15  ;;  %p9896_p3 = scmp.lt.u32.totalorder %s9892_s15, %s10413_s9 }
  0xa2   :  { %p9898_p4 = pnand %p9896_p3, %p9893_p2 }
  0xa4   :  { %9901 = shalt.err (!%p9898_p4)
}
  0xa5   :  { %s9902_s19 = scalar_lea.vmem %s123_s7, 16  ;;  %s9906_s23 = scalar_lea.vmem %s123_s7, 32 }
  0xa6   :  { %p9903_p5 = scmp.ne.s32.totalorder %s123_s7, %s9902_s19  ;;  %p9907_p6 = scmp.lt.s32.totalorder %s123_s7, %s123_s7 }
  0xa7   :  { %p9908_p7 = scmp.lt.s32.totalorder %s9906_s23, %s9902_s19 }
  0xa9   :  { %p9909_p8 = por %p9908_p7, %p9907_p6 }
  0xab   :  { %p9910_p9 = pnand %p9909_p8, %p9903_p5 }
  0xad   :  { %9913 = shalt.err (!%p9910_p9)
}
  0xae   :  { %125 = dma.hbm_to_vmem [thread:$0]  %s10413_s9, 16, %s123_s7, [#allocation15]  }
  0xaf   :  { %s9990_s21 = smov [#allocation19]   ;;  %s9914_s26 = scalar_lea.hbm %s10415_s11, 16 }
  0xb0   :  { %s142_s3 = sshll.u32 %s9990_s21, 4  ;;  %p9915_p10 = scmp.ne.s32.totalorder %s10415_s11, %s9914_s26  ;;  %s143_s3 = int_to_ptr.vmem [resolvable:$true] %s142_s3 }
  0xb1   :  { %p9918_p11 = scmp.lt.u32.totalorder %s9914_s26, %s10415_s11 }
  0xb3   :  { %p9920_p12 = pnand %p9918_p11, %p9915_p10 }
  0xb5   :  { %9923 = shalt.err (!%p9920_p12)
}
  0xb6   :  { %s9924_s1 = scalar_lea.vmem %s143_s3, 16  ;;  %s9928_s9 = scalar_lea.vmem %s143_s3, 32 }
  0xb7   :  { %p9925_p13 = scmp.ne.s32.totalorder %s143_s3, %s9924_s1  ;;  %p9929_p0 = scmp.lt.s32.totalorder %s143_s3, %s143_s3 }
  0xb8   :  { %p9930_p1 = scmp.lt.s32.totalorder %s9928_s9, %s9924_s1 }
  0xba   :  { %p9931_p2 = por %p9930_p1, %p9929_p0 }
  0xbc   :  { %p9932_p3 = pnand %p9931_p2, %p9925_p13 }
  0xbe   :  { %9935 = shalt.err (!%p9932_p3)
}
  0xbf   :  { %145 = dma.hbm_to_vmem [thread:$0]  %s10415_s11, 16, %s143_s3, [#allocation18]  }
  0xc0   :  { %9958 = dma.done.wait [#allocation3], 3072  }
  0xc1   :  { %9959 = vsyncadd [#allocation3], 4294964224 }
  0xc2   :  { %9960 = dma.done.wait [#allocation6], 106496  }
  0xc3   :  { %9961 = vsyncadd [#allocation6], 4294860800 }
  0xc4   :  { %9962 = dma.done.wait [#allocation9], 2080  }
  0xc5   :  { %9963 = vsyncadd [#allocation9], 4294965216 }
  0xc6   :  { %9964 = dma.done.wait [#allocation12], 1040  }
  0xc7   :  { %9965 = vsyncadd [#allocation12], 4294966256 }
  0xc8   :  { %9966 = dma.done.wait [#allocation15], 32  }
  0xc9   :  { %9967 = vsyncadd [#allocation15], 4294967264 }
  0xca   :  { %9968 = dma.done.wait [#allocation18], 80  }
  0xcb   :  { %9969 = vsyncadd [#allocation18], 4294967216  ;;  %v8370_v0 = vld [vmem:[#allocation5 + $0x4] ss:$16 sps:$4 sm:$0xff]   ;;  %v8372_v1 = vld [vmem:[#allocation5 + $0xc] ss:$16 sps:$4 sm:$0xff]   ;;  %v1007_v41 = vlaneseq }
  0xcc   :  { %5268 = vmatprep.subr.bf16.mxu0 %v8370_v0  ;;  %v8374_v2 = vld [vmem:[#allocation5] ss:$16 sps:$4 sm:$0xff]   ;;  %v8375_v3 = vld [vmem:[#allocation5 + $0x8] ss:$16 sps:$4 sm:$0xff]   ;;  %5784 = vmatprep.subr.bf16.mxu1 %v8372_v1  ;;  %v8376_v4 = vld [vmem:[#allocation5 + $0x24] ss:$16 sps:$4 sm:$0xff]  }
  0xcd   :  { %5269 = vmatpush1.bf16.msra.mxu0 %v8374_v2  ;;  %5785 = vmatpush1.bf16.msra.mxu1 %v8375_v3  ;;  %v8378_v5 = vld [vmem:[#allocation5 + $0x2c] ss:$16 sps:$4 sm:$0xff]   ;;  %v8380_v6 = vld [vmem:[#allocation5 + $0x20] ss:$16 sps:$4 sm:$0xff]   ;;  %v8381_v7 = vld [vmem:[#allocation5 + $0x28] ss:$16 sps:$4 sm:$0xff]  }
  0xce   :  { %5270 = vmatprep.subr.bf16.mxu0 %v8376_v4  ;;  %5786 = vmatprep.subr.bf16.mxu1 %v8378_v5  ;;  %v8382_v8 = vld [vmem:[#allocation5 + $0x44] ss:$16 sps:$4 sm:$0xff]   ;;  %v8384_v9 = vld [vmem:[#allocation5 + $0x4c] ss:$16 sps:$4 sm:$0xff]   ;;  %v8386_v10 = vld [vmem:[#allocation5 + $0x40] ss:$16 sps:$4 sm:$0xff]  }
  0xcf   :  { %v8387_v11 = vld [vmem:[#allocation5 + $0x48] ss:$16 sps:$4 sm:$0xff]   ;;  %v8388_v12 = vld [vmem:[#allocation5 + $0x64] ss:$16 sps:$4 sm:$0xff]   ;;  %v8390_v13 = vld [vmem:[#allocation5 + $0x6c] ss:$16 sps:$4 sm:$0xff]  }
  0xd0   :  { %v8392_v14 = vld [vmem:[#allocation5 + $0x60] ss:$16 sps:$4 sm:$0xff]   ;;  %v8393_v15 = vld [vmem:[#allocation5 + $0x68] ss:$16 sps:$4 sm:$0xff]   ;;  %v8394_v16 = vld [vmem:[#allocation5 + $0x84] ss:$16 sps:$4 sm:$0xff]  }
  0xd1   :  { %5271 = vmatpush1.bf16.msra.mxu0 %v8380_v6  ;;  %5787 = vmatpush1.bf16.msra.mxu1 %v8381_v7  ;;  %v8396_v17 = vld [vmem:[#allocation5 + $0x8c] ss:$16 sps:$4 sm:$0xff]   ;;  %v8398_v18 = vld [vmem:[#allocation5 + $0x80] ss:$16 sps:$4 sm:$0xff]   ;;  %v8399_v19 = vld [vmem:[#allocation5 + $0x88] ss:$16 sps:$4 sm:$0xff]  }
  0xd2   :  { %5272 = vmatprep.subr.bf16.mxu0 %v8382_v8  ;;  %5788 = vmatprep.subr.bf16.mxu1 %v8384_v9  ;;  %v8400_v20 = vld [vmem:[#allocation5 + $0xa4] ss:$16 sps:$4 sm:$0xff]   ;;  %v8402_v21 = vld [vmem:[#allocation5 + $0xac] ss:$16 sps:$4 sm:$0xff]   ;;  %v8404_v22 = vld [vmem:[#allocation5 + $0xa0] ss:$16 sps:$4 sm:$0xff]  }
  0xd3   :  { %v8405_v23 = vld [vmem:[#allocation5 + $0xa8] ss:$16 sps:$4 sm:$0xff]   ;;  %v8406_v24 = vld [vmem:[#allocation5 + $0xc4] ss:$16 sps:$4 sm:$0xff]   ;;  %v8408_v25 = vld [vmem:[#allocation5 + $0xcc] ss:$16 sps:$4 sm:$0xff]  }
  0xd4   :  { %v8410_v26 = vld [vmem:[#allocation5 + $0xc0] ss:$16 sps:$4 sm:$0xff]   ;;  %v8411_v27 = vld [vmem:[#allocation5 + $0xc8] ss:$16 sps:$4 sm:$0xff]   ;;  %v8412_v28 = vld [vmem:[#allocation5 + $0xe4] ss:$16 sps:$4 sm:$0xff]  }
  0xd5   :  { %5273 = vmatpush1.bf16.msra.mxu0 %v8386_v10  ;;  %5789 = vmatpush1.bf16.msra.mxu1 %v8387_v11  ;;  %v8414_v29 = vld [vmem:[#allocation5 + $0xec] ss:$16 sps:$4 sm:$0xff]   ;;  %v8416_v30 = vld [vmem:[#allocation5 + $0xe0] ss:$16 sps:$4 sm:$0xff]   ;;  %v8417_v31 = vld [vmem:[#allocation5 + $0xe8] ss:$16 sps:$4 sm:$0xff]  }
  0xd6   :  { %5274 = vmatprep.subr.bf16.mxu0 %v8388_v12  ;;  %5790 = vmatprep.subr.bf16.mxu1 %v8390_v13  ;;  %v8418_v32 = vld [vmem:[#allocation5 + $0x104] ss:$16 sps:$4 sm:$0xff]   ;;  %v8420_v33 = vld [vmem:[#allocation5 + $0x10c] ss:$16 sps:$4 sm:$0xff]   ;;  %v8422_v34 = vld [vmem:[#allocation5 + $0x100] ss:$16 sps:$4 sm:$0xff]  }
  0xd7   :  { %v8423_v35 = vld [vmem:[#allocation5 + $0x108] ss:$16 sps:$4 sm:$0xff]   ;;  %v8424_v36 = vld [vmem:[#allocation5 + $0x124] ss:$16 sps:$4 sm:$0xff]   ;;  %v8426_v37 = vld [vmem:[#allocation5 + $0x12c] ss:$16 sps:$4 sm:$0xff]  }
  0xd8   :  { %v8428_v38 = vld [vmem:[#allocation5 + $0x120] ss:$16 sps:$4 sm:$0xff]   ;;  %v9991_v39 = vmov 1966171168   ;;  %v8429_v42 = vld [vmem:[#allocation5 + $0x128] ss:$16 sps:$4 sm:$0xff]  }
  0xd9   :  { %5275 = vmatpush1.bf16.msra.mxu0 %v8392_v14  ;;  %5791 = vmatpush1.bf16.msra.mxu1 %v8393_v15  ;;  %v1005_v40 = vunpack.c.l.s4 %v9991_v39  ;;  %v8430_v43 = vld [vmem:[#allocation5 + $0x144] ss:$16 sps:$4 sm:$0xff]   ;;  %v8432_v44 = vld [vmem:[#allocation5 + $0x14c] ss:$16 sps:$4 sm:$0xff]   ;;  %v8434_v45 = vld [vmem:[#allocation5 + $0x140] ss:$16 sps:$4 sm:$0xff]  }
  0xda   :  { %5276 = vmatprep.subr.bf16.mxu0 %v8394_v16  ;;  %5792 = vmatprep.subr.bf16.mxu1 %v8396_v17  ;;  %v8435_v46 = vld [vmem:[#allocation5 + $0x148] ss:$16 sps:$4 sm:$0xff]   ;;  %v10194_v48 = vshrl.u32 %v1007_v41, 7  ;;  %v8436_v49 = vld [vmem:[#allocation5 + $0x164] ss:$16 sps:$4 sm:$0xff]   ;;  %vm9993_vm0 = vmmov 0  }
  0xdb   :  { %v1006_v47 = vunpack.c.0.s8 %v1005_v40  ;;  %v8438_v50 = vld [vmem:[#allocation5 + $0x16c] ss:$16 sps:$4 sm:$0xff]   ;;  %v8440_v51 = vld [vmem:[#allocation5 + $0x160] ss:$16 sps:$4 sm:$0xff]   ;;  %v8441_v52 = vld [vmem:[#allocation5 + $0x168] ss:$16 sps:$4 sm:$0xff]  }
  0xdc   :  { %v8442_v53 = vld [vmem:[#allocation5 + $0x184] ss:$16 sps:$4 sm:$0xff]   ;;  %v8444_v55 = vld [vmem:[#allocation5 + $0x18c] ss:$16 sps:$4 sm:$0xff]   ;;  %v8466_v56 = vld [vmem:[#allocation2] ss:$24 sps:$4 sm:$0xff]  }
  0xdd   :  { %5277 = vmatpush1.bf16.msra.mxu0 %v8398_v18  ;;  %5793 = vmatpush1.bf16.msra.mxu1 %v8399_v19  ;;  %v10197_v54 = vsub.s32 %v1006_v47, %v10194_v48  ;;  %v8469_v57 = vld [vmem:[#allocation2 + $0x30] ss:$24 sps:$4 sm:$0xff]   ;;  %v8472_v58 = vld [vmem:[#allocation2 + $0x60] ss:$24 sps:$4 sm:$0xff]   ;;  %v8448_v63 = vld [vmem:[#allocation5 + $0x1a4] ss:$16 sps:$4 sm:$0xff]  }
  0xde   :  { %5278 = vmatprep.subr.bf16.mxu0 %v8400_v20  ;;  %5794 = vmatprep.subr.bf16.mxu1 %v8402_v21  ;;  %v8446_v59 = vld [vmem:[#allocation5 + $0x180] ss:$16 sps:$4 sm:$0xff]   ;;  %v8447_v60 = vld [vmem:[#allocation5 + $0x188] ss:$16 sps:$4 sm:$0xff]   ;;  %v8450_v2 = vld [vmem:[#allocation5 + $0x1ac] ss:$16 sps:$4 sm:$0xff]  }
  0xdf   :  { %v8475_v61 = vld [vmem:[#allocation2 + $0x90] ss:$24 sps:$4 sm:$0xff]   ;;  %v1010_v62 = vrot.slane %v8466_v56, %v10197_v54  ;;  %v1024_v0 = vrot.slane %v8469_v57, %v10197_v54  ;;  %v1038_v1 = vrot.slane %v8472_v58, %v10197_v54  ;;  %v8454_v10 = vld [vmem:[#allocation5 + $0x1c4] ss:$16 sps:$4 sm:$0xff]   ;;  %v8456_v12 = vld [vmem:[#allocation5 + $0x1cc] ss:$16 sps:$4 sm:$0xff]  }
  0xe0   :  { %v1052_v3 = vrot.slane %v8475_v61, %v10197_v54  ;;  %v8452_v6 = vld [vmem:[#allocation5 + $0x1a0] ss:$16 sps:$4 sm:$0xff]   ;;  %v8453_v7 = vld [vmem:[#allocation5 + $0x1a8] ss:$16 sps:$4 sm:$0xff]   ;;  %v8460_v20 = vld [vmem:[#allocation5 + $0x1e4] ss:$16 sps:$4 sm:$0xff]  }
  0xe1   :  { %5279 = vmatpush1.bf16.msra.mxu0 %v8404_v22  ;;  %5795 = vmatpush1.bf16.msra.mxu1 %v8405_v23  ;;  %v1061_v4 = vcombine.high %v1010_v62, %v1024_v0  ;;  %v1060_v5 = vcombine.low %v1010_v62, %v1024_v0  ;;  %v8458_v16 = vld [vmem:[#allocation5 + $0x1c0] ss:$16 sps:$4 sm:$0xff]   ;;  %v8459_v17 = vld [vmem:[#allocation5 + $0x1c8] ss:$16 sps:$4 sm:$0xff]   ;;  %v8462_v21 = vld [vmem:[#allocation5 + $0x1ec] ss:$16 sps:$4 sm:$0xff]  }
  0xe2   :  { %5280 = vmatprep.subr.bf16.mxu0 %v8406_v24  ;;  %5796 = vmatprep.subr.bf16.mxu1 %v8408_v25  ;;  %v1065_v8 = vcombine.high %v1038_v1, %v1052_v3  ;;  %v1064_v9 = vcombine.low %v1038_v1, %v1052_v3  ;;  %v8464_v22 = vld [vmem:[#allocation5 + $0x1e0] ss:$16 sps:$4 sm:$0xff]   ;;  %v8465_v23 = vld [vmem:[#allocation5 + $0x1e8] ss:$16 sps:$4 sm:$0xff]   ;;  %v8480_v24 = vld [vmem:[#allocation5 + $0x204] ss:$16 sps:$4 sm:$0xff]  }
  0xe3   :  { %v1088_v11 = vrot.slane %v1061_v4, %v10197_v54  ;;  %v1074_v14 = vrot.slane %v1060_v5, %v10197_v54  ;;  %v8483_v25 = vld [vmem:[#allocation5 + $0x20c] ss:$16 sps:$4 sm:$0xff]   ;;  %v8496_v40 = vld [vmem:[#allocation5 + $0x260] ss:$16 sps:$4 sm:$0xff]   ;;  %v8499_v41 = vld [vmem:[#allocation5 + $0x268] ss:$16 sps:$4 sm:$0xff]  }
  0xe4   :  { %v1116_v13 = vrot.slane %v1065_v8, %v10197_v54  ;;  %v1102_v15 = vrot.slane %v1064_v9, %v10197_v54  ;;  %v8501_v39 = vld [vmem:[#allocation5 + $0x26c] ss:$16 sps:$4 sm:$0xff]   ;;  %v8522_v56 = vld [vmem:[#allocation5 + $0x2e4] ss:$16 sps:$4 sm:$0xff]   ;;  %v8520_v58 = vld [vmem:[#allocation5 + $0x2e0] ss:$16 sps:$4 sm:$0xff]  }
  0xe5   :  { %5281 = vmatpush1.bf16.msra.mxu0 %v8410_v26  ;;  %5797 = vmatpush1.bf16.msra.mxu1 %v8411_v27  ;;  %v8478_v26 = vld [vmem:[#allocation5 + $0x200] ss:$16 sps:$4 sm:$0xff]   ;;  %v8481_v27 = vld [vmem:[#allocation5 + $0x208] ss:$16 sps:$4 sm:$0xff]   ;;  %v8513_v47 = vld [vmem:[#allocation5 + $0x2ac] ss:$16 sps:$4 sm:$0xff]  }
  0xe6   :  { %5282 = vmatprep.subr.bf16.mxu0 %v8412_v28  ;;  %5798 = vmatprep.subr.bf16.mxu1 %v8414_v29  ;;  %v1128_v18 = vcombine.low %v1088_v11, %v1116_v13  ;;  %v10207_v19 = vcombine.high %v1074_v14, %v1102_v15  ;;  %v1124_v28 = vcombine.low %v1074_v14, %v1102_v15  ;;  %v8486_v29 = vld [vmem:[#allocation5 + $0x224] ss:$16 sps:$4 sm:$0xff]   ;;  %v8525_v57 = vld [vmem:[#allocation5 + $0x2ec] ss:$16 sps:$4 sm:$0xff]   ;;  %v8526_v62 = vld [vmem:[#allocation5 + $0x300] ss:$16 sps:$4 sm:$0xff]  }
  0xe7   :  { %v8531_v61 = vld [vmem:[#allocation5 + $0x30c] ss:$16 sps:$4 sm:$0xff]   ;;  %v8534_v0 = vld [vmem:[#allocation5 + $0x324] ss:$16 sps:$4 sm:$0xff]   ;;  %v8535_v3 = vld [vmem:[#allocation5 + $0x328] ss:$16 sps:$4 sm:$0xff]  }
  0xe8   :  { %5300 = vmatprep.mubr.bf16.mxu0 %v1128_v18  ;;  %5816 = vmatprep.mubr.bf16.mxu1 %v1128_v18  ;;  %v8537_v1 = vld [vmem:[#allocation5 + $0x32c] ss:$16 sps:$4 sm:$0xff]   ;;  %v8540_v4 = vld [vmem:[#allocation5 + $0x344] ss:$16 sps:$4 sm:$0xff]   ;;  %v8550_v14 = vld [vmem:[#allocation5 + $0x380] ss:$16 sps:$4 sm:$0xff]  }
  0xe9   :  { %5283 = vmatpush1.bf16.msra.mxu0 %v8416_v30  ;;  %5799 = vmatpush1.bf16.msra.mxu1 %v8417_v31  ;;  %v8489_v30 = vld [vmem:[#allocation5 + $0x22c] ss:$16 sps:$4 sm:$0xff]   ;;  %v1129_v31 = vcombine.high %v1088_v11, %v1116_v13  ;;  %v8546_v8 = vld [vmem:[#allocation5 + $0x364] ss:$16 sps:$4 sm:$0xff]   ;;  %v8547_v11 = vld [vmem:[#allocation5 + $0x368] ss:$16 sps:$4 sm:$0xff]  }
  0xea   :  { %5284 = vmatprep.subr.bf16.mxu0 %v8418_v32  ;;  %5800 = vmatprep.subr.bf16.mxu1 %v8420_v33  ;;  %v8484_v32 = vld [vmem:[#allocation5 + $0x220] ss:$16 sps:$4 sm:$0xff]   ;;  %v8487_v33 = vld [vmem:[#allocation5 + $0x228] ss:$16 sps:$4 sm:$0xff]   ;;  %v8543_v5 = vld [vmem:[#allocation5 + $0x34c] ss:$16 sps:$4 sm:$0xff]  }
  0xeb   :  { %v8549_v9 = vld [vmem:[#allocation5 + $0x36c] ss:$16 sps:$4 sm:$0xff]   ;;  %v8553_v15 = vld [vmem:[#allocation5 + $0x388] ss:$16 sps:$4 sm:$0xff]   ;;  %v8558_v18 = vld [vmem:[#allocation5 + $0x3a4] ss:$16 sps:$4 sm:$0xff]  }
  0xec   :  { %v8555_v13 = vld [vmem:[#allocation5 + $0x38c] ss:$16 sps:$4 sm:$0xff]   ;;  %vm7213_vm1 = vcmask 1043456   ;;  %vm7209_vm2 = vcmask 64512  }
  0xed   :  { %5285 = vmatpush1.bf16.msra.mxu0 %v8422_v34  ;;  %5801 = vmatpush1.bf16.msra.mxu1 %v8423_v35  ;;  %v8492_v34 = vld [vmem:[#allocation5 + $0x244] ss:$16 sps:$4 sm:$0xff]   ;;  %v8495_v35 = vld [vmem:[#allocation5 + $0x24c] ss:$16 sps:$4 sm:$0xff]  }
  0xee   :  { %5286 = vmatprep.subr.bf16.mxu0 %v8424_v36  ;;  %5802 = vmatprep.subr.bf16.mxu1 %v8426_v37  ;;  %v8490_v36 = vld [vmem:[#allocation5 + $0x240] ss:$16 sps:$4 sm:$0xff]   ;;  %v8493_v37 = vld [vmem:[#allocation5 + $0x248] ss:$16 sps:$4 sm:$0xff]  }
  0xf1   :  { %5287 = vmatpush1.bf16.msra.mxu0 %v8428_v38  ;;  %5803 = vmatpush1.bf16.msra.mxu1 %v8429_v42  ;;  %v8498_v38 = vld [vmem:[#allocation5 + $0x264] ss:$16 sps:$4 sm:$0xff]  }
  0xf2   :  { %5288 = vmatprep.subr.bf16.mxu0 %v8430_v43  ;;  %5804 = vmatprep.subr.bf16.mxu1 %v8432_v44  ;;  %v8504_v42 = vld [vmem:[#allocation5 + $0x284] ss:$16 sps:$4 sm:$0xff]   ;;  %v8507_v43 = vld [vmem:[#allocation5 + $0x28c] ss:$16 sps:$4 sm:$0xff]   ;;  %v8502_v44 = vld [vmem:[#allocation5 + $0x280] ss:$16 sps:$4 sm:$0xff]  }
  0xf5   :  { %5289 = vmatpush1.bf16.msra.mxu0 %v8434_v45  ;;  %5805 = vmatpush1.bf16.msra.mxu1 %v8435_v46  ;;  %v8505_v45 = vld [vmem:[#allocation5 + $0x288] ss:$16 sps:$4 sm:$0xff]   ;;  %v8510_v46 = vld [vmem:[#allocation5 + $0x2a4] ss:$16 sps:$4 sm:$0xff]  }
  0xf6   :  { %5290 = vmatprep.subr.bf16.mxu0 %v8436_v49  ;;  %5806 = vmatprep.subr.bf16.mxu1 %v8438_v50  ;;  %v8508_v49 = vld [vmem:[#allocation5 + $0x2a0] ss:$16 sps:$4 sm:$0xff]   ;;  %v8511_v50 = vld [vmem:[#allocation5 + $0x2a8] ss:$16 sps:$4 sm:$0xff]  }
  0xf9   :  { %5291 = vmatpush1.bf16.msra.mxu0 %v8440_v51  ;;  %5807 = vmatpush1.bf16.msra.mxu1 %v8441_v52  ;;  %v8516_v51 = vld [vmem:[#allocation5 + $0x2c4] ss:$16 sps:$4 sm:$0xff]   ;;  %v8519_v52 = vld [vmem:[#allocation5 + $0x2cc] ss:$16 sps:$4 sm:$0xff]  }
  0xfa   :  { %5292 = vmatprep.subr.bf16.mxu0 %v8442_v53  ;;  %5808 = vmatprep.subr.bf16.mxu1 %v8444_v55  ;;  %v8514_v53 = vld [vmem:[#allocation5 + $0x2c0] ss:$16 sps:$4 sm:$0xff]   ;;  %v8517_v55 = vld [vmem:[#allocation5 + $0x2c8] ss:$16 sps:$4 sm:$0xff]  }
  0xfd   :  { %5293 = vmatpush1.bf16.msra.mxu0 %v8446_v59  ;;  %5809 = vmatpush1.bf16.msra.mxu1 %v8447_v60  ;;  %v8523_v59 = vld [vmem:[#allocation5 + $0x2e8] ss:$16 sps:$4 sm:$0xff]   ;;  %v8528_v60 = vld [vmem:[#allocation5 + $0x304] ss:$16 sps:$4 sm:$0xff]  }
  0xfe   :  { %5294 = vmatprep.subr.bf16.mxu0 %v8448_v63  ;;  %5810 = vmatprep.subr.bf16.mxu1 %v8450_v2  ;;  %v8529_v63 = vld [vmem:[#allocation5 + $0x308] ss:$16 sps:$4 sm:$0xff]   ;;  %v8532_v2 = vld [vmem:[#allocation5 + $0x320] ss:$16 sps:$4 sm:$0xff]  }
 0x101   :  { %5295 = vmatpush1.bf16.msra.mxu0 %v8452_v6  ;;  %5811 = vmatpush1.bf16.msra.mxu1 %v8453_v7  ;;  %v8538_v6 = vld [vmem:[#allocation5 + $0x340] ss:$16 sps:$4 sm:$0xff]   ;;  %v8541_v7 = vld [vmem:[#allocation5 + $0x348] ss:$16 sps:$4 sm:$0xff]  }
 0x102   :  { %5296 = vmatprep.subr.bf16.mxu0 %v8454_v10  ;;  %5812 = vmatprep.subr.bf16.mxu1 %v8456_v12  ;;  %v8544_v10 = vld [vmem:[#allocation5 + $0x360] ss:$16 sps:$4 sm:$0xff]   ;;  %v8552_v12 = vld [vmem:[#allocation5 + $0x384] ss:$16 sps:$4 sm:$0xff]  }
 0x105   :  { %5297 = vmatpush1.bf16.msra.mxu0 %v8458_v16  ;;  %5813 = vmatpush1.bf16.msra.mxu1 %v8459_v17  ;;  %v8468_v16 = vld [vmem:[#allocation2 + $0x4] ss:$24 sps:$4 sm:$0xff]   ;;  %v8471_v17 = vld [vmem:[#allocation2 + $0x34] ss:$24 sps:$4 sm:$0xff]  }
 0x106   :  { %5298 = vmatprep.subr.bf16.mxu0 %v8460_v20  ;;  %5814 = vmatprep.subr.bf16.mxu1 %v8462_v21  ;;  %v8561_v20 = vld [vmem:[#allocation5 + $0x3ac] ss:$16 sps:$4 sm:$0xff]  }
 0x107   :  { %v8474_v21 = vld [vmem:[#allocation2 + $0x64] ss:$24 sps:$4 sm:$0xff]  }
 0x109   :  { %5299 = vmatpush1.bf16.msra.mxu0 %v8464_v22  ;;  %5815 = vmatpush1.bf16.msra.mxu1 %v8465_v23  ;;  %v8477_v22 = vld [vmem:[#allocation2 + $0x94] ss:$24 sps:$4 sm:$0xff]   ;;  %v8556_v23 = vld [vmem:[#allocation5 + $0x3a0] ss:$16 sps:$4 sm:$0xff]  }
 0x10a   :  { %5311 = vmatprep.subr.bf16.mxu0 %v8480_v24  ;;  %5827 = vmatprep.subr.bf16.mxu1 %v8483_v25  ;;  %v8559_v24 = vld [vmem:[#allocation5 + $0x3a8] ss:$16 sps:$4 sm:$0xff]   ;;  %v8564_v25 = vld [vmem:[#allocation5 + $0x3c4] ss:$16 sps:$4 sm:$0xff]  }
 0x10c   :  { %5301 = vmatmul.mubr.bf16.vlgmr.msra.gmra.mrb[0].mxu0 %v1124_v28  ;;  %5817 = vmatmul.mubr.bf16.vlgmr.msra.gmra.mrb[0].mxu1 %v1124_v28  ;;  %v1031_v28 = vrot.slane %v8471_v17, %v10197_v54  ;;  %v8624_v17 = vld [vmem:[#allocation5 + $0x504] ss:$16 sps:$4 sm:$0xff]  }
 0x10d   :  { %5312 = vmatpush1.bf16.msra.mxu0 %v8478_v26  ;;  %5828 = vmatpush1.bf16.msra.mxu1 %v8481_v27  ;;  %v8567_v26 = vld [vmem:[#allocation5 + $0x3cc] ss:$16 sps:$4 sm:$0xff]   ;;  %v1017_v27 = vrot.slane %v8468_v16, %v10197_v54  ;;  %v8619_v16 = vld [vmem:[#allocation5 + $0x4e8] ss:$16 sps:$4 sm:$0xff]  }
 0x10e   :  { %5313 = vmatprep.subr.bf16.mxu0 %v8486_v29  ;;  %5829 = vmatprep.subr.bf16.mxu1 %v8489_v30  ;;  %v1045_v29 = vrot.slane %v8474_v21, %v10197_v54  ;;  %v1059_v30 = vrot.slane %v8477_v22, %v10197_v54  ;;  %v8625_v21 = vld [vmem:[#allocation5 + $0x508] ss:$16 sps:$4 sm:$0xff]   ;;  %v8630_v22 = vld [vmem:[#allocation5 + $0x524] ss:$16 sps:$4 sm:$0xff]  }
 0x10f   :  { %5343 = vmatprep.mubr.bf16.mxu0 %v1129_v31  ;;  %5859 = vmatprep.mubr.bf16.mxu1 %v1129_v31  ;;  %v8562_v31 = vld [vmem:[#allocation5 + $0x3c0] ss:$16 sps:$4 sm:$0xff]  }
 0x111   :  { %5314 = vmatpush1.bf16.msra.mxu0 %v8484_v32  ;;  %5830 = vmatpush1.bf16.msra.mxu1 %v8487_v33  ;;  %v8565_v32 = vld [vmem:[#allocation5 + $0x3c8] ss:$16 sps:$4 sm:$0xff]   ;;  %v8570_v33 = vld [vmem:[#allocation5 + $0x3e4] ss:$16 sps:$4 sm:$0xff]  }
 0x112   :  { %5315 = vmatprep.subr.bf16.mxu0 %v8492_v34  ;;  %5831 = vmatprep.subr.bf16.mxu1 %v8495_v35  ;;  %v8573_v34 = vld [vmem:[#allocation5 + $0x3ec] ss:$16 sps:$4 sm:$0xff]   ;;  %v1063_v35 = vcombine.high %v1017_v27, %v1031_v28 }
 0x115   :  { %5316 = vmatpush1.bf16.msra.mxu0 %v8490_v36  ;;  %5832 = vmatpush1.bf16.msra.mxu1 %v8493_v37  ;;  %v1067_v36 = vcombine.high %v1045_v29, %v1059_v30  ;;  %v8568_v37 = vld [vmem:[#allocation5 + $0x3e0] ss:$16 sps:$4 sm:$0xff]  }
 0x116   :  { %5317 = vmatprep.subr.bf16.mxu0 %v8498_v38  ;;  %5833 = vmatprep.subr.bf16.mxu1 %v8501_v39  ;;  %v8571_v38 = vld [vmem:[#allocation5 + $0x3e8] ss:$16 sps:$4 sm:$0xff]   ;;  %v1062_v39 = vcombine.low %v1017_v27, %v1031_v28  ;;  %v8639_v27 = vld [vmem:[#allocation5 + $0x54c] ss:$16 sps:$4 sm:$0xff]   ;;  %v8634_v28 = vld [vmem:[#allocation5 + $0x540] ss:$16 sps:$4 sm:$0xff]  }
 0x119   :  { %5318 = vmatpush1.bf16.msra.mxu0 %v8496_v40  ;;  %5834 = vmatpush1.bf16.msra.mxu1 %v8499_v41  ;;  %v1066_v40 = vcombine.low %v1045_v29, %v1059_v30  ;;  %v8576_v41 = vld [vmem:[#allocation5 + $0x404] ss:$16 sps:$4 sm:$0xff]   ;;  %v8637_v29 = vld [vmem:[#allocation5 + $0x548] ss:$16 sps:$4 sm:$0xff]  }
 0x11a   :  { %5319 = vmatprep.subr.bf16.mxu0 %v8504_v42  ;;  %5835 = vmatprep.subr.bf16.mxu1 %v8507_v43  ;;  %v8579_v42 = vld [vmem:[#allocation5 + $0x40c] ss:$16 sps:$4 sm:$0xff]   ;;  %v1095_v43 = vrot.slane %v1063_v35, %v10197_v54  ;;  %v8642_v30 = vld [vmem:[#allocation5 + $0x564] ss:$16 sps:$4 sm:$0xff]  }
 0x11b   :  { %v8651_v35 = vld [vmem:[#allocation5 + $0x58c] ss:$16 sps:$4 sm:$0xff]  }
 0x11d   :  { %5320 = vmatpush1.bf16.msra.mxu0 %v8502_v44  ;;  %5836 = vmatpush1.bf16.msra.mxu1 %v8505_v45  ;;  %v1123_v44 = vrot.slane %v1067_v36, %v10197_v54  ;;  %v8574_v45 = vld [vmem:[#allocation5 + $0x400] ss:$16 sps:$4 sm:$0xff]  }
 0x11e   :  { %5321 = vmatprep.subr.bf16.mxu0 %v8510_v46  ;;  %5837 = vmatprep.subr.bf16.mxu1 %v8513_v47  ;;  %v8577_v46 = vld [vmem:[#allocation5 + $0x408] ss:$16 sps:$4 sm:$0xff]   ;;  %v10216_v47 = vrot.slane %v1062_v39, %v10197_v54  ;;  %v8646_v36 = vld [vmem:[#allocation5 + $0x580] ss:$16 sps:$4 sm:$0xff]   ;;  %v8657_v39 = vld [vmem:[#allocation5 + $0x5ac] ss:$16 sps:$4 sm:$0xff]  }
 0x121   :  { %5322 = vmatpush1.bf16.msra.mxu0 %v8508_v49  ;;  %5838 = vmatpush1.bf16.msra.mxu1 %v8511_v50  ;;  %v10219_v49 = vrot.slane %v1066_v40, %v10197_v54  ;;  %v8582_v50 = vld [vmem:[#allocation5 + $0x424] ss:$16 sps:$4 sm:$0xff]   ;;  %v8652_v40 = vld [vmem:[#allocation5 + $0x5a0] ss:$16 sps:$4 sm:$0xff]  }
 0x122   :  { %5323 = vmatprep.subr.bf16.mxu0 %v8516_v51  ;;  %5839 = vmatprep.subr.bf16.mxu1 %v8519_v52  ;;  %v10221_v51 = vcombine.high %v1095_v43, %v1123_v44  ;;  %v8585_v52 = vld [vmem:[#allocation5 + $0x42c] ss:$16 sps:$4 sm:$0xff]  }
 0x125   :  { %5324 = vmatpush1.bf16.msra.mxu0 %v8514_v53  ;;  %5840 = vmatpush1.bf16.msra.mxu1 %v8517_v55  ;;  %v10225_v53 = vcombine.high %v10216_v47, %v10219_v49  ;;  %v1130_v55 = vcombine.low %v1095_v43, %v1123_v44  ;;  %v8663_v43 = vld [vmem:[#allocation5 + $0x5cc] ss:$16 sps:$4 sm:$0xff]   ;;  %v8658_v44 = vld [vmem:[#allocation5 + $0x5c0] ss:$16 sps:$4 sm:$0xff]  }
 0x126   :  { %5325 = vmatprep.subr.bf16.mxu0 %v8522_v56  ;;  %5841 = vmatprep.subr.bf16.mxu1 %v8525_v57  ;;  %v8580_v56 = vld [vmem:[#allocation5 + $0x420] ss:$16 sps:$4 sm:$0xff]   ;;  %v8583_v57 = vld [vmem:[#allocation5 + $0x428] ss:$16 sps:$4 sm:$0xff]  }
 0x129   :  { %5326 = vmatpush1.bf16.msra.mxu0 %v8520_v58  ;;  %5842 = vmatpush1.bf16.msra.mxu1 %v8523_v59  ;;  %v8588_v58 = vld [vmem:[#allocation5 + $0x444] ss:$16 sps:$4 sm:$0xff]   ;;  %v8591_v59 = vld [vmem:[#allocation5 + $0x44c] ss:$16 sps:$4 sm:$0xff]  }
 0x12a   :  { %5327 = vmatprep.subr.bf16.mxu0 %v8528_v60  ;;  %5843 = vmatprep.subr.bf16.mxu1 %v8531_v61  ;;  %v8586_v60 = vld [vmem:[#allocation5 + $0x440] ss:$16 sps:$4 sm:$0xff]   ;;  %v8589_v61 = vld [vmem:[#allocation5 + $0x448] ss:$16 sps:$4 sm:$0xff]  }
 0x12d   :  { %5328 = vmatpush1.bf16.msra.mxu0 %v8526_v62  ;;  %5844 = vmatpush1.bf16.msra.mxu1 %v8529_v63  ;;  %v8594_v62 = vld [vmem:[#allocation5 + $0x464] ss:$16 sps:$4 sm:$0xff]   ;;  %v8597_v63 = vld [vmem:[#allocation5 + $0x46c] ss:$16 sps:$4 sm:$0xff]  }
 0x12e   :  { %5329 = vmatprep.subr.bf16.mxu0 %v8534_v0  ;;  %5845 = vmatprep.subr.bf16.mxu1 %v8537_v1  ;;  %v8592_v0 = vld [vmem:[#allocation5 + $0x460] ss:$16 sps:$4 sm:$0xff]   ;;  %v8600_v1 = vld [vmem:[#allocation5 + $0x484] ss:$16 sps:$4 sm:$0xff]  }
 0x131   :  { %5330 = vmatpush1.bf16.msra.mxu0 %v8532_v2  ;;  %5846 = vmatpush1.bf16.msra.mxu1 %v8535_v3  ;;  %v8603_v2 = vld [vmem:[#allocation5 + $0x48c] ss:$16 sps:$4 sm:$0xff]   ;;  %v8598_v3 = vld [vmem:[#allocation5 + $0x480] ss:$16 sps:$4 sm:$0xff]  }
 0x132   :  { %5331 = vmatprep.subr.bf16.mxu0 %v8540_v4  ;;  %5847 = vmatprep.subr.bf16.mxu1 %v8543_v5  ;;  %v8601_v4 = vld [vmem:[#allocation5 + $0x488] ss:$16 sps:$4 sm:$0xff]   ;;  %v8606_v5 = vld [vmem:[#allocation5 + $0x4a4] ss:$16 sps:$4 sm:$0xff]  }
 0x135   :  { %5332 = vmatpush1.bf16.msra.mxu0 %v8538_v6  ;;  %5848 = vmatpush1.bf16.msra.mxu1 %v8541_v7  ;;  %v8609_v6 = vld [vmem:[#allocation5 + $0x4ac] ss:$16 sps:$4 sm:$0xff]   ;;  %v8604_v7 = vld [vmem:[#allocation5 + $0x4a0] ss:$16 sps:$4 sm:$0xff]  }
 0x136   :  { %5333 = vmatprep.subr.bf16.mxu0 %v8546_v8  ;;  %5849 = vmatprep.subr.bf16.mxu1 %v8549_v9  ;;  %v8607_v8 = vld [vmem:[#allocation5 + $0x4a8] ss:$16 sps:$4 sm:$0xff]   ;;  %v8612_v9 = vld [vmem:[#allocation5 + $0x4c4] ss:$16 sps:$4 sm:$0xff]  }
 0x139   :  { %5334 = vmatpush1.bf16.msra.mxu0 %v8544_v10  ;;  %5850 = vmatpush1.bf16.msra.mxu1 %v8547_v11  ;;  %v8615_v10 = vld [vmem:[#allocation5 + $0x4cc] ss:$16 sps:$4 sm:$0xff]   ;;  %v8610_v11 = vld [vmem:[#allocation5 + $0x4c0] ss:$16 sps:$4 sm:$0xff]  }
 0x13a   :  { %5335 = vmatprep.subr.bf16.mxu0 %v8552_v12  ;;  %5851 = vmatprep.subr.bf16.mxu1 %v8555_v13  ;;  %v8613_v12 = vld [vmem:[#allocation5 + $0x4c8] ss:$16 sps:$4 sm:$0xff]   ;;  %v8618_v13 = vld [vmem:[#allocation5 + $0x4e4] ss:$16 sps:$4 sm:$0xff]  }
 0x13d   :  { %5336 = vmatpush1.bf16.msra.mxu0 %v8550_v14  ;;  %5852 = vmatpush1.bf16.msra.mxu1 %v8553_v15  ;;  %v8621_v14 = vld [vmem:[#allocation5 + $0x4ec] ss:$16 sps:$4 sm:$0xff]   ;;  %v8616_v15 = vld [vmem:[#allocation5 + $0x4e0] ss:$16 sps:$4 sm:$0xff]  }
 0x13e   :  { %5337 = vmatprep.subr.bf16.mxu0 %v8558_v18  ;;  %5853 = vmatprep.subr.bf16.mxu1 %v8561_v20  ;;  %v8627_v18 = vld [vmem:[#allocation5 + $0x50c] ss:$16 sps:$4 sm:$0xff]   ;;  %v8622_v20 = vld [vmem:[#allocation5 + $0x500] ss:$16 sps:$4 sm:$0xff]  }
 0x141   :  { %5338 = vmatpush1.bf16.msra.mxu0 %v8556_v23  ;;  %5854 = vmatpush1.bf16.msra.mxu1 %v8559_v24  ;;  %v8633_v23 = vld [vmem:[#allocation5 + $0x52c] ss:$16 sps:$4 sm:$0xff]   ;;  %v8628_v24 = vld [vmem:[#allocation5 + $0x520] ss:$16 sps:$4 sm:$0xff]  }
 0x142   :  { %5339 = vmatprep.subr.bf16.mxu0 %v8564_v25  ;;  %5855 = vmatprep.subr.bf16.mxu1 %v8567_v26  ;;  %v8631_v25 = vld [vmem:[#allocation5 + $0x528] ss:$16 sps:$4 sm:$0xff]   ;;  %v8636_v26 = vld [vmem:[#allocation5 + $0x544] ss:$16 sps:$4 sm:$0xff]  }
 0x145   :  { %5340 = vmatpush1.bf16.msra.mxu0 %v8562_v31  ;;  %5856 = vmatpush1.bf16.msra.mxu1 %v8565_v32  ;;  %v8645_v31 = vld [vmem:[#allocation5 + $0x56c] ss:$16 sps:$4 sm:$0xff]   ;;  %v8640_v32 = vld [vmem:[#allocation5 + $0x560] ss:$16 sps:$4 sm:$0xff]  }
 0x146   :  { %5341 = vmatprep.subr.bf16.mxu0 %v8570_v33  ;;  %5857 = vmatprep.subr.bf16.mxu1 %v8573_v34  ;;  %v8643_v33 = vld [vmem:[#allocation5 + $0x568] ss:$16 sps:$4 sm:$0xff]   ;;  %v8648_v34 = vld [vmem:[#allocation5 + $0x584] ss:$16 sps:$4 sm:$0xff]  }
 0x149   :  { %5342 = vmatpush1.bf16.msra.mxu0 %v8568_v37  ;;  %5858 = vmatpush1.bf16.msra.mxu1 %v8571_v38  ;;  %v8649_v37 = vld [vmem:[#allocation5 + $0x588] ss:$16 sps:$4 sm:$0xff]   ;;  %v8654_v38 = vld [vmem:[#allocation5 + $0x5a4] ss:$16 sps:$4 sm:$0xff]  }
 0x14a   :  { %5354 = vmatprep.subr.bf16.mxu0 %v8576_v41  ;;  %5870 = vmatprep.subr.bf16.mxu1 %v8579_v42  ;;  %v8655_v41 = vld [vmem:[#allocation5 + $0x5a8] ss:$16 sps:$4 sm:$0xff]   ;;  %v8660_v42 = vld [vmem:[#allocation5 + $0x5c4] ss:$16 sps:$4 sm:$0xff]  }
 0x14c   :  { %5344 = vmatmul.mubr.bf16.vlgmr.msra.gmra.mrb[0].mxu0 %v10207_v19  ;;  %5860 = vmatmul.mubr.bf16.vlgmr.msra.gmra.mrb[0].mxu1 %v10207_v19  ;;  %v8595_v19 = vld [vmem:[#allocation5 + $0x468] ss:$16 sps:$4 sm:$0xff]  }
 0x14d   :  { %5355 = vmatpush1.bf16.msra.mxu0 %v8574_v45  ;;  %5871 = vmatpush1.bf16.msra.mxu1 %v8577_v46  ;;  %v8661_v45 = vld [vmem:[#allocation5 + $0x5c8] ss:$16 sps:$4 sm:$0xff]   ;;  %v8666_v46 = vld [vmem:[#allocation5 + $0x5e4] ss:$16 sps:$4 sm:$0xff]  }
 0x14e   :  { %5356 = vmatprep.subr.bf16.mxu0 %v8582_v50  ;;  %5872 = vmatprep.subr.bf16.mxu1 %v8585_v52  ;;  %v8669_v50 = vld [vmem:[#allocation5 + $0x5ec] ss:$16 sps:$4 sm:$0xff]   ;;  %v8664_v52 = vld [vmem:[#allocation5 + $0x5e0] ss:$16 sps:$4 sm:$0xff]  }
 0x14f   :  { %5386 = vmatprep.mubr.bf16.mxu0 %v1130_v55  ;;  %5902 = vmatprep.mubr.bf16.mxu1 %v1130_v55  ;;  %v8667_v55 = vld [vmem:[#allocation5 + $0x5e8] ss:$16 sps:$4 sm:$0xff]  }
 0x151   :  { %5357 = vmatpush1.bf16.msra.mxu0 %v8580_v56  ;;  %5873 = vmatpush1.bf16.msra.mxu1 %v8583_v57  ;;  %v8672_v56 = vld [vmem:[#allocation5 + $0x604] ss:$16 sps:$4 sm:$0xff]   ;;  %v8675_v57 = vld [vmem:[#allocation5 + $0x60c] ss:$16 sps:$4 sm:$0xff]  }
 0x152   :  { %5358 = vmatprep.subr.bf16.mxu0 %v8588_v58  ;;  %5874 = vmatprep.subr.bf16.mxu1 %v8591_v59  ;;  %v8670_v58 = vld [vmem:[#allocation5 + $0x600] ss:$16 sps:$4 sm:$0xff]   ;;  %v8673_v59 = vld [vmem:[#allocation5 + $0x608] ss:$16 sps:$4 sm:$0xff]  }
 0x155   :  { %5359 = vmatpush1.bf16.msra.mxu0 %v8586_v60  ;;  %5875 = vmatpush1.bf16.msra.mxu1 %v8589_v61  ;;  %v1126_v60 = vcombine.low %v10216_v47, %v10219_v49  ;;  %v8678_v61 = vld [vmem:[#allocation5 + $0x624] ss:$16 sps:$4 sm:$0xff]   ;;  %v8682_v47 = vld [vmem:[#allocation5 + $0x640] ss:$16 sps:$4 sm:$0xff]   ;;  %v8685_v49 = vld [vmem:[#allocation5 + $0x648] ss:$16 sps:$4 sm:$0xff]  }
 0x156   :  { %5360 = vmatprep.subr.bf16.mxu0 %v8594_v62  ;;  %5876 = vmatprep.subr.bf16.mxu1 %v8597_v63  ;;  %v8681_v62 = vld [vmem:[#allocation5 + $0x62c] ss:$16 sps:$4 sm:$0xff]   ;;  %v8676_v63 = vld [vmem:[#allocation5 + $0x620] ss:$16 sps:$4 sm:$0xff]  }
 0x159   :  { %5361 = vmatpush1.bf16.msra.mxu0 %v8592_v0  ;;  %5877 = vmatpush1.bf16.msra.mxu1 %v8595_v19  ;;  %v8679_v0 = vld [vmem:[#allocation5 + $0x628] ss:$16 sps:$4 sm:$0xff]   ;;  %v8684_v19 = vld [vmem:[#allocation5 + $0x644] ss:$16 sps:$4 sm:$0xff]  }
 0x15a   :  { %5362 = vmatprep.subr.bf16.mxu0 %v8600_v1  ;;  %5878 = vmatprep.subr.bf16.mxu1 %v8603_v2  ;;  %v8687_v1 = vld [vmem:[#allocation5 + $0x64c] ss:$16 sps:$4 sm:$0xff]   ;;  %v8690_v2 = vld [vmem:[#allocation5 + $0x664] ss:$16 sps:$4 sm:$0xff]  }
 0x15d   :  { %5363 = vmatpush1.bf16.msra.mxu0 %v8598_v3  ;;  %5879 = vmatpush1.bf16.msra.mxu1 %v8601_v4  ;;  %v8693_v3 = vld [vmem:[#allocation5 + $0x66c] ss:$16 sps:$4 sm:$0xff]   ;;  %v8688_v4 = vld [vmem:[#allocation5 + $0x660] ss:$16 sps:$4 sm:$0xff]  }
 0x15e   :  { %5364 = vmatprep.subr.bf16.mxu0 %v8606_v5  ;;  %5880 = vmatprep.subr.bf16.mxu1 %v8609_v6  ;;  %v8691_v5 = vld [vmem:[#allocation5 + $0x668] ss:$16 sps:$4 sm:$0xff]   ;;  %v8696_v6 = vld [vmem:[#allocation5 + $0x684] ss:$16 sps:$4 sm:$0xff]  }
 0x161   :  { %5365 = vmatpush1.bf16.msra.mxu0 %v8604_v7  ;;  %5881 = vmatpush1.bf16.msra.mxu1 %v8607_v8  ;;  %v8699_v7 = vld [vmem:[#allocation5 + $0x68c] ss:$16 sps:$4 sm:$0xff]   ;;  %v8694_v8 = vld [vmem:[#allocation5 + $0x680] ss:$16 sps:$4 sm:$0xff]  }
 0x162   :  { %5366 = vmatprep.subr.bf16.mxu0 %v8612_v9  ;;  %5882 = vmatprep.subr.bf16.mxu1 %v8615_v10  ;;  %v8697_v9 = vld [vmem:[#allocation5 + $0x688] ss:$16 sps:$4 sm:$0xff]   ;;  %v8705_v10 = vld [vmem:[#allocation5 + $0x6ac] ss:$16 sps:$4 sm:$0xff]  }
 0x165   :  { %5367 = vmatpush1.bf16.msra.mxu0 %v8610_v11  ;;  %5883 = vmatpush1.bf16.msra.mxu1 %v8613_v12  ;;  %v8700_v11 = vld [vmem:[#allocation5 + $0x6a0] ss:$16 sps:$4 sm:$0xff]   ;;  %v8703_v12 = vld [vmem:[#allocation5 + $0x6a8] ss:$16 sps:$4 sm:$0xff]  }
 0x166   :  { %5368 = vmatprep.subr.bf16.mxu0 %v8618_v13  ;;  %5884 = vmatprep.subr.bf16.mxu1 %v8621_v14  ;;  %v8708_v13 = vld [vmem:[#allocation5 + $0x6c4] ss:$16 sps:$4 sm:$0xff]   ;;  %v8711_v14 = vld [vmem:[#allocation5 + $0x6cc] ss:$16 sps:$4 sm:$0xff]  }
 0x169   :  { %5369 = vmatpush1.bf16.msra.mxu0 %v8616_v15  ;;  %5885 = vmatpush1.bf16.msra.mxu1 %v8619_v16  ;;  %v8706_v15 = vld [vmem:[#allocation5 + $0x6c0] ss:$16 sps:$4 sm:$0xff]   ;;  %v8709_v16 = vld [vmem:[#allocation5 + $0x6c8] ss:$16 sps:$4 sm:$0xff]  }
 0x16a   :  { %5370 = vmatprep.subr.bf16.mxu0 %v8624_v17  ;;  %5886 = vmatprep.subr.bf16.mxu1 %v8627_v18  ;;  %v8714_v17 = vld [vmem:[#allocation5 + $0x6e4] ss:$16 sps:$4 sm:$0xff]   ;;  %v8717_v18 = vld [vmem:[#allocation5 + $0x6ec] ss:$16 sps:$4 sm:$0xff]  }
 0x16d   :  { %5371 = vmatpush1.bf16.msra.mxu0 %v8622_v20  ;;  %5887 = vmatpush1.bf16.msra.mxu1 %v8625_v21  ;;  %v8712_v20 = vld [vmem:[#allocation5 + $0x6e0] ss:$16 sps:$4 sm:$0xff]   ;;  %v8715_v21 = vld [vmem:[#allocation5 + $0x6e8] ss:$16 sps:$4 sm:$0xff]  }
 0x16e   :  { %5372 = vmatprep.subr.bf16.mxu0 %v8630_v22  ;;  %5888 = vmatprep.subr.bf16.mxu1 %v8633_v23  ;;  %v8720_v22 = vld [vmem:[#allocation5 + $0x704] ss:$16 sps:$4 sm:$0xff]   ;;  %v8723_v23 = vld [vmem:[#allocation5 + $0x70c] ss:$16 sps:$4 sm:$0xff]  }
 0x171   :  { %5373 = vmatpush1.bf16.msra.mxu0 %v8628_v24  ;;  %5889 = vmatpush1.bf16.msra.mxu1 %v8631_v25  ;;  %v8718_v24 = vld [vmem:[#allocation5 + $0x700] ss:$16 sps:$4 sm:$0xff]   ;;  %v8721_v25 = vld [vmem:[#allocation5 + $0x708] ss:$16 sps:$4 sm:$0xff]  }
 0x172   :  { %5374 = vmatprep.subr.bf16.mxu0 %v8636_v26  ;;  %5890 = vmatprep.subr.bf16.mxu1 %v8639_v27  ;;  %v8726_v26 = vld [vmem:[#allocation5 + $0x724] ss:$16 sps:$4 sm:$0xff]   ;;  %v8729_v27 = vld [vmem:[#allocation5 + $0x72c] ss:$16 sps:$4 sm:$0xff]  }
 0x175   :  { %5375 = vmatpush1.bf16.msra.mxu0 %v8634_v28  ;;  %5891 = vmatpush1.bf16.msra.mxu1 %v8637_v29  ;;  %v8724_v28 = vld [vmem:[#allocation5 + $0x720] ss:$16 sps:$4 sm:$0xff]   ;;  %v8727_v29 = vld [vmem:[#allocation5 + $0x728] ss:$16 sps:$4 sm:$0xff]  }
 0x176   :  { %5376 = vmatprep.subr.bf16.mxu0 %v8642_v30  ;;  %5892 = vmatprep.subr.bf16.mxu1 %v8645_v31  ;;  %v8732_v30 = vld [vmem:[#allocation5 + $0x744] ss:$16 sps:$4 sm:$0xff]   ;;  %v8735_v31 = vld [vmem:[#allocation5 + $0x74c] ss:$16 sps:$4 sm:$0xff]  }
 0x179   :  { %5377 = vmatpush1.bf16.msra.mxu0 %v8640_v32  ;;  %5893 = vmatpush1.bf16.msra.mxu1 %v8643_v33  ;;  %v8730_v32 = vld [vmem:[#allocation5 + $0x740] ss:$16 sps:$4 sm:$0xff]   ;;  %v8733_v33 = vld [vmem:[#allocation5 + $0x748] ss:$16 sps:$4 sm:$0xff]  }
 0x17a   :  { %5378 = vmatprep.subr.bf16.mxu0 %v8648_v34  ;;  %5894 = vmatprep.subr.bf16.mxu1 %v8651_v35  ;;  %v8738_v34 = vld [vmem:[#allocation5 + $0x764] ss:$16 sps:$4 sm:$0xff]   ;;  %v8741_v35 = vld [vmem:[#allocation5 + $0x76c] ss:$16 sps:$4 sm:$0xff]  }
 0x17d   :  { %5379 = vmatpush1.bf16.msra.mxu0 %v8646_v36  ;;  %5895 = vmatpush1.bf16.msra.mxu1 %v8649_v37  ;;  %v8736_v36 = vld [vmem:[#allocation5 + $0x760] ss:$16 sps:$4 sm:$0xff]   ;;  %v8739_v37 = vld [vmem:[#allocation5 + $0x768] ss:$16 sps:$4 sm:$0xff]  }
 0x17e   :  { %5380 = vmatprep.subr.bf16.mxu0 %v8654_v38  ;;  %5896 = vmatprep.subr.bf16.mxu1 %v8657_v39  ;;  %v8744_v38 = vld [vmem:[#allocation5 + $0x784] ss:$16 sps:$4 sm:$0xff]   ;;  %v8747_v39 = vld [vmem:[#allocation5 + $0x78c] ss:$16 sps:$4 sm:$0xff]  }
 0x181   :  { %5381 = vmatpush1.bf16.msra.mxu0 %v8652_v40  ;;  %5897 = vmatpush1.bf16.msra.mxu1 %v8655_v41  ;;  %v8742_v40 = vld [vmem:[#allocation5 + $0x780] ss:$16 sps:$4 sm:$0xff]   ;;  %v8745_v41 = vld [vmem:[#allocation5 + $0x788] ss:$16 sps:$4 sm:$0xff]  }
 0x182   :  { %5382 = vmatprep.subr.bf16.mxu0 %v8660_v42  ;;  %5898 = vmatprep.subr.bf16.mxu1 %v8663_v43  ;;  %v8750_v42 = vld [vmem:[#allocation5 + $0x7a4] ss:$16 sps:$4 sm:$0xff]   ;;  %v8753_v43 = vld [vmem:[#allocation5 + $0x7ac] ss:$16 sps:$4 sm:$0xff]  }
 0x185   :  { %5383 = vmatpush1.bf16.msra.mxu0 %v8658_v44  ;;  %5899 = vmatpush1.bf16.msra.mxu1 %v8661_v45  ;;  %v8862_v44 = vld [vmem:[#allocation2 + $0x8] ss:$24 sps:$4 sm:$0xff]   ;;  %v8864_v45 = vld [vmem:[#allocation2 + $0x38] ss:$24 sps:$4 sm:$0xff]  }
 0x186   :  { %5384 = vmatprep.subr.bf16.mxu0 %v8666_v46  ;;  %5900 = vmatprep.subr.bf16.mxu1 %v8669_v50  ;;  %v8866_v46 = vld [vmem:[#allocation2 + $0x68] ss:$24 sps:$4 sm:$0xff]   ;;  %v8868_v50 = vld [vmem:[#allocation2 + $0x98] ss:$24 sps:$4 sm:$0xff]  }
 0x189   :  { %5385 = vmatpush1.bf16.msra.mxu0 %v8664_v52  ;;  %5901 = vmatpush1.bf16.msra.mxu1 %v8667_v55  ;;  %v8748_v52 = vld [vmem:[#allocation5 + $0x7a0] ss:$16 sps:$4 sm:$0xff]   ;;  %v8751_v55 = vld [vmem:[#allocation5 + $0x7a8] ss:$16 sps:$4 sm:$0xff]  }
 0x18a   :  { %5397 = vmatprep.subr.bf16.mxu0 %v8672_v56  ;;  %5913 = vmatprep.subr.bf16.mxu1 %v8675_v57  ;;  %v8756_v56 = vld [vmem:[#allocation5 + $0x7c4] ss:$16 sps:$4 sm:$0xff]   ;;  %v8759_v57 = vld [vmem:[#allocation5 + $0x7cc] ss:$16 sps:$4 sm:$0xff]  }
 0x18c   :  { %5387 = vmatmul.mubr.bf16.vlgmr.msra.gmra.mrb[0].mxu0 %v1126_v60  ;;  %5903 = vmatmul.mubr.bf16.vlgmr.msra.gmra.mrb[0].mxu1 %v1126_v60  ;;  %v1174_v60 = vrot.slane %v8866_v46, %v10197_v54  ;;  %v8817_v46 = vld [vmem:[#allocation5 + $0x908] ss:$16 sps:$4 sm:$0xff]  }
 0x18d   :  { %5398 = vmatpush1.bf16.msra.mxu0 %v8670_v58  ;;  %5914 = vmatpush1.bf16.msra.mxu1 %v8673_v59  ;;  %v1146_v58 = vrot.slane %v8862_v44, %v10197_v54  ;;  %v1160_v59 = vrot.slane %v8864_v45, %v10197_v54  ;;  %v8819_v44 = vld [vmem:[#allocation5 + $0x90c] ss:$16 sps:$4 sm:$0xff]   ;;  %v8814_v45 = vld [vmem:[#allocation5 + $0x900] ss:$16 sps:$4 sm:$0xff]  }
 0x18e   :  { %5399 = vmatprep.subr.bf16.mxu0 %v8678_v61  ;;  %5915 = vmatprep.subr.bf16.mxu1 %v8681_v62  ;;  %v1188_v61 = vrot.slane %v8868_v50, %v10197_v54  ;;  %v8754_v62 = vld [vmem:[#allocation5 + $0x7c0] ss:$16 sps:$4 sm:$0xff]   ;;  %v8822_v50 = vld [vmem:[#allocation5 + $0x924] ss:$16 sps:$4 sm:$0xff]  }
 0x18f   :  { %5429 = vmatprep.mubr.bf16.mxu0 %v10221_v51  ;;  %5945 = vmatprep.mubr.bf16.mxu1 %v10221_v51  ;;  %v8702_v51 = vld [vmem:[#allocation5 + $0x6a4] ss:$16 sps:$4 sm:$0xff]  }
 0x191   :  { %5400 = vmatpush1.bf16.msra.mxu0 %v8676_v63  ;;  %5916 = vmatpush1.bf16.msra.mxu1 %v8679_v0  ;;  %v8757_v63 = vld [vmem:[#allocation5 + $0x7c8] ss:$16 sps:$4 sm:$0xff]   ;;  %v8762_v0 = vld [vmem:[#allocation5 + $0x7e4] ss:$16 sps:$4 sm:$0xff]  }
 0x192   :  { %5401 = vmatprep.subr.bf16.mxu0 %v8684_v19  ;;  %5917 = vmatprep.subr.bf16.mxu1 %v8687_v1  ;;  %v8765_v19 = vld [vmem:[#allocation5 + $0x7ec] ss:$16 sps:$4 sm:$0xff]   ;;  %v1197_v1 = vcombine.high %v1146_v58, %v1160_v59 }
 0x195   :  { %5402 = vmatpush1.bf16.msra.mxu0 %v8682_v47  ;;  %5918 = vmatpush1.bf16.msra.mxu1 %v8685_v49  ;;  %v1201_v47 = vcombine.high %v1174_v60, %v1188_v61  ;;  %v8760_v49 = vld [vmem:[#allocation5 + $0x7e0] ss:$16 sps:$4 sm:$0xff]  }
 0x196   :  { %5403 = vmatprep.subr.bf16.mxu0 %v8690_v2  ;;  %5919 = vmatprep.subr.bf16.mxu1 %v8693_v3  ;;  %v8763_v2 = vld [vmem:[#allocation5 + $0x7e8] ss:$16 sps:$4 sm:$0xff]   ;;  %v1196_v3 = vcombine.low %v1146_v58, %v1160_v59  ;;  %v8831_v58 = vld [vmem:[#allocation5 + $0x94c] ss:$16 sps:$4 sm:$0xff]   ;;  %v8826_v59 = vld [vmem:[#allocation5 + $0x940] ss:$16 sps:$4 sm:$0xff]  }
 0x199   :  { %5404 = vmatpush1.bf16.msra.mxu0 %v8688_v4  ;;  %5920 = vmatpush1.bf16.msra.mxu1 %v8691_v5  ;;  %v1200_v4 = vcombine.low %v1174_v60, %v1188_v61  ;;  %v8768_v5 = vld [vmem:[#allocation5 + $0x804] ss:$16 sps:$4 sm:$0xff]   ;;  %v8829_v60 = vld [vmem:[#allocation5 + $0x948] ss:$16 sps:$4 sm:$0xff]  }
 0x19a   :  { %5405 = vmatprep.subr.bf16.mxu0 %v8696_v6  ;;  %5921 = vmatprep.subr.bf16.mxu1 %v8699_v7  ;;  %v8771_v6 = vld [vmem:[#allocation5 + $0x80c] ss:$16 sps:$4 sm:$0xff]   ;;  %v1224_v7 = vrot.slane %v1197_v1, %v10197_v54  ;;  %v8834_v61 = vld [vmem:[#allocation5 + $0x964] ss:$16 sps:$4 sm:$0xff]  }
 0x19b   :  { %v8843_v1 = vld [vmem:[#allocation5 + $0x98c] ss:$16 sps:$4 sm:$0xff]  }
 0x19d   :  { %5406 = vmatpush1.bf16.msra.mxu0 %v8694_v8  ;;  %5922 = vmatpush1.bf16.msra.mxu1 %v8697_v9  ;;  %v1252_v8 = vrot.slane %v1201_v47, %v10197_v54  ;;  %v8766_v9 = vld [vmem:[#allocation5 + $0x800] ss:$16 sps:$4 sm:$0xff]  }
 0x19e   :  { %5407 = vmatprep.subr.bf16.mxu0 %v8702_v51  ;;  %5923 = vmatprep.subr.bf16.mxu1 %v8705_v10  ;;  %v8769_v51 = vld [vmem:[#allocation5 + $0x808] ss:$16 sps:$4 sm:$0xff]   ;;  %v10240_v10 = vrot.slane %v1196_v3, %v10197_v54  ;;  %v8838_v47 = vld [vmem:[#allocation5 + $0x980] ss:$16 sps:$4 sm:$0xff]   ;;  %v8849_v3 = vld [vmem:[#allocation5 + $0x9ac] ss:$16 sps:$4 sm:$0xff]  }
 0x1a1   :  { %5408 = vmatpush1.bf16.msra.mxu0 %v8700_v11  ;;  %5924 = vmatpush1.bf16.msra.mxu1 %v8703_v12  ;;  %v10243_v11 = vrot.slane %v1200_v4, %v10197_v54  ;;  %v8774_v12 = vld [vmem:[#allocation5 + $0x824] ss:$16 sps:$4 sm:$0xff]   ;;  %v8844_v4 = vld [vmem:[#allocation5 + $0x9a0] ss:$16 sps:$4 sm:$0xff]  }
 0x1a2   :  { %5409 = vmatprep.subr.bf16.mxu0 %v8708_v13  ;;  %5925 = vmatprep.subr.bf16.mxu1 %v8711_v14  ;;  %v10245_v13 = vcombine.high %v1224_v7, %v1252_v8  ;;  %v8777_v14 = vld [vmem:[#allocation5 + $0x82c] ss:$16 sps:$4 sm:$0xff]  }
 0x1a5   :  { %5410 = vmatpush1.bf16.msra.mxu0 %v8706_v15  ;;  %5926 = vmatpush1.bf16.msra.mxu1 %v8709_v16  ;;  %v10249_v15 = vcombine.high %v10240_v10, %v10243_v11  ;;  %v1264_v16 = vcombine.low %v1224_v7, %v1252_v8  ;;  %v8855_v7 = vld [vmem:[#allocation5 + $0x9cc] ss:$16 sps:$4 sm:$0xff]   ;;  %v8850_v8 = vld [vmem:[#allocation5 + $0x9c0] ss:$16 sps:$4 sm:$0xff]  }
 0x1a6   :  { %5411 = vmatprep.subr.bf16.mxu0 %v8714_v17  ;;  %5927 = vmatprep.subr.bf16.mxu1 %v8717_v18  ;;  %v8772_v17 = vld [vmem:[#allocation5 + $0x820] ss:$16 sps:$4 sm:$0xff]   ;;  %v8775_v18 = vld [vmem:[#allocation5 + $0x828] ss:$16 sps:$4 sm:$0xff]  }
 0x1a9   :  { %5412 = vmatpush1.bf16.msra.mxu0 %v8712_v20  ;;  %5928 = vmatpush1.bf16.msra.mxu1 %v8715_v21  ;;  %v8780_v20 = vld [vmem:[#allocation5 + $0x844] ss:$16 sps:$4 sm:$0xff]   ;;  %v8783_v21 = vld [vmem:[#allocation5 + $0x84c] ss:$16 sps:$4 sm:$0xff]  }
 0x1aa   :  { %5413 = vmatprep.subr.bf16.mxu0 %v8720_v22  ;;  %5929 = vmatprep.subr.bf16.mxu1 %v8723_v23  ;;  %v8778_v22 = vld [vmem:[#allocation5 + $0x840] ss:$16 sps:$4 sm:$0xff]   ;;  %v8781_v23 = vld [vmem:[#allocation5 + $0x848] ss:$16 sps:$4 sm:$0xff]  }
 0x1ad   :  { %5414 = vmatpush1.bf16.msra.mxu0 %v8718_v24  ;;  %5930 = vmatpush1.bf16.msra.mxu1 %v8721_v25  ;;  %v8786_v24 = vld [vmem:[#allocation5 + $0x864] ss:$16 sps:$4 sm:$0xff]   ;;  %v8789_v25 = vld [vmem:[#allocation5 + $0x86c] ss:$16 sps:$4 sm:$0xff]  }
 0x1ae   :  { %5415 = vmatprep.subr.bf16.mxu0 %v8726_v26  ;;  %5931 = vmatprep.subr.bf16.mxu1 %v8729_v27  ;;  %v8784_v26 = vld [vmem:[#allocation5 + $0x860] ss:$16 sps:$4 sm:$0xff]   ;;  %v8792_v27 = vld [vmem:[#allocation5 + $0x884] ss:$16 sps:$4 sm:$0xff]  }
 0x1b1   :  { %5416 = vmatpush1.bf16.msra.mxu0 %v8724_v28  ;;  %5932 = vmatpush1.bf16.msra.mxu1 %v8727_v29  ;;  %v8795_v28 = vld [vmem:[#allocation5 + $0x88c] ss:$16 sps:$4 sm:$0xff]   ;;  %v8790_v29 = vld [vmem:[#allocation5 + $0x880] ss:$16 sps:$4 sm:$0xff]  }
 0x1b2   :  { %5417 = vmatprep.subr.bf16.mxu0 %v8732_v30  ;;  %5933 = vmatprep.subr.bf16.mxu1 %v8735_v31  ;;  %v8793_v30 = vld [vmem:[#allocation5 + $0x888] ss:$16 sps:$4 sm:$0xff]   ;;  %v8798_v31 = vld [vmem:[#allocation5 + $0x8a4] ss:$16 sps:$4 sm:$0xff]  }
 0x1b5   :  { %5418 = vmatpush1.bf16.msra.mxu0 %v8730_v32  ;;  %5934 = vmatpush1.bf16.msra.mxu1 %v8733_v33  ;;  %v8801_v32 = vld [vmem:[#allocation5 + $0x8ac] ss:$16 sps:$4 sm:$0xff]   ;;  %v8796_v33 = vld [vmem:[#allocation5 + $0x8a0] ss:$16 sps:$4 sm:$0xff]  }
 0x1b6   :  { %5419 = vmatprep.subr.bf16.mxu0 %v8738_v34  ;;  %5935 = vmatprep.subr.bf16.mxu1 %v8741_v35  ;;  %v8799_v34 = vld [vmem:[#allocation5 + $0x8a8] ss:$16 sps:$4 sm:$0xff]   ;;  %v8804_v35 = vld [vmem:[#allocation5 + $0x8c4] ss:$16 sps:$4 sm:$0xff]  }
 0x1b9   :  { %5420 = vmatpush1.bf16.msra.mxu0 %v8736_v36  ;;  %5936 = vmatpush1.bf16.msra.mxu1 %v8739_v37  ;;  %v8807_v36 = vld [vmem:[#allocation5 + $0x8cc] ss:$16 sps:$4 sm:$0xff]   ;;  %v8802_v37 = vld [vmem:[#allocation5 + $0x8c0] ss:$16 sps:$4 sm:$0xff]  }
 0x1ba   :  { %5421 = vmatprep.subr.bf16.mxu0 %v8744_v38  ;;  %5937 = vmatprep.subr.bf16.mxu1 %v8747_v39  ;;  %v8805_v38 = vld [vmem:[#allocation5 + $0x8c8] ss:$16 sps:$4 sm:$0xff]   ;;  %v8810_v39 = vld [vmem:[#allocation5 + $0x8e4] ss:$16 sps:$4 sm:$0xff]  }
 0x1bd   :  { %5422 = vmatpush1.bf16.msra.mxu0 %v8742_v40  ;;  %5938 = vmatpush1.bf16.msra.mxu1 %v8745_v41  ;;  %v8813_v40 = vld [vmem:[#allocation5 + $0x8ec] ss:$16 sps:$4 sm:$0xff]   ;;  %v8808_v41 = vld [vmem:[#allocation5 + $0x8e0] ss:$16 sps:$4 sm:$0xff]  }
 0x1be   :  { %5423 = vmatprep.subr.bf16.mxu0 %v8750_v42  ;;  %5939 = vmatprep.subr.bf16.mxu1 %v8753_v43  ;;  %v8811_v42 = vld [vmem:[#allocation5 + $0x8e8] ss:$16 sps:$4 sm:$0xff]   ;;  %v8816_v43 = vld [vmem:[#allocation5 + $0x904] ss:$16 sps:$4 sm:$0xff]  }
 0x1c1   :  { %5424 = vmatpush1.bf16.msra.mxu0 %v8748_v52  ;;  %5940 = vmatpush1.bf16.msra.mxu1 %v8751_v55  ;;  %v8825_v52 = vld [vmem:[#allocation5 + $0x92c] ss:$16 sps:$4 sm:$0xff]   ;;  %v8820_v55 = vld [vmem:[#allocation5 + $0x920] ss:$16 sps:$4 sm:$0xff]  }
 0x1c2   :  { %5425 = vmatprep.subr.bf16.mxu0 %v8756_v56  ;;  %5941 = vmatprep.subr.bf16.mxu1 %v8759_v57  ;;  %v8823_v56 = vld [vmem:[#allocation5 + $0x928] ss:$16 sps:$4 sm:$0xff]   ;;  %v8828_v57 = vld [vmem:[#allocation5 + $0x944] ss:$16 sps:$4 sm:$0xff]  }
 0x1c5   :  { %5426 = vmatpush1.bf16.msra.mxu0 %v8754_v62  ;;  %5942 = vmatpush1.bf16.msra.mxu1 %v8757_v63  ;;  %v8837_v62 = vld [vmem:[#allocation5 + $0x96c] ss:$16 sps:$4 sm:$0xff]   ;;  %v8832_v63 = vld [vmem:[#allocation5 + $0x960] ss:$16 sps:$4 sm:$0xff]  }
 0x1c6   :  { %5427 = vmatprep.subr.bf16.mxu0 %v8762_v0  ;;  %5943 = vmatprep.subr.bf16.mxu1 %v8765_v19  ;;  %v8835_v0 = vld [vmem:[#allocation5 + $0x968] ss:$16 sps:$4 sm:$0xff]   ;;  %v8840_v19 = vld [vmem:[#allocation5 + $0x984] ss:$16 sps:$4 sm:$0xff]  }
 0x1c9   :  { %5428 = vmatpush1.bf16.msra.mxu0 %v8760_v49  ;;  %5944 = vmatpush1.bf16.msra.mxu1 %v8763_v2  ;;  %v8841_v49 = vld [vmem:[#allocation5 + $0x988] ss:$16 sps:$4 sm:$0xff]   ;;  %v8846_v2 = vld [vmem:[#allocation5 + $0x9a4] ss:$16 sps:$4 sm:$0xff]  }
 0x1ca   :  { %5440 = vmatprep.subr.bf16.mxu0 %v8768_v5  ;;  %5956 = vmatprep.subr.bf16.mxu1 %v8771_v6  ;;  %v8847_v5 = vld [vmem:[#allocation5 + $0x9a8] ss:$16 sps:$4 sm:$0xff]   ;;  %v8852_v6 = vld [vmem:[#allocation5 + $0x9c4] ss:$16 sps:$4 sm:$0xff]  }
 0x1cc   :  { %5430 = vmatmul.mubr.bf16.vlgmr.msra.gmra.mrb[0].mxu0 %v10225_v53  ;;  %5946 = vmatmul.mubr.bf16.vlgmr.msra.gmra.mrb[0].mxu1 %v10225_v53  ;;  %v8787_v53 = vld [vmem:[#allocation5 + $0x868] ss:$16 sps:$4 sm:$0xff]  }
 0x1cd   :  { %5441 = vmatpush1.bf16.msra.mxu0 %v8766_v9  ;;  %5957 = vmatpush1.bf16.msra.mxu1 %v8769_v51  ;;  %v8853_v9 = vld [vmem:[#allocation5 + $0x9c8] ss:$16 sps:$4 sm:$0xff]   ;;  %v8858_v51 = vld [vmem:[#allocation5 + $0x9e4] ss:$16 sps:$4 sm:$0xff]  }
 0x1ce   :  { %5442 = vmatprep.subr.bf16.mxu0 %v8774_v12  ;;  %5958 = vmatprep.subr.bf16.mxu1 %v8777_v14  ;;  %v8861_v12 = vld [vmem:[#allocation5 + $0x9ec] ss:$16 sps:$4 sm:$0xff]   ;;  %v8856_v14 = vld [vmem:[#allocation5 + $0x9e0] ss:$16 sps:$4 sm:$0xff]  }
 0x1cf   :  { %5472 = vmatprep.mubr.bf16.mxu0 %v1264_v16  ;;  %5988 = vmatprep.mubr.bf16.mxu1 %v1264_v16  ;;  %v8859_v16 = vld [vmem:[#allocation5 + $0x9e8] ss:$16 sps:$4 sm:$0xff]  }
 0x1d1   :  { %5443 = vmatpush1.bf16.msra.mxu0 %v8772_v17  ;;  %5959 = vmatpush1.bf16.msra.mxu1 %v8775_v18  ;;  %v8872_v17 = vld [vmem:[#allocation5 + $0xa04] ss:$16 sps:$4 sm:$0xff]   ;;  %v8875_v18 = vld [vmem:[#allocation5 + $0xa0c] ss:$16 sps:$4 sm:$0xff]  }
 0x1d2   :  { %5444 = vmatprep.subr.bf16.mxu0 %v8780_v20  ;;  %5960 = vmatprep.subr.bf16.mxu1 %v8783_v21  ;;  %v1260_v20 = vcombine.low %v10240_v10, %v10243_v11  ;;  %v8870_v21 = vld [vmem:[#allocation5 + $0xa00] ss:$16 sps:$4 sm:$0xff]   ;;  %v8885_v11 = vld [vmem:[#allocation5 + $0xa48] ss:$16 sps:$4 sm:$0xff]  }
 0x1d3   :  { %v8882_v10 = vld [vmem:[#allocation5 + $0xa40] ss:$16 sps:$4 sm:$0xff]  }
 0x1d5   :  { %5445 = vmatpush1.bf16.msra.mxu0 %v8778_v22  ;;  %5961 = vmatpush1.bf16.msra.mxu1 %v8781_v23  ;;  %v8873_v22 = vld [vmem:[#allocation5 + $0xa08] ss:$16 sps:$4 sm:$0xff]   ;;  %v8878_v23 = vld [vmem:[#allocation5 + $0xa24] ss:$16 sps:$4 sm:$0xff]  }
 0x1d6   :  { %5446 = vmatprep.subr.bf16.mxu0 %v8786_v24  ;;  %5962 = vmatprep.subr.bf16.mxu1 %v8789_v25  ;;  %v8881_v24 = vld [vmem:[#allocation5 + $0xa2c] ss:$16 sps:$4 sm:$0xff]   ;;  %v8876_v25 = vld [vmem:[#allocation5 + $0xa20] ss:$16 sps:$4 sm:$0xff]  }
 0x1d9   :  { %5447 = vmatpush1.bf16.msra.mxu0 %v8784_v26  ;;  %5963 = vmatpush1.bf16.msra.mxu1 %v8787_v53  ;;  %v8879_v26 = vld [vmem:[#allocation5 + $0xa28] ss:$16 sps:$4 sm:$0xff]   ;;  %v8884_v53 = vld [vmem:[#allocation5 + $0xa44] ss:$16 sps:$4 sm:$0xff]  }
 0x1da   :  { %5448 = vmatprep.subr.bf16.mxu0 %v8792_v27  ;;  %5964 = vmatprep.subr.bf16.mxu1 %v8795_v28  ;;  %v8887_v27 = vld [vmem:[#allocation5 + $0xa4c] ss:$16 sps:$4 sm:$0xff]   ;;  %v8890_v28 = vld [vmem:[#allocation5 + $0xa64] ss:$16 sps:$4 sm:$0xff]  }
 0x1dd   :  { %5449 = vmatpush1.bf16.msra.mxu0 %v8790_v29  ;;  %5965 = vmatpush1.bf16.msra.mxu1 %v8793_v30  ;;  %v8893_v29 = vld [vmem:[#allocation5 + $0xa6c] ss:$16 sps:$4 sm:$0xff]   ;;  %v8888_v30 = vld [vmem:[#allocation5 + $0xa60] ss:$16 sps:$4 sm:$0xff]  }
 0x1de   :  { %5450 = vmatprep.subr.bf16.mxu0 %v8798_v31  ;;  %5966 = vmatprep.subr.bf16.mxu1 %v8801_v32  ;;  %v8891_v31 = vld [vmem:[#allocation5 + $0xa68] ss:$16 sps:$4 sm:$0xff]   ;;  %v8896_v32 = vld [vmem:[#allocation5 + $0xa84] ss:$16 sps:$4 sm:$0xff]  }
 0x1e1   :  { %5451 = vmatpush1.bf16.msra.mxu0 %v8796_v33  ;;  %5967 = vmatpush1.bf16.msra.mxu1 %v8799_v34  ;;  %v8899_v33 = vld [vmem:[#allocation5 + $0xa8c] ss:$16 sps:$4 sm:$0xff]   ;;  %v8894_v34 = vld [vmem:[#allocation5 + $0xa80] ss:$16 sps:$4 sm:$0xff]  }
 0x1e2   :  { %5452 = vmatprep.subr.bf16.mxu0 %v8804_v35  ;;  %5968 = vmatprep.subr.bf16.mxu1 %v8807_v36  ;;  %v8902_v35 = vld [vmem:[#allocation5 + $0xaa4] ss:$16 sps:$4 sm:$0xff]   ;;  %v8905_v36 = vld [vmem:[#allocation5 + $0xaac] ss:$16 sps:$4 sm:$0xff]  }
 0x1e5   :  { %5453 = vmatpush1.bf16.msra.mxu0 %v8802_v37  ;;  %5969 = vmatpush1.bf16.msra.mxu1 %v8805_v38  ;;  %v8900_v37 = vld [vmem:[#allocation5 + $0xaa0] ss:$16 sps:$4 sm:$0xff]   ;;  %v8903_v38 = vld [vmem:[#allocation5 + $0xaa8] ss:$16 sps:$4 sm:$0xff]  }
 0x1e6   :  { %5454 = vmatprep.subr.bf16.mxu0 %v8810_v39  ;;  %5970 = vmatprep.subr.bf16.mxu1 %v8813_v40  ;;  %v8908_v39 = vld [vmem:[#allocation5 + $0xac4] ss:$16 sps:$4 sm:$0xff]   ;;  %v8911_v40 = vld [vmem:[#allocation5 + $0xacc] ss:$16 sps:$4 sm:$0xff]  }
 0x1e9   :  { %5455 = vmatpush1.bf16.msra.mxu0 %v8808_v41  ;;  %5971 = vmatpush1.bf16.msra.mxu1 %v8811_v42  ;;  %v8906_v41 = vld [vmem:[#allocation5 + $0xac0] ss:$16 sps:$4 sm:$0xff]   ;;  %v8909_v42 = vld [vmem:[#allocation5 + $0xac8] ss:$16 sps:$4 sm:$0xff]  }
 0x1ea   :  { %5456 = vmatprep.subr.bf16.mxu0 %v8816_v43  ;;  %5972 = vmatprep.subr.bf16.mxu1 %v8819_v44  ;;  %v8914_v43 = vld [vmem:[#allocation5 + $0xae4] ss:$16 sps:$4 sm:$0xff]   ;;  %v8917_v44 = vld [vmem:[#allocation5 + $0xaec] ss:$16 sps:$4 sm:$0xff]  }
 0x1ed   :  { %5457 = vmatpush1.bf16.msra.mxu0 %v8814_v45  ;;  %5973 = vmatpush1.bf16.msra.mxu1 %v8817_v46  ;;  %v8912_v45 = vld [vmem:[#allocation5 + $0xae0] ss:$16 sps:$4 sm:$0xff]   ;;  %v8915_v46 = vld [vmem:[#allocation5 + $0xae8] ss:$16 sps:$4 sm:$0xff]  }
 0x1ee   :  { %5458 = vmatprep.subr.bf16.mxu0 %v8822_v50  ;;  %5974 = vmatprep.subr.bf16.mxu1 %v8825_v52  ;;  %v8920_v50 = vld [vmem:[#allocation5 + $0xb04] ss:$16 sps:$4 sm:$0xff]   ;;  %v8923_v52 = vld [vmem:[#allocation5 + $0xb0c] ss:$16 sps:$4 sm:$0xff]  }
 0x1f1   :  { %5459 = vmatpush1.bf16.msra.mxu0 %v8820_v55  ;;  %5975 = vmatpush1.bf16.msra.mxu1 %v8823_v56  ;;  %v8918_v55 = vld [vmem:[#allocation5 + $0xb00] ss:$16 sps:$4 sm:$0xff]   ;;  %v8921_v56 = vld [vmem:[#allocation5 + $0xb08] ss:$16 sps:$4 sm:$0xff]  }
 0x1f2   :  { %5460 = vmatprep.subr.bf16.mxu0 %v8828_v57  ;;  %5976 = vmatprep.subr.bf16.mxu1 %v8831_v58  ;;  %v8926_v57 = vld [vmem:[#allocation5 + $0xb24] ss:$16 sps:$4 sm:$0xff]   ;;  %v8929_v58 = vld [vmem:[#allocation5 + $0xb2c] ss:$16 sps:$4 sm:$0xff]  }
 0x1f5   :  { %5461 = vmatpush1.bf16.msra.mxu0 %v8826_v59  ;;  %5977 = vmatpush1.bf16.msra.mxu1 %v8829_v60  ;;  %v8924_v59 = vld [vmem:[#allocation5 + $0xb20] ss:$16 sps:$4 sm:$0xff]   ;;  %v8927_v60 = vld [vmem:[#allocation5 + $0xb28] ss:$16 sps:$4 sm:$0xff]  }
 0x1f6   :  { %5462 = vmatprep.subr.bf16.mxu0 %v8834_v61  ;;  %5978 = vmatprep.subr.bf16.mxu1 %v8837_v62  ;;  %v8932_v61 = vld [vmem:[#allocation5 + $0xb44] ss:$16 sps:$4 sm:$0xff]   ;;  %v8935_v62 = vld [vmem:[#allocation5 + $0xb4c] ss:$16 sps:$4 sm:$0xff]  }
 0x1f9   :  { %5463 = vmatpush1.bf16.msra.mxu0 %v8832_v63  ;;  %5979 = vmatpush1.bf16.msra.mxu1 %v8835_v0  ;;  %v8930_v63 = vld [vmem:[#allocation5 + $0xb40] ss:$16 sps:$4 sm:$0xff]   ;;  %v8933_v0 = vld [vmem:[#allocation5 + $0xb48] ss:$16 sps:$4 sm:$0xff]  }
 0x1fa   :  { %5464 = vmatprep.subr.bf16.mxu0 %v8840_v19  ;;  %5980 = vmatprep.subr.bf16.mxu1 %v8843_v1  ;;  %v8938_v19 = vld [vmem:[#allocation5 + $0xb64] ss:$16 sps:$4 sm:$0xff]   ;;  %v8941_v1 = vld [vmem:[#allocation5 + $0xb6c] ss:$16 sps:$4 sm:$0xff]  }
 0x1fd   :  { %5465 = vmatpush1.bf16.msra.mxu0 %v8838_v47  ;;  %5981 = vmatpush1.bf16.msra.mxu1 %v8841_v49  ;;  %v8936_v47 = vld [vmem:[#allocation5 + $0xb60] ss:$16 sps:$4 sm:$0xff]   ;;  %v8939_v49 = vld [vmem:[#allocation5 + $0xb68] ss:$16 sps:$4 sm:$0xff]  }
 0x1fe   :  { %5466 = vmatprep.subr.bf16.mxu0 %v8846_v2  ;;  %5982 = vmatprep.subr.bf16.mxu1 %v8849_v3  ;;  %v8944_v2 = vld [vmem:[#allocation5 + $0xb84] ss:$16 sps:$4 sm:$0xff]   ;;  %v8947_v3 = vld [vmem:[#allocation5 + $0xb8c] ss:$16 sps:$4 sm:$0xff]  }
 0x201   :  { %5467 = vmatpush1.bf16.msra.mxu0 %v8844_v4  ;;  %5983 = vmatpush1.bf16.msra.mxu1 %v8847_v5  ;;  %v8942_v4 = vld [vmem:[#allocation5 + $0xb80] ss:$16 sps:$4 sm:$0xff]   ;;  %v8945_v5 = vld [vmem:[#allocation5 + $0xb88] ss:$16 sps:$4 sm:$0xff]  }
 0x202   :  { %5468 = vmatprep.subr.bf16.mxu0 %v8852_v6  ;;  %5984 = vmatprep.subr.bf16.mxu1 %v8855_v7  ;;  %v8950_v6 = vld [vmem:[#allocation5 + $0xba4] ss:$16 sps:$4 sm:$0xff]   ;;  %v8953_v7 = vld [vmem:[#allocation5 + $0xbac] ss:$16 sps:$4 sm:$0xff]  }
 0x205   :  { %5469 = vmatpush1.bf16.msra.mxu0 %v8850_v8  ;;  %5985 = vmatpush1.bf16.msra.mxu1 %v8853_v9  ;;  %v9062_v8 = vld [vmem:[#allocation2 + $0xc] ss:$24 sps:$4 sm:$0xff]   ;;  %v9063_v9 = vld [vmem:[#allocation2 + $0x3c] ss:$24 sps:$4 sm:$0xff]  }
 0x206   :  { %5470 = vmatprep.subr.bf16.mxu0 %v8858_v51  ;;  %5986 = vmatprep.subr.bf16.mxu1 %v8861_v12  ;;  %v9064_v51 = vld [vmem:[#allocation2 + $0x6c] ss:$24 sps:$4 sm:$0xff]   ;;  %v9065_v12 = vld [vmem:[#allocation2 + $0x9c] ss:$24 sps:$4 sm:$0xff]  }
 0x209   :  { %5471 = vmatpush1.bf16.msra.mxu0 %v8856_v14  ;;  %5987 = vmatpush1.bf16.msra.mxu1 %v8859_v16  ;;  %v8948_v14 = vld [vmem:[#allocation5 + $0xba0] ss:$16 sps:$4 sm:$0xff]   ;;  %v8951_v16 = vld [vmem:[#allocation5 + $0xba8] ss:$16 sps:$4 sm:$0xff]  }
 0x20a   :  { %5483 = vmatprep.subr.bf16.mxu0 %v8872_v17  ;;  %5999 = vmatprep.subr.bf16.mxu1 %v8875_v18  ;;  %v8956_v17 = vld [vmem:[#allocation5 + $0xbc4] ss:$16 sps:$4 sm:$0xff]   ;;  %v8959_v18 = vld [vmem:[#allocation5 + $0xbcc] ss:$16 sps:$4 sm:$0xff]  }
 0x20c   :  { %5473 = vmatmul.mubr.bf16.vlgmr.msra.gmra.mrb[0].mxu0 %v1260_v20  ;;  %5989 = vmatmul.mubr.bf16.vlgmr.msra.gmra.mrb[0].mxu1 %v1260_v20  ;;  %v1153_v20 = vrot.slane %v9062_v8, %v10197_v54  ;;  %v9019_v8 = vld [vmem:[#allocation5 + $0xd0c] ss:$16 sps:$4 sm:$0xff]  }
 0x20d   :  { %5484 = vmatpush1.bf16.msra.mxu0 %v8870_v21  ;;  %6000 = vmatpush1.bf16.msra.mxu1 %v8873_v22  ;;  %v1167_v21 = vrot.slane %v9063_v9, %v10197_v54  ;;  %v1181_v22 = vrot.slane %v9064_v51, %v10197_v54  ;;  %v9014_v9 = vld [vmem:[#allocation5 + $0xd00] ss:$16 sps:$4 sm:$0xff]   ;;  %v9017_v51 = vld [vmem:[#allocation5 + $0xd08] ss:$16 sps:$4 sm:$0xff]  }
 0x20e   :  { %5485 = vmatprep.subr.bf16.mxu0 %v8878_v23  ;;  %6001 = vmatprep.subr.bf16.mxu1 %v8881_v24  ;;  %v1195_v23 = vrot.slane %v9065_v12, %v10197_v54  ;;  %v8954_v24 = vld [vmem:[#allocation5 + $0xbc0] ss:$16 sps:$4 sm:$0xff]   ;;  %v9022_v12 = vld [vmem:[#allocation5 + $0xd24] ss:$16 sps:$4 sm:$0xff]  }
 0x20f   :  { %5515 = vmatprep.mubr.bf16.mxu0 %v10245_v13  ;;  %6031 = vmatprep.mubr.bf16.mxu1 %v10245_v13  ;;  %v8897_v13 = vld [vmem:[#allocation5 + $0xa88] ss:$16 sps:$4 sm:$0xff]  }
 0x211   :  { %5486 = vmatpush1.bf16.msra.mxu0 %v8876_v25  ;;  %6002 = vmatpush1.bf16.msra.mxu1 %v8879_v26  ;;  %v8957_v25 = vld [vmem:[#allocation5 + $0xbc8] ss:$16 sps:$4 sm:$0xff]   ;;  %v8962_v26 = vld [vmem:[#allocation5 + $0xbe4] ss:$16 sps:$4 sm:$0xff]  }
 0x212   :  { %5487 = vmatprep.subr.bf16.mxu0 %v8884_v53  ;;  %6003 = vmatprep.subr.bf16.mxu1 %v8887_v27  ;;  %v8965_v53 = vld [vmem:[#allocation5 + $0xbec] ss:$16 sps:$4 sm:$0xff]   ;;  %v1199_v27 = vcombine.high %v1153_v20, %v1167_v21 }
 0x215   :  { %5488 = vmatpush1.bf16.msra.mxu0 %v8882_v10  ;;  %6004 = vmatpush1.bf16.msra.mxu1 %v8885_v11  ;;  %v1203_v10 = vcombine.high %v1181_v22, %v1195_v23  ;;  %v1198_v11 = vcombine.low %v1153_v20, %v1167_v21  ;;  %v9031_v20 = vld [vmem:[#allocation5 + $0xd4c] ss:$16 sps:$4 sm:$0xff]   ;;  %v9026_v21 = vld [vmem:[#allocation5 + $0xd40] ss:$16 sps:$4 sm:$0xff]  }
 0x216   :  { %5489 = vmatprep.subr.bf16.mxu0 %v8890_v28  ;;  %6005 = vmatprep.subr.bf16.mxu1 %v8893_v29  ;;  %v1202_v28 = vcombine.low %v1181_v22, %v1195_v23  ;;  %v8960_v29 = vld [vmem:[#allocation5 + $0xbe0] ss:$16 sps:$4 sm:$0xff]   ;;  %v9029_v22 = vld [vmem:[#allocation5 + $0xd48] ss:$16 sps:$4 sm:$0xff]   ;;  %v9034_v23 = vld [vmem:[#allocation5 + $0xd64] ss:$16 sps:$4 sm:$0xff]  }
 0x219   :  { %5490 = vmatpush1.bf16.msra.mxu0 %v8888_v30  ;;  %6006 = vmatpush1.bf16.msra.mxu1 %v8891_v31  ;;  %v8963_v30 = vld [vmem:[#allocation5 + $0xbe8] ss:$16 sps:$4 sm:$0xff]   ;;  %v8968_v31 = vld [vmem:[#allocation5 + $0xc04] ss:$16 sps:$4 sm:$0xff]  }
 0x21a   :  { %5491 = vmatprep.subr.bf16.mxu0 %v8896_v32  ;;  %6007 = vmatprep.subr.bf16.mxu1 %v8899_v33  ;;  %v8971_v32 = vld [vmem:[#allocation5 + $0xc0c] ss:$16 sps:$4 sm:$0xff]   ;;  %v1231_v33 = vrot.slane %v1199_v27, %v10197_v54 }
 0x21b   :  { %v9043_v27 = vld [vmem:[#allocation5 + $0xd8c] ss:$16 sps:$4 sm:$0xff]  }
 0x21d   :  { %5492 = vmatpush1.bf16.msra.mxu0 %v8894_v34  ;;  %6008 = vmatpush1.bf16.msra.mxu1 %v8897_v13  ;;  %v1259_v34 = vrot.slane %v1203_v10, %v10197_v54  ;;  %v10264_v13 = vrot.slane %v1198_v11, %v10197_v54  ;;  %v9038_v10 = vld [vmem:[#allocation5 + $0xd80] ss:$16 sps:$4 sm:$0xff]   ;;  %v9041_v11 = vld [vmem:[#allocation5 + $0xd88] ss:$16 sps:$4 sm:$0xff]  }
 0x21e   :  { %5493 = vmatprep.subr.bf16.mxu0 %v8902_v35  ;;  %6009 = vmatprep.subr.bf16.mxu1 %v8905_v36  ;;  %v10267_v35 = vrot.slane %v1202_v28, %v10197_v54  ;;  %v8966_v36 = vld [vmem:[#allocation5 + $0xc00] ss:$16 sps:$4 sm:$0xff]   ;;  %v9046_v28 = vld [vmem:[#allocation5 + $0xda4] ss:$16 sps:$4 sm:$0xff]  }
 0x221   :  { %5494 = vmatpush1.bf16.msra.mxu0 %v8900_v37  ;;  %6010 = vmatpush1.bf16.msra.mxu1 %v8903_v38  ;;  %v8969_v37 = vld [vmem:[#allocation5 + $0xc08] ss:$16 sps:$4 sm:$0xff]   ;;  %v10269_v38 = vcombine.high %v1231_v33, %v1259_v34 }
 0x222   :  { %5495 = vmatprep.subr.bf16.mxu0 %v8908_v39  ;;  %6011 = vmatprep.subr.bf16.mxu1 %v8911_v40  ;;  %v8974_v39 = vld [vmem:[#allocation5 + $0xc24] ss:$16 sps:$4 sm:$0xff]   ;;  %v8977_v40 = vld [vmem:[#allocation5 + $0xc2c] ss:$16 sps:$4 sm:$0xff]  }
 0x225   :  { %5496 = vmatpush1.bf16.msra.mxu0 %v8906_v41  ;;  %6012 = vmatpush1.bf16.msra.mxu1 %v8909_v42  ;;  %v10273_v41 = vcombine.high %v10264_v13, %v10267_v35  ;;  %v1266_v42 = vcombine.low %v1231_v33, %v1259_v34  ;;  %v9055_v33 = vld [vmem:[#allocation5 + $0xdcc] ss:$16 sps:$4 sm:$0xff]   ;;  %v9050_v34 = vld [vmem:[#allocation5 + $0xdc0] ss:$16 sps:$4 sm:$0xff]  }
 0x226   :  { %5497 = vmatprep.subr.bf16.mxu0 %v8914_v43  ;;  %6013 = vmatprep.subr.bf16.mxu1 %v8917_v44  ;;  %v8972_v43 = vld [vmem:[#allocation5 + $0xc20] ss:$16 sps:$4 sm:$0xff]   ;;  %v8975_v44 = vld [vmem:[#allocation5 + $0xc28] ss:$16 sps:$4 sm:$0xff]  }
 0x229   :  { %5498 = vmatpush1.bf16.msra.mxu0 %v8912_v45  ;;  %6014 = vmatpush1.bf16.msra.mxu1 %v8915_v46  ;;  %v8980_v45 = vld [vmem:[#allocation5 + $0xc44] ss:$16 sps:$4 sm:$0xff]   ;;  %v8983_v46 = vld [vmem:[#allocation5 + $0xc4c] ss:$16 sps:$4 sm:$0xff]  }
 0x22a   :  { %5499 = vmatprep.subr.bf16.mxu0 %v8920_v50  ;;  %6015 = vmatprep.subr.bf16.mxu1 %v8923_v52  ;;  %v8978_v50 = vld [vmem:[#allocation5 + $0xc40] ss:$16 sps:$4 sm:$0xff]   ;;  %v8981_v52 = vld [vmem:[#allocation5 + $0xc48] ss:$16 sps:$4 sm:$0xff]  }
 0x22d   :  { %5500 = vmatpush1.bf16.msra.mxu0 %v8918_v55  ;;  %6016 = vmatpush1.bf16.msra.mxu1 %v8921_v56  ;;  %v8986_v55 = vld [vmem:[#allocation5 + $0xc64] ss:$16 sps:$4 sm:$0xff]   ;;  %v8989_v56 = vld [vmem:[#allocation5 + $0xc6c] ss:$16 sps:$4 sm:$0xff]  }
 0x22e   :  { %5501 = vmatprep.subr.bf16.mxu0 %v8926_v57  ;;  %6017 = vmatprep.subr.bf16.mxu1 %v8929_v58  ;;  %v8987_v57 = vld [vmem:[#allocation5 + $0xc68] ss:$16 sps:$4 sm:$0xff]   ;;  %v8992_v58 = vld [vmem:[#allocation5 + $0xc84] ss:$16 sps:$4 sm:$0xff]  }
 0x231   :  { %5502 = vmatpush1.bf16.msra.mxu0 %v8924_v59  ;;  %6018 = vmatpush1.bf16.msra.mxu1 %v8927_v60  ;;  %v8995_v59 = vld [vmem:[#allocation5 + $0xc8c] ss:$16 sps:$4 sm:$0xff]   ;;  %v8990_v60 = vld [vmem:[#allocation5 + $0xc80] ss:$16 sps:$4 sm:$0xff]  }
 0x232   :  { %5503 = vmatprep.subr.bf16.mxu0 %v8932_v61  ;;  %6019 = vmatprep.subr.bf16.mxu1 %v8935_v62  ;;  %v8993_v61 = vld [vmem:[#allocation5 + $0xc88] ss:$16 sps:$4 sm:$0xff]   ;;  %v8998_v62 = vld [vmem:[#allocation5 + $0xca4] ss:$16 sps:$4 sm:$0xff]  }
 0x235   :  { %5504 = vmatpush1.bf16.msra.mxu0 %v8930_v63  ;;  %6020 = vmatpush1.bf16.msra.mxu1 %v8933_v0  ;;  %v9001_v63 = vld [vmem:[#allocation5 + $0xcac] ss:$16 sps:$4 sm:$0xff]   ;;  %v8996_v0 = vld [vmem:[#allocation5 + $0xca0] ss:$16 sps:$4 sm:$0xff]  }
 0x236   :  { %5505 = vmatprep.subr.bf16.mxu0 %v8938_v19  ;;  %6021 = vmatprep.subr.bf16.mxu1 %v8941_v1  ;;  %v8999_v19 = vld [vmem:[#allocation5 + $0xca8] ss:$16 sps:$4 sm:$0xff]   ;;  %v9004_v1 = vld [vmem:[#allocation5 + $0xcc4] ss:$16 sps:$4 sm:$0xff]  }
 0x239   :  { %5506 = vmatpush1.bf16.msra.mxu0 %v8936_v47  ;;  %6022 = vmatpush1.bf16.msra.mxu1 %v8939_v49  ;;  %v9007_v47 = vld [vmem:[#allocation5 + $0xccc] ss:$16 sps:$4 sm:$0xff]   ;;  %v9002_v49 = vld [vmem:[#allocation5 + $0xcc0] ss:$16 sps:$4 sm:$0xff]  }
 0x23a   :  { %5507 = vmatprep.subr.bf16.mxu0 %v8944_v2  ;;  %6023 = vmatprep.subr.bf16.mxu1 %v8947_v3  ;;  %v9005_v2 = vld [vmem:[#allocation5 + $0xcc8] ss:$16 sps:$4 sm:$0xff]   ;;  %v9010_v3 = vld [vmem:[#allocation5 + $0xce4] ss:$16 sps:$4 sm:$0xff]  }
 0x23d   :  { %5508 = vmatpush1.bf16.msra.mxu0 %v8942_v4  ;;  %6024 = vmatpush1.bf16.msra.mxu1 %v8945_v5  ;;  %v9013_v4 = vld [vmem:[#allocation5 + $0xcec] ss:$16 sps:$4 sm:$0xff]   ;;  %v9008_v5 = vld [vmem:[#allocation5 + $0xce0] ss:$16 sps:$4 sm:$0xff]  }
 0x23e   :  { %5509 = vmatprep.subr.bf16.mxu0 %v8950_v6  ;;  %6025 = vmatprep.subr.bf16.mxu1 %v8953_v7  ;;  %v9011_v6 = vld [vmem:[#allocation5 + $0xce8] ss:$16 sps:$4 sm:$0xff]   ;;  %v9016_v7 = vld [vmem:[#allocation5 + $0xd04] ss:$16 sps:$4 sm:$0xff]  }
 0x241   :  { %5510 = vmatpush1.bf16.msra.mxu0 %v8948_v14  ;;  %6026 = vmatpush1.bf16.msra.mxu1 %v8951_v16  ;;  %v9025_v14 = vld [vmem:[#allocation5 + $0xd2c] ss:$16 sps:$4 sm:$0xff]   ;;  %v9020_v16 = vld [vmem:[#allocation5 + $0xd20] ss:$16 sps:$4 sm:$0xff]  }
 0x242   :  { %5511 = vmatprep.subr.bf16.mxu0 %v8956_v17  ;;  %6027 = vmatprep.subr.bf16.mxu1 %v8959_v18  ;;  %v9023_v17 = vld [vmem:[#allocation5 + $0xd28] ss:$16 sps:$4 sm:$0xff]   ;;  %v9028_v18 = vld [vmem:[#allocation5 + $0xd44] ss:$16 sps:$4 sm:$0xff]  }
 0x245   :  { %5512 = vmatpush1.bf16.msra.mxu0 %v8954_v24  ;;  %6028 = vmatpush1.bf16.msra.mxu1 %v8957_v25  ;;  %v9037_v24 = vld [vmem:[#allocation5 + $0xd6c] ss:$16 sps:$4 sm:$0xff]   ;;  %v9032_v25 = vld [vmem:[#allocation5 + $0xd60] ss:$16 sps:$4 sm:$0xff]  }
 0x246   :  { %5513 = vmatprep.subr.bf16.mxu0 %v8962_v26  ;;  %6029 = vmatprep.subr.bf16.mxu1 %v8965_v53  ;;  %v9035_v26 = vld [vmem:[#allocation5 + $0xd68] ss:$16 sps:$4 sm:$0xff]   ;;  %v9040_v53 = vld [vmem:[#allocation5 + $0xd84] ss:$16 sps:$4 sm:$0xff]  }
 0x249   :  { %5514 = vmatpush1.bf16.msra.mxu0 %v8960_v29  ;;  %6030 = vmatpush1.bf16.msra.mxu1 %v8963_v30  ;;  %v9049_v29 = vld [vmem:[#allocation5 + $0xdac] ss:$16 sps:$4 sm:$0xff]   ;;  %v9044_v30 = vld [vmem:[#allocation5 + $0xda0] ss:$16 sps:$4 sm:$0xff]  }
 0x24a   :  { %5526 = vmatprep.subr.bf16.mxu0 %v8968_v31  ;;  %6042 = vmatprep.subr.bf16.mxu1 %v8971_v32  ;;  %v9047_v31 = vld [vmem:[#allocation5 + $0xda8] ss:$16 sps:$4 sm:$0xff]   ;;  %v9052_v32 = vld [vmem:[#allocation5 + $0xdc4] ss:$16 sps:$4 sm:$0xff]  }
 0x24c   :  { %5516 = vmatmul.mubr.bf16.vlgmr.msra.gmra.mrb[0].mxu0 %v10249_v15  ;;  %6032 = vmatmul.mubr.bf16.vlgmr.msra.gmra.mrb[0].mxu1 %v10249_v15  ;;  %v8984_v15 = vld [vmem:[#allocation5 + $0xc60] ss:$16 sps:$4 sm:$0xff]  }
 0x24d   :  { %5527 = vmatpush1.bf16.msra.mxu0 %v8966_v36  ;;  %6043 = vmatpush1.bf16.msra.mxu1 %v8969_v37  ;;  %v9053_v36 = vld [vmem:[#allocation5 + $0xdc8] ss:$16 sps:$4 sm:$0xff]   ;;  %v9058_v37 = vld [vmem:[#allocation5 + $0xde4] ss:$16 sps:$4 sm:$0xff]  }
 0x24e   :  { %5528 = vmatprep.subr.bf16.mxu0 %v8974_v39  ;;  %6044 = vmatprep.subr.bf16.mxu1 %v8977_v40  ;;  %v9061_v39 = vld [vmem:[#allocation5 + $0xdec] ss:$16 sps:$4 sm:$0xff]   ;;  %v9056_v40 = vld [vmem:[#allocation5 + $0xde0] ss:$16 sps:$4 sm:$0xff]  }
 0x24f   :  { %5558 = vmatprep.mubr.bf16.mxu0 %v1266_v42  ;;  %6074 = vmatprep.mubr.bf16.mxu1 %v1266_v42  ;;  %v9059_v42 = vld [vmem:[#allocation5 + $0xde8] ss:$16 sps:$4 sm:$0xff]  }
 0x251   :  { %5529 = vmatpush1.bf16.msra.mxu0 %v8972_v43  ;;  %6045 = vmatpush1.bf16.msra.mxu1 %v8975_v44  ;;  %v9068_v43 = vld [vmem:[#allocation5 + $0xe04] ss:$16 sps:$4 sm:$0xff]   ;;  %v9071_v44 = vld [vmem:[#allocation5 + $0xe0c] ss:$16 sps:$4 sm:$0xff]  }
 0x252   :  { %5530 = vmatprep.subr.bf16.mxu0 %v8980_v45  ;;  %6046 = vmatprep.subr.bf16.mxu1 %v8983_v46  ;;  %v1262_v45 = vcombine.low %v10264_v13, %v10267_v35  ;;  %v9066_v46 = vld [vmem:[#allocation5 + $0xe00] ss:$16 sps:$4 sm:$0xff]   ;;  %v9081_v35 = vld [vmem:[#allocation5 + $0xe48] ss:$16 sps:$4 sm:$0xff]  }
 0x253   :  { %v9078_v13 = vld [vmem:[#allocation5 + $0xe40] ss:$16 sps:$4 sm:$0xff]  }
 0x255   :  { %5531 = vmatpush1.bf16.msra.mxu0 %v8978_v50  ;;  %6047 = vmatpush1.bf16.msra.mxu1 %v8981_v52  ;;  %v9069_v50 = vld [vmem:[#allocation5 + $0xe08] ss:$16 sps:$4 sm:$0xff]   ;;  %v9074_v52 = vld [vmem:[#allocation5 + $0xe24] ss:$16 sps:$4 sm:$0xff]  }
 0x256   :  { %5532 = vmatprep.subr.bf16.mxu0 %v8986_v55  ;;  %6048 = vmatprep.subr.bf16.mxu1 %v8989_v56  ;;  %v9077_v55 = vld [vmem:[#allocation5 + $0xe2c] ss:$16 sps:$4 sm:$0xff]   ;;  %v9072_v56 = vld [vmem:[#allocation5 + $0xe20] ss:$16 sps:$4 sm:$0xff]  }
 0x259   :  { %5533 = vmatpush1.bf16.msra.mxu0 %v8984_v15  ;;  %6049 = vmatpush1.bf16.msra.mxu1 %v8987_v57  ;;  %v9075_v15 = vld [vmem:[#allocation5 + $0xe28] ss:$16 sps:$4 sm:$0xff]   ;;  %v9080_v57 = vld [vmem:[#allocation5 + $0xe44] ss:$16 sps:$4 sm:$0xff]  }
 0x25a   :  { %5534 = vmatprep.subr.bf16.mxu0 %v8992_v58  ;;  %6050 = vmatprep.subr.bf16.mxu1 %v8995_v59  ;;  %v9083_v58 = vld [vmem:[#allocation5 + $0xe4c] ss:$16 sps:$4 sm:$0xff]   ;;  %v9086_v59 = vld [vmem:[#allocation5 + $0xe64] ss:$16 sps:$4 sm:$0xff]  }
 0x25d   :  { %5535 = vmatpush1.bf16.msra.mxu0 %v8990_v60  ;;  %6051 = vmatpush1.bf16.msra.mxu1 %v8993_v61  ;;  %v9089_v60 = vld [vmem:[#allocation5 + $0xe6c] ss:$16 sps:$4 sm:$0xff]   ;;  %v9084_v61 = vld [vmem:[#allocation5 + $0xe60] ss:$16 sps:$4 sm:$0xff]  }
 0x25e   :  { %5536 = vmatprep.subr.bf16.mxu0 %v8998_v62  ;;  %6052 = vmatprep.subr.bf16.mxu1 %v9001_v63  ;;  %v9087_v62 = vld [vmem:[#allocation5 + $0xe68] ss:$16 sps:$4 sm:$0xff]   ;;  %v9092_v63 = vld [vmem:[#allocation5 + $0xe84] ss:$16 sps:$4 sm:$0xff]  }
 0x261   :  { %5537 = vmatpush1.bf16.msra.mxu0 %v8996_v0  ;;  %6053 = vmatpush1.bf16.msra.mxu1 %v8999_v19  ;;  %v9095_v0 = vld [vmem:[#allocation5 + $0xe8c] ss:$16 sps:$4 sm:$0xff]   ;;  %v9090_v19 = vld [vmem:[#allocation5 + $0xe80] ss:$16 sps:$4 sm:$0xff]  }
 0x262   :  { %5538 = vmatprep.subr.bf16.mxu0 %v9004_v1  ;;  %6054 = vmatprep.subr.bf16.mxu1 %v9007_v47  ;;  %v9098_v1 = vld [vmem:[#allocation5 + $0xea4] ss:$16 sps:$4 sm:$0xff]   ;;  %v9101_v47 = vld [vmem:[#allocation5 + $0xeac] ss:$16 sps:$4 sm:$0xff]  }
 0x265   :  { %5539 = vmatpush1.bf16.msra.mxu0 %v9002_v49  ;;  %6055 = vmatpush1.bf16.msra.mxu1 %v9005_v2  ;;  %v9096_v49 = vld [vmem:[#allocation5 + $0xea0] ss:$16 sps:$4 sm:$0xff]   ;;  %v9099_v2 = vld [vmem:[#allocation5 + $0xea8] ss:$16 sps:$4 sm:$0xff]  }
 0x266   :  { %5540 = vmatprep.subr.bf16.mxu0 %v9010_v3  ;;  %6056 = vmatprep.subr.bf16.mxu1 %v9013_v4  ;;  %v9104_v3 = vld [vmem:[#allocation5 + $0xec4] ss:$16 sps:$4 sm:$0xff]   ;;  %v9107_v4 = vld [vmem:[#allocation5 + $0xecc] ss:$16 sps:$4 sm:$0xff]  }
 0x269   :  { %5541 = vmatpush1.bf16.msra.mxu0 %v9008_v5  ;;  %6057 = vmatpush1.bf16.msra.mxu1 %v9011_v6  ;;  %v9102_v5 = vld [vmem:[#allocation5 + $0xec0] ss:$16 sps:$4 sm:$0xff]   ;;  %v9105_v6 = vld [vmem:[#allocation5 + $0xec8] ss:$16 sps:$4 sm:$0xff]  }
 0x26a   :  { %5542 = vmatprep.subr.bf16.mxu0 %v9016_v7  ;;  %6058 = vmatprep.subr.bf16.mxu1 %v9019_v8  ;;  %v9110_v7 = vld [vmem:[#allocation5 + $0xee4] ss:$16 sps:$4 sm:$0xff]   ;;  %v9113_v8 = vld [vmem:[#allocation5 + $0xeec] ss:$16 sps:$4 sm:$0xff]  }
 0x26d   :  { %5543 = vmatpush1.bf16.msra.mxu0 %v9014_v9  ;;  %6059 = vmatpush1.bf16.msra.mxu1 %v9017_v51  ;;  %v9108_v9 = vld [vmem:[#allocation5 + $0xee0] ss:$16 sps:$4 sm:$0xff]   ;;  %v9111_v51 = vld [vmem:[#allocation5 + $0xee8] ss:$16 sps:$4 sm:$0xff]  }
 0x26e   :  { %5544 = vmatprep.subr.bf16.mxu0 %v9022_v12  ;;  %6060 = vmatprep.subr.bf16.mxu1 %v9025_v14  ;;  %v9116_v12 = vld [vmem:[#allocation5 + $0xf04] ss:$16 sps:$4 sm:$0xff]   ;;  %v9119_v14 = vld [vmem:[#allocation5 + $0xf0c] ss:$16 sps:$4 sm:$0xff]  }
 0x271   :  { %5545 = vmatpush1.bf16.msra.mxu0 %v9020_v16  ;;  %6061 = vmatpush1.bf16.msra.mxu1 %v9023_v17  ;;  %v9114_v16 = vld [vmem:[#allocation5 + $0xf00] ss:$16 sps:$4 sm:$0xff]   ;;  %v9117_v17 = vld [vmem:[#allocation5 + $0xf08] ss:$16 sps:$4 sm:$0xff]  }
 0x272   :  { %5546 = vmatprep.subr.bf16.mxu0 %v9028_v18  ;;  %6062 = vmatprep.subr.bf16.mxu1 %v9031_v20  ;;  %v9122_v18 = vld [vmem:[#allocation5 + $0xf24] ss:$16 sps:$4 sm:$0xff]   ;;  %v9125_v20 = vld [vmem:[#allocation5 + $0xf2c] ss:$16 sps:$4 sm:$0xff]  }
 0x275   :  { %5547 = vmatpush1.bf16.msra.mxu0 %v9026_v21  ;;  %6063 = vmatpush1.bf16.msra.mxu1 %v9029_v22  ;;  %v9120_v21 = vld [vmem:[#allocation5 + $0xf20] ss:$16 sps:$4 sm:$0xff]   ;;  %v9123_v22 = vld [vmem:[#allocation5 + $0xf28] ss:$16 sps:$4 sm:$0xff]  }
 0x276   :  { %5548 = vmatprep.subr.bf16.mxu0 %v9034_v23  ;;  %6064 = vmatprep.subr.bf16.mxu1 %v9037_v24  ;;  %v9128_v23 = vld [vmem:[#allocation5 + $0xf44] ss:$16 sps:$4 sm:$0xff]   ;;  %v9131_v24 = vld [vmem:[#allocation5 + $0xf4c] ss:$16 sps:$4 sm:$0xff]  }
 0x279   :  { %5549 = vmatpush1.bf16.msra.mxu0 %v9032_v25  ;;  %6065 = vmatpush1.bf16.msra.mxu1 %v9035_v26  ;;  %v9126_v25 = vld [vmem:[#allocation5 + $0xf40] ss:$16 sps:$4 sm:$0xff]   ;;  %v9129_v26 = vld [vmem:[#allocation5 + $0xf48] ss:$16 sps:$4 sm:$0xff]  }
 0x27a   :  { %5550 = vmatprep.subr.bf16.mxu0 %v9040_v53  ;;  %6066 = vmatprep.subr.bf16.mxu1 %v9043_v27  ;;  %v9134_v53 = vld [vmem:[#allocation5 + $0xf64] ss:$16 sps:$4 sm:$0xff]   ;;  %v9137_v27 = vld [vmem:[#allocation5 + $0xf6c] ss:$16 sps:$4 sm:$0xff]  }
 0x27d   :  { %5551 = vmatpush1.bf16.msra.mxu0 %v9038_v10  ;;  %6067 = vmatpush1.bf16.msra.mxu1 %v9041_v11  ;;  %v9132_v10 = vld [vmem:[#allocation5 + $0xf60] ss:$16 sps:$4 sm:$0xff]   ;;  %v9135_v11 = vld [vmem:[#allocation5 + $0xf68] ss:$16 sps:$4 sm:$0xff]  }
 0x27e   :  { %5552 = vmatprep.subr.bf16.mxu0 %v9046_v28  ;;  %6068 = vmatprep.subr.bf16.mxu1 %v9049_v29  ;;  %v9140_v28 = vld [vmem:[#allocation5 + $0xf84] ss:$16 sps:$4 sm:$0xff]   ;;  %v9143_v29 = vld [vmem:[#allocation5 + $0xf8c] ss:$16 sps:$4 sm:$0xff]  }
 0x281   :  { %5553 = vmatpush1.bf16.msra.mxu0 %v9044_v30  ;;  %6069 = vmatpush1.bf16.msra.mxu1 %v9047_v31  ;;  %v9138_v30 = vld [vmem:[#allocation5 + $0xf80] ss:$16 sps:$4 sm:$0xff]   ;;  %v9141_v31 = vld [vmem:[#allocation5 + $0xf88] ss:$16 sps:$4 sm:$0xff]  }
 0x282   :  { %5554 = vmatprep.subr.bf16.mxu0 %v9052_v32  ;;  %6070 = vmatprep.subr.bf16.mxu1 %v9055_v33  ;;  %v9146_v32 = vld [vmem:[#allocation5 + $0xfa4] ss:$16 sps:$4 sm:$0xff]   ;;  %v9149_v33 = vld [vmem:[#allocation5 + $0xfac] ss:$16 sps:$4 sm:$0xff]  }
 0x285   :  { %5555 = vmatpush1.bf16.msra.mxu0 %v9050_v34  ;;  %6071 = vmatpush1.bf16.msra.mxu1 %v9053_v36  ;;  %v9258_v34 = vld [vmem:[#allocation2 + $0x10] ss:$24 sps:$4 sm:$0xff]   ;;  %v9260_v36 = vld [vmem:[#allocation2 + $0x40] ss:$24 sps:$4 sm:$0xff]  }
 0x286   :  { %5556 = vmatprep.subr.bf16.mxu0 %v9058_v37  ;;  %6072 = vmatprep.subr.bf16.mxu1 %v9061_v39  ;;  %v9262_v37 = vld [vmem:[#allocation2 + $0x70] ss:$24 sps:$4 sm:$0xff]   ;;  %v9264_v39 = vld [vmem:[#allocation2 + $0xa0] ss:$24 sps:$4 sm:$0xff]  }
 0x289   :  { %5557 = vmatpush1.bf16.msra.mxu0 %v9056_v40  ;;  %6073 = vmatpush1.bf16.msra.mxu1 %v9059_v42  ;;  %v9144_v40 = vld [vmem:[#allocation5 + $0xfa0] ss:$16 sps:$4 sm:$0xff]   ;;  %v9147_v42 = vld [vmem:[#allocation5 + $0xfa8] ss:$16 sps:$4 sm:$0xff]  }
 0x28a   :  { %5569 = vmatprep.subr.bf16.mxu0 %v9068_v43  ;;  %6085 = vmatprep.subr.bf16.mxu1 %v9071_v44  ;;  %v9152_v43 = vld [vmem:[#allocation5 + $0xfc4] ss:$16 sps:$4 sm:$0xff]   ;;  %v9155_v44 = vld [vmem:[#allocation5 + $0xfcc] ss:$16 sps:$4 sm:$0xff]  }
 0x28c   :  { %5559 = vmatmul.mubr.bf16.vlgmr.msra.gmra.mrb[0].mxu0 %v1262_v45  ;;  %6075 = vmatmul.mubr.bf16.vlgmr.msra.gmra.mrb[0].mxu1 %v1262_v45  ;;  %v1282_v45 = vrot.slane %v9258_v34, %v10197_v54  ;;  %v9215_v34 = vld [vmem:[#allocation5 + $0x110c] ss:$16 sps:$4 sm:$0xff]  }
 0x28d   :  { %5570 = vmatpush1.bf16.msra.mxu0 %v9066_v46  ;;  %6086 = vmatpush1.bf16.msra.mxu1 %v9069_v50  ;;  %v1296_v46 = vrot.slane %v9260_v36, %v10197_v54  ;;  %v1310_v50 = vrot.slane %v9262_v37, %v10197_v54  ;;  %v9210_v36 = vld [vmem:[#allocation5 + $0x1100] ss:$16 sps:$4 sm:$0xff]   ;;  %v9213_v37 = vld [vmem:[#allocation5 + $0x1108] ss:$16 sps:$4 sm:$0xff]  }
 0x28e   :  { %5571 = vmatprep.subr.bf16.mxu0 %v9074_v52  ;;  %6087 = vmatprep.subr.bf16.mxu1 %v9077_v55  ;;  %v1324_v52 = vrot.slane %v9264_v39, %v10197_v54  ;;  %v9150_v55 = vld [vmem:[#allocation5 + $0xfc0] ss:$16 sps:$4 sm:$0xff]   ;;  %v9218_v39 = vld [vmem:[#allocation5 + $0x1124] ss:$16 sps:$4 sm:$0xff]  }
 0x28f   :  { %5601 = vmatprep.mubr.bf16.mxu0 %v10269_v38  ;;  %6117 = vmatprep.mubr.bf16.mxu1 %v10269_v38  ;;  %v9093_v38 = vld [vmem:[#allocation5 + $0xe88] ss:$16 sps:$4 sm:$0xff]  }
 0x291   :  { %5572 = vmatpush1.bf16.msra.mxu0 %v9072_v56  ;;  %6088 = vmatpush1.bf16.msra.mxu1 %v9075_v15  ;;  %v9153_v56 = vld [vmem:[#allocation5 + $0xfc8] ss:$16 sps:$4 sm:$0xff]   ;;  %v9158_v15 = vld [vmem:[#allocation5 + $0xfe4] ss:$16 sps:$4 sm:$0xff]  }
 0x292   :  { %5573 = vmatprep.subr.bf16.mxu0 %v9080_v57  ;;  %6089 = vmatprep.subr.bf16.mxu1 %v9083_v58  ;;  %v9161_v57 = vld [vmem:[#allocation5 + $0xfec] ss:$16 sps:$4 sm:$0xff]   ;;  %v1333_v58 = vcombine.high %v1282_v45, %v1296_v46 }
 0x295   :  { %5574 = vmatpush1.bf16.msra.mxu0 %v9078_v13  ;;  %6090 = vmatpush1.bf16.msra.mxu1 %v9081_v35  ;;  %v1337_v13 = vcombine.high %v1310_v50, %v1324_v52  ;;  %v1332_v35 = vcombine.low %v1282_v45, %v1296_v46  ;;  %v9227_v45 = vld [vmem:[#allocation5 + $0x114c] ss:$16 sps:$4 sm:$0xff]   ;;  %v9222_v46 = vld [vmem:[#allocation5 + $0x1140] ss:$16 sps:$4 sm:$0xff]  }
 0x296   :  { %5575 = vmatprep.subr.bf16.mxu0 %v9086_v59  ;;  %6091 = vmatprep.subr.bf16.mxu1 %v9089_v60  ;;  %v1336_v59 = vcombine.low %v1310_v50, %v1324_v52  ;;  %v9156_v60 = vld [vmem:[#allocation5 + $0xfe0] ss:$16 sps:$4 sm:$0xff]   ;;  %v9225_v50 = vld [vmem:[#allocation5 + $0x1148] ss:$16 sps:$4 sm:$0xff]   ;;  %v9230_v52 = vld [vmem:[#allocation5 + $0x1164] ss:$16 sps:$4 sm:$0xff]  }
 0x299   :  { %5576 = vmatpush1.bf16.msra.mxu0 %v9084_v61  ;;  %6092 = vmatpush1.bf16.msra.mxu1 %v9087_v62  ;;  %v9159_v61 = vld [vmem:[#allocation5 + $0xfe8] ss:$16 sps:$4 sm:$0xff]   ;;  %v9164_v62 = vld [vmem:[#allocation5 + $0x1004] ss:$16 sps:$4 sm:$0xff]  }
 0x29a   :  { %5577 = vmatprep.subr.bf16.mxu0 %v9092_v63  ;;  %6093 = vmatprep.subr.bf16.mxu1 %v9095_v0  ;;  %v9167_v63 = vld [vmem:[#allocation5 + $0x100c] ss:$16 sps:$4 sm:$0xff]   ;;  %v1360_v0 = vrot.slane %v1333_v58, %v10197_v54 }
 0x29b   :  { %v9239_v58 = vld [vmem:[#allocation5 + $0x118c] ss:$16 sps:$4 sm:$0xff]  }
 0x29d   :  { %5578 = vmatpush1.bf16.msra.mxu0 %v9090_v19  ;;  %6094 = vmatpush1.bf16.msra.mxu1 %v9093_v38  ;;  %v1388_v19 = vrot.slane %v1337_v13, %v10197_v54  ;;  %v10288_v38 = vrot.slane %v1332_v35, %v10197_v54  ;;  %v9234_v13 = vld [vmem:[#allocation5 + $0x1180] ss:$16 sps:$4 sm:$0xff]   ;;  %v9237_v35 = vld [vmem:[#allocation5 + $0x1188] ss:$16 sps:$4 sm:$0xff]  }
 0x29e   :  { %5579 = vmatprep.subr.bf16.mxu0 %v9098_v1  ;;  %6095 = vmatprep.subr.bf16.mxu1 %v9101_v47  ;;  %v10291_v1 = vrot.slane %v1336_v59, %v10197_v54  ;;  %v9162_v47 = vld [vmem:[#allocation5 + $0x1000] ss:$16 sps:$4 sm:$0xff]   ;;  %v9242_v59 = vld [vmem:[#allocation5 + $0x11a4] ss:$16 sps:$4 sm:$0xff]  }
 0x2a1   :  { %5580 = vmatpush1.bf16.msra.mxu0 %v9096_v49  ;;  %6096 = vmatpush1.bf16.msra.mxu1 %v9099_v2  ;;  %v9165_v49 = vld [vmem:[#allocation5 + $0x1008] ss:$16 sps:$4 sm:$0xff]   ;;  %v10293_v2 = vcombine.high %v1360_v0, %v1388_v19 }
 0x2a2   :  { %5581 = vmatprep.subr.bf16.mxu0 %v9104_v3  ;;  %6097 = vmatprep.subr.bf16.mxu1 %v9107_v4  ;;  %v9170_v3 = vld [vmem:[#allocation5 + $0x1024] ss:$16 sps:$4 sm:$0xff]   ;;  %v9173_v4 = vld [vmem:[#allocation5 + $0x102c] ss:$16 sps:$4 sm:$0xff]  }
 0x2a5   :  { %5582 = vmatpush1.bf16.msra.mxu0 %v9102_v5  ;;  %6098 = vmatpush1.bf16.msra.mxu1 %v9105_v6  ;;  %v10297_v5 = vcombine.high %v10288_v38, %v10291_v1  ;;  %v1400_v6 = vcombine.low %v1360_v0, %v1388_v19  ;;  %v9251_v0 = vld [vmem:[#allocation5 + $0x11cc] ss:$16 sps:$4 sm:$0xff]   ;;  %v9246_v19 = vld [vmem:[#allocation5 + $0x11c0] ss:$16 sps:$4 sm:$0xff]  }
 0x2a6   :  { %5583 = vmatprep.subr.bf16.mxu0 %v9110_v7  ;;  %6099 = vmatprep.subr.bf16.mxu1 %v9113_v8  ;;  %v9168_v7 = vld [vmem:[#allocation5 + $0x1020] ss:$16 sps:$4 sm:$0xff]   ;;  %v9171_v8 = vld [vmem:[#allocation5 + $0x1028] ss:$16 sps:$4 sm:$0xff]  }
 0x2a9   :  { %5584 = vmatpush1.bf16.msra.mxu0 %v9108_v9  ;;  %6100 = vmatpush1.bf16.msra.mxu1 %v9111_v51  ;;  %v9176_v9 = vld [vmem:[#allocation5 + $0x1044] ss:$16 sps:$4 sm:$0xff]   ;;  %v9179_v51 = vld [vmem:[#allocation5 + $0x104c] ss:$16 sps:$4 sm:$0xff]  }
 0x2aa   :  { %5585 = vmatprep.subr.bf16.mxu0 %v9116_v12  ;;  %6101 = vmatprep.subr.bf16.mxu1 %v9119_v14  ;;  %v9174_v12 = vld [vmem:[#allocation5 + $0x1040] ss:$16 sps:$4 sm:$0xff]   ;;  %v9177_v14 = vld [vmem:[#allocation5 + $0x1048] ss:$16 sps:$4 sm:$0xff]  }
 0x2ad   :  { %5586 = vmatpush1.bf16.msra.mxu0 %v9114_v16  ;;  %6102 = vmatpush1.bf16.msra.mxu1 %v9117_v17  ;;  %v9182_v16 = vld [vmem:[#allocation5 + $0x1064] ss:$16 sps:$4 sm:$0xff]   ;;  %v9185_v17 = vld [vmem:[#allocation5 + $0x106c] ss:$16 sps:$4 sm:$0xff]  }
 0x2ae   :  { %5587 = vmatprep.subr.bf16.mxu0 %v9122_v18  ;;  %6103 = vmatprep.subr.bf16.mxu1 %v9125_v20  ;;  %v9183_v18 = vld [vmem:[#allocation5 + $0x1068] ss:$16 sps:$4 sm:$0xff]   ;;  %v9188_v20 = vld [vmem:[#allocation5 + $0x1084] ss:$16 sps:$4 sm:$0xff]  }
 0x2b1   :  { %5588 = vmatpush1.bf16.msra.mxu0 %v9120_v21  ;;  %6104 = vmatpush1.bf16.msra.mxu1 %v9123_v22  ;;  %v9191_v21 = vld [vmem:[#allocation5 + $0x108c] ss:$16 sps:$4 sm:$0xff]   ;;  %v9186_v22 = vld [vmem:[#allocation5 + $0x1080] ss:$16 sps:$4 sm:$0xff]  }
 0x2b2   :  { %5589 = vmatprep.subr.bf16.mxu0 %v9128_v23  ;;  %6105 = vmatprep.subr.bf16.mxu1 %v9131_v24  ;;  %v9189_v23 = vld [vmem:[#allocation5 + $0x1088] ss:$16 sps:$4 sm:$0xff]   ;;  %v9194_v24 = vld [vmem:[#allocation5 + $0x10a4] ss:$16 sps:$4 sm:$0xff]  }
 0x2b5   :  { %5590 = vmatpush1.bf16.msra.mxu0 %v9126_v25  ;;  %6106 = vmatpush1.bf16.msra.mxu1 %v9129_v26  ;;  %v9197_v25 = vld [vmem:[#allocation5 + $0x10ac] ss:$16 sps:$4 sm:$0xff]   ;;  %v9192_v26 = vld [vmem:[#allocation5 + $0x10a0] ss:$16 sps:$4 sm:$0xff]  }
 0x2b6   :  { %5591 = vmatprep.subr.bf16.mxu0 %v9134_v53  ;;  %6107 = vmatprep.subr.bf16.mxu1 %v9137_v27  ;;  %v9195_v53 = vld [vmem:[#allocation5 + $0x10a8] ss:$16 sps:$4 sm:$0xff]   ;;  %v9200_v27 = vld [vmem:[#allocation5 + $0x10c4] ss:$16 sps:$4 sm:$0xff]  }
 0x2b9   :  { %5592 = vmatpush1.bf16.msra.mxu0 %v9132_v10  ;;  %6108 = vmatpush1.bf16.msra.mxu1 %v9135_v11  ;;  %v9203_v10 = vld [vmem:[#allocation5 + $0x10cc] ss:$16 sps:$4 sm:$0xff]   ;;  %v9198_v11 = vld [vmem:[#allocation5 + $0x10c0] ss:$16 sps:$4 sm:$0xff]  }
 0x2ba   :  { %5593 = vmatprep.subr.bf16.mxu0 %v9140_v28  ;;  %6109 = vmatprep.subr.bf16.mxu1 %v9143_v29  ;;  %v9201_v28 = vld [vmem:[#allocation5 + $0x10c8] ss:$16 sps:$4 sm:$0xff]   ;;  %v9206_v29 = vld [vmem:[#allocation5 + $0x10e4] ss:$16 sps:$4 sm:$0xff]  }
 0x2bd   :  { %5594 = vmatpush1.bf16.msra.mxu0 %v9138_v30  ;;  %6110 = vmatpush1.bf16.msra.mxu1 %v9141_v31  ;;  %v9209_v30 = vld [vmem:[#allocation5 + $0x10ec] ss:$16 sps:$4 sm:$0xff]   ;;  %v9204_v31 = vld [vmem:[#allocation5 + $0x10e0] ss:$16 sps:$4 sm:$0xff]  }
 0x2be   :  { %5595 = vmatprep.subr.bf16.mxu0 %v9146_v32  ;;  %6111 = vmatprep.subr.bf16.mxu1 %v9149_v33  ;;  %v9207_v32 = vld [vmem:[#allocation5 + $0x10e8] ss:$16 sps:$4 sm:$0xff]   ;;  %v9212_v33 = vld [vmem:[#allocation5 + $0x1104] ss:$16 sps:$4 sm:$0xff]  }
 0x2c1   :  { %5596 = vmatpush1.bf16.msra.mxu0 %v9144_v40  ;;  %6112 = vmatpush1.bf16.msra.mxu1 %v9147_v42  ;;  %v9221_v40 = vld [vmem:[#allocation5 + $0x112c] ss:$16 sps:$4 sm:$0xff]   ;;  %v9216_v42 = vld [vmem:[#allocation5 + $0x1120] ss:$16 sps:$4 sm:$0xff]  }
 0x2c2   :  { %5597 = vmatprep.subr.bf16.mxu0 %v9152_v43  ;;  %6113 = vmatprep.subr.bf16.mxu1 %v9155_v44  ;;  %v9219_v43 = vld [vmem:[#allocation5 + $0x1128] ss:$16 sps:$4 sm:$0xff]   ;;  %v9224_v44 = vld [vmem:[#allocation5 + $0x1144] ss:$16 sps:$4 sm:$0xff]  }
 0x2c5   :  { %5598 = vmatpush1.bf16.msra.mxu0 %v9150_v55  ;;  %6114 = vmatpush1.bf16.msra.mxu1 %v9153_v56  ;;  %v9233_v55 = vld [vmem:[#allocation5 + $0x116c] ss:$16 sps:$4 sm:$0xff]   ;;  %v9228_v56 = vld [vmem:[#allocation5 + $0x1160] ss:$16 sps:$4 sm:$0xff]  }
 0x2c6   :  { %5599 = vmatprep.subr.bf16.mxu0 %v9158_v15  ;;  %6115 = vmatprep.subr.bf16.mxu1 %v9161_v57  ;;  %v9231_v15 = vld [vmem:[#allocation5 + $0x1168] ss:$16 sps:$4 sm:$0xff]   ;;  %v9236_v57 = vld [vmem:[#allocation5 + $0x1184] ss:$16 sps:$4 sm:$0xff]  }
 0x2c9   :  { %5600 = vmatpush1.bf16.msra.mxu0 %v9156_v60  ;;  %6116 = vmatpush1.bf16.msra.mxu1 %v9159_v61  ;;  %v9245_v60 = vld [vmem:[#allocation5 + $0x11ac] ss:$16 sps:$4 sm:$0xff]   ;;  %v9240_v61 = vld [vmem:[#allocation5 + $0x11a0] ss:$16 sps:$4 sm:$0xff]  }
 0x2ca   :  { %5612 = vmatprep.subr.bf16.mxu0 %v9164_v62  ;;  %6128 = vmatprep.subr.bf16.mxu1 %v9167_v63  ;;  %v9243_v62 = vld [vmem:[#allocation5 + $0x11a8] ss:$16 sps:$4 sm:$0xff]   ;;  %v9248_v63 = vld [vmem:[#allocation5 + $0x11c4] ss:$16 sps:$4 sm:$0xff]  }
 0x2cc   :  { %5602 = vmatmul.mubr.bf16.vlgmr.msra.gmra.mrb[0].mxu0 %v10273_v41  ;;  %6118 = vmatmul.mubr.bf16.vlgmr.msra.gmra.mrb[0].mxu1 %v10273_v41  ;;  %v9180_v41 = vld [vmem:[#allocation5 + $0x1060] ss:$16 sps:$4 sm:$0xff]  }
 0x2cd   :  { %5613 = vmatpush1.bf16.msra.mxu0 %v9162_v47  ;;  %6129 = vmatpush1.bf16.msra.mxu1 %v9165_v49  ;;  %v9249_v47 = vld [vmem:[#allocation5 + $0x11c8] ss:$16 sps:$4 sm:$0xff]   ;;  %v9254_v49 = vld [vmem:[#allocation5 + $0x11e4] ss:$16 sps:$4 sm:$0xff]  }
 0x2ce   :  { %5614 = vmatprep.subr.bf16.mxu0 %v9170_v3  ;;  %6130 = vmatprep.subr.bf16.mxu1 %v9173_v4  ;;  %v9257_v3 = vld [vmem:[#allocation5 + $0x11ec] ss:$16 sps:$4 sm:$0xff]   ;;  %v9252_v4 = vld [vmem:[#allocation5 + $0x11e0] ss:$16 sps:$4 sm:$0xff]  }
 0x2cf   :  { %5644 = vmatprep.mubr.bf16.mxu0 %v1400_v6  ;;  %6160 = vmatprep.mubr.bf16.mxu1 %v1400_v6  ;;  %v9255_v6 = vld [vmem:[#allocation5 + $0x11e8] ss:$16 sps:$4 sm:$0xff]  }
 0x2d1   :  { %5615 = vmatpush1.bf16.msra.mxu0 %v9168_v7  ;;  %6131 = vmatpush1.bf16.msra.mxu1 %v9171_v8  ;;  %v9268_v7 = vld [vmem:[#allocation5 + $0x1204] ss:$16 sps:$4 sm:$0xff]   ;;  %v9271_v8 = vld [vmem:[#allocation5 + $0x120c] ss:$16 sps:$4 sm:$0xff]  }
 0x2d2   :  { %5616 = vmatprep.subr.bf16.mxu0 %v9176_v9  ;;  %6132 = vmatprep.subr.bf16.mxu1 %v9179_v51  ;;  %v1396_v9 = vcombine.low %v10288_v38, %v10291_v1  ;;  %v9266_v51 = vld [vmem:[#allocation5 + $0x1200] ss:$16 sps:$4 sm:$0xff]   ;;  %v9281_v1 = vld [vmem:[#allocation5 + $0x1248] ss:$16 sps:$4 sm:$0xff]  }
 0x2d3   :  { %v9278_v38 = vld [vmem:[#allocation5 + $0x1240] ss:$16 sps:$4 sm:$0xff]  }
 0x2d5   :  { %5617 = vmatpush1.bf16.msra.mxu0 %v9174_v12  ;;  %6133 = vmatpush1.bf16.msra.mxu1 %v9177_v14  ;;  %v9269_v12 = vld [vmem:[#allocation5 + $0x1208] ss:$16 sps:$4 sm:$0xff]   ;;  %v9274_v14 = vld [vmem:[#allocation5 + $0x1224] ss:$16 sps:$4 sm:$0xff]  }
 0x2d6   :  { %5618 = vmatprep.subr.bf16.mxu0 %v9182_v16  ;;  %6134 = vmatprep.subr.bf16.mxu1 %v9185_v17  ;;  %v9277_v16 = vld [vmem:[#allocation5 + $0x122c] ss:$16 sps:$4 sm:$0xff]   ;;  %v9272_v17 = vld [vmem:[#allocation5 + $0x1220] ss:$16 sps:$4 sm:$0xff]  }
 0x2d9   :  { %5619 = vmatpush1.bf16.msra.mxu0 %v9180_v41  ;;  %6135 = vmatpush1.bf16.msra.mxu1 %v9183_v18  ;;  %v9275_v41 = vld [vmem:[#allocation5 + $0x1228] ss:$16 sps:$4 sm:$0xff]   ;;  %v9280_v18 = vld [vmem:[#allocation5 + $0x1244] ss:$16 sps:$4 sm:$0xff]  }
 0x2da   :  { %5620 = vmatprep.subr.bf16.mxu0 %v9188_v20  ;;  %6136 = vmatprep.subr.bf16.mxu1 %v9191_v21  ;;  %v9283_v20 = vld [vmem:[#allocation5 + $0x124c] ss:$16 sps:$4 sm:$0xff]   ;;  %v9286_v21 = vld [vmem:[#allocation5 + $0x1264] ss:$16 sps:$4 sm:$0xff]  }
 0x2dd   :  { %5621 = vmatpush1.bf16.msra.mxu0 %v9186_v22  ;;  %6137 = vmatpush1.bf16.msra.mxu1 %v9189_v23  ;;  %v9289_v22 = vld [vmem:[#allocation5 + $0x126c] ss:$16 sps:$4 sm:$0xff]   ;;  %v9284_v23 = vld [vmem:[#allocation5 + $0x1260] ss:$16 sps:$4 sm:$0xff]  }
 0x2de   :  { %5622 = vmatprep.subr.bf16.mxu0 %v9194_v24  ;;  %6138 = vmatprep.subr.bf16.mxu1 %v9197_v25  ;;  %v9287_v24 = vld [vmem:[#allocation5 + $0x1268] ss:$16 sps:$4 sm:$0xff]   ;;  %v9292_v25 = vld [vmem:[#allocation5 + $0x1284] ss:$16 sps:$4 sm:$0xff]  }
 0x2e1   :  { %5623 = vmatpush1.bf16.msra.mxu0 %v9192_v26  ;;  %6139 = vmatpush1.bf16.msra.mxu1 %v9195_v53  ;;  %v9295_v26 = vld [vmem:[#allocation5 + $0x128c] ss:$16 sps:$4 sm:$0xff]   ;;  %v9290_v53 = vld [vmem:[#allocation5 + $0x1280] ss:$16 sps:$4 sm:$0xff]  }
 0x2e2   :  { %5624 = vmatprep.subr.bf16.mxu0 %v9200_v27  ;;  %6140 = vmatprep.subr.bf16.mxu1 %v9203_v10  ;;  %v9298_v27 = vld [vmem:[#allocation5 + $0x12a4] ss:$16 sps:$4 sm:$0xff]   ;;  %v9301_v10 = vld [vmem:[#allocation5 + $0x12ac] ss:$16 sps:$4 sm:$0xff]  }
 0x2e5   :  { %5625 = vmatpush1.bf16.msra.mxu0 %v9198_v11  ;;  %6141 = vmatpush1.bf16.msra.mxu1 %v9201_v28  ;;  %v9296_v11 = vld [vmem:[#allocation5 + $0x12a0] ss:$16 sps:$4 sm:$0xff]   ;;  %v9299_v28 = vld [vmem:[#allocation5 + $0x12a8] ss:$16 sps:$4 sm:$0xff]  }
 0x2e6   :  { %5626 = vmatprep.subr.bf16.mxu0 %v9206_v29  ;;  %6142 = vmatprep.subr.bf16.mxu1 %v9209_v30  ;;  %v9304_v29 = vld [vmem:[#allocation5 + $0x12c4] ss:$16 sps:$4 sm:$0xff]   ;;  %v9307_v30 = vld [vmem:[#allocation5 + $0x12cc] ss:$16 sps:$4 sm:$0xff]  }
 0x2e9   :  { %5627 = vmatpush1.bf16.msra.mxu0 %v9204_v31  ;;  %6143 = vmatpush1.bf16.msra.mxu1 %v9207_v32  ;;  %v9302_v31 = vld [vmem:[#allocation5 + $0x12c0] ss:$16 sps:$4 sm:$0xff]   ;;  %v9305_v32 = vld [vmem:[#allocation5 + $0x12c8] ss:$16 sps:$4 sm:$0xff]  }
 0x2ea   :  { %5628 = vmatprep.subr.bf16.mxu0 %v9212_v33  ;;  %6144 = vmatprep.subr.bf16.mxu1 %v9215_v34  ;;  %v9310_v33 = vld [vmem:[#allocation5 + $0x12e4] ss:$16 sps:$4 sm:$0xff]   ;;  %v9313_v34 = vld [vmem:[#allocation5 + $0x12ec] ss:$16 sps:$4 sm:$0xff]  }
 0x2ed   :  { %5629 = vmatpush1.bf16.msra.mxu0 %v9210_v36  ;;  %6145 = vmatpush1.bf16.msra.mxu1 %v9213_v37  ;;  %v9308_v36 = vld [vmem:[#allocation5 + $0x12e0] ss:$16 sps:$4 sm:$0xff]   ;;  %v9311_v37 = vld [vmem:[#allocation5 + $0x12e8] ss:$16 sps:$4 sm:$0xff]  }
 0x2ee   :  { %5630 = vmatprep.subr.bf16.mxu0 %v9218_v39  ;;  %6146 = vmatprep.subr.bf16.mxu1 %v9221_v40  ;;  %v9316_v39 = vld [vmem:[#allocation5 + $0x1304] ss:$16 sps:$4 sm:$0xff]   ;;  %v9319_v40 = vld [vmem:[#allocation5 + $0x130c] ss:$16 sps:$4 sm:$0xff]  }
 0x2f1   :  { %5631 = vmatpush1.bf16.msra.mxu0 %v9216_v42  ;;  %6147 = vmatpush1.bf16.msra.mxu1 %v9219_v43  ;;  %v9314_v42 = vld [vmem:[#allocation5 + $0x1300] ss:$16 sps:$4 sm:$0xff]   ;;  %v9317_v43 = vld [vmem:[#allocation5 + $0x1308] ss:$16 sps:$4 sm:$0xff]  }
 0x2f2   :  { %5632 = vmatprep.subr.bf16.mxu0 %v9224_v44  ;;  %6148 = vmatprep.subr.bf16.mxu1 %v9227_v45  ;;  %v9322_v44 = vld [vmem:[#allocation5 + $0x1324] ss:$16 sps:$4 sm:$0xff]   ;;  %v9325_v45 = vld [vmem:[#allocation5 + $0x132c] ss:$16 sps:$4 sm:$0xff]  }
 0x2f5   :  { %5633 = vmatpush1.bf16.msra.mxu0 %v9222_v46  ;;  %6149 = vmatpush1.bf16.msra.mxu1 %v9225_v50  ;;  %v9320_v46 = vld [vmem:[#allocation5 + $0x1320] ss:$16 sps:$4 sm:$0xff]   ;;  %v9323_v50 = vld [vmem:[#allocation5 + $0x1328] ss:$16 sps:$4 sm:$0xff]  }
 0x2f6   :  { %5634 = vmatprep.subr.bf16.mxu0 %v9230_v52  ;;  %6150 = vmatprep.subr.bf16.mxu1 %v9233_v55  ;;  %v9328_v52 = vld [vmem:[#allocation5 + $0x1344] ss:$16 sps:$4 sm:$0xff]   ;;  %v9331_v55 = vld [vmem:[#allocation5 + $0x134c] ss:$16 sps:$4 sm:$0xff]  }
 0x2f9   :  { %5635 = vmatpush1.bf16.msra.mxu0 %v9228_v56  ;;  %6151 = vmatpush1.bf16.msra.mxu1 %v9231_v15  ;;  %v9326_v56 = vld [vmem:[#allocation5 + $0x1340] ss:$16 sps:$4 sm:$0xff]   ;;  %v9329_v15 = vld [vmem:[#allocation5 + $0x1348] ss:$16 sps:$4 sm:$0xff]  }
 0x2fa   :  { %5636 = vmatprep.subr.bf16.mxu0 %v9236_v57  ;;  %6152 = vmatprep.subr.bf16.mxu1 %v9239_v58  ;;  %v9334_v57 = vld [vmem:[#allocation5 + $0x1364] ss:$16 sps:$4 sm:$0xff]   ;;  %v9337_v58 = vld [vmem:[#allocation5 + $0x136c] ss:$16 sps:$4 sm:$0xff]  }
 0x2fd   :  { %5637 = vmatpush1.bf16.msra.mxu0 %v9234_v13  ;;  %6153 = vmatpush1.bf16.msra.mxu1 %v9237_v35  ;;  %v9332_v13 = vld [vmem:[#allocation5 + $0x1360] ss:$16 sps:$4 sm:$0xff]   ;;  %v9335_v35 = vld [vmem:[#allocation5 + $0x1368] ss:$16 sps:$4 sm:$0xff]  }
 0x2fe   :  { %5638 = vmatprep.subr.bf16.mxu0 %v9242_v59  ;;  %6154 = vmatprep.subr.bf16.mxu1 %v9245_v60  ;;  %v9340_v59 = vld [vmem:[#allocation5 + $0x1384] ss:$16 sps:$4 sm:$0xff]   ;;  %v9343_v60 = vld [vmem:[#allocation5 + $0x138c] ss:$16 sps:$4 sm:$0xff]  }
 0x301   :  { %5639 = vmatpush1.bf16.msra.mxu0 %v9240_v61  ;;  %6155 = vmatpush1.bf16.msra.mxu1 %v9243_v62  ;;  %v9338_v61 = vld [vmem:[#allocation5 + $0x1380] ss:$16 sps:$4 sm:$0xff]   ;;  %v9341_v62 = vld [vmem:[#allocation5 + $0x1388] ss:$16 sps:$4 sm:$0xff]  }
 0x302   :  { %5640 = vmatprep.subr.bf16.mxu0 %v9248_v63  ;;  %6156 = vmatprep.subr.bf16.mxu1 %v9251_v0  ;;  %v9346_v63 = vld [vmem:[#allocation5 + $0x13a4] ss:$16 sps:$4 sm:$0xff]   ;;  %v9349_v0 = vld [vmem:[#allocation5 + $0x13ac] ss:$16 sps:$4 sm:$0xff]  }
 0x305   :  { %5641 = vmatpush1.bf16.msra.mxu0 %v9246_v19  ;;  %6157 = vmatpush1.bf16.msra.mxu1 %v9249_v47  ;;  %v9458_v19 = vld [vmem:[#allocation2 + $0x14] ss:$24 sps:$4 sm:$0xff]   ;;  %v9459_v47 = vld [vmem:[#allocation2 + $0x44] ss:$24 sps:$4 sm:$0xff]  }
 0x306   :  { %5642 = vmatprep.subr.bf16.mxu0 %v9254_v49  ;;  %6158 = vmatprep.subr.bf16.mxu1 %v9257_v3  ;;  %v9460_v49 = vld [vmem:[#allocation2 + $0x74] ss:$24 sps:$4 sm:$0xff]   ;;  %v9461_v3 = vld [vmem:[#allocation2 + $0xa4] ss:$24 sps:$4 sm:$0xff]  }
 0x309   :  { %5643 = vmatpush1.bf16.msra.mxu0 %v9252_v4  ;;  %6159 = vmatpush1.bf16.msra.mxu1 %v9255_v6  ;;  %v9344_v4 = vld [vmem:[#allocation5 + $0x13a0] ss:$16 sps:$4 sm:$0xff]   ;;  %v9347_v6 = vld [vmem:[#allocation5 + $0x13a8] ss:$16 sps:$4 sm:$0xff]  }
 0x30a   :  { %5655 = vmatprep.subr.bf16.mxu0 %v9268_v7  ;;  %6171 = vmatprep.subr.bf16.mxu1 %v9271_v8  ;;  %v9352_v7 = vld [vmem:[#allocation5 + $0x13c4] ss:$16 sps:$4 sm:$0xff]   ;;  %v9355_v8 = vld [vmem:[#allocation5 + $0x13cc] ss:$16 sps:$4 sm:$0xff]  }
 0x30c   :  { %5645 = vmatmul.mubr.bf16.vlgmr.msra.gmra.mrb[0].mxu0 %v1396_v9  ;;  %6161 = vmatmul.mubr.bf16.vlgmr.msra.gmra.mrb[0].mxu1 %v1396_v9  ;;  %v1289_v9 = vrot.slane %v9458_v19, %v10197_v54  ;;  %v9410_v19 = vld [vmem:[#allocation5 + $0x1500] ss:$16 sps:$4 sm:$0xff]  }
 0x30d   :  { %5656 = vmatpush1.bf16.msra.mxu0 %v9266_v51  ;;  %6172 = vmatpush1.bf16.msra.mxu1 %v9269_v12  ;;  %v1303_v51 = vrot.slane %v9459_v47, %v10197_v54  ;;  %v1317_v12 = vrot.slane %v9460_v49, %v10197_v54  ;;  %v9413_v47 = vld [vmem:[#allocation5 + $0x1508] ss:$16 sps:$4 sm:$0xff]   ;;  %v9418_v49 = vld [vmem:[#allocation5 + $0x1524] ss:$16 sps:$4 sm:$0xff]  }
 0x30e   :  { %5657 = vmatprep.subr.bf16.mxu0 %v9274_v14  ;;  %6173 = vmatprep.subr.bf16.mxu1 %v9277_v16  ;;  %v1331_v14 = vrot.slane %v9461_v3, %v10197_v54  ;;  %v9350_v16 = vld [vmem:[#allocation5 + $0x13c0] ss:$16 sps:$4 sm:$0xff]   ;;  %v9421_v3 = vld [vmem:[#allocation5 + $0x152c] ss:$16 sps:$4 sm:$0xff]  }
 0x30f   :  { %5687 = vmatprep.mubr.bf16.mxu0 %v10293_v2  ;;  %6203 = vmatprep.mubr.bf16.mxu1 %v10293_v2  ;;  %v9293_v2 = vld [vmem:[#allocation5 + $0x1288] ss:$16 sps:$4 sm:$0xff]  }
 0x311   :  { %5658 = vmatpush1.bf16.msra.mxu0 %v9272_v17  ;;  %6174 = vmatpush1.bf16.msra.mxu1 %v9275_v41  ;;  %v9353_v17 = vld [vmem:[#allocation5 + $0x13c8] ss:$16 sps:$4 sm:$0xff]   ;;  %v9358_v41 = vld [vmem:[#allocation5 + $0x13e4] ss:$16 sps:$4 sm:$0xff]  }
 0x312   :  { %5659 = vmatprep.subr.bf16.mxu0 %v9280_v18  ;;  %6175 = vmatprep.subr.bf16.mxu1 %v9283_v20  ;;  %v9361_v18 = vld [vmem:[#allocation5 + $0x13ec] ss:$16 sps:$4 sm:$0xff]   ;;  %v1335_v20 = vcombine.high %v1289_v9, %v1303_v51 }
 0x315   :  { %5660 = vmatpush1.bf16.msra.mxu0 %v9278_v38  ;;  %6176 = vmatpush1.bf16.msra.mxu1 %v9281_v1  ;;  %v1339_v38 = vcombine.high %v1317_v12, %v1331_v14  ;;  %v1334_v1 = vcombine.low %v1289_v9, %v1303_v51  ;;  %v9422_v9 = vld [vmem:[#allocation5 + $0x1540] ss:$16 sps:$4 sm:$0xff]   ;;  %v9425_v51 = vld [vmem:[#allocation5 + $0x1548] ss:$16 sps:$4 sm:$0xff]  }
 0x316   :  { %5661 = vmatprep.subr.bf16.mxu0 %v9286_v21  ;;  %6177 = vmatprep.subr.bf16.mxu1 %v9289_v22  ;;  %v1338_v21 = vcombine.low %v1317_v12, %v1331_v14  ;;  %v9356_v22 = vld [vmem:[#allocation5 + $0x13e0] ss:$16 sps:$4 sm:$0xff]   ;;  %v9430_v12 = vld [vmem:[#allocation5 + $0x1564] ss:$16 sps:$4 sm:$0xff]   ;;  %v9433_v14 = vld [vmem:[#allocation5 + $0x156c] ss:$16 sps:$4 sm:$0xff]  }
 0x319   :  { %5662 = vmatpush1.bf16.msra.mxu0 %v9284_v23  ;;  %6178 = vmatpush1.bf16.msra.mxu1 %v9287_v24  ;;  %v9359_v23 = vld [vmem:[#allocation5 + $0x13e8] ss:$16 sps:$4 sm:$0xff]   ;;  %v9364_v24 = vld [vmem:[#allocation5 + $0x1404] ss:$16 sps:$4 sm:$0xff]  }
 0x31a   :  { %5663 = vmatprep.subr.bf16.mxu0 %v9292_v25  ;;  %6179 = vmatprep.subr.bf16.mxu1 %v9295_v26  ;;  %v9367_v25 = vld [vmem:[#allocation5 + $0x140c] ss:$16 sps:$4 sm:$0xff]   ;;  %v1367_v26 = vrot.slane %v1335_v20, %v10197_v54  ;;  %v9434_v20 = vld [vmem:[#allocation5 + $0x1580] ss:$16 sps:$4 sm:$0xff]  }
 0x31d   :  { %5664 = vmatpush1.bf16.msra.mxu0 %v9290_v53  ;;  %6180 = vmatpush1.bf16.msra.mxu1 %v9293_v2  ;;  %v1395_v53 = vrot.slane %v1339_v38, %v10197_v54  ;;  %v10312_v2 = vrot.slane %v1334_v1, %v10197_v54  ;;  %v9437_v38 = vld [vmem:[#allocation5 + $0x1588] ss:$16 sps:$4 sm:$0xff]   ;;  %v9442_v1 = vld [vmem:[#allocation5 + $0x15a4] ss:$16 sps:$4 sm:$0xff]  }
 0x31e   :  { %5665 = vmatprep.subr.bf16.mxu0 %v9298_v27  ;;  %6181 = vmatprep.subr.bf16.mxu1 %v9301_v10  ;;  %v10315_v27 = vrot.slane %v1338_v21, %v10197_v54  ;;  %v9362_v10 = vld [vmem:[#allocation5 + $0x1400] ss:$16 sps:$4 sm:$0xff]   ;;  %v9445_v21 = vld [vmem:[#allocation5 + $0x15ac] ss:$16 sps:$4 sm:$0xff]  }
 0x31f   :  { %v9368_v54 = vld [vmem:[#allocation5 + $0x1420] ss:$16 sps:$4 sm:$0xff]  }
 0x321   :  { %5666 = vmatpush1.bf16.msra.mxu0 %v9296_v11  ;;  %6182 = vmatpush1.bf16.msra.mxu1 %v9299_v28  ;;  %v9365_v11 = vld [vmem:[#allocation5 + $0x1408] ss:$16 sps:$4 sm:$0xff]   ;;  %v10317_v28 = vcombine.high %v1367_v26, %v1395_v53 }
 0x322   :  { %5667 = vmatprep.subr.bf16.mxu0 %v9304_v29  ;;  %6183 = vmatprep.subr.bf16.mxu1 %v9307_v30  ;;  %v10321_v29 = vcombine.high %v10312_v2, %v10315_v27  ;;  %v9370_v30 = vld [vmem:[#allocation5 + $0x1424] ss:$16 sps:$4 sm:$0xff]  }
 0x325   :  { %5668 = vmatpush1.bf16.msra.mxu0 %v9302_v31  ;;  %6184 = vmatpush1.bf16.msra.mxu1 %v9305_v32  ;;  %v9373_v31 = vld [vmem:[#allocation5 + $0x142c] ss:$16 sps:$4 sm:$0xff]   ;;  %v1402_v32 = vcombine.low %v1367_v26, %v1395_v53  ;;  %v9446_v26 = vld [vmem:[#allocation5 + $0x15c0] ss:$16 sps:$4 sm:$0xff]   ;;  %v9449_v53 = vld [vmem:[#allocation5 + $0x15c8] ss:$16 sps:$4 sm:$0xff]  }
 0x326   :  { %5669 = vmatprep.subr.bf16.mxu0 %v9310_v33  ;;  %6185 = vmatprep.subr.bf16.mxu1 %v9313_v34  ;;  %v9371_v33 = vld [vmem:[#allocation5 + $0x1428] ss:$16 sps:$4 sm:$0xff]   ;;  %v9376_v34 = vld [vmem:[#allocation5 + $0x1444] ss:$16 sps:$4 sm:$0xff]  }
 0x329   :  { %5670 = vmatpush1.bf16.msra.mxu0 %v9308_v36  ;;  %6186 = vmatpush1.bf16.msra.mxu1 %v9311_v37  ;;  %v9379_v36 = vld [vmem:[#allocation5 + $0x144c] ss:$16 sps:$4 sm:$0xff]   ;;  %v9374_v37 = vld [vmem:[#allocation5 + $0x1440] ss:$16 sps:$4 sm:$0xff]  }
 0x32a   :  { %5671 = vmatprep.subr.bf16.mxu0 %v9316_v39  ;;  %6187 = vmatprep.subr.bf16.mxu1 %v9319_v40  ;;  %v9377_v39 = vld [vmem:[#allocation5 + $0x1448] ss:$16 sps:$4 sm:$0xff]   ;;  %v9382_v40 = vld [vmem:[#allocation5 + $0x1464] ss:$16 sps:$4 sm:$0xff]  }
 0x32d   :  { %5672 = vmatpush1.bf16.msra.mxu0 %v9314_v42  ;;  %6188 = vmatpush1.bf16.msra.mxu1 %v9317_v43  ;;  %v9385_v42 = vld [vmem:[#allocation5 + $0x146c] ss:$16 sps:$4 sm:$0xff]   ;;  %v9383_v43 = vld [vmem:[#allocation5 + $0x1468] ss:$16 sps:$4 sm:$0xff]  }
 0x32e   :  { %5673 = vmatprep.subr.bf16.mxu0 %v9322_v44  ;;  %6189 = vmatprep.subr.bf16.mxu1 %v9325_v45  ;;  %v9388_v44 = vld [vmem:[#allocation5 + $0x1484] ss:$16 sps:$4 sm:$0xff]   ;;  %v9391_v45 = vld [vmem:[#allocation5 + $0x148c] ss:$16 sps:$4 sm:$0xff]  }
 0x331   :  { %5674 = vmatpush1.bf16.msra.mxu0 %v9320_v46  ;;  %6190 = vmatpush1.bf16.msra.mxu1 %v9323_v50  ;;  %v9386_v46 = vld [vmem:[#allocation5 + $0x1480] ss:$16 sps:$4 sm:$0xff]   ;;  %v9389_v50 = vld [vmem:[#allocation5 + $0x1488] ss:$16 sps:$4 sm:$0xff]  }
 0x332   :  { %5675 = vmatprep.subr.bf16.mxu0 %v9328_v52  ;;  %6191 = vmatprep.subr.bf16.mxu1 %v9331_v55  ;;  %v9394_v52 = vld [vmem:[#allocation5 + $0x14a4] ss:$16 sps:$4 sm:$0xff]   ;;  %v9397_v55 = vld [vmem:[#allocation5 + $0x14ac] ss:$16 sps:$4 sm:$0xff]  }
 0x335   :  { %5676 = vmatpush1.bf16.msra.mxu0 %v9326_v56  ;;  %6192 = vmatpush1.bf16.msra.mxu1 %v9329_v15  ;;  %v9392_v56 = vld [vmem:[#allocation5 + $0x14a0] ss:$16 sps:$4 sm:$0xff]   ;;  %v9395_v15 = vld [vmem:[#allocation5 + $0x14a8] ss:$16 sps:$4 sm:$0xff]  }
 0x336   :  { %5677 = vmatprep.subr.bf16.mxu0 %v9334_v57  ;;  %6193 = vmatprep.subr.bf16.mxu1 %v9337_v58  ;;  %v9400_v57 = vld [vmem:[#allocation5 + $0x14c4] ss:$16 sps:$4 sm:$0xff]   ;;  %v9403_v58 = vld [vmem:[#allocation5 + $0x14cc] ss:$16 sps:$4 sm:$0xff]  }
 0x339   :  { %5678 = vmatpush1.bf16.msra.mxu0 %v9332_v13  ;;  %6194 = vmatpush1.bf16.msra.mxu1 %v9335_v35  ;;  %v9398_v13 = vld [vmem:[#allocation5 + $0x14c0] ss:$16 sps:$4 sm:$0xff]   ;;  %v9401_v35 = vld [vmem:[#allocation5 + $0x14c8] ss:$16 sps:$4 sm:$0xff]  }
 0x33a   :  { %5679 = vmatprep.subr.bf16.mxu0 %v9340_v59  ;;  %6195 = vmatprep.subr.bf16.mxu1 %v9343_v60  ;;  %v9406_v59 = vld [vmem:[#allocation5 + $0x14e4] ss:$16 sps:$4 sm:$0xff]   ;;  %v9409_v60 = vld [vmem:[#allocation5 + $0x14ec] ss:$16 sps:$4 sm:$0xff]  }
 0x33d   :  { %5680 = vmatpush1.bf16.msra.mxu0 %v9338_v61  ;;  %6196 = vmatpush1.bf16.msra.mxu1 %v9341_v62  ;;  %v9404_v61 = vld [vmem:[#allocation5 + $0x14e0] ss:$16 sps:$4 sm:$0xff]   ;;  %v9407_v62 = vld [vmem:[#allocation5 + $0x14e8] ss:$16 sps:$4 sm:$0xff]  }
 0x33e   :  { %5681 = vmatprep.subr.bf16.mxu0 %v9346_v63  ;;  %6197 = vmatprep.subr.bf16.mxu1 %v9349_v0  ;;  %v9412_v63 = vld [vmem:[#allocation5 + $0x1504] ss:$16 sps:$4 sm:$0xff]   ;;  %v9415_v0 = vld [vmem:[#allocation5 + $0x150c] ss:$16 sps:$4 sm:$0xff]  }
 0x341   :  { %5682 = vmatpush1.bf16.msra.mxu0 %v9344_v4  ;;  %6198 = vmatpush1.bf16.msra.mxu1 %v9347_v6  ;;  %v9416_v4 = vld [vmem:[#allocation5 + $0x1520] ss:$16 sps:$4 sm:$0xff]   ;;  %v9419_v6 = vld [vmem:[#allocation5 + $0x1528] ss:$16 sps:$4 sm:$0xff]  }
 0x342   :  { %5683 = vmatprep.subr.bf16.mxu0 %v9352_v7  ;;  %6199 = vmatprep.subr.bf16.mxu1 %v9355_v8  ;;  %v9424_v7 = vld [vmem:[#allocation5 + $0x1544] ss:$16 sps:$4 sm:$0xff]   ;;  %v9427_v8 = vld [vmem:[#allocation5 + $0x154c] ss:$16 sps:$4 sm:$0xff]  }
 0x345   :  { %5684 = vmatpush1.bf16.msra.mxu0 %v9350_v16  ;;  %6200 = vmatpush1.bf16.msra.mxu1 %v9353_v17  ;;  %v9428_v16 = vld [vmem:[#allocation5 + $0x1560] ss:$16 sps:$4 sm:$0xff]   ;;  %v9431_v17 = vld [vmem:[#allocation5 + $0x1568] ss:$16 sps:$4 sm:$0xff]  }
 0x346   :  { %5685 = vmatprep.subr.bf16.mxu0 %v9358_v41  ;;  %6201 = vmatprep.subr.bf16.mxu1 %v9361_v18  ;;  %v9436_v41 = vld [vmem:[#allocation5 + $0x1584] ss:$16 sps:$4 sm:$0xff]   ;;  %v9439_v18 = vld [vmem:[#allocation5 + $0x158c] ss:$16 sps:$4 sm:$0xff]  }
 0x349   :  { %5686 = vmatpush1.bf16.msra.mxu0 %v9356_v22  ;;  %6202 = vmatpush1.bf16.msra.mxu1 %v9359_v23  ;;  %v9440_v22 = vld [vmem:[#allocation5 + $0x15a0] ss:$16 sps:$4 sm:$0xff]   ;;  %v9443_v23 = vld [vmem:[#allocation5 + $0x15a8] ss:$16 sps:$4 sm:$0xff]  }
 0x34a   :  { %5698 = vmatprep.subr.bf16.mxu0 %v9364_v24  ;;  %6214 = vmatprep.subr.bf16.mxu1 %v9367_v25  ;;  %v9448_v24 = vld [vmem:[#allocation5 + $0x15c4] ss:$16 sps:$4 sm:$0xff]   ;;  %v9451_v25 = vld [vmem:[#allocation5 + $0x15cc] ss:$16 sps:$4 sm:$0xff]  }
 0x34c   :  { %5688 = vmatmul.mubr.bf16.vlgmr.msra.gmra.mrb[0].mxu0 %v10297_v5  ;;  %6204 = vmatmul.mubr.bf16.vlgmr.msra.gmra.mrb[0].mxu1 %v10297_v5  ;;  %v9380_v5 = vld [vmem:[#allocation5 + $0x1460] ss:$16 sps:$4 sm:$0xff]  }
 0x34d   :  { %5699 = vmatpush1.bf16.msra.mxu0 %v9362_v10  ;;  %6215 = vmatpush1.bf16.msra.mxu1 %v9365_v11  ;;  %v9454_v10 = vld [vmem:[#allocation5 + $0x15e4] ss:$16 sps:$4 sm:$0xff]   ;;  %v9457_v11 = vld [vmem:[#allocation5 + $0x15ec] ss:$16 sps:$4 sm:$0xff]  }
 0x34e   :  { %5700 = vmatprep.subr.bf16.mxu0 %v9370_v30  ;;  %6216 = vmatprep.subr.bf16.mxu1 %v9373_v31  ;;  %v9452_v30 = vld [vmem:[#allocation5 + $0x15e0] ss:$16 sps:$4 sm:$0xff]   ;;  %v9455_v31 = vld [vmem:[#allocation5 + $0x15e8] ss:$16 sps:$4 sm:$0xff]  }
 0x34f   :  { %5730 = vmatprep.mubr.bf16.mxu0 %v1402_v32  ;;  %6246 = vmatprep.mubr.bf16.mxu1 %v1402_v32  ;;  %v9464_v32 = vld [vmem:[#allocation5 + $0x1604] ss:$16 sps:$4 sm:$0xff]  }
 0x351   :  { %5701 = vmatpush1.bf16.msra.mxu0 %v9368_v54  ;;  %6217 = vmatpush1.bf16.msra.mxu1 %v9371_v33  ;;  %v9467_v54 = vld [vmem:[#allocation5 + $0x160c] ss:$16 sps:$4 sm:$0xff]   ;;  %v1398_v33 = vcombine.low %v10312_v2, %v10315_v27  ;;  %v9474_v2 = vld [vmem:[#allocation5 + $0x1640] ss:$16 sps:$4 sm:$0xff]   ;;  %v9477_v27 = vld [vmem:[#allocation5 + $0x1648] ss:$16 sps:$4 sm:$0xff]  }
 0x352   :  { %5702 = vmatprep.subr.bf16.mxu0 %v9376_v34  ;;  %6218 = vmatprep.subr.bf16.mxu1 %v9379_v36  ;;  %v9462_v34 = vld [vmem:[#allocation5 + $0x1600] ss:$16 sps:$4 sm:$0xff]   ;;  %v9465_v36 = vld [vmem:[#allocation5 + $0x1608] ss:$16 sps:$4 sm:$0xff]  }
 0x355   :  { %5703 = vmatpush1.bf16.msra.mxu0 %v9374_v37  ;;  %6219 = vmatpush1.bf16.msra.mxu1 %v9377_v39  ;;  %v9470_v37 = vld [vmem:[#allocation5 + $0x1624] ss:$16 sps:$4 sm:$0xff]   ;;  %v9473_v39 = vld [vmem:[#allocation5 + $0x162c] ss:$16 sps:$4 sm:$0xff]  }
 0x356   :  { %5704 = vmatprep.subr.bf16.mxu0 %v9382_v40  ;;  %6220 = vmatprep.subr.bf16.mxu1 %v9385_v42  ;;  %v9468_v40 = vld [vmem:[#allocation5 + $0x1620] ss:$16 sps:$4 sm:$0xff]   ;;  %v9471_v42 = vld [vmem:[#allocation5 + $0x1628] ss:$16 sps:$4 sm:$0xff]  }
 0x359   :  { %5705 = vmatpush1.bf16.msra.mxu0 %v9380_v5  ;;  %6221 = vmatpush1.bf16.msra.mxu1 %v9383_v43  ;;  %v9476_v5 = vld [vmem:[#allocation5 + $0x1644] ss:$16 sps:$4 sm:$0xff]   ;;  %v9479_v43 = vld [vmem:[#allocation5 + $0x164c] ss:$16 sps:$4 sm:$0xff]  }
 0x35a   :  { %5706 = vmatprep.subr.bf16.mxu0 %v9388_v44  ;;  %6222 = vmatprep.subr.bf16.mxu1 %v9391_v45  ;;  %v9482_v44 = vld [vmem:[#allocation5 + $0x1664] ss:$16 sps:$4 sm:$0xff]   ;;  %v9485_v45 = vld [vmem:[#allocation5 + $0x166c] ss:$16 sps:$4 sm:$0xff]  }
 0x35d   :  { %5707 = vmatpush1.bf16.msra.mxu0 %v9386_v46  ;;  %6223 = vmatpush1.bf16.msra.mxu1 %v9389_v50  ;;  %v9480_v46 = vld [vmem:[#allocation5 + $0x1660] ss:$16 sps:$4 sm:$0xff]   ;;  %v9483_v50 = vld [vmem:[#allocation5 + $0x1668] ss:$16 sps:$4 sm:$0xff]  }
 0x35e   :  { %5708 = vmatprep.subr.bf16.mxu0 %v9394_v52  ;;  %6224 = vmatprep.subr.bf16.mxu1 %v9397_v55  ;;  %v9488_v52 = vld [vmem:[#allocation5 + $0x1684] ss:$16 sps:$4 sm:$0xff]   ;;  %v9491_v55 = vld [vmem:[#allocation5 + $0x168c] ss:$16 sps:$4 sm:$0xff]  }
 0x361   :  { %5709 = vmatpush1.bf16.msra.mxu0 %v9392_v56  ;;  %6225 = vmatpush1.bf16.msra.mxu1 %v9395_v15  ;;  %v9486_v56 = vld [vmem:[#allocation5 + $0x1680] ss:$16 sps:$4 sm:$0xff]   ;;  %v9494_v15 = vld [vmem:[#allocation5 + $0x16a4] ss:$16 sps:$4 sm:$0xff]  }
 0x362   :  { %5710 = vmatprep.subr.bf16.mxu0 %v9400_v57  ;;  %6226 = vmatprep.subr.bf16.mxu1 %v9403_v58  ;;  %v9497_v57 = vld [vmem:[#allocation5 + $0x16ac] ss:$16 sps:$4 sm:$0xff]   ;;  %v9492_v58 = vld [vmem:[#allocation5 + $0x16a0] ss:$16 sps:$4 sm:$0xff]  }
 0x365   :  { %5711 = vmatpush1.bf16.msra.mxu0 %v9398_v13  ;;  %6227 = vmatpush1.bf16.msra.mxu1 %v9401_v35  ;;  %v9495_v13 = vld [vmem:[#allocation5 + $0x16a8] ss:$16 sps:$4 sm:$0xff]   ;;  %v9500_v35 = vld [vmem:[#allocation5 + $0x16c4] ss:$16 sps:$4 sm:$0xff]  }
 0x366   :  { %5712 = vmatprep.subr.bf16.mxu0 %v9406_v59  ;;  %6228 = vmatprep.subr.bf16.mxu1 %v9409_v60  ;;  %v9503_v59 = vld [vmem:[#allocation5 + $0x16cc] ss:$16 sps:$4 sm:$0xff]   ;;  %v9498_v60 = vld [vmem:[#allocation5 + $0x16c0] ss:$16 sps:$4 sm:$0xff]  }
 0x369   :  { %5713 = vmatpush1.bf16.msra.mxu0 %v9404_v61  ;;  %6229 = vmatpush1.bf16.msra.mxu1 %v9407_v62  ;;  %v9501_v61 = vld [vmem:[#allocation5 + $0x16c8] ss:$16 sps:$4 sm:$0xff]   ;;  %v9506_v62 = vld [vmem:[#allocation5 + $0x16e4] ss:$16 sps:$4 sm:$0xff]  }
 0x36a   :  { %5714 = vmatprep.subr.bf16.mxu0 %v9412_v63  ;;  %6230 = vmatprep.subr.bf16.mxu1 %v9415_v0  ;;  %v9509_v63 = vld [vmem:[#allocation5 + $0x16ec] ss:$16 sps:$4 sm:$0xff]   ;;  %v9504_v0 = vld [vmem:[#allocation5 + $0x16e0] ss:$16 sps:$4 sm:$0xff]  }
 0x36d   :  { %5715 = vmatpush1.bf16.msra.mxu0 %v9410_v19  ;;  %6231 = vmatpush1.bf16.msra.mxu1 %v9413_v47  ;;  %v9507_v19 = vld [vmem:[#allocation5 + $0x16e8] ss:$16 sps:$4 sm:$0xff]   ;;  %v9512_v47 = vld [vmem:[#allocation5 + $0x1704] ss:$16 sps:$4 sm:$0xff]  }
 0x36e   :  { %5716 = vmatprep.subr.bf16.mxu0 %v9418_v49  ;;  %6232 = vmatprep.subr.bf16.mxu1 %v9421_v3  ;;  %v9515_v49 = vld [vmem:[#allocation5 + $0x170c] ss:$16 sps:$4 sm:$0xff]   ;;  %v9510_v3 = vld [vmem:[#allocation5 + $0x1700] ss:$16 sps:$4 sm:$0xff]  }
 0x371   :  { %5717 = vmatpush1.bf16.msra.mxu0 %v9416_v4  ;;  %6233 = vmatpush1.bf16.msra.mxu1 %v9419_v6  ;;  %v9513_v4 = vld [vmem:[#allocation5 + $0x1708] ss:$16 sps:$4 sm:$0xff]   ;;  %v9518_v6 = vld [vmem:[#allocation5 + $0x1724] ss:$16 sps:$4 sm:$0xff]  }
 0x372   :  { %5718 = vmatprep.subr.bf16.mxu0 %v9424_v7  ;;  %6234 = vmatprep.subr.bf16.mxu1 %v9427_v8  ;;  %v9521_v7 = vld [vmem:[#allocation5 + $0x172c] ss:$16 sps:$4 sm:$0xff]   ;;  %v9516_v8 = vld [vmem:[#allocation5 + $0x1720] ss:$16 sps:$4 sm:$0xff]  }
 0x375   :  { %5719 = vmatpush1.bf16.msra.mxu0 %v9422_v9  ;;  %6235 = vmatpush1.bf16.msra.mxu1 %v9425_v51  ;;  %v9519_v9 = vld [vmem:[#allocation5 + $0x1728] ss:$16 sps:$4 sm:$0xff]   ;;  %v9524_v51 = vld [vmem:[#allocation5 + $0x1744] ss:$16 sps:$4 sm:$0xff]  }
 0x376   :  { %5720 = vmatprep.subr.bf16.mxu0 %v9430_v12  ;;  %6236 = vmatprep.subr.bf16.mxu1 %v9433_v14  ;;  %v9527_v12 = vld [vmem:[#allocation5 + $0x174c] ss:$16 sps:$4 sm:$0xff]   ;;  %v9522_v14 = vld [vmem:[#allocation5 + $0x1740] ss:$16 sps:$4 sm:$0xff]  }
 0x379   :  { %5721 = vmatpush1.bf16.msra.mxu0 %v9428_v16  ;;  %6237 = vmatpush1.bf16.msra.mxu1 %v9431_v17  ;;  %v9525_v16 = vld [vmem:[#allocation5 + $0x1748] ss:$16 sps:$4 sm:$0xff]   ;;  %v9530_v17 = vld [vmem:[#allocation5 + $0x1764] ss:$16 sps:$4 sm:$0xff]  }
 0x37a   :  { %5722 = vmatprep.subr.bf16.mxu0 %v9436_v41  ;;  %6238 = vmatprep.subr.bf16.mxu1 %v9439_v18  ;;  %v9533_v41 = vld [vmem:[#allocation5 + $0x176c] ss:$16 sps:$4 sm:$0xff]   ;;  %v9528_v18 = vld [vmem:[#allocation5 + $0x1760] ss:$16 sps:$4 sm:$0xff]  }
 0x37d   :  { %5723 = vmatpush1.bf16.msra.mxu0 %v9434_v20  ;;  %6239 = vmatpush1.bf16.msra.mxu1 %v9437_v38  ;;  %v9531_v20 = vld [vmem:[#allocation5 + $0x1768] ss:$16 sps:$4 sm:$0xff]   ;;  %v9536_v38 = vld [vmem:[#allocation5 + $0x1784] ss:$16 sps:$4 sm:$0xff]  }
 0x37e   :  { %5724 = vmatprep.subr.bf16.mxu0 %v9442_v1  ;;  %6240 = vmatprep.subr.bf16.mxu1 %v9445_v21  ;;  %v9539_v1 = vld [vmem:[#allocation5 + $0x178c] ss:$16 sps:$4 sm:$0xff]   ;;  %v9534_v21 = vld [vmem:[#allocation5 + $0x1780] ss:$16 sps:$4 sm:$0xff]  }
 0x381   :  { %5725 = vmatpush1.bf16.msra.mxu0 %v9440_v22  ;;  %6241 = vmatpush1.bf16.msra.mxu1 %v9443_v23  ;;  %v9537_v22 = vld [vmem:[#allocation5 + $0x1788] ss:$16 sps:$4 sm:$0xff]   ;;  %v9542_v23 = vld [vmem:[#allocation5 + $0x17a4] ss:$16 sps:$4 sm:$0xff]  }
 0x382   :  { %5726 = vmatprep.subr.bf16.mxu0 %v9448_v24  ;;  %6242 = vmatprep.subr.bf16.mxu1 %v9451_v25  ;;  %v9545_v24 = vld [vmem:[#allocation5 + $0x17ac] ss:$16 sps:$4 sm:$0xff]   ;;  %v9540_v25 = vld [vmem:[#allocation5 + $0x17a0] ss:$16 sps:$4 sm:$0xff]  }
 0x385   :  { %5727 = vmatpush1.bf16.msra.mxu0 %v9446_v26  ;;  %6243 = vmatpush1.bf16.msra.mxu1 %v9449_v53  ;;  %v9543_v26 = vld [vmem:[#allocation5 + $0x17a8] ss:$16 sps:$4 sm:$0xff]   ;;  %v9548_v53 = vld [vmem:[#allocation5 + $0x17c4] ss:$16 sps:$4 sm:$0xff]  }
 0x386   :  { %5728 = vmatprep.subr.bf16.mxu0 %v9454_v10  ;;  %6244 = vmatprep.subr.bf16.mxu1 %v9457_v11  ;;  %v9551_v10 = vld [vmem:[#allocation5 + $0x17cc] ss:$16 sps:$4 sm:$0xff]   ;;  %v9546_v11 = vld [vmem:[#allocation5 + $0x17c0] ss:$16 sps:$4 sm:$0xff]  }
 0x389   :  { %5729 = vmatpush1.bf16.msra.mxu0 %v9452_v30  ;;  %6245 = vmatpush1.bf16.msra.mxu1 %v9455_v31  ;;  %v9549_v30 = vld [vmem:[#allocation5 + $0x17c8] ss:$16 sps:$4 sm:$0xff]   ;;  %v9554_v31 = vld [vmem:[#allocation5 + $0x17e4] ss:$16 sps:$4 sm:$0xff]  }
 0x38a   :  { %5741 = vmatprep.subr.bf16.mxu0 %v9464_v32  ;;  %6257 = vmatprep.subr.bf16.mxu1 %v9467_v54  ;;  %v9557_v32 = vld [vmem:[#allocation5 + $0x17ec] ss:$16 sps:$4 sm:$0xff]   ;;  %v9552_v54 = vld [vmem:[#allocation5 + $0x17e0] ss:$16 sps:$4 sm:$0xff]  }
 0x38c   :  { %5731 = vmatmul.mubr.bf16.vlgmr.msra.gmra.mrb[0].mxu0 %v1398_v33  ;;  %6247 = vmatmul.mubr.bf16.vlgmr.msra.gmra.mrb[0].mxu1 %v1398_v33  ;;  %v9555_v33 = vld [vmem:[#allocation5 + $0x17e8] ss:$16 sps:$4 sm:$0xff]  }
 0x38d   :  { %5742 = vmatpush1.bf16.msra.mxu0 %v9462_v34  ;;  %6258 = vmatpush1.bf16.msra.mxu1 %v9465_v36  ;;  %v9560_v34 = vld [vmem:[#allocation7 + $0x4] ss:$8 sps:$4 sm:$0xff]   ;;  %v9558_v36 = vld [vmem:[#allocation7] ss:$8 sps:$4 sm:$0xff]  }
 0x38e   :  { %5743 = vmatprep.subr.bf16.mxu0 %v9470_v37  ;;  %6259 = vmatprep.subr.bf16.mxu1 %v9473_v39  ;;  %v9563_v37 = vld [vmem:[#allocation7 + $0x14] ss:$8 sps:$4 sm:$0xff]   ;;  %v9561_v39 = vld [vmem:[#allocation7 + $0x10] ss:$8 sps:$4 sm:$0xff]  }
 0x38f   :  { %5773 = vmatprep.mubr.bf16.mxu0 %v10317_v28  ;;  %6289 = vmatprep.mubr.bf16.mxu1 %v10317_v28  ;;  %v9489_v28 = vld [vmem:[#allocation5 + $0x1688] ss:$16 sps:$4 sm:$0xff]  }
 0x391   :  { %5744 = vmatpush1.bf16.msra.mxu0 %v9468_v40  ;;  %6260 = vmatpush1.bf16.msra.mxu1 %v9471_v42  ;;  %v9566_v40 = vld [vmem:[#allocation7 + $0x24] ss:$8 sps:$4 sm:$0xff]   ;;  %v9564_v42 = vld [vmem:[#allocation7 + $0x20] ss:$8 sps:$4 sm:$0xff]  }
 0x392   :  { %5745 = vmatprep.subr.bf16.mxu0 %v9476_v5  ;;  %6261 = vmatprep.subr.bf16.mxu1 %v9479_v43  ;;  %v9569_v5 = vld [vmem:[#allocation7 + $0x34] ss:$8 sps:$4 sm:$0xff]   ;;  %v9567_v43 = vld [vmem:[#allocation7 + $0x30] ss:$8 sps:$4 sm:$0xff]  }
 0x395   :  { %5746 = vmatpush1.bf16.msra.mxu0 %v9474_v2  ;;  %6262 = vmatpush1.bf16.msra.mxu1 %v9477_v27  ;;  %v9572_v2 = vld [vmem:[#allocation7 + $0x44] ss:$8 sps:$4 sm:$0xff]   ;;  %v9570_v27 = vld [vmem:[#allocation7 + $0x40] ss:$8 sps:$4 sm:$0xff]  }
 0x396   :  { %5747 = vmatprep.subr.bf16.mxu0 %v9482_v44  ;;  %6263 = vmatprep.subr.bf16.mxu1 %v9485_v45  ;;  %v9575_v44 = vld [vmem:[#allocation7 + $0x54] ss:$8 sps:$4 sm:$0xff]   ;;  %v9573_v45 = vld [vmem:[#allocation7 + $0x50] ss:$8 sps:$4 sm:$0xff]  }
 0x399   :  { %5748 = vmatpush1.bf16.msra.mxu0 %v9480_v46  ;;  %6264 = vmatpush1.bf16.msra.mxu1 %v9483_v50  ;;  %v9576_v46 = vld [vmem:[#allocation7 + $0x60] ss:$8 sps:$4 sm:$0xff]   ;;  %v9581_v50 = vld [vmem:[#allocation7 + $0x74] ss:$8 sps:$4 sm:$0xff]  }
 0x39a   :  { %5749 = vmatprep.subr.bf16.mxu0 %v9488_v52  ;;  %6265 = vmatprep.subr.bf16.mxu1 %v9491_v55  ;;  %v9579_v52 = vld [vmem:[#allocation7 + $0x70] ss:$8 sps:$4 sm:$0xff]   ;;  %v9584_v55 = vld [vmem:[#allocation7 + $0x84] ss:$8 sps:$4 sm:$0xff]  }
 0x39d   :  { %5750 = vmatpush1.bf16.msra.mxu0 %v9486_v56  ;;  %6266 = vmatpush1.bf16.msra.mxu1 %v9489_v28  ;;  %v9582_v56 = vld [vmem:[#allocation7 + $0x80] ss:$8 sps:$4 sm:$0xff]   ;;  %v9587_v28 = vld [vmem:[#allocation7 + $0x94] ss:$8 sps:$4 sm:$0xff]  }
 0x39e   :  { %5751 = vmatprep.subr.bf16.mxu0 %v9494_v15  ;;  %6267 = vmatprep.subr.bf16.mxu1 %v9497_v57  ;;  %v9585_v15 = vld [vmem:[#allocation7 + $0x90] ss:$8 sps:$4 sm:$0xff]   ;;  %v9590_v57 = vld [vmem:[#allocation7 + $0xa4] ss:$8 sps:$4 sm:$0xff]  }
 0x3a1   :  { %5752 = vmatpush1.bf16.msra.mxu0 %v9492_v58  ;;  %6268 = vmatpush1.bf16.msra.mxu1 %v9495_v13  ;;  %v9588_v58 = vld [vmem:[#allocation7 + $0xa0] ss:$8 sps:$4 sm:$0xff]   ;;  %v9593_v13 = vld [vmem:[#allocation7 + $0xb4] ss:$8 sps:$4 sm:$0xff]  }
 0x3a2   :  { %5753 = vmatprep.subr.bf16.mxu0 %v9500_v35  ;;  %6269 = vmatprep.subr.bf16.mxu1 %v9503_v59  ;;  %v9591_v35 = vld [vmem:[#allocation7 + $0xb0] ss:$8 sps:$4 sm:$0xff]   ;;  %v9596_v59 = vld [vmem:[#allocation7 + $0xc4] ss:$8 sps:$4 sm:$0xff]  }
 0x3a5   :  { %5754 = vmatpush1.bf16.msra.mxu0 %v9498_v60  ;;  %6270 = vmatpush1.bf16.msra.mxu1 %v9501_v61  ;;  %v9594_v60 = vld [vmem:[#allocation7 + $0xc0] ss:$8 sps:$4 sm:$0xff]   ;;  %v9599_v61 = vld [vmem:[#allocation7 + $0xd4] ss:$8 sps:$4 sm:$0xff]  }
 0x3a6   :  { %5755 = vmatprep.subr.bf16.mxu0 %v9506_v62  ;;  %6271 = vmatprep.subr.bf16.mxu1 %v9509_v63  ;;  %v9597_v62 = vld [vmem:[#allocation7 + $0xd0] ss:$8 sps:$4 sm:$0xff]   ;;  %v9602_v63 = vld [vmem:[#allocation7 + $0xe4] ss:$8 sps:$4 sm:$0xff]  }
 0x3a9   :  { %5756 = vmatpush1.bf16.msra.mxu0 %v9504_v0  ;;  %6272 = vmatpush1.bf16.msra.mxu1 %v9507_v19  ;;  %v9600_v0 = vld [vmem:[#allocation7 + $0xe0] ss:$8 sps:$4 sm:$0xff]   ;;  %v9605_v19 = vld [vmem:[#allocation7 + $0xf4] ss:$8 sps:$4 sm:$0xff]  }
 0x3aa   :  { %5757 = vmatprep.subr.bf16.mxu0 %v9512_v47  ;;  %6273 = vmatprep.subr.bf16.mxu1 %v9515_v49  ;;  %v9603_v47 = vld [vmem:[#allocation7 + $0xf0] ss:$8 sps:$4 sm:$0xff]   ;;  %v9608_v49 = vld [vmem:[#allocation7 + $0x104] ss:$8 sps:$4 sm:$0xff]  }
 0x3ad   :  { %5758 = vmatpush1.bf16.msra.mxu0 %v9510_v3  ;;  %6274 = vmatpush1.bf16.msra.mxu1 %v9513_v4  ;;  %v9654_v3 = vld [vmem:[#allocation10 + $0x40] sm:$0xff]  }
 0x3ae   :  { %5759 = vmatprep.subr.bf16.mxu0 %v9518_v6  ;;  %6275 = vmatprep.subr.bf16.mxu1 %v9521_v7  ;;  %v9655_v4 = vld [vmem:[#allocation10] sm:$0xff]   ;;  %v9656_v6 = vld [vmem:[#allocation10 + $0x48] sm:$0xff]  }
 0x3af   :  { %v9657_v7 = vld [vmem:[#allocation10 + $0x8] sm:$0xff]  }
 0x3b1   :  { %5760 = vmatpush1.bf16.msra.mxu0 %v9516_v8  ;;  %6276 = vmatpush1.bf16.msra.mxu1 %v9519_v9  ;;  %v9658_v8 = vld [vmem:[#allocation10 + $0x50] sm:$0xff]  }
 0x3b2   :  { %5761 = vmatprep.subr.bf16.mxu0 %v9524_v51  ;;  %6277 = vmatprep.subr.bf16.mxu1 %v9527_v12  ;;  %v9659_v9 = vld [vmem:[#allocation10 + $0x10] sm:$0xff]   ;;  %v9660_v51 = vld [vmem:[#allocation10 + $0x58] sm:$0xff]  }
 0x3b3   :  { %v9661_v12 = vld [vmem:[#allocation10 + $0x18] sm:$0xff]  }
 0x3b5   :  { %5762 = vmatpush1.bf16.msra.mxu0 %v9522_v14  ;;  %6278 = vmatpush1.bf16.msra.mxu1 %v9525_v16  ;;  %v9662_v14 = vld [vmem:[#allocation10 + $0x60] sm:$0xff]  }
 0x3b6   :  { %5763 = vmatprep.subr.bf16.mxu0 %v9530_v17  ;;  %6279 = vmatprep.subr.bf16.mxu1 %v9533_v41  ;;  %v9663_v16 = vld [vmem:[#allocation10 + $0x20] sm:$0xff]   ;;  %v9664_v17 = vld [vmem:[#allocation10 + $0x68] sm:$0xff]  }
 0x3b9   :  { %5764 = vmatpush1.bf16.msra.mxu0 %v9528_v18  ;;  %6280 = vmatpush1.bf16.msra.mxu1 %v9531_v20 }
 0x3ba   :  { %5765 = vmatprep.subr.bf16.mxu0 %v9536_v38  ;;  %6281 = vmatprep.subr.bf16.mxu1 %v9539_v1 }
 0x3bd   :  { %5766 = vmatpush1.bf16.msra.mxu0 %v9534_v21  ;;  %6282 = vmatpush1.bf16.msra.mxu1 %v9537_v22 }
 0x3be   :  { %5767 = vmatprep.subr.bf16.mxu0 %v9542_v23  ;;  %6283 = vmatprep.subr.bf16.mxu1 %v9545_v24 }
 0x3c1   :  { %5768 = vmatpush1.bf16.msra.mxu0 %v9540_v25  ;;  %6284 = vmatpush1.bf16.msra.mxu1 %v9543_v26 }
 0x3c2   :  { %5769 = vmatprep.subr.bf16.mxu0 %v9548_v53  ;;  %6285 = vmatprep.subr.bf16.mxu1 %v9551_v10  ;;  %v9606_v10 = vld [vmem:[#allocation7 + $0x100] ss:$8 sps:$4 sm:$0xff]  }
 0x3c5   :  { %5770 = vmatpush1.bf16.msra.mxu0 %v9546_v11  ;;  %6286 = vmatpush1.bf16.msra.mxu1 %v9549_v30  ;;  %v9611_v11 = vld [vmem:[#allocation7 + $0x114] ss:$8 sps:$4 sm:$0xff]   ;;  %v9609_v30 = vld [vmem:[#allocation7 + $0x110] ss:$8 sps:$4 sm:$0xff]  }
 0x3c6   :  { %5771 = vmatprep.subr.bf16.mxu0 %v9554_v31  ;;  %6287 = vmatprep.subr.bf16.mxu1 %v9557_v32  ;;  %v9614_v31 = vld [vmem:[#allocation7 + $0x124] ss:$8 sps:$4 sm:$0xff]   ;;  %v9612_v32 = vld [vmem:[#allocation7 + $0x120] ss:$8 sps:$4 sm:$0xff]  }
 0x3c9   :  { %5772 = vmatpush1.bf16.msra.mxu0 %v9552_v54  ;;  %6288 = vmatpush1.bf16.msra.mxu1 %v9555_v33  ;;  %v9617_v54 = vld [vmem:[#allocation7 + $0x134] ss:$8 sps:$4 sm:$0xff]   ;;  %v9615_v33 = vld [vmem:[#allocation7 + $0x130] ss:$8 sps:$4 sm:$0xff]  }
 0x3ca   :  { %6700 = vmatprep.subr.bf16.mxu0 %v9560_v34  ;;  %8161 = vmatprep.subr.bf16.mxu1 %v9654_v3  ;;  %v9620_v34 = vld [vmem:[#allocation7 + $0x144] ss:$8 sps:$4 sm:$0xff]  }
 0x3cc   :  { %5774 = vmatmul.mubr.bf16.vlgmr.msra.gmra.mrb[0].mxu0 %v10321_v29  ;;  %6290 = vmatmul.mubr.bf16.vlgmr.msra.gmra.mrb[0].mxu1 %v10321_v29  ;;  %v9578_v29 = vld [vmem:[#allocation7 + $0x64] ss:$8 sps:$4 sm:$0xff]  }
 0x3cd   :  { %6701 = vmatpush1.bf16.msra.mxu0 %v9558_v36  ;;  %8162 = vmatpush3.bf16.msra.mxu1 %v9655_v4  ;;  %v9618_v36 = vld [vmem:[#allocation7 + $0x140] ss:$8 sps:$4 sm:$0xff]  }
 0x3ce   :  { %6702 = vmatprep.subr.bf16.mxu0 %v9563_v37  ;;  %8163 = vmatprep.subr.bf16.mxu1 %v9656_v6  ;;  %v9623_v37 = vld [vmem:[#allocation7 + $0x154] ss:$8 sps:$4 sm:$0xff]  }
 0x3d1   :  { %6703 = vmatpush1.bf16.msra.mxu0 %v9561_v39  ;;  %8164 = vmatpush3.bf16.msra.mxu1 %v9657_v7  ;;  %v9621_v39 = vld [vmem:[#allocation7 + $0x150] ss:$8 sps:$4 sm:$0xff]  }
 0x3d2   :  { %6704 = vmatprep.subr.bf16.mxu0 %v9566_v40  ;;  %8165 = vmatprep.subr.bf16.mxu1 %v9658_v8  ;;  %v9626_v40 = vld [vmem:[#allocation7 + $0x164] ss:$8 sps:$4 sm:$0xff]  }
 0x3d5   :  { %6705 = vmatpush1.bf16.msra.mxu0 %v9564_v42  ;;  %8166 = vmatpush3.bf16.msra.mxu1 %v9659_v9  ;;  %v9624_v42 = vld [vmem:[#allocation7 + $0x160] ss:$8 sps:$4 sm:$0xff]  }
 0x3d6   :  { %6706 = vmatprep.subr.bf16.mxu0 %v9569_v5  ;;  %8167 = vmatprep.subr.bf16.mxu1 %v9660_v51  ;;  %v9629_v5 = vld [vmem:[#allocation7 + $0x174] ss:$8 sps:$4 sm:$0xff]  }
 0x3d9   :  { %6707 = vmatpush1.bf16.msra.mxu0 %v9567_v43  ;;  %8168 = vmatpush3.bf16.msra.mxu1 %v9661_v12  ;;  %v9627_v43 = vld [vmem:[#allocation7 + $0x170] ss:$8 sps:$4 sm:$0xff]  }
 0x3da   :  { %6708 = vmatprep.subr.bf16.mxu0 %v9572_v2  ;;  %8169 = vmatprep.subr.bf16.mxu1 %v9662_v14  ;;  %v9632_v2 = vld [vmem:[#allocation7 + $0x184] ss:$8 sps:$4 sm:$0xff]  }
 0x3dd   :  { %6709 = vmatpush1.bf16.msra.mxu0 %v9570_v27  ;;  %8170 = vmatpush3.bf16.msra.mxu1 %v9663_v16  ;;  %v9630_v27 = vld [vmem:[#allocation7 + $0x180] ss:$8 sps:$4 sm:$0xff]  }
 0x3de   :  { %6710 = vmatprep.subr.bf16.mxu0 %v9575_v44  ;;  %8171 = vmatprep.subr.bf16.mxu1 %v9664_v17  ;;  %v9635_v44 = vld [vmem:[#allocation7 + $0x194] ss:$8 sps:$4 sm:$0xff]  }
 0x3e1   :  { %6711 = vmatpush1.bf16.msra.mxu0 %v9573_v45  ;;  %v9633_v45 = vld [vmem:[#allocation7 + $0x190] ss:$8 sps:$4 sm:$0xff]  }
 0x3e2   :  { %6712 = vmatprep.subr.bf16.mxu0 %v9578_v29  ;;  %v9638_v29 = vld [vmem:[#allocation7 + $0x1a4] ss:$8 sps:$4 sm:$0xff]  }
 0x3e5   :  { %6713 = vmatpush1.bf16.msra.mxu0 %v9576_v46  ;;  %v9636_v46 = vld [vmem:[#allocation7 + $0x1a0] ss:$8 sps:$4 sm:$0xff]  }
 0x3e6   :  { %6714 = vmatprep.subr.bf16.mxu0 %v9581_v50  ;;  %v9641_v50 = vld [vmem:[#allocation7 + $0x1b4] ss:$8 sps:$4 sm:$0xff]  }
 0x3e9   :  { %6715 = vmatpush1.bf16.msra.mxu0 %v9579_v52  ;;  %v9639_v52 = vld [vmem:[#allocation7 + $0x1b0] ss:$8 sps:$4 sm:$0xff]  }
 0x3ea   :  { %6716 = vmatprep.subr.bf16.mxu0 %v9584_v55  ;;  %v9644_v55 = vld [vmem:[#allocation7 + $0x1c4] ss:$8 sps:$4 sm:$0xff]  }
 0x3ed   :  { %6717 = vmatpush1.bf16.msra.mxu0 %v9582_v56  ;;  %v9642_v56 = vld [vmem:[#allocation7 + $0x1c0] ss:$8 sps:$4 sm:$0xff]  }
 0x3ee   :  { %6718 = vmatprep.subr.bf16.mxu0 %v9587_v28  ;;  %v9647_v28 = vld [vmem:[#allocation7 + $0x1d4] ss:$8 sps:$4 sm:$0xff]  }
 0x3f1   :  { %6719 = vmatpush1.bf16.msra.mxu0 %v9585_v15  ;;  %v9645_v15 = vld [vmem:[#allocation7 + $0x1d0] ss:$8 sps:$4 sm:$0xff]  }
 0x3f2   :  { %6720 = vmatprep.subr.bf16.mxu0 %v9590_v57  ;;  %v9650_v57 = vld [vmem:[#allocation7 + $0x1e4] ss:$8 sps:$4 sm:$0xff]  }
 0x3f5   :  { %6721 = vmatpush1.bf16.msra.mxu0 %v9588_v58  ;;  %v9648_v58 = vld [vmem:[#allocation7 + $0x1e0] ss:$8 sps:$4 sm:$0xff]  }
 0x3f6   :  { %6722 = vmatprep.subr.bf16.mxu0 %v9593_v13  ;;  %v9653_v13 = vld [vmem:[#allocation7 + $0x1f4] ss:$8 sps:$4 sm:$0xff]  }
 0x3f9   :  { %6723 = vmatpush1.bf16.msra.mxu0 %v9591_v35  ;;  %v9651_v35 = vld [vmem:[#allocation7 + $0x1f0] ss:$8 sps:$4 sm:$0xff]  }
 0x3fa   :  { %6724 = vmatprep.subr.bf16.mxu0 %v9596_v59  ;;  %v9665_v59 = vld [vmem:[#allocation10 + $0x28] sm:$0xff]  }
 0x3fb   :  { %8172 = vmatpush3.bf16.msra.mxu1 %v9665_v59 }
 0x3fd   :  { %6725 = vmatpush1.bf16.msra.mxu0 %v9594_v60  ;;  %v9666_v60 = vld [vmem:[#allocation10 + $0x70] sm:$0xff]  }
 0x3fe   :  { %6726 = vmatprep.subr.bf16.mxu0 %v9599_v61  ;;  %v9667_v61 = vld [vmem:[#allocation10 + $0x30] sm:$0xff]   ;;  %8173 = vmatprep.subr.bf16.mxu1 %v9666_v60  ;;  %v8150_v60 = vld [vmem:[#allocation16] ss:$0 sm:$0xff] }
 0x3ff   :  { %8174 = vmatpush3.bf16.msra.mxu1 %v9667_v61 }
 0x401   :  { %6727 = vmatpush1.bf16.msra.mxu0 %v9597_v62  ;;  %v9668_v62 = vld [vmem:[#allocation10 + $0x78] sm:$0xff]  }
 0x402   :  { %6728 = vmatprep.subr.bf16.mxu0 %v9602_v63  ;;  %v9669_v63 = vld [vmem:[#allocation10 + $0x38] sm:$0xff]   ;;  %8175 = vmatprep.subr.bf16.mxu1 %v9668_v62 }
 0x403   :  { %8176 = vmatpush3.bf16.msra.mxu1 %v9669_v63 }
 0x405   :  { %6729 = vmatpush1.bf16.msra.mxu0 %v9600_v0  ;;  %v9992_v0 = vmov 0.0  }
 0x406   :  { %6730 = vmatprep.subr.bf16.mxu0 %v9605_v19  ;;  %8203 = vmatprep.subr.bf16.mxu1 %v9992_v0  ;;  %v6372_v19 = vsub.s32 0, %v10194_v48 }
 0x409   :  { %6731 = vmatpush1.bf16.msra.mxu0 %v9603_v47  ;;  %v6368_v47 = vld [vmem:[#allocation8] sm:$0x3] }
 0x40a   :  { %6743 = vmatprep.subr.bf16.mxu0 %v9608_v49  ;;  %v6376_v49 = vsub.s32 1, %v10194_v48  ;;  %v6373_v3 = vrot.slane %v6368_v47, %v6372_v19  ;;  %v9671_v48 = vld [vmem:[#allocation13 + $0x8] sm:$0xff]  }
 0x40c   :  { %v6377_v4 = vrot.slane %v6368_v47, %v6376_v49 }
 0x49f   :  { %v5775_v41 = vpop.f32.mrb[0].mxu0  ;;  %v10331_v18 = vpop.f32.mrb[0].mxu1 }
 0x4a0   :  { %v5777_v20 = vpop.f32.mrb[1].mxu0  ;;  %v6293_v38 = vpop.f32.mrb[1].mxu1 }
 0x4a1   :  { %v5779_v1 = vpop.f32.mrb[2].mxu0  ;;  %v10333_v21 = vpop.f32.mrb[2].mxu1 }
 0x4a2   :  { %v6300_v22 = vpack.c.bf16 %v5779_v1, %v5775_v41  ;;  %v6302_v23 = vpack.c.bf16 %v10333_v21, %v10331_v18  ;;  %v5781_v24 = vpop.f32.mrb[3].mxu0  ;;  %v6297_v25 = vpop.f32.mrb[3].mxu1  ;;  %v9670_v21 = vld [vmem:[#allocation13] sm:$0xff]  }
 0x4a3   :  { %v6301_v26 = vpack.c.bf16 %v5781_v24, %v5777_v20  ;;  %v6303_v53 = vpack.c.bf16 %v6297_v25, %v6293_v38  ;;  %v9674_v24 = vld [vmem:[#allocation13 + $0x20] sm:$0xff]   ;;  %v9675_v25 = vld [vmem:[#allocation13 + $0x28] sm:$0xff]  }
 0x4a5   :  { %6732 = vmatprep.mubr.bf16.mxu0 %v6301_v26  ;;  %v9676_v26 = vld [vmem:[#allocation13 + $0x30] sm:$0xff]  }
 0x4a6   :  { %6733 = vmatmul.mubr.bf16.vlgmr.msra.gmra.mrb[4].mxu0 %v6300_v22  ;;  %v9672_v22 = vld [vmem:[#allocation13 + $0x10] sm:$0xff]  }
 0x4a7   :  { %6744 = vmatpush1.bf16.msra.mxu0 %v9606_v10  ;;  %6775 = vmatprep.mubr.bf16.mxu0 %v6303_v53  ;;  %v9677_v53 = vld [vmem:[#allocation13 + $0x38] sm:$0xff]  }
 0x4a8   :  { %6745 = vmatprep.subr.bf16.mxu0 %v9611_v11  ;;  %v8124_v11 = vld [vmem:[#allocation11] ss:$0 sm:$0xff] }
 0x4ab   :  { %6746 = vmatpush1.bf16.msra.mxu0 %v9609_v30 }
 0x4ac   :  { %6747 = vmatprep.subr.bf16.mxu0 %v9614_v31 }
 0x4af   :  { %6748 = vmatpush1.bf16.msra.mxu0 %v9612_v32 }
 0x4b0   :  { %6749 = vmatprep.subr.bf16.mxu0 %v9617_v54 }
 0x4b3   :  { %6750 = vmatpush1.bf16.msra.mxu0 %v9615_v33 }
 0x4b4   :  { %6751 = vmatprep.subr.bf16.mxu0 %v9620_v34 }
 0x4b7   :  { %6752 = vmatpush1.bf16.msra.mxu0 %v9618_v36 }
 0x4b8   :  { %6753 = vmatprep.subr.bf16.mxu0 %v9623_v37 }
 0x4bb   :  { %6754 = vmatpush1.bf16.msra.mxu0 %v9621_v39 }
 0x4bc   :  { %6755 = vmatprep.subr.bf16.mxu0 %v9626_v40  ;;  %v9678_v40 = vld [vmem:[%s10412_s8] sm:$0xff]  }
 0x4bf   :  { %6756 = vmatpush1.bf16.msra.mxu0 %v9624_v42 }
 0x4c0   :  { %6757 = vmatprep.subr.bf16.mxu0 %v9629_v5  ;;  %v9679_v5 = vld [vmem:[%s10412_s8 + $0x8] sm:$0xff]  }
 0x4c3   :  { %6758 = vmatpush1.bf16.msra.mxu0 %v9627_v43  ;;  %v9680_v43 = vld [vmem:[%s10412_s8 + $0x10] sm:$0xff]  }
 0x4c4   :  { %6759 = vmatprep.subr.bf16.mxu0 %v9632_v2  ;;  %v9681_v2 = vld [vmem:[%s10412_s8 + $0x18] sm:$0xff]  }
 0x4c7   :  { %6760 = vmatpush1.bf16.msra.mxu0 %v9630_v27  ;;  %v9682_v27 = vld [vmem:[%s10412_s8 + $0x20] sm:$0xff]  }
 0x4c8   :  { %6761 = vmatprep.subr.bf16.mxu0 %v9635_v44  ;;  %v9683_v44 = vld [vmem:[%s10412_s8 + $0x28] sm:$0xff]  }
 0x4cb   :  { %6762 = vmatpush1.bf16.msra.mxu0 %v9633_v45  ;;  %v9684_v45 = vld [vmem:[%s10412_s8 + $0x30] sm:$0xff]  }
 0x4cc   :  { %6763 = vmatprep.subr.bf16.mxu0 %v9638_v29  ;;  %v9685_v29 = vld [vmem:[%s10412_s8 + $0x38] sm:$0xff]  }
 0x4cf   :  { %6764 = vmatpush1.bf16.msra.mxu0 %v9636_v46  ;;  %v8141_v46 = vld [vmem:[#allocation14] ss:$0 sm:$0xff] }
 0x4d0   :  { %6765 = vmatprep.subr.bf16.mxu0 %v9641_v50 }
 0x4d3   :  { %6766 = vmatpush1.bf16.msra.mxu0 %v9639_v52 }
 0x4d4   :  { %6767 = vmatprep.subr.bf16.mxu0 %v9644_v55 }
 0x4d7   :  { %6768 = vmatpush1.bf16.msra.mxu0 %v9642_v56 }
 0x4d8   :  { %6769 = vmatprep.subr.bf16.mxu0 %v9647_v28 }
 0x4db   :  { %6770 = vmatpush1.bf16.msra.mxu0 %v9645_v15 }
 0x4dc   :  { %6771 = vmatprep.subr.bf16.mxu0 %v9650_v57 }
 0x4df   :  { %6772 = vmatpush1.bf16.msra.mxu0 %v9648_v58 }
 0x4e0   :  { %6773 = vmatprep.subr.bf16.mxu0 %v9653_v13 }
 0x4e3   :  { %6774 = vmatpush1.bf16.msra.mxu0 %v9651_v35  ;;  %v7201_v35 = vld [vmem:[#allocation17] sm:$0xf] }
 0x4e4   :  { %v7215_v59 = vsel %vm7213_vm1, %v7201_v35, 0 }
 0x4e6   :  { %6776 = vmatmul.mubr.bf16.vlgmr.msra.gmra.mrb[4].mxu0 %v6302_v23  ;;  %v9673_v23 = vld [vmem:[#allocation13 + $0x18] sm:$0xff]  }
 0x5b9   :  { %v6777_v6 = vpop.f32.mrb[4].mxu0 }
 0x5ba   :  { %v8249_v7 = vadd.f32 %v6777_v6, %v6373_v3  ;;  %v6779_v8 = vpop.f32.mrb[5].mxu0 }
 0x5bb   :  { %v8250_v9 = vadd.f32 %v6779_v8, %v6377_v4  ;;  %v6781_v51 = vpop.f32.mrb[6].mxu0 }
 0x5bc   :  { %v8251_v12 = vadd.f32 %v6781_v51, %v6373_v3  ;;  %v6783_v14 = vpop.f32.mrb[7].mxu0  ;;  %v6786_v17 = vmax.f32 %v8249_v7, 0.0  ;;  %v8159_v7 = vld [vmem:[#allocation19] ss:$0 sm:$0xff] }
 0x5bd   :  { %v8252_v16 = vadd.f32 %v6783_v14, %v6377_v4  ;;  %v6787_v18 = vmax.f32 %v8250_v9, 0.0 }
 0x5be   :  { %v6788_v41 = vmax.f32 %v8251_v12, 0.0 }
 0x5bf   :  { %v6789_v20 = vmax.f32 %v8252_v16, 0.0 }
 0x5c0   :  { %v6790_v38 = vpack.c.bf16 %v6788_v41, %v6786_v17 }
 0x5c1   :  { %v6791_v1 = vpack.c.bf16 %v6789_v20, %v6787_v18 }
 0x5c3   :  { %6959 = vmatprep.mubr.bf16.mxu1 %v6791_v1 }
 0x5c4   :  { %6960 = vmatmul.mubr.bf16.vlgmr.msra.gmra.mrb[4].mxu1 %v6790_v38 }
 0x5c5   :  { %8204 = vmatpush3.bf16.msra.mxu1 %v9670_v21  ;;  %8219 = vmatprep.mubr.msk.bf16.mxu1 %vm9993_vm0, %v9992_v0 }
 0x5c6   :  { %8205 = vmatprep.subr.bf16.mxu1 %v9992_v0 }
 0x5c9   :  { %8206 = vmatpush3.bf16.msra.mxu1 %v9671_v48 }
 0x5ca   :  { %8207 = vmatprep.subr.bf16.mxu1 %v9992_v0 }
 0x5cd   :  { %8208 = vmatpush3.bf16.msra.mxu1 %v9672_v22 }
 0x5ce   :  { %8209 = vmatprep.subr.bf16.mxu1 %v9992_v0 }
 0x5d1   :  { %8210 = vmatpush3.bf16.msra.mxu1 %v9673_v23 }
 0x5d2   :  { %8211 = vmatprep.subr.bf16.mxu1 %v9992_v0 }
 0x5d5   :  { %8212 = vmatpush3.bf16.msra.mxu1 %v9674_v24 }
 0x5d6   :  { %8213 = vmatprep.subr.bf16.mxu1 %v9992_v0 }
 0x5d9   :  { %8214 = vmatpush3.bf16.msra.mxu1 %v9675_v25 }
 0x5da   :  { %8215 = vmatprep.subr.bf16.mxu1 %v9992_v0 }
 0x5dd   :  { %8216 = vmatpush3.bf16.msra.mxu1 %v9676_v26 }
 0x5de   :  { %8217 = vmatprep.subr.bf16.mxu1 %v9992_v0 }
 0x5e1   :  { %8218 = vmatpush3.bf16.msra.mxu1 %v9677_v53 }
 0x5e2   :  { %8223 = vmatprep.subr.bf16.mxu1 %v9992_v0 }
 0x697   :  { %v8177_v10 = vpop.f32.mrb[4].mxu1 }
 0x698   :  { %v8178_v30 = vpop.f32.mrb[5].mxu1 }
 0x699   :  { %v8179_v31 = vadd.f32 %v8178_v30, %v8177_v10  ;;  %v8180_v32 = vpop.f32.mrb[6].mxu1 }
 0x69a   :  { %v8181_v54 = vpop.f32.mrb[7].mxu1 }
 0x69b   :  { %v6962_v33 = vadd.f32 %v8179_v31, %v8124_v11  ;;  %v8182_v34 = vadd.f32 %v8181_v54, %v8180_v32 }
 0x69d   :  { %v6965_v36 = vadd.f32 %v8182_v34, %v8124_v11  ;;  %v6968_v37 = vmax.f32 %v6962_v33, 0.0 }
 0x69f   :  { %v6969_v39 = vmax.f32 %v6965_v36, 0.0 }
 0x6a1   :  { %v6970_v42 = vpack.c.bf16 %v6969_v39, %v6968_v37 }
 0x6a3   :  { %8220 = vmatmul.mubr.bf16.vlgmr.msra.gmra.mrb[8].mxu1 %v6970_v42 }
 0x6a4   :  { %8224 = vmatpush3.bf16.msra.mxu1 %v9678_v40  ;;  %8239 = vmatprep.mubr.msk.bf16.mxu1 %vm9993_vm0, %v9992_v0 }
 0x6a5   :  { %8225 = vmatprep.subr.bf16.mxu1 %v9992_v0 }
 0x6a8   :  { %8226 = vmatpush3.bf16.msra.mxu1 %v9679_v5 }
 0x6a9   :  { %8227 = vmatprep.subr.bf16.mxu1 %v9992_v0 }
 0x6ac   :  { %8228 = vmatpush3.bf16.msra.mxu1 %v9680_v43 }
 0x6ad   :  { %8229 = vmatprep.subr.bf16.mxu1 %v9992_v0 }
 0x6b0   :  { %8230 = vmatpush3.bf16.msra.mxu1 %v9681_v2 }
 0x6b1   :  { %8231 = vmatprep.subr.bf16.mxu1 %v9992_v0 }
 0x6b4   :  { %8232 = vmatpush3.bf16.msra.mxu1 %v9682_v27 }
 0x6b5   :  { %8233 = vmatprep.subr.bf16.mxu1 %v9992_v0 }
 0x6b8   :  { %8234 = vmatpush3.bf16.msra.mxu1 %v9683_v44 }
 0x6b9   :  { %8235 = vmatprep.subr.bf16.mxu1 %v9992_v0 }
 0x6bc   :  { %8236 = vmatpush3.bf16.msra.mxu1 %v9684_v45 }
 0x6bd   :  { %8237 = vmatprep.subr.bf16.mxu1 %v9992_v0 }
 0x6c0   :  { %8238 = vmatpush3.bf16.msra.mxu1 %v9685_v29 }
 0x6c1   :  { %8243 = vmatprep.subr.bf16.mxu1 %v9992_v0 }
 0x776   :  { %v7076_v50 = vpop.f32.mrb[8].mxu1 }
 0x777   :  { %v7077_v52 = vadd.f32 %v8141_v46, %v7076_v50  ;;  %v8221_v55 = vpop.f32.mrb[9].mxu1 }
 0x778   :  { %v7079_v56 = vpop.f32.mrb[10].mxu1 }
 0x779   :  { %v7080_v28 = vadd.f32 %v8141_v46, %v7079_v56  ;;  %v8222_v15 = vpop.f32.mrb[11].mxu1  ;;  %v7083_v57 = vmax.f32 %v7077_v52, 0.0 }
 0x77b   :  { %v7084_v58 = vmax.f32 %v7080_v28, 0.0 }
 0x77d   :  { %v7085_v13 = vpack.c.bf16 %v7084_v58, %v7083_v57 }
 0x77f   :  { %8240 = vmatmul.mubr.bf16.vlgmr.msra.gmra.mrb[12].mxu1 %v7085_v13 }
 0x780   :  { %8245 = vmatprep.mubr.msk.bf16.mxu1 %vm9993_vm0, %v9992_v0  ;;  %8244 = vmatpush3.bf16.msra.mxu1 %v7215_v59 }
 0x852   :  { %v7191_v61 = vpop.f32.mrb[12].mxu1 }
 0x853   :  { %v7192_v62 = vadd.f32 %v8150_v60, %v7191_v61  ;;  %v8241_v63 = vpop.f32.mrb[13].mxu1 }
 0x854   :  { %v7194_v19 = vpop.f32.mrb[14].mxu1 }
 0x855   :  { %v7195_v47 = vadd.f32 %v8150_v60, %v7194_v19  ;;  %v8242_v49 = vpop.f32.mrb[15].mxu1  ;;  %v7198_v3 = vmax.f32 %v7192_v62, 0.0 }
 0x857   :  { %v7199_v4 = vmax.f32 %v7195_v47, 0.0 }
 0x859   :  { %v7200_v6 = vpack.c.bf16 %v7199_v4, %v7198_v3 }
 0x85b   :  { %8246 = vmatmul.mubr.msk.bf16.vlgmr.msra.gmra.mrb[16].mxu1 %vm7209_vm2, %v7200_v6 }
 0x92e   :  { %v7251_v8 = vpop.f32.mrb[16].mxu1 }
 0x92f   :  { %v7252_v0 = vadd.f32 %v8159_v7, %v7251_v8  ;;  %v8247_v9 = vpop.f32.mrb[17].mxu1 }
 0x930   :  { %v7254_v51 = vpop.f32.mrb[18].mxu1 }
 0x931   :  { %v7258_v12 = vsub.f32 0.0, %v7252_v0  ;;  %v7255_v14 = vadd.f32 %v8159_v7, %v7254_v51  ;;  %v8248_v16 = vpop.f32.mrb[19].mxu1 }
 0x933   :  { %v7260_v17 = vmul.f32 1.442695, %v7258_v12  ;;  %v7259_v41 = vsub.f32 0.0, %v7255_v14 }
 0x935   :  { %9686 = vpow2.f32 %v7260_v17  ;;  %v7262_v18 = vmul.f32 1.442695, %v7259_v41 }
 0x937   :  { %9688 = vpow2.f32 %v7262_v18 }
 0x93f   :  { %v9687_v20 = vpop.eup %9686 }
 0x940   :  { %v7264_v38 = vadd.f32 1.0, %v9687_v20 }
 0x941   :  { %v9689_v1 = vpop.eup %9688 }
 0x942   :  { %9690 = vrcp.f32 %v7264_v38  ;;  %v7265_v21 = vadd.f32 1.0, %v9689_v1 }
 0x944   :  { %9692 = vrcp.f32 %v7265_v21 }
 0x94c   :  { %v9691_v48 = vpop.eup %9690 }
 0x94d   :  { %7268 = vst.msk [vmem:[#allocation20] sm:$0xff] %vm7209_vm2, %v9691_v48 }
 0x94e   :  { %v9693_v22 = vpop.eup %9692 }
 0x94f   :  { %7269 = vst.msk [vmem:[#allocation20 + $0x8] sm:$0xff] %vm7209_vm2, %v9693_v22 }
 0x950   :  { %7274 = vsyncadd [#allocation4], 224  ;;  %s9994_s8 = smov [#allocation20]  }
 0x951   :  { %s7275_s21 = sshll.u32 %s9994_s8, 4  ;;  %s7276_s21 = int_to_ptr.vmem [resolvable:$true] %s7275_s21 }
 0x952   :  { %s9936_s3 = scalar_lea.vmem %s7276_s21, 32  ;;  %s9940_s18 = scalar_lea.vmem %s7276_s21, 256 }
 0x953   :  { %p9937_p4 = scmp.ne.s32.totalorder %s7276_s21, %s9936_s3  ;;  %p9941_p5 = scmp.lt.s32.totalorder %s7276_s21, %s7276_s21 }
 0x954   :  { %p9942_p6 = scmp.lt.s32.totalorder %s9940_s18, %s9936_s3 }
 0x956   :  { %p9943_p7 = por %p9942_p6, %p9941_p5 }
 0x958   :  { %p9944_p8 = pnand %p9943_p7, %p9937_p4 }
 0x95a   :  { %9947 = shalt.err (!%p9944_p8)
}
 0x95b   :  { %s9948_s25 = scalar_lea.hbm %s10416_s12, 32 }
 0x95c   :  { %p9949_p9 = scmp.ne.s32.totalorder %s10416_s12, %s9948_s25  ;;  %p9952_p10 = scmp.lt.u32.totalorder %s9948_s25, %s10416_s12 }
 0x95e   :  { %p9954_p11 = pnand %p9952_p10, %p9949_p9 }
 0x960   :  { %9957 = shalt.err (!%p9954_p11)
}
 0x961   :  { %s9995_s9 = smov 32   ;;  %s9996_s7 = smov 2  }
 0x962   :  { %7281 = dma.vmem_to_hbm [thread:$0]  %s7276_s21, 32, %s10416_s12, [#allocation4], %s9995_s9, %s9995_s9, %s9996_s7  }
 0x963   :  { %9970 = dma.done.wait [#allocation4], 256  }
 0x964   :  { %9971 = vsyncadd [#allocation4], 4294967040 }
 0x965   :  { %7285 = vsyncpa [#allocation3], 1 }
 0x966   :  { %7286 = vsyncpa [#allocation6], 1 }
 0x967   :  { %7287 = vsyncpa [#allocation9], 1 }
 0x968   :  { %7288 = vsyncpa [#allocation12], 1 }
 0x969   :  { %7289 = vsyncpa [#allocation15], 1 }
 0x96a   :  { %7290 = vsyncpa [#allocation18], 1 }
 0x96b   :  { %7291 = vsyncpa [#allocation4], 1 }

</bundles_post_ra>
